<compile_context>
chip_gen: v7x
topology: tpu7x:2x2x1
jax: 0.10.0
libtpu: 0.0.40
codegen_flags: <defaults>
</compile_context>

<pallas_src>
import functools

import jax
import jax.numpy as jnp
from jax import lax
from jax.experimental import pallas as pl
from jax.experimental.pallas import tpu as pltpu


def _round_up(x, m):
    return (x + m - 1) // m * m


def _repconv_kernel(x_ref, w_ref, b_ref, o_ref, *, m_out, wp):
    # x_ref: (Mtot, Cin)       bf16 flattened zero-padded activation (whole slab)
    # w_ref: (9, Cin, co_blk)  bf16 BN-folded weights (1x1 merged into centre tap)
    # b_ref: (1, co_blk)       f32 combined bias of both BN branches
    # o_ref: (m_out, co_blk)   bf16 outputs at every padded-grid position
    x = x_ref[...]
    acc = None
    for kh in range(3):
        for kw in range(3):
            off = kh * wp + kw                               # constant row shift per tap
            d = jnp.dot(x, w_ref[kh * 3 + kw],
                        preferred_element_type=jnp.float32)  # (Mtot, co_blk) f32
            d = d[off:off + m_out, :]                        # f32 sublane-offset slice
            acc = d if acc is None else acc + d
    z = acc + b_ref[...]
    y = z * pl.reciprocal(1.0 + jnp.exp(-z), approx=True)    # SiLU (exp + rcp -> EUP)
    o_ref[...] = y.astype(o_ref.dtype)


@jax.jit
def repconv_pallas(x_nhwc, w3_hwio, w1_io, bias):
    """x_nhwc: (N,H,W,Cin); w3_hwio: (3,3,Cin,Cout); w1_io: (Cin,Cout); bias: (Cout,)."""
    N, H, W, Cin = x_nhwc.shape
    Cout = w3_hwio.shape[-1]
    Hp, Wp = H + 2, W + 2
    m_out = N * Hp * Wp                 # conv evaluated at every padded position
    guard = Wp + 1                      # largest |row shift| of a 3x3 tap
    m_tot = _round_up(m_out + 2 * guard, 16)

    # Two output-channel tiles per layer: >=2 "parallel" grid steps so both v7x
    # TensorCores split the weight stream; each tile stays >=128 lanes wide.
    assert Cout % 256 == 0, "Cout must be a multiple of 256"
    n_co = 2
    co_blk = Cout // n_co

    # Fold the 1x1 branch into the centre tap of the 3x3 weight; lay out as one
    # contiguous (9, Cin, co_blk) bf16 slab per channel tile.
    w_fold = w3_hwio.at[1, 1].add(w1_io)                              # (3,3,Cin,Cout)
    wk = w_fold.reshape(9, Cin, n_co, co_blk).transpose(2, 0, 1, 3)
    wk = wk.astype(jnp.bfloat16)                                      # (n_co,9,Cin,co_blk)
    b2 = bias.reshape(1, Cout).astype(jnp.float32)

    # bf16 BEFORE padding (halves the activation HBM write), zero-pad H/W by 1,
    # flatten the padded grid to rows, add guard rows for the tap shifts.
    xb = x_nhwc.astype(jnp.bfloat16)
    xp = jnp.pad(xb, ((0, 0), (1, 1), (1, 1), (0, 0)))                # (N,Hp,Wp,Cin)
    xflat = xp.reshape(m_out, Cin)
    xflat = jnp.pad(xflat, ((guard, m_tot - m_out - guard), (0, 0)))  # (m_tot, Cin)

    kernel = functools.partial(_repconv_kernel, m_out=m_out, wp=Wp)
    out = pl.pallas_call(
        kernel,
        out_shape=jax.ShapeDtypeStruct((m_out, Cout), jnp.bfloat16),
        grid_spec=pltpu.PrefetchScalarGridSpec(
            num_scalar_prefetch=0,
            grid=(n_co,),
            in_specs=[
                # whole activation slab, constant block index -> DMA'd once
                pl.BlockSpec((m_tot, Cin), lambda co: (0, 0)),
                # contiguous per-tile weight slab (leading dim squeezed)
                pl.BlockSpec((None, 9, Cin, co_blk), lambda co: (co, 0, 0, 0)),
                pl.BlockSpec((1, co_blk), lambda co: (0, co)),
            ],
            out_specs=pl.BlockSpec((m_out, co_blk), lambda co: (0, co)),
        ),
        compiler_params=pltpu.CompilerParams(
            dimension_semantics=("parallel",),
            vmem_limit_bytes=32 << 20,     # worst layer uses ~10 MB; v7x-safe
        ),
    )(xflat, wk, b2)

    # Drop the outputs computed at padded positions (layout plumbing only).
    y = out.reshape(N, Hp, Wp, Cout)[:, 1:H + 1, 1:W + 1, :]
    return y


def make_repconv_params(key, c1, c2, eps=1e-5):
    """Deterministic RepConv params with BN folded into conv weights + bias."""
    ks = jax.random.split(key, 10)
    # 3x3 branch: conv (bias=False) + BN
    w3 = 0.05 * jax.random.normal(ks[0], (3, 3, c1, c2), jnp.float32)      # HWIO
    g3 = 1.0 + 0.1 * jax.random.normal(ks[1], (c2,), jnp.float32)
    b3 = 0.1 * jax.random.normal(ks[2], (c2,), jnp.float32)
    m3 = 0.1 * jax.random.normal(ks[3], (c2,), jnp.float32)
    v3 = jax.random.uniform(ks[4], (c2,), jnp.float32, 0.5, 1.5)
    # 1x1 branch: conv (bias=False) + BN
    w1 = 0.05 * jax.random.normal(ks[5], (c1, c2), jnp.float32)            # IO
    g1 = 1.0 + 0.1 * jax.random.normal(ks[6], (c2,), jnp.float32)
    b1 = 0.1 * jax.random.normal(ks[7], (c2,), jnp.float32)
    m1 = 0.1 * jax.random.normal(ks[8], (c2,), jnp.float32)
    v1 = jax.random.uniform(ks[9], (c2,), jnp.float32, 0.5, 1.5)

    s3 = g3 / jnp.sqrt(v3 + eps)
    s1 = g1 / jnp.sqrt(v1 + eps)
    w3f = w3 * s3            # scale per output channel (last HWIO axis)
    w1f = w1 * s1
    bias = (b3 - m3 * s3) + (b1 - m1 * s1)
    return w3f, w1f, bias


def ref_repconv(x_nhwc, w3_hwio, w1_io, bias):
    """Pure-JAX f32 reference, two-branch form (same folded BN params)."""
    dn = ("NHWC", "HWIO", "NHWC")
    y3 = lax.conv_general_dilated(x_nhwc, w3_hwio, (1, 1), ((1, 1), (1, 1)),
                                  dimension_numbers=dn)
    y1 = lax.conv_general_dilated(x_nhwc, w1_io[None, None], (1, 1), "VALID",
                                  dimension_numbers=dn)
    z = y3 + y1 + bias
    return z * jax.nn.sigmoid(z)


def ref_repconv_bf16(x_nhwc, w3_hwio, w1_io, bias):
    """Reference matching the kernel's numerics: folded weight + bf16-rounded operands."""
    dn = ("NHWC", "HWIO", "NHWC")
    w_fold = w3_hwio.at[1, 1].add(w1_io)
    xb = x_nhwc.astype(jnp.bfloat16).astype(jnp.float32)
    wb = w_fold.astype(jnp.bfloat16).astype(jnp.float32)
    z = lax.conv_general_dilated(xb, wb, (1, 1), ((1, 1), (1, 1)),
                                 dimension_numbers=dn) + bias
    return z * jax.nn.sigmoid(z)


if __name__ == "__main__":
    key = jax.random.PRNGKey(0)
    kx, kp = jax.random.split(key)
    kx0, kx1, kx2 = jax.random.split(kx, 3)
    kp0, kp1, kp2 = jax.random.split(kp, 3)

    # PyTorch-convention NCHW feature-pyramid inputs (small spatial sizes).
    xs_nchw = [
        jax.random.normal(kx0, (2, 128, 16, 16), jnp.float32),
        jax.random.normal(kx1, (2, 256, 8, 8), jnp.float32),
        jax.random.normal(kx2, (2, 512, 4, 4), jnp.float32),
    ]
    params = [
        make_repconv_params(kp0, 128, 256),
        make_repconv_params(kp1, 256, 512),
        make_repconv_params(kp2, 512, 1024),
    ]

    outs_nchw = []
    for x_nchw, (w3, w1, b) in zip(xs_nchw, params):
        x_nhwc = jnp.transpose(x_nchw, (0, 2, 3, 1))
        y = repconv_pallas(x_nhwc, w3, w1, b).astype(jnp.float32)

        # Tight check against a reference with identical (bf16-rounded) operands.
        y_ref_bf16 = ref_repconv_bf16(x_nhwc, w3, w1, b)
        err_bf16 = float(jnp.max(jnp.abs(y - y_ref_bf16)))
        assert jnp.allclose(y, y_ref_bf16, atol=3e-2, rtol=2e-2), \
            f"bf16-consistent max abs err {err_bf16}"

        # Loose semantic sanity check against the full-f32 two-branch reference
        # (tolerance covers bf16 rounding of operands + bf16 output).
        y_ref_f32 = ref_repconv(x_nhwc, w3, w1, b)
        err_f32 = float(jnp.max(jnp.abs(y - y_ref_f32)))
        assert jnp.allclose(y, y_ref_f32, atol=2.5e-1, rtol=5e-2), \
            f"f32-reference max abs err {err_f32}"

        outs_nchw.append(jnp.transpose(y, (0, 3, 1, 2)))   # back to PyTorch NCHW

    for o in outs_nchw:
        jax.block_until_ready(o)
    print("KERNEL_OK")
</pallas_src>

<mosaic_0001>
module attributes {stable_mosaic.version = 11 : i64} {
  func.func @_repconv_kernel(%arg0: i32, %arg1: memref<688x128xbf16, #tpu.memory_space<vmem>>, %arg2: memref<1x9x128x128xbf16, #tpu.memory_space<vmem>>, %arg3: memref<1x128xf32, #tpu.memory_space<vmem>>, %arg4: memref<648x128xbf16, #tpu.memory_space<vmem>>) attributes {dimension_semantics = [#tpu.dimension_semantics<parallel>], iteration_bounds = array<i64: 2>, scalar_prefetch = 0 : i64, scratch_operands = 0 : i64, tpu.core_type = #tpu.core_type<tc>, window_params = [{pipeline_mode = #tpu.pipeline_mode<synchronous>, transform_indices = @transform_0, window_bounds = array<i64: 688, 128>}, {transform_indices = @transform_1, window_bounds = array<i64: 1, 9, 128, 128>}, {transform_indices = @transform_2, window_bounds = array<i64: 1, 128>}, {transform_indices = @transform_3, window_bounds = array<i64: 648, 128>}]} {
    %c0 = arith.constant 0 : index
    %c0_0 = arith.constant 0 : index
    %0 = vector.load %arg1[%c0, %c0_0] : memref<688x128xbf16, #tpu.memory_space<vmem>>, vector<688x128xbf16>
    %c0_1 = arith.constant 0 : index
    %c0_2 = arith.constant 0 : index
    %c0_3 = arith.constant 0 : index
    %c0_4 = arith.constant 0 : index
    %1 = vector.load %arg2[%c0_1, %c0_2, %c0_3, %c0_4] : memref<1x9x128x128xbf16, #tpu.memory_space<vmem>>, vector<1x1x128x128xbf16>
    %2 = vector.shape_cast %1 : vector<1x1x128x128xbf16> to vector<128x128xbf16>
    %cst = arith.constant dense<0.000000e+00> : vector<688x128xf32>
    %3 = tpu.matmul %0, %2, %cst {dimension_numbers = #tpu.dot_dimension_numbers<[1], [0], [0], [1], [0, 0, 1, 1], [], []>} : vector<688x128xbf16>, vector<128x128xbf16>, vector<688x128xf32> -> vector<688x128xf32>
    %4 = vector.extract_strided_slice %3 {offsets = [0, 0], sizes = [648, 128], strides = [1, 1]} : vector<688x128xf32> to vector<648x128xf32>
    %c0_5 = arith.constant 0 : index
    %c1 = arith.constant 1 : index
    %c0_6 = arith.constant 0 : index
    %c0_7 = arith.constant 0 : index
    %5 = vector.load %arg2[%c0_5, %c1, %c0_6, %c0_7] : memref<1x9x128x128xbf16, #tpu.memory_space<vmem>>, vector<1x1x128x128xbf16>
    %6 = vector.shape_cast %5 : vector<1x1x128x128xbf16> to vector<128x128xbf16>
    %cst_8 = arith.constant dense<0.000000e+00> : vector<688x128xf32>
    %7 = tpu.matmul %0, %6, %cst_8 {dimension_numbers = #tpu.dot_dimension_numbers<[1], [0], [0], [1], [0, 0, 1, 1], [], []>} : vector<688x128xbf16>, vector<128x128xbf16>, vector<688x128xf32> -> vector<688x128xf32>
    %8 = vector.extract_strided_slice %7 {offsets = [1, 0], sizes = [648, 128], strides = [1, 1]} : vector<688x128xf32> to vector<648x128xf32>
    %9 = arith.addf %4, %8 : vector<648x128xf32>
    %c0_9 = arith.constant 0 : index
    %c2 = arith.constant 2 : index
    %c0_10 = arith.constant 0 : index
    %c0_11 = arith.constant 0 : index
    %10 = vector.load %arg2[%c0_9, %c2, %c0_10, %c0_11] : memref<1x9x128x128xbf16, #tpu.memory_space<vmem>>, vector<1x1x128x128xbf16>
    %11 = vector.shape_cast %10 : vector<1x1x128x128xbf16> to vector<128x128xbf16>
    %cst_12 = arith.constant dense<0.000000e+00> : vector<688x128xf32>
    %12 = tpu.matmul %0, %11, %cst_12 {dimension_numbers = #tpu.dot_dimension_numbers<[1], [0], [0], [1], [0, 0, 1, 1], [], []>} : vector<688x128xbf16>, vector<128x128xbf16>, vector<688x128xf32> -> vector<688x128xf32>
    %13 = vector.extract_strided_slice %12 {offsets = [2, 0], sizes = [648, 128], strides = [1, 1]} : vector<688x128xf32> to vector<648x128xf32>
    %14 = arith.addf %9, %13 : vector<648x128xf32>
    %c0_13 = arith.constant 0 : index
    %c3 = arith.constant 3 : index
    %c0_14 = arith.constant 0 : index
    %c0_15 = arith.constant 0 : index
    %15 = vector.load %arg2[%c0_13, %c3, %c0_14, %c0_15] : memref<1x9x128x128xbf16, #tpu.memory_space<vmem>>, vector<1x1x128x128xbf16>
    %16 = vector.shape_cast %15 : vector<1x1x128x128xbf16> to vector<128x128xbf16>
    %cst_16 = arith.constant dense<0.000000e+00> : vector<688x128xf32>
    %17 = tpu.matmul %0, %16, %cst_16 {dimension_numbers = #tpu.dot_dimension_numbers<[1], [0], [0], [1], [0, 0, 1, 1], [], []>} : vector<688x128xbf16>, vector<128x128xbf16>, vector<688x128xf32> -> vector<688x128xf32>
    %18 = vector.extract_strided_slice %17 {offsets = [18, 0], sizes = [648, 128], strides = [1, 1]} : vector<688x128xf32> to vector<648x128xf32>
    %19 = arith.addf %14, %18 : vector<648x128xf32>
    %c0_17 = arith.constant 0 : index
    %c4 = arith.constant 4 : index
    %c0_18 = arith.constant 0 : index
    %c0_19 = arith.constant 0 : index
    %20 = vector.load %arg2[%c0_17, %c4, %c0_18, %c0_19] : memref<1x9x128x128xbf16, #tpu.memory_space<vmem>>, vector<1x1x128x128xbf16>
    %21 = vector.shape_cast %20 : vector<1x1x128x128xbf16> to vector<128x128xbf16>
    %cst_20 = arith.constant dense<0.000000e+00> : vector<688x128xf32>
    %22 = tpu.matmul %0, %21, %cst_20 {dimension_numbers = #tpu.dot_dimension_numbers<[1], [0], [0], [1], [0, 0, 1, 1], [], []>} : vector<688x128xbf16>, vector<128x128xbf16>, vector<688x128xf32> -> vector<688x128xf32>
    %23 = vector.extract_strided_slice %22 {offsets = [19, 0], sizes = [648, 128], strides = [1, 1]} : vector<688x128xf32> to vector<648x128xf32>
    %24 = arith.addf %19, %23 : vector<648x128xf32>
    %c0_21 = arith.constant 0 : index
    %c5 = arith.constant 5 : index
    %c0_22 = arith.constant 0 : index
    %c0_23 = arith.constant 0 : index
    %25 = vector.load %arg2[%c0_21, %c5, %c0_22, %c0_23] : memref<1x9x128x128xbf16, #tpu.memory_space<vmem>>, vector<1x1x128x128xbf16>
    %26 = vector.shape_cast %25 : vector<1x1x128x128xbf16> to vector<128x128xbf16>
    %cst_24 = arith.constant dense<0.000000e+00> : vector<688x128xf32>
    %27 = tpu.matmul %0, %26, %cst_24 {dimension_numbers = #tpu.dot_dimension_numbers<[1], [0], [0], [1], [0, 0, 1, 1], [], []>} : vector<688x128xbf16>, vector<128x128xbf16>, vector<688x128xf32> -> vector<688x128xf32>
    %28 = vector.extract_strided_slice %27 {offsets = [20, 0], sizes = [648, 128], strides = [1, 1]} : vector<688x128xf32> to vector<648x128xf32>
    %29 = arith.addf %24, %28 : vector<648x128xf32>
    %c0_25 = arith.constant 0 : index
    %c6 = arith.constant 6 : index
    %c0_26 = arith.constant 0 : index
    %c0_27 = arith.constant 0 : index
    %30 = vector.load %arg2[%c0_25, %c6, %c0_26, %c0_27] : memref<1x9x128x128xbf16, #tpu.memory_space<vmem>>, vector<1x1x128x128xbf16>
    %31 = vector.shape_cast %30 : vector<1x1x128x128xbf16> to vector<128x128xbf16>
    %cst_28 = arith.constant dense<0.000000e+00> : vector<688x128xf32>
    %32 = tpu.matmul %0, %31, %cst_28 {dimension_numbers = #tpu.dot_dimension_numbers<[1], [0], [0], [1], [0, 0, 1, 1], [], []>} : vector<688x128xbf16>, vector<128x128xbf16>, vector<688x128xf32> -> vector<688x128xf32>
    %33 = vector.extract_strided_slice %32 {offsets = [36, 0], sizes = [648, 128], strides = [1, 1]} : vector<688x128xf32> to vector<648x128xf32>
    %34 = arith.addf %29, %33 : vector<648x128xf32>
    %c0_29 = arith.constant 0 : index
    %c7 = arith.constant 7 : index
    %c0_30 = arith.constant 0 : index
    %c0_31 = arith.constant 0 : index
    %35 = vector.load %arg2[%c0_29, %c7, %c0_30, %c0_31] : memref<1x9x128x128xbf16, #tpu.memory_space<vmem>>, vector<1x1x128x128xbf16>
    %36 = vector.shape_cast %35 : vector<1x1x128x128xbf16> to vector<128x128xbf16>
    %cst_32 = arith.constant dense<0.000000e+00> : vector<688x128xf32>
    %37 = tpu.matmul %0, %36, %cst_32 {dimension_numbers = #tpu.dot_dimension_numbers<[1], [0], [0], [1], [0, 0, 1, 1], [], []>} : vector<688x128xbf16>, vector<128x128xbf16>, vector<688x128xf32> -> vector<688x128xf32>
    %38 = vector.extract_strided_slice %37 {offsets = [37, 0], sizes = [648, 128], strides = [1, 1]} : vector<688x128xf32> to vector<648x128xf32>
    %39 = arith.addf %34, %38 : vector<648x128xf32>
    %c0_33 = arith.constant 0 : index
    %c8 = arith.constant 8 : index
    %c0_34 = arith.constant 0 : index
    %c0_35 = arith.constant 0 : index
    %40 = vector.load %arg2[%c0_33, %c8, %c0_34, %c0_35] : memref<1x9x128x128xbf16, #tpu.memory_space<vmem>>, vector<1x1x128x128xbf16>
    %41 = vector.shape_cast %40 : vector<1x1x128x128xbf16> to vector<128x128xbf16>
    %cst_36 = arith.constant dense<0.000000e+00> : vector<688x128xf32>
    %42 = tpu.matmul %0, %41, %cst_36 {dimension_numbers = #tpu.dot_dimension_numbers<[1], [0], [0], [1], [0, 0, 1, 1], [], []>} : vector<688x128xbf16>, vector<128x128xbf16>, vector<688x128xf32> -> vector<688x128xf32>
    %43 = vector.extract_strided_slice %42 {offsets = [38, 0], sizes = [648, 128], strides = [1, 1]} : vector<688x128xf32> to vector<648x128xf32>
    %44 = arith.addf %39, %43 : vector<648x128xf32>
    %c0_37 = arith.constant 0 : index
    %c0_38 = arith.constant 0 : index
    %45 = vector.load %arg3[%c0_37, %c0_38] : memref<1x128xf32, #tpu.memory_space<vmem>>, vector<1x128xf32>
    %46 = vector.broadcast %45 : vector<1x128xf32> to vector<648x128xf32>
    %47 = arith.addf %44, %46 : vector<648x128xf32>
    %cst_39 = arith.constant 0.000000e+00 : f32
    %48 = vector.broadcast %cst_39 : f32 to vector<648x128xf32>
    %49 = arith.subf %48, %47 : vector<648x128xf32>
    %50 = math.exp %49 : vector<648x128xf32>
    %cst_40 = arith.constant 1.000000e+00 : f32
    %51 = vector.broadcast %cst_40 : f32 to vector<648x128xf32>
    %52 = arith.addf %51, %50 : vector<648x128xf32>
    %53 = tpu.reciprocal %52 {approx = true} : vector<648x128xf32> -> vector<648x128xf32>
    %54 = arith.mulf %47, %53 : vector<648x128xf32>
    %55 = arith.truncf %54 : vector<648x128xf32> to vector<648x128xbf16>
    %c0_41 = arith.constant 0 : index
    %c0_42 = arith.constant 0 : index
    %56 = vector.load %arg4[%c0_41, %c0_42] : memref<648x128xbf16, #tpu.memory_space<vmem>>, vector<648x128xbf16>
    tpu.vector_store %arg4[%c0_41, %c0_42], %55 {strides = array<i32>} : memref<648x128xbf16, #tpu.memory_space<vmem>>, vector<648x128xbf16>,
    return
  }
  func.func @transform_0(%arg0: i32) -> (i32, i32) {
    %c0_i32 = arith.constant 0 : i32
    %c0_i32_0 = arith.constant 0 : i32
    %c0_i32_1 = arith.constant 0 : i32
    return %c0_i32, %c0_i32_0 : i32, i32
  }
  func.func @transform_1(%arg0: i32) -> (i32, i32, i32, i32) {
    %c0_i32 = arith.constant 0 : i32
    %c0_i32_0 = arith.constant 0 : i32
    %c0_i32_1 = arith.constant 0 : i32
    %c0_i32_2 = arith.constant 0 : i32
    return %arg0, %c0_i32, %c0_i32_0, %c0_i32_1 : i32, i32, i32, i32
  }
  func.func @transform_2(%arg0: i32) -> (i32, i32) {
    %c0_i32 = arith.constant 0 : i32
    %c0_i32_0 = arith.constant 0 : i32
    return %c0_i32, %arg0 : i32, i32
  }
  func.func @transform_3(%arg0: i32) -> (i32, i32) {
    %c0_i32 = arith.constant 0 : i32
    %c0_i32_0 = arith.constant 0 : i32
    return %c0_i32, %arg0 : i32, i32
  }
}

</mosaic_0001>

<bundles_post_ra>
// kernel: repconv_pallas.1
= control target key start
LH: loop header
LB: loop body
LE: loop exit
PB: predicated region body
PF: predicated region fallthrough
CT: control target
= control target key end

     0   :  { %s12619_s12 = smov 0   ;;  %s12621_s13 = smov 0   ;;  %s16547_s0 = inlined_call_operand.vmem [shape: bf16[688,128], index: 0, kind: input, shape index: {}]   ;;  %s16548_s1 = inlined_call_operand.vmem [shape: bf16[2,9,128,128], index: 1, kind: input, shape index: {}]   ;;  %s16549_s2 = inlined_call_operand.vmem [shape: f32[1,256], index: 2, kind: input, shape index: {}]   ;;  %s16550_s3 = inlined_call_operand.vmem [shape: bf16[648,256], index: 3, kind: output, shape index: {}]  }
   0x1   :  { %s12623_s14 = smov 0  }
   0x2 LB: > { %s12632_s15 = sadd.s32 4294967295, %s12595_s14   ;;  %s12634_s16 = sadd.s32 1, %s12595_s14   ;;  %s12595_s14 = sphi %s12623_s14, %s16873_s14   ;;  %s12591_s13 = sphi %s12621_s13, %s16872_s13   ;;  %s12587_s12 = sphi %s12619_s12, %s16871_s12  }
   0x3   : > { %s90_s17 = ssub.s32 %s12595_s14, %s12634_s16  ;;  %s93_s18 = sadd.s32 1, %s12591_s13 }
   0x4   : > { %p91_p0 = scmp.eq.s32.totalorder %s90_s17, 0  ;;  %p103_p1 = scmp.ne.s32.totalorder %s12591_s13, %s12587_s12 }
   0x5   : > { %p104_p2 = scmp.eq.s32.totalorder %s12632_s15, 1  ;;  %p9137_p3 = scmp.ge.s32.totalorder %s12595_s14, 1 }
   0x6   : > { %s12642_s19 = scalar_select %p91_p0, %s12591_s13, %s93_s18  }
   0x7   : > { %p12644_p4 = por %p104_p2, %p103_p1  ;;  %p145_p5 = scmp.lt.s32.totalorder %s12595_s14, 3 }
   0x9   : > { %p146_p6 = pnand %p9137_p3, %p145_p5 }
   0xb   : > { %149 = sbr.rel (%p146_p6) target bundleno = 1875 (0x753), region = 32 }
  0x12   : > { %p171_p7 = scmp.lt.s32.totalorder %s12632_s15, 1  ;;  %v16551_v0 = vmov 0.0   ;;  %vm12598_vm0 = vmmov 0   ;;  %v12689_v9 = vld [vmem:[%s16547_s0] sm:$0xff]   ;;  %v11991_v10 = vld [vmem:[%s16547_s0 + $0xb0] sm:$0xff]   ;;  %v12708_v15 = vld [vmem:[%s16547_s0 + $0x8] sm:$0xff]  }
  0x13   : > { %10246 = vmatprep.subr.bf16.mxu0 %v16551_v0  ;;  %11938 = vmatprep.subr.bf16.mxu1 %v16551_v0  ;;  %v11995_v16 = vld [vmem:[%s16547_s0 + $0xb8] sm:$0xff]   ;;  %v12729_v21 = vld [vmem:[%s16547_s0 + $0x10] sm:$0xff]   ;;  %v11997_v22 = vld [vmem:[%s16547_s0 + $0xc0] sm:$0xff]   ;;  %vm1480_vm1 = vcmask 1046528   ;;  %vm2326_vm2 = vcmask 1045504   ;;  %vm4017_vm3 = vcmask 1044480  }
  0x14   : > { %s12652_s21 = scalar_select %p171_p7, %s12632_s15, 1  ;;  %10262 = vmatprep.mubr.msk.bf16.mxu0 %vm12598_vm0, %v16551_v0  ;;  %10350 = vmatprep.mubr.msk.bf16.mxu1 %vm12598_vm0, %v16551_v0  ;;  %v12750_v27 = vld [vmem:[%s16547_s0 + $0x18] sm:$0xff]   ;;  %v12000_v28 = vld [vmem:[%s16547_s0 + $0xc8] sm:$0xff]   ;;  %v12771_v33 = vld [vmem:[%s16547_s0 + $0x20] sm:$0xff]   ;;  %vm4863_vm4 = vcmask 1043456   ;;  %vm6554_vm5 = vcmask 1042432  }
  0x15   : > { %v12003_v34 = vld [vmem:[%s16547_s0 + $0xd0] sm:$0xff]   ;;  %v12788_v35 = vld [vmem:[%s16547_s0 + $0x28] sm:$0xff]   ;;  %v12793_v36 = vld [vmem:[%s16547_s0 + $0xd8] sm:$0xff]   ;;  %vm7400_vm6 = vcmask 1041408   ;;  %s168_s29 = sand.u32 1, %s12587_s12  }
  0x16   : > { %s11955_s22 = smul.u32 576, %s12652_s21  ;;  %v12804_v37 = vld [vmem:[%s16547_s0 + $0x30] sm:$0xff]   ;;  %v12809_v38 = vld [vmem:[%s16547_s0 + $0xe0] sm:$0xff]   ;;  %v12820_v39 = vld [vmem:[%s16547_s0 + $0x38] sm:$0xff]  }
  0x17   : > { %v12825_v40 = vld [vmem:[%s16547_s0 + $0xe8] sm:$0xff]   ;;  %v12836_v41 = vld [vmem:[%s16547_s0 + $0x40] sm:$0xff]   ;;  %v12841_v42 = vld [vmem:[%s16547_s0 + $0xf0] sm:$0xff]   ;;  %s15687_s12 = smul.u32 324, %s168_s29 }
  0x18   : > { %s12662_s25 = scalar_lea.vmem %s16548_s1, %s11955_s22  ;;  %v12852_v43 = vld [vmem:[%s16547_s0 + $0x48] sm:$0xff]   ;;  %v12857_v44 = vld [vmem:[%s16547_s0 + $0xf8] sm:$0xff]   ;;  %v12868_v45 = vld [vmem:[%s16547_s0 + $0x50] sm:$0xff]  }
  0x19   : > { %v11982_v1 = vld [vmem:[%s12662_s25] sm:$0xff]   ;;  %v11983_v2 = vld [vmem:[%s12662_s25 + $0x8] sm:$0xff]   ;;  %v11984_v3 = vld [vmem:[%s12662_s25 + $0x10] sm:$0xff]   ;;  %s15712_s5 = scalar_lea.vmem [#allocation2], %s15687_s12 }
  0x1a   : > { %10247 = vmatpush3.bf16.msra.mxu0 %v11982_v1  ;;  %11946 = vmatpush3.bf16.msra.mxu1 %v11982_v1  ;;  %v11985_v4 = vld [vmem:[%s12662_s25 + $0x18] sm:$0xff]   ;;  %v11986_v5 = vld [vmem:[%s12662_s25 + $0x20] sm:$0xff]   ;;  %v11987_v6 = vld [vmem:[%s12662_s25 + $0x28] sm:$0xff]  }
  0x1b   : > { %10248 = vmatprep.subr.bf16.mxu0 %v16551_v0  ;;  %11939 = vmatprep.subr.bf16.mxu1 %v16551_v0  ;;  %v11988_v7 = vld [vmem:[%s12662_s25 + $0x30] sm:$0xff]   ;;  %v11989_v8 = vld [vmem:[%s12662_s25 + $0x38] sm:$0xff]   ;;  %v11992_v11 = vld [vmem:[%s12662_s25 + $0x80] sm:$0xff]  }
  0x1c   : > { %v11993_v12 = vld [vmem:[%s12662_s25 + $0x40] sm:$0xff]   ;;  %v11998_v13 = vld [vmem:[%s12662_s25 + $0x88] sm:$0xff]   ;;  %v12006_v17 = vld [vmem:[%s12662_s25 + $0x90] sm:$0xff]  }
  0x1d   : > { %v12001_v14 = vld [vmem:[%s12662_s25 + $0x48] sm:$0xff]   ;;  %v12009_v18 = vld [vmem:[%s12662_s25 + $0x50] sm:$0xff]   ;;  %v12014_v19 = vld [vmem:[%s12662_s25 + $0x98] sm:$0xff]  }
  0x1e   : > { %10249 = vmatpush3.bf16.msra.mxu0 %v11983_v2  ;;  %11947 = vmatpush3.bf16.msra.mxu1 %v11983_v2  ;;  %v12015_v20 = vld [vmem:[%s12662_s25 + $0x58] sm:$0xff]   ;;  %v12022_v23 = vld [vmem:[%s12662_s25 + $0xa0] sm:$0xff]   ;;  %v12028_v25 = vld [vmem:[%s12662_s25 + $0xa8] sm:$0xff]  }
  0x1f   : > { %10250 = vmatprep.subr.bf16.mxu0 %v16551_v0  ;;  %11940 = vmatprep.subr.bf16.mxu1 %v16551_v0  ;;  %v12023_v24 = vld [vmem:[%s12662_s25 + $0x60] sm:$0xff]   ;;  %v12031_v26 = vld [vmem:[%s12662_s25 + $0x68] sm:$0xff]   ;;  %v12036_v29 = vld [vmem:[%s12662_s25 + $0x70] sm:$0xff]  }
  0x20   : > { %v12037_v30 = vld [vmem:[%s12662_s25 + $0xb0] sm:$0xff]   ;;  %v12044_v31 = vld [vmem:[%s12662_s25 + $0x78] sm:$0xff]   ;;  %v12019_v46 = vld [vmem:[%s16547_s0 + $0x100] sm:$0xff]  }
  0x21   : > { %v12045_v32 = vld [vmem:[%s12662_s25 + $0xb8] sm:$0xff]   ;;  %v12021_v48 = vld [vmem:[%s16547_s0 + $0x108] sm:$0xff]   ;;  %v12894_v49 = vld [vmem:[%s16547_s0 + $0x60] sm:$0xff]  }
  0x22   : > { %10251 = vmatpush3.bf16.msra.mxu0 %v11984_v3  ;;  %11948 = vmatpush3.bf16.msra.mxu1 %v11984_v3  ;;  %v12881_v47 = vld [vmem:[%s16547_s0 + $0x58] sm:$0xff]   ;;  %v12025_v50 = vld [vmem:[%s16547_s0 + $0x110] sm:$0xff]   ;;  %v12907_v51 = vld [vmem:[%s16547_s0 + $0x68] sm:$0xff]  }
  0x23   : > { %10252 = vmatprep.subr.bf16.mxu0 %v16551_v0  ;;  %11941 = vmatprep.subr.bf16.mxu1 %v16551_v0  ;;  %v12027_v52 = vld [vmem:[%s16547_s0 + $0x118] sm:$0xff]   ;;  %v12920_v53 = vld [vmem:[%s16547_s0 + $0x70] sm:$0xff]   ;;  %v12030_v54 = vld [vmem:[%s16547_s0 + $0x120] sm:$0xff]  }
  0x24   : > { %v12933_v55 = vld [vmem:[%s16547_s0 + $0x78] sm:$0xff]   ;;  %v12033_v56 = vld [vmem:[%s16547_s0 + $0x128] sm:$0xff]   ;;  %v12946_v57 = vld [vmem:[%s16547_s0 + $0x80] sm:$0xff]  }
  0x25   : > { %v12035_v58 = vld [vmem:[%s16547_s0 + $0x130] sm:$0xff]   ;;  %v12959_v59 = vld [vmem:[%s16547_s0 + $0x88] sm:$0xff]   ;;  %v12039_v60 = vld [vmem:[%s16547_s0 + $0x138] sm:$0xff]  }
  0x26   : > { %10253 = vmatpush3.bf16.msra.mxu0 %v11985_v4  ;;  %11949 = vmatpush3.bf16.msra.mxu1 %v11985_v4  ;;  %v12972_v61 = vld [vmem:[%s16547_s0 + $0x90] sm:$0xff]   ;;  %v12041_v62 = vld [vmem:[%s16547_s0 + $0x140] sm:$0xff]   ;;  %v12985_v63 = vld [vmem:[%s16547_s0 + $0x98] sm:$0xff]  }
  0x27   : > { %10254 = vmatprep.subr.bf16.mxu0 %v16551_v0  ;;  %11942 = vmatprep.subr.bf16.mxu1 %v16551_v0  ;;  %v12043_v1 = vld [vmem:[%s16547_s0 + $0x148] sm:$0xff]   ;;  %v12998_v2 = vld [vmem:[%s16547_s0 + $0xa0] sm:$0xff]   ;;  %v12047_v3 = vld [vmem:[%s16547_s0 + $0x150] sm:$0xff]  }
  0x28   : > { %v13011_v4 = vld [vmem:[%s16547_s0 + $0xa8] sm:$0xff]  }
  0x2a   : > { %10255 = vmatpush3.bf16.msra.mxu0 %v11986_v5  ;;  %11950 = vmatpush3.bf16.msra.mxu1 %v11986_v5  ;;  %v12049_v5 = vld [vmem:[%s12662_s25 + $0xc0] sm:$0xff]  }
  0x2b   : > { %10256 = vmatprep.subr.bf16.mxu0 %v16551_v0  ;;  %11943 = vmatprep.subr.bf16.mxu1 %v16551_v0 }
  0x2e   : > { %10257 = vmatpush3.bf16.msra.mxu0 %v11987_v6  ;;  %11951 = vmatpush3.bf16.msra.mxu1 %v11987_v6  ;;  %v12051_v6 = vld [vmem:[%s12662_s25 + $0xc8] sm:$0xff]  }
  0x2f   : > { %10258 = vmatprep.subr.bf16.mxu0 %v16551_v0  ;;  %11944 = vmatprep.subr.bf16.mxu1 %v16551_v0 }
  0x32   : > { %10259 = vmatpush3.bf16.msra.mxu0 %v11988_v7  ;;  %11952 = vmatpush3.bf16.msra.mxu1 %v11988_v7  ;;  %v12050_v7 = vld [vmem:[%s12662_s25 + $0x100] sm:$0xff]  }
  0x33   : > { %10260 = vmatprep.subr.bf16.mxu0 %v16551_v0  ;;  %11945 = vmatprep.subr.bf16.mxu1 %v16551_v0 }
  0x36   : > { %10261 = vmatpush3.bf16.msra.mxu0 %v11989_v8  ;;  %11953 = vmatpush3.bf16.msra.mxu1 %v11989_v8  ;;  %v12053_v8 = vld [vmem:[%s12662_s25 + $0xd0] sm:$0xff]  }
  0x37   : > { %10622 = vmatprep.subr.bf16.mxu0 %v16551_v0  ;;  %10434 = vmatprep.subr.bf16.mxu1 %v16551_v0 }
  0x39   : > { %10263 = vmatmul.mubr.bf16.vlgmr.msra.gmra.mrb[0].mxu0 %v12689_v9  ;;  %10351 = vmatmul.mubr.bf16.vlgmr.msra.gmra.mrb[0].mxu1 %v11991_v10  ;;  %v12052_v10 = vld [vmem:[%s12662_s25 + $0x108] sm:$0xff]  }
  0x3a   : > { %10623 = vmatpush3.bf16.msra.mxu0 %v11992_v11  ;;  %10266 = vmatprep.mubr.msk.bf16.mxu0 %vm12598_vm0, %v16551_v0  ;;  %v12055_v11 = vld [vmem:[%s12662_s25 + $0xd8] sm:$0xff]  }
  0x3b   : > { %10354 = vmatprep.mubr.msk.bf16.mxu1 %vm12598_vm0, %v16551_v0  ;;  %10435 = vmatpush3.bf16.msra.mxu1 %v11993_v12  ;;  %v12054_v12 = vld [vmem:[%s12662_s25 + $0x110] sm:$0xff]  }
  0x3c   : > { %10624 = vmatprep.subr.bf16.mxu0 %v16551_v0  ;;  %10436 = vmatprep.subr.bf16.mxu1 %v16551_v0 }
  0x3e   : > { %10625 = vmatpush3.bf16.msra.mxu0 %v11998_v13 }
  0x3f   : > { %10437 = vmatpush3.bf16.msra.mxu1 %v12001_v14  ;;  %10626 = vmatprep.subr.bf16.mxu0 %v16551_v0 }
  0x40   : > { %10438 = vmatprep.subr.bf16.mxu1 %v16551_v0 }
  0x41   : > { %10267 = vmatmul.mubr.bf16.gmra.mrb[4].mxu0 %v12708_v15  ;;  %10355 = vmatmul.mubr.bf16.gmra.mrb[4].mxu1 %v11995_v16 }
  0x42   : > { %10270 = vmatprep.mubr.msk.bf16.mxu0 %vm12598_vm0, %v16551_v0  ;;  %10358 = vmatprep.mubr.msk.bf16.mxu1 %vm12598_vm0, %v16551_v0 }
  0x43   : > { %10627 = vmatpush3.bf16.msra.mxu0 %v12006_v17  ;;  %10439 = vmatpush3.bf16.msra.mxu1 %v12009_v18 }
  0x44   : > { %10628 = vmatprep.subr.bf16.mxu0 %v16551_v0  ;;  %10440 = vmatprep.subr.bf16.mxu1 %v16551_v0 }
  0x47   : > { %10629 = vmatpush3.bf16.msra.mxu0 %v12014_v19  ;;  %10441 = vmatpush3.bf16.msra.mxu1 %v12015_v20 }
  0x48   : > { %10630 = vmatprep.subr.bf16.mxu0 %v16551_v0  ;;  %10442 = vmatprep.subr.bf16.mxu1 %v16551_v0 }
  0x49   : > { %10271 = vmatmul.mubr.bf16.gmra.mrb[8].mxu0 %v12729_v21  ;;  %10359 = vmatmul.mubr.bf16.gmra.mrb[8].mxu1 %v11997_v22 }
  0x4a   : > { %10274 = vmatprep.mubr.msk.bf16.mxu0 %vm12598_vm0, %v16551_v0  ;;  %10362 = vmatprep.mubr.msk.bf16.mxu1 %vm12598_vm0, %v16551_v0 }
  0x4b   : > { %10631 = vmatpush3.bf16.msra.mxu0 %v12022_v23  ;;  %10443 = vmatpush3.bf16.msra.mxu1 %v12023_v24  ;;  %v12057_v23 = vld [vmem:[%s12662_s25 + $0xe0] sm:$0xff]  }
  0x4c   : > { %10632 = vmatprep.subr.bf16.mxu0 %v16551_v0  ;;  %10444 = vmatprep.subr.bf16.mxu1 %v16551_v0 }
  0x4f   : > { %10633 = vmatpush3.bf16.msra.mxu0 %v12028_v25  ;;  %10445 = vmatpush3.bf16.msra.mxu1 %v12031_v26 }
  0x50   : > { %10446 = vmatprep.subr.bf16.mxu1 %v16551_v0  ;;  %10634 = vmatprep.subr.bf16.mxu0 %v16551_v0 }
  0x51   : > { %10275 = vmatmul.mubr.bf16.gmra.mrb[12].mxu0 %v12750_v27  ;;  %10363 = vmatmul.mubr.bf16.gmra.mrb[12].mxu1 %v12000_v28  ;;  %v12058_v28 = vld [vmem:[%s12662_s25 + $0x120] sm:$0xff]  }
  0x52   : > { %10278 = vmatprep.mubr.msk.bf16.mxu0 %vm12598_vm0, %v16551_v0  ;;  %10366 = vmatprep.mubr.msk.bf16.mxu1 %vm12598_vm0, %v16551_v0 }
  0x53   : > { %10447 = vmatpush3.bf16.msra.mxu1 %v12036_v29  ;;  %10635 = vmatpush3.bf16.msra.mxu0 %v12037_v30 }
  0x54   : > { %10448 = vmatprep.subr.bf16.mxu1 %v16551_v0  ;;  %10636 = vmatprep.subr.bf16.mxu0 %v16551_v0 }
  0x57   : > { %10449 = vmatpush3.bf16.msra.mxu1 %v12044_v31  ;;  %10637 = vmatpush3.bf16.msra.mxu0 %v12045_v32 }
  0x58   : > { %10810 = vmatprep.subr.bf16.mxu1 %v16551_v0  ;;  %10998 = vmatprep.subr.bf16.mxu0 %v16551_v0 }
  0x59   : > { %10279 = vmatmul.mubr.bf16.gmra.mrb[16].mxu0 %v12771_v33  ;;  %10367 = vmatmul.mubr.bf16.gmra.mrb[16].mxu1 %v12003_v34 }
  0x5a   : > { %10282 = vmatprep.mubr.msk.bf16.mxu0 %vm12598_vm0, %v16551_v0  ;;  %10370 = vmatprep.mubr.msk.bf16.mxu1 %vm12598_vm0, %v16551_v0 }
  0x61   : > { %10283 = vmatmul.mubr.bf16.gmra.mrb[20].mxu0 %v12788_v35  ;;  %10371 = vmatmul.mubr.bf16.gmra.mrb[20].mxu1 %v12793_v36 }
  0x62   : > { %10286 = vmatprep.mubr.msk.bf16.mxu0 %vm12598_vm0, %v16551_v0  ;;  %10374 = vmatprep.mubr.msk.bf16.mxu1 %vm12598_vm0, %v16551_v0 }
  0x69   : > { %10287 = vmatmul.mubr.bf16.gmra.mrb[24].mxu0 %v12804_v37  ;;  %10375 = vmatmul.mubr.bf16.gmra.mrb[24].mxu1 %v12809_v38 }
  0x6a   : > { %10290 = vmatprep.mubr.msk.bf16.mxu0 %vm12598_vm0, %v16551_v0  ;;  %10378 = vmatprep.mubr.msk.bf16.mxu1 %vm12598_vm0, %v16551_v0 }
  0x71   : > { %10291 = vmatmul.mubr.bf16.gmra.mrb[28].mxu0 %v12820_v39  ;;  %10379 = vmatmul.mubr.bf16.gmra.mrb[28].mxu1 %v12825_v40 }
  0x72   : > { %10294 = vmatprep.mubr.msk.bf16.mxu0 %vm12598_vm0, %v16551_v0  ;;  %10382 = vmatprep.mubr.msk.bf16.mxu1 %vm12598_vm0, %v16551_v0 }
  0x79   : > { %10295 = vmatmul.mubr.bf16.gmra.mrb[32].mxu0 %v12836_v41  ;;  %10383 = vmatmul.mubr.bf16.gmra.mrb[32].mxu1 %v12841_v42 }
  0x7a   : > { %10298 = vmatprep.mubr.msk.bf16.mxu0 %vm12598_vm0, %v16551_v0  ;;  %10386 = vmatprep.mubr.msk.bf16.mxu1 %vm12598_vm0, %v16551_v0 }
  0x81   : > { %10299 = vmatmul.mubr.bf16.gmra.mrb[36].mxu0 %v12852_v43  ;;  %10387 = vmatmul.mubr.bf16.gmra.mrb[36].mxu1 %v12857_v44 }
  0x82   : > { %10302 = vmatprep.mubr.msk.bf16.mxu0 %vm12598_vm0, %v16551_v0  ;;  %10390 = vmatprep.mubr.msk.bf16.mxu1 %vm12598_vm0, %v16551_v0 }
  0x89   : > { %10303 = vmatmul.mubr.bf16.gmra.mrb[40].mxu0 %v12868_v45  ;;  %10391 = vmatmul.mubr.bf16.gmra.mrb[40].mxu1 %v12019_v46 }
  0x8a   : > { %10306 = vmatprep.mubr.msk.bf16.mxu0 %vm12598_vm0, %v16551_v0  ;;  %10394 = vmatprep.mubr.msk.bf16.mxu1 %vm12598_vm0, %v16551_v0 }
  0x91   : > { %10307 = vmatmul.mubr.bf16.gmra.mrb[44].mxu0 %v12881_v47  ;;  %10395 = vmatmul.mubr.bf16.gmra.mrb[44].mxu1 %v12021_v48 }
  0x92   : > { %10310 = vmatprep.mubr.msk.bf16.mxu0 %vm12598_vm0, %v16551_v0  ;;  %10398 = vmatprep.mubr.msk.bf16.mxu1 %vm12598_vm0, %v16551_v0 }
  0x99   : > { %10311 = vmatmul.mubr.bf16.gmra.mrb[48].mxu0 %v12894_v49  ;;  %10399 = vmatmul.mubr.bf16.gmra.mrb[48].mxu1 %v12025_v50 }
  0x9a   : > { %10314 = vmatprep.mubr.msk.bf16.mxu0 %vm12598_vm0, %v16551_v0  ;;  %10402 = vmatprep.mubr.msk.bf16.mxu1 %vm12598_vm0, %v16551_v0 }
  0xa1   : > { %10315 = vmatmul.mubr.bf16.gmra.mrb[52].mxu0 %v12907_v51  ;;  %10403 = vmatmul.mubr.bf16.gmra.mrb[52].mxu1 %v12027_v52 }
  0xa2   : > { %10318 = vmatprep.mubr.msk.bf16.mxu0 %vm12598_vm0, %v16551_v0  ;;  %10406 = vmatprep.mubr.msk.bf16.mxu1 %vm12598_vm0, %v16551_v0 }
  0xa9   : > { %10319 = vmatmul.mubr.bf16.gmra.mrb[56].mxu0 %v12920_v53  ;;  %10407 = vmatmul.mubr.bf16.gmra.mrb[56].mxu1 %v12030_v54 }
  0xaa   : > { %10322 = vmatprep.mubr.msk.bf16.mxu0 %vm12598_vm0, %v16551_v0  ;;  %10410 = vmatprep.mubr.msk.bf16.mxu1 %vm12598_vm0, %v16551_v0 }
  0xb1   : > { %10323 = vmatmul.mubr.bf16.gmra.mrb[60].mxu0 %v12933_v55  ;;  %10411 = vmatmul.mubr.bf16.gmra.mrb[60].mxu1 %v12033_v56 }
  0xb2   : > { %10326 = vmatprep.mubr.msk.bf16.mxu0 %vm12598_vm0, %v16551_v0  ;;  %10414 = vmatprep.mubr.msk.bf16.mxu1 %vm12598_vm0, %v16551_v0 }
  0xb9   : > { %10327 = vmatmul.mubr.bf16.gmra.mrb[64].mxu0 %v12946_v57  ;;  %10415 = vmatmul.mubr.bf16.gmra.mrb[64].mxu1 %v12035_v58 }
  0xba   : > { %10330 = vmatprep.mubr.msk.bf16.mxu0 %vm12598_vm0, %v16551_v0  ;;  %10418 = vmatprep.mubr.msk.bf16.mxu1 %vm12598_vm0, %v16551_v0 }
  0xc1   : > { %10331 = vmatmul.mubr.bf16.gmra.mrb[68].mxu0 %v12959_v59  ;;  %10419 = vmatmul.mubr.bf16.gmra.mrb[68].mxu1 %v12039_v60 }
  0xc2   : > { %10334 = vmatprep.mubr.msk.bf16.mxu0 %vm12598_vm0, %v16551_v0  ;;  %10422 = vmatprep.mubr.msk.bf16.mxu1 %vm12598_vm0, %v16551_v0 }
  0xc9   : > { %10335 = vmatmul.mubr.bf16.gmra.mrb[72].mxu0 %v12972_v61  ;;  %10423 = vmatmul.mubr.bf16.gmra.mrb[72].mxu1 %v12041_v62 }
  0xca   : > { %10338 = vmatprep.mubr.msk.bf16.mxu0 %vm12598_vm0, %v16551_v0  ;;  %10426 = vmatprep.mubr.msk.bf16.mxu1 %vm12598_vm0, %v16551_v0 }
  0xd1   : > { %10339 = vmatmul.mubr.bf16.gmra.mrb[76].mxu0 %v12985_v63  ;;  %10427 = vmatmul.mubr.bf16.gmra.mrb[76].mxu1 %v12043_v1 }
  0xd2   : > { %10342 = vmatprep.mubr.msk.bf16.mxu0 %vm12598_vm0, %v16551_v0  ;;  %10430 = vmatprep.mubr.msk.bf16.mxu1 %vm12598_vm0, %v16551_v0 }
  0xd9   : > { %10343 = vmatmul.mubr.bf16.gmra.mrb[80].mxu0 %v12998_v2  ;;  %10431 = vmatmul.mubr.bf16.gmra.mrb[80].mxu1 %v12047_v3 }
  0xda   : > { %10346 = vmatprep.mubr.msk.bf16.mxu0 %vm12598_vm0, %v16551_v0  ;;  %10450 = vmatprep.mubr.msk.bf16.mxu1 %vm12598_vm0, %v16551_v0 }
  0xe1   : > { %10347 = vmatmul.mubr.bf16.gmra.mrb[84].mxu0 %v13011_v4  ;;  %10451 = vmatmul.mubr.bf16.vlgmr.msra.gmra.mrb[84].mxu1 %v12689_v9 }
  0xe2   : > { %10454 = vmatprep.mubr.msk.bf16.mxu1 %vm12598_vm0, %v16551_v0  ;;  %10638 = vmatprep.mubr.msk.bf16.mxu0 %vm12598_vm0, %v16551_v0 }
  0xe3   : > { %10811 = vmatpush3.bf16.msra.mxu1 %v12049_v5 }
  0xe4   : > { %10812 = vmatprep.subr.bf16.mxu1 %v16551_v0 }
  0xe7   : > { %10813 = vmatpush3.bf16.msra.mxu1 %v12051_v6 }
  0xe8   : > { %10814 = vmatprep.subr.bf16.mxu1 %v16551_v0 }
  0xe9   : > { %10455 = vmatmul.mubr.bf16.gmra.mrb[88].mxu1 %v12708_v15  ;;  %10639 = vmatmul.mubr.bf16.vlgmr.msra.gmra.mrb[88].mxu0 %v12689_v9  ;;  %v12056_v9 = vld [vmem:[%s12662_s25 + $0x118] sm:$0xff]  }
  0xea   : > { %10999 = vmatpush3.bf16.msra.mxu0 %v12050_v7  ;;  %10458 = vmatprep.mubr.msk.bf16.mxu1 %vm12598_vm0, %v16551_v0 }
  0xeb   : > { %10642 = vmatprep.mubr.msk.bf16.mxu0 %vm12598_vm0, %v16551_v0  ;;  %11000 = vmatprep.subr.bf16.mxu0 %v16551_v0 }
  0xec   : > { %10815 = vmatpush3.bf16.msra.mxu1 %v12053_v8 }
  0xed   : > { %10816 = vmatprep.subr.bf16.mxu1 %v16551_v0 }
  0xee   : > { %11001 = vmatpush3.bf16.msra.mxu0 %v12052_v10 }
  0xef   : > { %11002 = vmatprep.subr.bf16.mxu0 %v16551_v0 }
  0xf0   : > { %10817 = vmatpush3.bf16.msra.mxu1 %v12055_v11 }
  0xf1   : > { %10459 = vmatmul.mubr.bf16.gmra.mrb[92].mxu1 %v12729_v21  ;;  %10643 = vmatmul.mubr.bf16.gmra.mrb[92].mxu0 %v12708_v15 }
  0xf2   : > { %10462 = vmatprep.mubr.msk.bf16.mxu1 %vm12598_vm0, %v16551_v0  ;;  %10646 = vmatprep.mubr.msk.bf16.mxu0 %vm12598_vm0, %v16551_v0 }
  0xf3   : > { %11003 = vmatpush3.bf16.msra.mxu0 %v12054_v12  ;;  %10818 = vmatprep.subr.bf16.mxu1 %v16551_v0 }
  0xf4   : > { %11004 = vmatprep.subr.bf16.mxu0 %v16551_v0  ;;  %10819 = vmatpush3.bf16.msra.mxu1 %v12057_v23 }
  0xf5   : > { %10820 = vmatprep.subr.bf16.mxu1 %v16551_v0 }
  0xf7   : > { %11005 = vmatpush3.bf16.msra.mxu0 %v12056_v9 }
  0xf8   : > { %11006 = vmatprep.subr.bf16.mxu0 %v16551_v0 }
  0xf9   : > { %10463 = vmatmul.mubr.bf16.gmra.mrb[96].mxu1 %v12750_v27  ;;  %10647 = vmatmul.mubr.bf16.gmra.mrb[96].mxu0 %v12729_v21 }
  0xfa   : > { %10466 = vmatprep.mubr.msk.bf16.mxu1 %vm12598_vm0, %v16551_v0  ;;  %10650 = vmatprep.mubr.msk.bf16.mxu0 %vm12598_vm0, %v16551_v0 }
  0xfb   : > { %11007 = vmatpush3.bf16.msra.mxu0 %v12058_v28 }
  0xfc   : > { %11008 = vmatprep.subr.bf16.mxu0 %v16551_v0 }
 0x101   : > { %10467 = vmatmul.mubr.bf16.gmra.mrb[100].mxu1 %v12771_v33  ;;  %10651 = vmatmul.mubr.bf16.gmra.mrb[100].mxu0 %v12750_v27 }
 0x102   : > { %10470 = vmatprep.mubr.msk.bf16.mxu1 %vm12598_vm0, %v16551_v0  ;;  %10654 = vmatprep.mubr.msk.bf16.mxu0 %vm12598_vm0, %v16551_v0 }
 0x109   : > { %10471 = vmatmul.mubr.bf16.gmra.mrb[104].mxu1 %v12788_v35  ;;  %10655 = vmatmul.mubr.bf16.gmra.mrb[104].mxu0 %v12771_v33 }
 0x10a   : > { %10474 = vmatprep.mubr.msk.bf16.mxu1 %vm12598_vm0, %v16551_v0  ;;  %10658 = vmatprep.mubr.msk.bf16.mxu0 %vm12598_vm0, %v16551_v0 }
 0x10c   : > { %v13065_v13 = vpop.f32.mrb[0].mxu0  ;;  %v13067_v14 = vpop.f32.mrb[0].mxu1 }
 0x10d   : > { %16554 = vst [vmem:[#allocation3_spill] sm:$0xff] %v13067_v14  ;;  %v10264_v15 = vpop.f32.mrb[1].mxu0  ;;  %v10352_v16 = vpop.f32.mrb[1].mxu1 }
 0x10e   : > { %v13069_v17 = vpop.f32.mrb[2].mxu0  ;;  %v13071_v18 = vpop.f32.mrb[2].mxu1 }
 0x10f   : > { %16555 = vst [vmem:[#allocation4_spill] sm:$0xff] %v13071_v18  ;;  %v10265_v19 = vpop.f32.mrb[3].mxu0  ;;  %v10353_v20 = vpop.f32.mrb[3].mxu1 }
 0x111   : > { %10475 = vmatmul.mubr.bf16.gmra.mrb[108].mxu1 %v12804_v37  ;;  %10659 = vmatmul.mubr.bf16.gmra.mrb[108].mxu0 %v12788_v35 }
 0x112   : > { %10478 = vmatprep.mubr.msk.bf16.mxu1 %vm12598_vm0, %v16551_v0  ;;  %10662 = vmatprep.mubr.msk.bf16.mxu0 %vm12598_vm0, %v16551_v0 }
 0x114   : > { %v13079_v21 = vpop.f32.mrb[4].mxu0  ;;  %v13081_v22 = vpop.f32.mrb[4].mxu1 }
 0x115   : > { %16556 = vst [vmem:[#allocation5_spill] sm:$0xff] %v13081_v22  ;;  %v10268_v24 = vpop.f32.mrb[5].mxu0  ;;  %v10356_v25 = vpop.f32.mrb[5].mxu1 }
 0x116   : > { %v13084_v26 = vpop.f32.mrb[6].mxu0  ;;  %v13086_v27 = vpop.f32.mrb[6].mxu1 }
 0x117   : > { %16557 = vst [vmem:[#allocation6_spill] sm:$0xff] %v13086_v27  ;;  %v10269_v29 = vpop.f32.mrb[7].mxu0  ;;  %v10357_v30 = vpop.f32.mrb[7].mxu1  ;;  %v16593_v27 = vmov 0.0  }
 0x119   : > { %10479 = vmatmul.mubr.bf16.gmra.mrb[112].mxu1 %v12820_v39  ;;  %10663 = vmatmul.mubr.bf16.gmra.mrb[112].mxu0 %v12804_v37 }
 0x11a   : > { %10482 = vmatprep.mubr.msk.bf16.mxu1 %vm12598_vm0, %v16551_v0  ;;  %10666 = vmatprep.mubr.msk.bf16.mxu0 %vm12598_vm0, %v16551_v0 }
 0x11c   : > { %v13097_v31 = vpop.f32.mrb[8].mxu0  ;;  %v13099_v32 = vpop.f32.mrb[8].mxu1 }
 0x11d   : > { %16558 = vst [vmem:[#allocation7_spill] sm:$0xff] %v13099_v32  ;;  %v10272_v33 = vpop.f32.mrb[9].mxu0  ;;  %v10360_v34 = vpop.f32.mrb[9].mxu1 }
 0x11e   : > { %v13101_v35 = vpop.f32.mrb[10].mxu0  ;;  %v13103_v46 = vpop.f32.mrb[10].mxu1 }
 0x11f   : > { %16559 = vst [vmem:[#allocation8_spill] sm:$0xff] %v13103_v46  ;;  %v10273_v48 = vpop.f32.mrb[11].mxu0  ;;  %v10361_v37 = vpop.f32.mrb[11].mxu1 }
 0x120   : > { %v12060_v48 = vld [vmem:[%s12662_s25 + $0x128] sm:$0xff]  }
 0x121   : > { %10483 = vmatmul.mubr.bf16.gmra.mrb[116].mxu1 %v12836_v41  ;;  %10667 = vmatmul.mubr.bf16.gmra.mrb[116].mxu0 %v12820_v39 }
 0x122   : > { %10486 = vmatprep.mubr.msk.bf16.mxu1 %vm12598_vm0, %v16551_v0  ;;  %10670 = vmatprep.mubr.msk.bf16.mxu0 %vm12598_vm0, %v16551_v0 }
 0x123   : > { %11009 = vmatpush3.bf16.msra.mxu0 %v12060_v48 }
 0x124   : > { %v13111_v50 = vpop.f32.mrb[12].mxu0  ;;  %v13113_v52 = vpop.f32.mrb[12].mxu1  ;;  %11010 = vmatprep.subr.bf16.mxu0 %v16551_v0 }
 0x125   : > { %16560 = vst [vmem:[#allocation9_spill] sm:$0xff] %v13113_v52  ;;  %v10276_v54 = vpop.f32.mrb[13].mxu0  ;;  %v10364_v56 = vpop.f32.mrb[13].mxu1 }
 0x126   : > { %v13115_v58 = vpop.f32.mrb[14].mxu0  ;;  %v13117_v60 = vpop.f32.mrb[14].mxu1 }
 0x127   : > { %16561 = vst [vmem:[#allocation10_spill] sm:$0xff] %v13117_v60  ;;  %v10277_v62 = vpop.f32.mrb[15].mxu0  ;;  %v10365_v1 = vpop.f32.mrb[15].mxu1 }
 0x129   : > { %10487 = vmatmul.mubr.bf16.gmra.mrb[120].mxu1 %v12852_v43  ;;  %10671 = vmatmul.mubr.bf16.gmra.mrb[120].mxu0 %v12836_v41 }
 0x12a   : > { %10490 = vmatprep.mubr.msk.bf16.mxu1 %vm12598_vm0, %v16551_v0  ;;  %10674 = vmatprep.mubr.msk.bf16.mxu0 %vm12598_vm0, %v16551_v0 }
 0x12c   : > { %v13125_v39 = vpop.f32.mrb[16].mxu0  ;;  %v13127_v3 = vpop.f32.mrb[16].mxu1 }
 0x12d   : > { %16562 = vst [vmem:[#allocation11_spill] sm:$0xff] %v13127_v3  ;;  %v10280_v5 = vpop.f32.mrb[17].mxu0  ;;  %v10368_v6 = vpop.f32.mrb[17].mxu1 }
 0x12e   : > { %v13129_v7 = vpop.f32.mrb[18].mxu0  ;;  %v13131_v8 = vpop.f32.mrb[18].mxu1 }
 0x12f   : > { %16563 = vst [vmem:[#allocation12_spill] sm:$0xff] %v13131_v8  ;;  %v10281_v10 = vpop.f32.mrb[19].mxu0  ;;  %v10369_v11 = vpop.f32.mrb[19].mxu1 }
 0x131   : > { %10491 = vmatmul.mubr.bf16.gmra.mrb[124].mxu1 %v12868_v45  ;;  %10675 = vmatmul.mubr.bf16.gmra.mrb[124].mxu0 %v12852_v43 }
 0x132   : > { %10494 = vmatprep.mubr.msk.bf16.mxu1 %vm12598_vm0, %v16551_v0  ;;  %10678 = vmatprep.mubr.msk.bf16.mxu0 %vm12598_vm0, %v16551_v0 }
 0x134   : > { %v13139_v41 = vpop.f32.mrb[20].mxu0  ;;  %v13141_v12 = vpop.f32.mrb[20].mxu1 }
 0x135   : > { %16564 = vst [vmem:[#allocation13_spill] sm:$0xff] %v13141_v12  ;;  %v10284_v9 = vpop.f32.mrb[21].mxu0  ;;  %v10372_v15 = vpop.f32.mrb[21].mxu1 }
 0x136   : > { %v13143_v16 = vpop.f32.mrb[22].mxu0  ;;  %v13145_v19 = vpop.f32.mrb[22].mxu1 }
 0x137   : > { %16565 = vst [vmem:[#allocation14_spill] sm:$0xff] %v13145_v19  ;;  %v10285_v20 = vpop.f32.mrb[23].mxu0  ;;  %v10373_v23 = vpop.f32.mrb[23].mxu1 }
 0x139   : > { %10495 = vmatmul.mubr.bf16.gmra.mrb[128].mxu1 %v12881_v47  ;;  %10679 = vmatmul.mubr.bf16.gmra.mrb[128].mxu0 %v12868_v45  ;;  %v12059_v45 = vld [vmem:[%s12662_s25 + $0xe8] sm:$0xff]  }
 0x13a   : > { %10498 = vmatprep.mubr.msk.bf16.mxu1 %vm12598_vm0, %v16551_v0  ;;  %10682 = vmatprep.mubr.msk.bf16.mxu0 %vm12598_vm0, %v16551_v0 }
 0x13b   : > { %10821 = vmatpush3.bf16.msra.mxu1 %v12059_v45 }
 0x13c   : > { %v13153_v43 = vpop.f32.mrb[24].mxu0  ;;  %v13155_v24 = vpop.f32.mrb[24].mxu1  ;;  %10822 = vmatprep.subr.bf16.mxu1 %v16551_v0 }
 0x13d   : > { %16566 = vst [vmem:[#allocation15_spill] sm:$0xff] %v13155_v24  ;;  %v10288_v25 = vpop.f32.mrb[25].mxu0  ;;  %v10376_v28 = vpop.f32.mrb[25].mxu1 }
 0x13e   : > { %v13157_v29 = vpop.f32.mrb[26].mxu0  ;;  %v13159_v30 = vpop.f32.mrb[26].mxu1 }
 0x13f   : > { %16567 = vst [vmem:[#allocation16_spill] sm:$0xff] %v13159_v30  ;;  %v10289_v33 = vpop.f32.mrb[27].mxu0  ;;  %v10377_v34 = vpop.f32.mrb[27].mxu1  ;;  %v12422_v30 = vld [vmem:[%s16547_s0 + $0xb8] sm:$0xff]  }
 0x141   : > { %10499 = vmatmul.mubr.bf16.gmra.mrb[132].mxu1 %v12894_v49  ;;  %10683 = vmatmul.mubr.bf16.gmra.mrb[132].mxu0 %v12881_v47 }
 0x142   : > { %10502 = vmatprep.mubr.msk.bf16.mxu1 %vm12598_vm0, %v16551_v0  ;;  %10686 = vmatprep.mubr.msk.bf16.mxu0 %vm12598_vm0, %v16551_v0 }
 0x144   : > { %v13169_v37 = vpop.f32.mrb[28].mxu0  ;;  %v13171_v54 = vpop.f32.mrb[28].mxu1 }
 0x145   : > { %16568 = vst [vmem:[#allocation17_spill] sm:$0xff] %v13171_v54  ;;  %v10292_v56 = vpop.f32.mrb[29].mxu0  ;;  %v10380_v62 = vpop.f32.mrb[29].mxu1 }
 0x146   : > { %v13175_v47 = vpop.f32.mrb[30].mxu0  ;;  %v13177_v1 = vpop.f32.mrb[30].mxu1 }
 0x147   : > { %16569 = vst [vmem:[#allocation18_spill] sm:$0xff] %v13177_v1  ;;  %v10293_v5 = vpop.f32.mrb[31].mxu0  ;;  %v10381_v6 = vpop.f32.mrb[31].mxu1 }
 0x149   : > { %10503 = vmatmul.mubr.bf16.gmra.mrb[136].mxu1 %v12907_v51  ;;  %10687 = vmatmul.mubr.bf16.gmra.mrb[136].mxu0 %v12894_v49 }
 0x14a   : > { %10506 = vmatprep.mubr.msk.bf16.mxu1 %vm12598_vm0, %v16551_v0  ;;  %10690 = vmatprep.mubr.msk.bf16.mxu0 %vm12598_vm0, %v16551_v0 }
 0x14c   : > { %v13185_v10 = vpop.f32.mrb[32].mxu0  ;;  %v13187_v11 = vpop.f32.mrb[32].mxu1 }
 0x14d   : > { %16570 = vst [vmem:[#allocation19_spill] sm:$0xff] %v13187_v11  ;;  %v10296_v9 = vpop.f32.mrb[33].mxu0  ;;  %v10384_v15 = vpop.f32.mrb[33].mxu1 }
 0x14e   : > { %v13189_v20 = vpop.f32.mrb[34].mxu0  ;;  %v13191_v23 = vpop.f32.mrb[34].mxu1 }
 0x14f   : > { %16571 = vst [vmem:[#allocation20_spill] sm:$0xff] %v13191_v23  ;;  %v10297_v25 = vpop.f32.mrb[35].mxu0  ;;  %v10385_v28 = vpop.f32.mrb[35].mxu1 }
 0x151   : > { %10507 = vmatmul.mubr.bf16.gmra.mrb[140].mxu1 %v12920_v53  ;;  %10691 = vmatmul.mubr.bf16.gmra.mrb[140].mxu0 %v12907_v51 }
 0x152   : > { %10510 = vmatprep.mubr.msk.bf16.mxu1 %vm12598_vm0, %v16551_v0  ;;  %10694 = vmatprep.mubr.msk.bf16.mxu0 %vm12598_vm0, %v16551_v0 }
 0x154   : > { %v13199_v49 = vpop.f32.mrb[36].mxu0  ;;  %v13201_v33 = vpop.f32.mrb[36].mxu1 }
 0x155   : > { %16572 = vst [vmem:[#allocation21_spill] sm:$0xff] %v13201_v33  ;;  %v10300_v34 = vpop.f32.mrb[37].mxu0  ;;  %v10388_v45 = vpop.f32.mrb[37].mxu1 }
 0x156   : > { %v13203_v48 = vpop.f32.mrb[38].mxu0  ;;  %v13205_v56 = vpop.f32.mrb[38].mxu1 }
 0x157   : > { %16573 = vst [vmem:[#allocation22_spill] sm:$0xff] %v13205_v56  ;;  %v10301_v62 = vpop.f32.mrb[39].mxu0  ;;  %v10389_v5 = vpop.f32.mrb[39].mxu1  ;;  %v12062_v56 = vld [vmem:[%s12662_s25 + $0x130] sm:$0xff]  }
 0x158   : > { %11011 = vmatpush3.bf16.msra.mxu0 %v12062_v56 }
 0x159   : > { %10511 = vmatmul.mubr.bf16.gmra.mrb[144].mxu1 %v12933_v55  ;;  %10695 = vmatmul.mubr.bf16.gmra.mrb[144].mxu0 %v12920_v53 }
 0x15a   : > { %10514 = vmatprep.mubr.msk.bf16.mxu1 %vm12598_vm0, %v16551_v0  ;;  %10698 = vmatprep.mubr.msk.bf16.mxu0 %vm12598_vm0, %v16551_v0 }
 0x15b   : > { %11012 = vmatprep.subr.bf16.mxu0 %v16551_v0 }
 0x15c   : > { %v13213_v51 = vpop.f32.mrb[40].mxu0  ;;  %v13215_v6 = vpop.f32.mrb[40].mxu1 }
 0x15d   : > { %16574 = vst [vmem:[#allocation23_spill] sm:$0xff] %v13215_v6  ;;  %v10304_v9 = vpop.f32.mrb[41].mxu0  ;;  %v10392_v15 = vpop.f32.mrb[41].mxu1 }
 0x15e   : > { %v13217_v25 = vpop.f32.mrb[42].mxu0  ;;  %v13219_v28 = vpop.f32.mrb[42].mxu1 }
 0x15f   : > { %16575 = vst [vmem:[#allocation24_spill] sm:$0xff] %v13219_v28  ;;  %v10305_v34 = vpop.f32.mrb[43].mxu0  ;;  %v10393_v45 = vpop.f32.mrb[43].mxu1 }
 0x161   : > { %10515 = vmatmul.mubr.bf16.gmra.mrb[148].mxu1 %v12946_v57  ;;  %10699 = vmatmul.mubr.bf16.gmra.mrb[148].mxu0 %v12933_v55  ;;  %v12061_v55 = vld [vmem:[%s12662_s25 + $0xf0] sm:$0xff]  }
 0x162   : > { %10518 = vmatprep.mubr.msk.bf16.mxu1 %vm12598_vm0, %v16551_v0  ;;  %10702 = vmatprep.mubr.msk.bf16.mxu0 %vm12598_vm0, %v16551_v0 }
 0x163   : > { %10823 = vmatpush3.bf16.msra.mxu1 %v12061_v55 }
 0x164   : > { %v13227_v53 = vpop.f32.mrb[44].mxu0  ;;  %v13229_v62 = vpop.f32.mrb[44].mxu1  ;;  %10824 = vmatprep.subr.bf16.mxu1 %v16551_v0 }
 0x165   : > { %16576 = vst [vmem:[#allocation25_spill] sm:$0xff] %v13229_v62  ;;  %v10308_v5 = vpop.f32.mrb[45].mxu0  ;;  %v10396_v9 = vpop.f32.mrb[45].mxu1 }
 0x166   : > { %v13231_v15 = vpop.f32.mrb[46].mxu0  ;;  %v13233_v34 = vpop.f32.mrb[46].mxu1 }
 0x167   : > { %16577 = vst [vmem:[#allocation26_spill] sm:$0xff] %v13233_v34  ;;  %v10309_v45 = vpop.f32.mrb[47].mxu0  ;;  %v10397_v28 = vpop.f32.mrb[47].mxu1 }
 0x169   : > { %10519 = vmatmul.mubr.bf16.gmra.mrb[152].mxu1 %v12959_v59  ;;  %10703 = vmatmul.mubr.bf16.gmra.mrb[152].mxu0 %v12946_v57 }
 0x16a   : > { %10522 = vmatprep.mubr.msk.bf16.mxu1 %vm12598_vm0, %v16551_v0  ;;  %10706 = vmatprep.mubr.msk.bf16.mxu0 %vm12598_vm0, %v16551_v0 }
 0x16c   : > { %v13242_v5 = vpop.f32.mrb[48].mxu0  ;;  %v13244_v9 = vpop.f32.mrb[48].mxu1 }
 0x16d   : > { %16578 = vst [vmem:[#allocation27_spill] sm:$0xff] %v13244_v9  ;;  %v10312_v34 = vpop.f32.mrb[49].mxu0  ;;  %v10400_v45 = vpop.f32.mrb[49].mxu1 }
 0x16e   : > { %v13247_v28 = vpop.f32.mrb[50].mxu0  ;;  %v13249_v62 = vpop.f32.mrb[50].mxu1 }
 0x16f   : > { %16579 = vst [vmem:[#allocation28_spill] sm:$0xff] %v13249_v62  ;;  %v10313_v57 = vpop.f32.mrb[51].mxu0  ;;  %v10401_v6 = vpop.f32.mrb[51].mxu1 }
 0x171   : > { %10523 = vmatmul.mubr.bf16.gmra.mrb[156].mxu1 %v12972_v61  ;;  %10707 = vmatmul.mubr.bf16.gmra.mrb[156].mxu0 %v12959_v59 }
 0x172   : > { %10526 = vmatprep.mubr.msk.bf16.mxu1 %vm12598_vm0, %v16551_v0  ;;  %10710 = vmatprep.mubr.msk.bf16.mxu0 %vm12598_vm0, %v16551_v0 }
 0x174   : > { %v13258_v34 = vpop.f32.mrb[52].mxu0  ;;  %v13260_v55 = vpop.f32.mrb[52].mxu1 }
 0x175   : > { %16580 = vst [vmem:[#allocation29_spill] sm:$0xff] %v13260_v55  ;;  %v10316_v45 = vpop.f32.mrb[53].mxu0  ;;  %v10404_v6 = vpop.f32.mrb[53].mxu1 }
 0x176   : > { %v13263_v57 = vpop.f32.mrb[54].mxu0  ;;  %v13265_v62 = vpop.f32.mrb[54].mxu1 }
 0x177   : > { %16581 = vst [vmem:[#allocation30_spill] sm:$0xff] %v13265_v62  ;;  %v10317_v59 = vpop.f32.mrb[55].mxu0  ;;  %v10405_v9 = vpop.f32.mrb[55].mxu1 }
 0x179   : > { %10527 = vmatmul.mubr.bf16.gmra.mrb[160].mxu1 %v12985_v63  ;;  %10711 = vmatmul.mubr.bf16.gmra.mrb[160].mxu0 %v12972_v61 }
 0x17a   : > { %10530 = vmatprep.mubr.msk.bf16.mxu1 %vm12598_vm0, %v16551_v0  ;;  %10714 = vmatprep.mubr.msk.bf16.mxu0 %vm12598_vm0, %v16551_v0 }
 0x17c   : > { %v13273_v56 = vpop.f32.mrb[56].mxu0  ;;  %v13275_v45 = vpop.f32.mrb[56].mxu1 }
 0x17d   : > { %16582 = vst [vmem:[#allocation31_spill] sm:$0xff] %v13275_v45  ;;  %v10320_v6 = vpop.f32.mrb[57].mxu0  ;;  %v10408_v55 = vpop.f32.mrb[57].mxu1 }
 0x17e   : > { %v13277_v33 = vpop.f32.mrb[58].mxu0  ;;  %v13279_v59 = vpop.f32.mrb[58].mxu1 }
 0x17f   : > { %16583 = vst [vmem:[#allocation32_spill] sm:$0xff] %v13279_v59  ;;  %v10321_v9 = vpop.f32.mrb[59].mxu0  ;;  %v10409_v62 = vpop.f32.mrb[59].mxu1 }
 0x181   : > { %10531 = vmatmul.mubr.bf16.gmra.mrb[164].mxu1 %v12998_v2  ;;  %10715 = vmatmul.mubr.bf16.gmra.mrb[164].mxu0 %v12985_v63 }
 0x182   : > { %10534 = vmatprep.mubr.msk.bf16.mxu1 %vm12598_vm0, %v16551_v0  ;;  %10718 = vmatprep.mubr.msk.bf16.mxu0 %vm12598_vm0, %v16551_v0 }
 0x184   : > { %v13287_v61 = vpop.f32.mrb[60].mxu0  ;;  %v13289_v6 = vpop.f32.mrb[60].mxu1 }
 0x185   : > { %16584 = vst [vmem:[#allocation33_spill] sm:$0xff] %v13289_v6  ;;  %v10324_v55 = vpop.f32.mrb[61].mxu0  ;;  %v10412_v45 = vpop.f32.mrb[61].mxu1 }
 0x186   : > { %v13291_v23 = vpop.f32.mrb[62].mxu0  ;;  %v13293_v9 = vpop.f32.mrb[62].mxu1 }
 0x187   : > { %16585 = vst [vmem:[#allocation34_spill] sm:$0xff] %v13293_v9  ;;  %v10325_v62 = vpop.f32.mrb[63].mxu0  ;;  %v10413_v59 = vpop.f32.mrb[63].mxu1 }
 0x189   : > { %10535 = vmatmul.mubr.bf16.gmra.mrb[168].mxu1 %v13011_v4  ;;  %10719 = vmatmul.mubr.bf16.gmra.mrb[168].mxu0 %v12998_v2  ;;  %v12421_v2 = vld [vmem:[%s16547_s0 + $0xb0] sm:$0xff]  }
 0x18a   : > { %10538 = vmatprep.mubr.msk.bf16.mxu1 %vm12598_vm0, %v16551_v0  ;;  %10722 = vmatprep.mubr.msk.bf16.mxu0 %vm12598_vm0, %v16551_v0 }
 0x18c   : > { %v13301_v63 = vpop.f32.mrb[64].mxu0  ;;  %v13303_v55 = vpop.f32.mrb[64].mxu1 }
 0x18d   : > { %16586 = vst [vmem:[#allocation35_spill] sm:$0xff] %v13303_v55  ;;  %v10328_v45 = vpop.f32.mrb[65].mxu0  ;;  %v10416_v6 = vpop.f32.mrb[65].mxu1 }
 0x18e   : > { %v13305_v11 = vpop.f32.mrb[66].mxu0  ;;  %v13307_v62 = vpop.f32.mrb[66].mxu1 }
 0x18f   : > { %16587 = vst [vmem:[#allocation36_spill] sm:$0xff] %v13307_v62  ;;  %v10329_v59 = vpop.f32.mrb[67].mxu0  ;;  %v10417_v9 = vpop.f32.mrb[67].mxu1 }
 0x191   : > { %10539 = vmatmul.mubr.bf16.gmra.mrb[172].mxu1 %v12421_v2  ;;  %10723 = vmatmul.mubr.bf16.gmra.mrb[172].mxu0 %v13011_v4  ;;  %v12063_v4 = vld [vmem:[%s12662_s25 + $0xf8] sm:$0xff]  }
 0x192   : > { %10542 = vmatprep.mubr.msk.bf16.mxu1 %vm12598_vm0, %v16551_v0  ;;  %10726 = vmatprep.mubr.msk.bf16.mxu0 %vm12598_vm0, %v16551_v0 }
 0x193   : > { %10825 = vmatpush3.bf16.msra.mxu1 %v12063_v4  ;;  %v12423_v4 = vld [vmem:[%s16547_s0 + $0xc0] sm:$0xff]  }
 0x194   : > { %v13317_v6 = vpop.f32.mrb[68].mxu0  ;;  %v13319_v45 = vpop.f32.mrb[68].mxu1  ;;  %11186 = vmatprep.subr.bf16.mxu1 %v16551_v0 }
 0x195   : > { %16588 = vst [vmem:[#allocation37_spill] sm:$0xff] %v13319_v45  ;;  %v10332_v59 = vpop.f32.mrb[69].mxu0  ;;  %v10420_v9 = vpop.f32.mrb[69].mxu1 }
 0x196   : > { %v13321_v62 = vpop.f32.mrb[70].mxu0  ;;  %v13323_v55 = vpop.f32.mrb[70].mxu1  ;;  %v12064_v59 = vld [vmem:[%s12662_s25 + $0x138] sm:$0xff]  }
 0x197   : > { %16589 = vst [vmem:[#allocation38_spill] sm:$0xff] %v13323_v55  ;;  %v10333_v1 = vpop.f32.mrb[71].mxu0  ;;  %v10421_v54 = vpop.f32.mrb[71].mxu1  ;;  %11013 = vmatpush3.bf16.msra.mxu0 %v12064_v59 }
 0x198   : > { %11374 = vmatprep.subr.bf16.mxu0 %v16551_v0 }
 0x199   : > { %10543 = vmatmul.mubr.bf16.gmra.mrb[176].mxu1 %v12422_v30  ;;  %10727 = vmatmul.mubr.bf16.gmra.mrb[176].mxu0 %v12421_v2 }
 0x19a   : > { %10546 = vmatprep.mubr.msk.bf16.mxu1 %vm12598_vm0, %v16551_v0  ;;  %10730 = vmatprep.mubr.msk.bf16.mxu0 %vm12598_vm0, %v16551_v0 }
 0x19c   : > { %v13334_v9 = vpop.f32.mrb[72].mxu0  ;;  %v13336_v55 = vpop.f32.mrb[72].mxu1 }
 0x19d   : > { %16590 = vst [vmem:[#allocation39_spill] sm:$0xff] %v13336_v55  ;;  %v10336_v54 = vpop.f32.mrb[73].mxu0  ;;  %v10424_v1 = vpop.f32.mrb[73].mxu1 }
 0x19e   : > { %v13340_v2 = vpop.f32.mrb[74].mxu0  ;;  %v945_v45 = vpop.f32.mrb[74].mxu1 }
 0x19f   : > { %v10337_v24 = vpop.f32.mrb[75].mxu0  ;;  %v10425_v19 = vpop.f32.mrb[75].mxu1 }
 0x1a1   : > { %10547 = vmatmul.mubr.bf16.gmra.mrb[180].mxu1 %v12423_v4  ;;  %10731 = vmatmul.mubr.bf16.gmra.mrb[180].mxu0 %v12422_v30  ;;  %v12424_v30 = vld [vmem:[%s16547_s0 + $0xc8] sm:$0xff]  }
 0x1a2   : > { %10550 = vmatprep.mubr.msk.bf16.mxu1 %vm12598_vm0, %v16551_v0  ;;  %10734 = vmatprep.mubr.msk.bf16.mxu0 %vm12598_vm0, %v16551_v0 }
 0x1a4   : > { %v13349_v59 = vpop.f32.mrb[76].mxu0  ;;  %v949_v54 = vpop.f32.mrb[76].mxu1 }
 0x1a5   : > { %v10340_v1 = vpop.f32.mrb[77].mxu0  ;;  %v10428_v55 = vpop.f32.mrb[77].mxu1 }
 0x1a6   : > { %v13351_v45 = vpop.f32.mrb[78].mxu0  ;;  %v951_v19 = vpop.f32.mrb[78].mxu1 }
 0x1a7   : > { %v10341_v24 = vpop.f32.mrb[79].mxu0  ;;  %v10429_v12 = vpop.f32.mrb[79].mxu1 }
 0x1a9   : > { %10551 = vmatmul.mubr.bf16.gmra.mrb[184].mxu1 %v12424_v30  ;;  %10735 = vmatmul.mubr.bf16.gmra.mrb[184].mxu0 %v12423_v4  ;;  %v12425_v4 = vld [vmem:[%s16547_s0 + $0xd0] sm:$0xff]  }
 0x1aa   : > { %10554 = vmatprep.mubr.msk.bf16.mxu1 %vm12598_vm0, %v16551_v0  ;;  %10738 = vmatprep.mubr.msk.bf16.mxu0 %vm12598_vm0, %v16551_v0 }
 0x1ac   : > { %v13360_v54 = vpop.f32.mrb[80].mxu0  ;;  %v955_v55 = vpop.f32.mrb[80].mxu1 }
 0x1ad   : > { %v10344_v1 = vpop.f32.mrb[81].mxu0  ;;  %v10432_v8 = vpop.f32.mrb[81].mxu1 }
 0x1ae   : > { %v13362_v19 = vpop.f32.mrb[82].mxu0  ;;  %v957_v12 = vpop.f32.mrb[82].mxu1 }
 0x1af   : > { %v10345_v24 = vpop.f32.mrb[83].mxu0  ;;  %v10433_v3 = vpop.f32.mrb[83].mxu1 }
 0x1b1   : > { %10555 = vmatmul.mubr.bf16.gmra.mrb[188].mxu1 %v12425_v4  ;;  %10739 = vmatmul.mubr.bf16.gmra.mrb[188].mxu0 %v12424_v30 }
 0x1b2   : > { %10558 = vmatprep.mubr.msk.bf16.mxu1 %vm12598_vm0, %v16551_v0  ;;  %10742 = vmatprep.mubr.msk.bf16.mxu0 %vm12598_vm0, %v16551_v0 }
 0x1b4   : > { %v13371_v55 = vpop.f32.mrb[84].mxu0  ;;  %v1059_v8 = vpop.f32.mrb[84].mxu1 }
 0x1b5   : > { %16591 = vst [vmem:[#allocation40_spill] sm:$0xff] %v13371_v55  ;;  %v1481_v1 = vrot.slane %v1059_v8, 1  ;;  %v10348_v60 = vpop.f32.mrb[85].mxu0  ;;  %v10452_v12 = vpop.f32.mrb[85].mxu1 }
 0x1b6   : > { %v13373_v24 = vpop.f32.mrb[86].mxu0  ;;  %v1062_v3 = vpop.f32.mrb[86].mxu1 }
 0x1b7   : > { %16592 = vst [vmem:[#allocation41_spill] sm:$0xff] %v13373_v24  ;;  %v1482_v52 = vrot.slane %v1062_v3, 1  ;;  %v10349_v46 = vpop.f32.mrb[87].mxu0  ;;  %v10453_v32 = vpop.f32.mrb[87].mxu1 }
 0x1b9   : > { %v1483_v30 = vsel %vm1480_vm1, %v1481_v1, %v1482_v52  ;;  %10559 = vmatmul.mubr.bf16.gmra.mrb[192].mxu1 %v12793_v36  ;;  %10743 = vmatmul.mubr.bf16.gmra.mrb[192].mxu0 %v12425_v4 }
 0x1ba   : > { %v1725_v0 = vadd.f32 %v1483_v30, %v13065_v13  ;;  %10562 = vmatprep.mubr.msk.bf16.mxu1 %vm12598_vm0, %v16593_v27  ;;  %10746 = vmatprep.mubr.msk.bf16.mxu0 %vm12598_vm0, %v16593_v27 }
 0x1bc   : > { %v1067_v60 = vpop.f32.mrb[88].mxu1  ;;  %v1905_v8 = vpop.f32.mrb[88].mxu0 }
 0x1bd   : > { %v1484_v12 = vrot.slane %v1067_v60, 1  ;;  %v10456_v22 = vpop.f32.mrb[89].mxu1  ;;  %v10640_v3 = vpop.f32.mrb[89].mxu0  ;;  %v2327_v36 = vrot.slane %v1905_v8, 2 }
 0x1be   : > { %v1070_v46 = vpop.f32.mrb[90].mxu1  ;;  %v1908_v32 = vpop.f32.mrb[90].mxu0  ;;  %v12426_v22 = vld [vmem:[%s16547_s0 + $0xd8] sm:$0xff]  }
 0x1bf   : > { %v1485_v1 = vsel %vm1480_vm1, %v1482_v52, %v1484_v12  ;;  %v1486_v4 = vrot.slane %v1070_v46, 1  ;;  %v2328_v18 = vrot.slane %v1908_v32, 2  ;;  %v10641_v13 = vpop.f32.mrb[91].mxu0  ;;  %v10457_v30 = vpop.f32.mrb[91].mxu1 }
 0x1c0   : > { %v1726_v14 = vadd.f32 %v1485_v1, %v13069_v17 }
 0x1c1   : > { %v1487_v24 = vsel %vm1480_vm1, %v1484_v12, %v1486_v4  ;;  %v2329_v55 = vsel %vm2326_vm2, %v2327_v36, %v2328_v18  ;;  %10563 = vmatmul.mubr.bf16.gmra.mrb[196].mxu1 %v12809_v38  ;;  %10747 = vmatmul.mubr.bf16.gmra.mrb[196].mxu0 %v12426_v22 }
 0x1c2   : > { %v1727_v52 = vadd.f32 %v1487_v24, %v13079_v21  ;;  %v13391_v60 = vadd.f32 %v2329_v55, %v1725_v0  ;;  %10566 = vmatprep.mubr.msk.bf16.mxu1 %vm12598_vm0, %v16593_v27  ;;  %10750 = vmatprep.mubr.msk.bf16.mxu0 %vm12598_vm0, %v16593_v27 }
 0x1c4   : > { %16594 = vst [vmem:[#allocation42_spill] sm:$0xff] %v13391_v60  ;;  %v1075_v17 = vpop.f32.mrb[92].mxu1  ;;  %v1913_v8 = vpop.f32.mrb[92].mxu0 }
 0x1c5   : > { %v1488_v12 = vrot.slane %v1075_v17, 1  ;;  %v2330_v3 = vrot.slane %v1913_v8, 2  ;;  %v10460_v38 = vpop.f32.mrb[93].mxu1  ;;  %v10644_v46 = vpop.f32.mrb[93].mxu0 }
 0x1c6   : > { %v1078_v32 = vpop.f32.mrb[94].mxu1  ;;  %v1916_v1 = vpop.f32.mrb[94].mxu0 }
 0x1c7   : > { %v1489_v36 = vsel %vm1480_vm1, %v1486_v4, %v1488_v12  ;;  %v2331_v21 = vsel %vm2326_vm2, %v2328_v18, %v2330_v3  ;;  %v1490_v0 = vrot.slane %v1078_v32, 1  ;;  %v2332_v55 = vrot.slane %v1916_v1, 2  ;;  %v10645_v24 = vpop.f32.mrb[95].mxu0  ;;  %v10461_v13 = vpop.f32.mrb[95].mxu1  ;;  %v12427_v4 = vld [vmem:[%s16547_s0 + $0xe0] sm:$0xff]  }
 0x1c8   : > { %v1728_v30 = vadd.f32 %v1489_v36, %v13084_v26  ;;  %v13400_v22 = vadd.f32 %v2331_v21, %v1726_v14 }
 0x1c9   : > { %v1491_v60 = vsel %vm1480_vm1, %v1488_v12, %v1490_v0  ;;  %v2333_v17 = vsel %vm2326_vm2, %v2330_v3, %v2332_v55  ;;  %10567 = vmatmul.mubr.bf16.gmra.mrb[200].mxu1 %v12825_v40  ;;  %10751 = vmatmul.mubr.bf16.gmra.mrb[200].mxu0 %v12427_v4 }
 0x1ca   : > { %v1729_v18 = vadd.f32 %v1491_v60, %v13097_v31  ;;  %v13409_v8 = vadd.f32 %v2333_v17, %v1727_v52  ;;  %10570 = vmatprep.mubr.msk.bf16.mxu1 %vm12598_vm0, %v16593_v27  ;;  %10754 = vmatprep.mubr.msk.bf16.mxu0 %vm12598_vm0, %v16593_v27 }
 0x1cc   : > { %v1083_v14 = vpop.f32.mrb[96].mxu1  ;;  %v1921_v26 = vpop.f32.mrb[96].mxu0 }
 0x1cd   : > { %v1492_v12 = vrot.slane %v1083_v14, 1  ;;  %v2334_v3 = vrot.slane %v1921_v26, 2  ;;  %v10464_v40 = vpop.f32.mrb[97].mxu1  ;;  %v10648_v38 = vpop.f32.mrb[97].mxu0 }
 0x1ce   : > { %v1086_v46 = vpop.f32.mrb[98].mxu1  ;;  %v1924_v32 = vpop.f32.mrb[98].mxu0 }
 0x1cf   : > { %v1493_v1 = vsel %vm1480_vm1, %v1490_v0, %v1492_v12  ;;  %v2335_v31 = vsel %vm2326_vm2, %v2332_v55, %v2334_v3  ;;  %v1494_v52 = vrot.slane %v1086_v46, 1  ;;  %v2336_v60 = vrot.slane %v1924_v32, 2  ;;  %v10649_v36 = vpop.f32.mrb[99].mxu0  ;;  %v10465_v21 = vpop.f32.mrb[99].mxu1  ;;  %v12428_v0 = vld [vmem:[%s16547_s0 + $0xe8] sm:$0xff]  }
 0x1d0   : > { %v1730_v24 = vadd.f32 %v1493_v1, %v13101_v35  ;;  %v13418_v13 = vadd.f32 %v2335_v31, %v1728_v30 }
 0x1d1   : > { %v1495_v17 = vsel %vm1480_vm1, %v1492_v12, %v1494_v52  ;;  %v2337_v4 = vsel %vm2326_vm2, %v2334_v3, %v2336_v60  ;;  %10571 = vmatmul.mubr.bf16.gmra.mrb[204].mxu1 %v12841_v42  ;;  %10755 = vmatmul.mubr.bf16.gmra.mrb[204].mxu0 %v12428_v0 }
 0x1d2   : > { %v1731_v55 = vadd.f32 %v1495_v17, %v13111_v50  ;;  %v13427_v14 = vadd.f32 %v2337_v4, %v1729_v18  ;;  %10574 = vmatprep.mubr.msk.bf16.mxu1 %vm12598_vm0, %v16593_v27  ;;  %10758 = vmatprep.mubr.msk.bf16.mxu0 %vm12598_vm0, %v16593_v27 }
 0x1d4   : > { %v1091_v35 = vpop.f32.mrb[100].mxu1  ;;  %v1929_v30 = vpop.f32.mrb[100].mxu0 }
 0x1d5   : > { %v1496_v26 = vrot.slane %v1091_v35, 1  ;;  %v2338_v12 = vrot.slane %v1929_v30, 2  ;;  %v10468_v3 = vpop.f32.mrb[101].mxu1  ;;  %v10652_v40 = vpop.f32.mrb[101].mxu0 }
 0x1d6   : > { %v1094_v38 = vpop.f32.mrb[102].mxu1  ;;  %v1932_v46 = vpop.f32.mrb[102].mxu0 }
 0x1d7   : > { %v1497_v32 = vsel %vm1480_vm1, %v1494_v52, %v1496_v26  ;;  %v2339_v50 = vsel %vm2326_vm2, %v2336_v60, %v2338_v12  ;;  %v1498_v18 = vrot.slane %v1094_v38, 1  ;;  %v2340_v1 = vrot.slane %v1932_v46, 2  ;;  %v10653_v31 = vpop.f32.mrb[103].mxu0  ;;  %v10469_v36 = vpop.f32.mrb[103].mxu1 }
 0x1d8   : > { %v1732_v21 = vadd.f32 %v1497_v32, %v13115_v58  ;;  %v13436_v17 = vadd.f32 %v2339_v50, %v1730_v24 }
 0x1d9   : > { %v1499_v4 = vsel %vm1480_vm1, %v1496_v26, %v1498_v18  ;;  %v2341_v0 = vsel %vm2326_vm2, %v2338_v12, %v2340_v1  ;;  %10575 = vmatmul.mubr.bf16.gmra.mrb[208].mxu1 %v12857_v44  ;;  %10759 = vmatmul.mubr.bf16.gmra.mrb[208].mxu0 %v12841_v42 }
 0x1da   : > { %v1733_v52 = vadd.f32 %v1499_v4, %v13125_v39  ;;  %v13443_v35 = vadd.f32 %v2341_v0, %v1731_v55  ;;  %10578 = vmatprep.mubr.msk.bf16.mxu1 %vm12598_vm0, %v16593_v27  ;;  %10762 = vmatprep.mubr.msk.bf16.mxu0 %vm12598_vm0, %v16593_v27  ;;  %v12429_v4 = vld [vmem:[%s16547_s0 + $0x100] sm:$0xff]  }
 0x1dc   : > { %v1099_v58 = vpop.f32.mrb[104].mxu1  ;;  %v1937_v60 = vpop.f32.mrb[104].mxu0 }
 0x1dd   : > { %v1500_v24 = vrot.slane %v1099_v58, 1  ;;  %v2342_v30 = vrot.slane %v1937_v60, 2  ;;  %v10472_v26 = vpop.f32.mrb[105].mxu1  ;;  %v10656_v12 = vpop.f32.mrb[105].mxu0 }
 0x1de   : > { %v1102_v3 = vpop.f32.mrb[106].mxu1  ;;  %v1940_v44 = vpop.f32.mrb[106].mxu0 }
 0x1df   : > { %v1501_v42 = vsel %vm1480_vm1, %v1498_v18, %v1500_v24  ;;  %v2343_v39 = vsel %vm2326_vm2, %v2340_v1, %v2342_v30  ;;  %v1502_v55 = vrot.slane %v1102_v3, 1  ;;  %v2344_v40 = vrot.slane %v1940_v44, 2  ;;  %v10657_v38 = vpop.f32.mrb[107].mxu0  ;;  %v10473_v46 = vpop.f32.mrb[107].mxu1  ;;  %v12430_v18 = vld [vmem:[%s16547_s0 + $0xf8] sm:$0xff]  }
 0x1e0   : > { %v1734_v32 = vadd.f32 %v1501_v42, %v13129_v7  ;;  %v13452_v50 = vadd.f32 %v2343_v39, %v1732_v21 }
 0x1e1   : > { %v1503_v31 = vsel %vm1480_vm1, %v1500_v24, %v1502_v55  ;;  %v2345_v36 = vsel %vm2326_vm2, %v2342_v30, %v2344_v40  ;;  %10579 = vmatmul.mubr.bf16.gmra.mrb[212].mxu1 %v12429_v4  ;;  %10763 = vmatmul.mubr.bf16.gmra.mrb[212].mxu0 %v12430_v18  ;;  %v12431_v18 = vld [vmem:[%s16547_s0 + $0x108] sm:$0xff]  }
 0x1e2   : > { %v1735_v1 = vadd.f32 %v1503_v31, %v13139_v41  ;;  %v13463_v0 = vadd.f32 %v2345_v36, %v1733_v52  ;;  %10582 = vmatprep.mubr.msk.bf16.mxu1 %vm12598_vm0, %v16593_v27  ;;  %10766 = vmatprep.mubr.msk.bf16.mxu0 %vm12598_vm0, %v16593_v27 }
 0x1e4   : > { %v1107_v7 = vpop.f32.mrb[108].mxu1  ;;  %v1945_v21 = vpop.f32.mrb[108].mxu0 }
 0x1e5   : > { %v1504_v58 = vrot.slane %v1107_v7, 1  ;;  %v2346_v60 = vrot.slane %v1945_v21, 2  ;;  %v10476_v24 = vpop.f32.mrb[109].mxu1  ;;  %v10660_v30 = vpop.f32.mrb[109].mxu0 }
 0x1e6   : > { %v1110_v26 = vpop.f32.mrb[110].mxu1  ;;  %v1948_v12 = vpop.f32.mrb[110].mxu0 }
 0x1e7   : > { %v1505_v3 = vsel %vm1480_vm1, %v1502_v55, %v1504_v58  ;;  %v2347_v41 = vsel %vm2326_vm2, %v2344_v40, %v2346_v60  ;;  %v1506_v52 = vrot.slane %v1110_v26, 1  ;;  %v2348_v44 = vrot.slane %v1948_v12, 2  ;;  %v10661_v42 = vpop.f32.mrb[111].mxu0  ;;  %v10477_v39 = vpop.f32.mrb[111].mxu1 }
 0x1e8   : > { %v1736_v38 = vadd.f32 %v1505_v3, %v13143_v16  ;;  %v13472_v46 = vadd.f32 %v2347_v41, %v1734_v32 }
 0x1e9   : > { %v1507_v31 = vsel %vm1480_vm1, %v1504_v58, %v1506_v52  ;;  %v2349_v36 = vsel %vm2326_vm2, %v2346_v60, %v2348_v44  ;;  %10583 = vmatmul.mubr.bf16.gmra.mrb[216].mxu1 %v12431_v18  ;;  %10767 = vmatmul.mubr.bf16.gmra.mrb[216].mxu0 %v12429_v4 }
 0x1ea   : > { %v1737_v55 = vadd.f32 %v1507_v31, %v13153_v43  ;;  %v13480_v40 = vadd.f32 %v2349_v36, %v1735_v1  ;;  %10586 = vmatprep.mubr.msk.bf16.mxu1 %vm12598_vm0, %v16593_v27  ;;  %10770 = vmatprep.mubr.msk.bf16.mxu0 %vm12598_vm0, %v16593_v27  ;;  %v12432_v36 = vld [vmem:[%s16547_s0 + $0x110] sm:$0xff]  }
 0x1ec   : > { %v1115_v16 = vpop.f32.mrb[112].mxu1  ;;  %v1953_v32 = vpop.f32.mrb[112].mxu0 }
 0x1ed   : > { %v1508_v7 = vrot.slane %v1115_v16, 1  ;;  %v2350_v21 = vrot.slane %v1953_v32, 2  ;;  %v10480_v58 = vpop.f32.mrb[113].mxu1  ;;  %v10664_v60 = vpop.f32.mrb[113].mxu0 }
 0x1ee   : > { %v1118_v24 = vpop.f32.mrb[114].mxu1  ;;  %v1956_v30 = vpop.f32.mrb[114].mxu0 }
 0x1ef   : > { %v1509_v4 = vsel %vm1480_vm1, %v1506_v52, %v1508_v7  ;;  %v2351_v43 = vsel %vm2326_vm2, %v2348_v44, %v2350_v21  ;;  %v1510_v1 = vrot.slane %v1118_v24, 1  ;;  %v2352_v26 = vrot.slane %v1956_v30, 2  ;;  %v10665_v12 = vpop.f32.mrb[115].mxu0  ;;  %v10481_v3 = vpop.f32.mrb[115].mxu1 }
 0x1f0   : > { %v1738_v41 = vadd.f32 %v1509_v4, %v13157_v29  ;;  %v13489_v42 = vadd.f32 %v2351_v43, %v1736_v38 }
 0x1f1   : > { %v1511_v39 = vsel %vm1480_vm1, %v1508_v7, %v1510_v1  ;;  %v2353_v31 = vsel %vm2326_vm2, %v2350_v21, %v2352_v26  ;;  %10587 = vmatmul.mubr.bf16.gmra.mrb[220].mxu1 %v12432_v36  ;;  %10771 = vmatmul.mubr.bf16.gmra.mrb[220].mxu0 %v12431_v18 }
 0x1f2   : > { %v1739_v52 = vadd.f32 %v1511_v39, %v13169_v37  ;;  %v13497_v44 = vadd.f32 %v2353_v31, %v1737_v55  ;;  %10590 = vmatprep.mubr.msk.bf16.mxu1 %vm12598_vm0, %v16593_v27  ;;  %10774 = vmatprep.mubr.msk.bf16.mxu0 %vm12598_vm0, %v16593_v27  ;;  %v12433_v31 = vld [vmem:[%s16547_s0 + $0x118] sm:$0xff]  }
 0x1f4   : > { %v1123_v29 = vpop.f32.mrb[116].mxu1  ;;  %v1961_v38 = vpop.f32.mrb[116].mxu0 }
 0x1f5   : > { %v1512_v16 = vrot.slane %v1123_v29, 1  ;;  %v2354_v32 = vrot.slane %v1961_v38, 2  ;;  %v10484_v7 = vpop.f32.mrb[117].mxu1  ;;  %v10668_v21 = vpop.f32.mrb[117].mxu0 }
 0x1f6   : > { %v1126_v58 = vpop.f32.mrb[118].mxu1  ;;  %v1964_v60 = vpop.f32.mrb[118].mxu0 }
 0x1f7   : > { %v1513_v18 = vsel %vm1480_vm1, %v1510_v1, %v1512_v16  ;;  %v2355_v37 = vsel %vm2326_vm2, %v2352_v26, %v2354_v32  ;;  %v1514_v55 = vrot.slane %v1126_v58, 1  ;;  %v2356_v24 = vrot.slane %v1964_v60, 2  ;;  %v10669_v30 = vpop.f32.mrb[119].mxu0  ;;  %v10485_v4 = vpop.f32.mrb[119].mxu1 }
 0x1f8   : > { %v1740_v43 = vadd.f32 %v1513_v18, %v13175_v47  ;;  %v13506_v12 = vadd.f32 %v2355_v37, %v1738_v41 }
 0x1f9   : > { %v1515_v3 = vsel %vm1480_vm1, %v1512_v16, %v1514_v55  ;;  %v2357_v39 = vsel %vm2326_vm2, %v2354_v32, %v2356_v24  ;;  %10591 = vmatmul.mubr.bf16.gmra.mrb[224].mxu1 %v12433_v31  ;;  %10775 = vmatmul.mubr.bf16.gmra.mrb[224].mxu0 %v12432_v36 }
 0x1fa   : > { %v1741_v1 = vadd.f32 %v1515_v3, %v13185_v10  ;;  %v13514_v26 = vadd.f32 %v2357_v39, %v1739_v52  ;;  %10594 = vmatprep.mubr.msk.bf16.mxu1 %vm12598_vm0, %v16593_v27  ;;  %10778 = vmatprep.mubr.msk.bf16.mxu0 %vm12598_vm0, %v16593_v27  ;;  %v12434_v39 = vld [vmem:[%s16547_s0 + $0x120] sm:$0xff]  }
 0x1fc   : > { %v1131_v47 = vpop.f32.mrb[120].mxu1  ;;  %v1969_v41 = vpop.f32.mrb[120].mxu0 }
 0x1fd   : > { %v1516_v29 = vrot.slane %v1131_v47, 1  ;;  %v2358_v38 = vrot.slane %v1969_v41, 2  ;;  %v10488_v16 = vpop.f32.mrb[121].mxu1  ;;  %v10672_v32 = vpop.f32.mrb[121].mxu0 }
 0x1fe   : > { %v1134_v7 = vpop.f32.mrb[122].mxu1  ;;  %v1972_v21 = vpop.f32.mrb[122].mxu0 }
 0x1ff   : > { %v1517_v36 = vsel %vm1480_vm1, %v1514_v55, %v1516_v29  ;;  %v2359_v10 = vsel %vm2326_vm2, %v2356_v24, %v2358_v38  ;;  %v1518_v52 = vrot.slane %v1134_v7, 1  ;;  %v2360_v58 = vrot.slane %v1972_v21, 2  ;;  %v10673_v60 = vpop.f32.mrb[123].mxu0  ;;  %v10489_v18 = vpop.f32.mrb[123].mxu1 }
 0x200   : > { %v1742_v37 = vadd.f32 %v1517_v36, %v13189_v20  ;;  %v13523_v30 = vadd.f32 %v2359_v10, %v1740_v43 }
 0x201   : > { %v1519_v4 = vsel %vm1480_vm1, %v1516_v29, %v1518_v52  ;;  %v2361_v3 = vsel %vm2326_vm2, %v2358_v38, %v2360_v58  ;;  %10595 = vmatmul.mubr.bf16.gmra.mrb[228].mxu1 %v12434_v39  ;;  %10779 = vmatmul.mubr.bf16.gmra.mrb[228].mxu0 %v12433_v31 }
 0x202   : > { %v1743_v55 = vadd.f32 %v1519_v4, %v13199_v49  ;;  %v13531_v24 = vadd.f32 %v2361_v3, %v1741_v1  ;;  %10598 = vmatprep.mubr.msk.bf16.mxu1 %vm12598_vm0, %v16593_v27  ;;  %10782 = vmatprep.mubr.msk.bf16.mxu0 %vm12598_vm0, %v16593_v27  ;;  %v12435_v3 = vld [vmem:[%s16547_s0 + $0x128] sm:$0xff]  }
 0x204   : > { %v1139_v20 = vpop.f32.mrb[124].mxu1  ;;  %v1977_v43 = vpop.f32.mrb[124].mxu0 }
 0x205   : > { %v1520_v47 = vrot.slane %v1139_v20, 1  ;;  %v2362_v41 = vrot.slane %v1977_v43, 2  ;;  %v10492_v29 = vpop.f32.mrb[125].mxu1  ;;  %v10676_v38 = vpop.f32.mrb[125].mxu0 }
 0x206   : > { %v1142_v16 = vpop.f32.mrb[126].mxu1  ;;  %v1980_v32 = vpop.f32.mrb[126].mxu0 }
 0x207   : > { %v1521_v31 = vsel %vm1480_vm1, %v1518_v52, %v1520_v47  ;;  %v2363_v49 = vsel %vm2326_vm2, %v2360_v58, %v2362_v41  ;;  %v1522_v1 = vrot.slane %v1142_v16, 1  ;;  %v2364_v7 = vrot.slane %v1980_v32, 2  ;;  %v10677_v21 = vpop.f32.mrb[127].mxu0  ;;  %v10493_v36 = vpop.f32.mrb[127].mxu1 }
 0x208   : > { %v1744_v10 = vadd.f32 %v1521_v31, %v13203_v48  ;;  %v13540_v60 = vadd.f32 %v2363_v49, %v1742_v37 }
 0x209   : > { %v1523_v18 = vsel %vm1480_vm1, %v1520_v47, %v1522_v1  ;;  %v2365_v4 = vsel %vm2326_vm2, %v2362_v41, %v2364_v7  ;;  %10599 = vmatmul.mubr.bf16.gmra.mrb[232].mxu1 %v12435_v3  ;;  %10783 = vmatmul.mubr.bf16.gmra.mrb[232].mxu0 %v12434_v39 }
 0x20a   : > { %v1745_v52 = vadd.f32 %v1523_v18, %v13213_v51  ;;  %v13548_v58 = vadd.f32 %v2365_v4, %v1743_v55  ;;  %10602 = vmatprep.mubr.msk.bf16.mxu1 %vm12598_vm0, %v16593_v27  ;;  %10786 = vmatprep.mubr.msk.bf16.mxu0 %vm12598_vm0, %v16593_v27  ;;  %v12436_v4 = vld [vmem:[%s16547_s0 + $0x130] sm:$0xff]  }
 0x20c   : > { %v1147_v48 = vpop.f32.mrb[128].mxu1  ;;  %v1985_v37 = vpop.f32.mrb[128].mxu0 }
 0x20d   : > { %v1524_v20 = vrot.slane %v1147_v48, 1  ;;  %v2366_v43 = vrot.slane %v1985_v37, 2  ;;  %v10496_v47 = vpop.f32.mrb[129].mxu1  ;;  %v10680_v41 = vpop.f32.mrb[129].mxu0 }
 0x20e   : > { %v1150_v29 = vpop.f32.mrb[130].mxu1  ;;  %v1988_v38 = vpop.f32.mrb[130].mxu0 }
 0x20f   : > { %v1525_v39 = vsel %vm1480_vm1, %v1522_v1, %v1524_v20  ;;  %v2367_v51 = vsel %vm2326_vm2, %v2364_v7, %v2366_v43  ;;  %v1526_v55 = vrot.slane %v1150_v29, 1  ;;  %v2368_v16 = vrot.slane %v1988_v38, 2  ;;  %v10681_v32 = vpop.f32.mrb[131].mxu0  ;;  %v10497_v31 = vpop.f32.mrb[131].mxu1 }
 0x210   : > { %v1746_v49 = vadd.f32 %v1525_v39, %v13217_v25  ;;  %v13557_v21 = vadd.f32 %v2367_v51, %v1744_v10 }
 0x211   : > { %v1527_v36 = vsel %vm1480_vm1, %v1524_v20, %v1526_v55  ;;  %v2369_v18 = vsel %vm2326_vm2, %v2366_v43, %v2368_v16  ;;  %10603 = vmatmul.mubr.bf16.gmra.mrb[236].mxu1 %v12436_v4  ;;  %10787 = vmatmul.mubr.bf16.gmra.mrb[236].mxu0 %v12435_v3 }
 0x212   : > { %v1747_v1 = vadd.f32 %v1527_v36, %v13227_v53  ;;  %v13565_v7 = vadd.f32 %v2369_v18, %v1745_v52  ;;  %10606 = vmatprep.mubr.msk.bf16.mxu1 %vm12598_vm0, %v16593_v27  ;;  %10790 = vmatprep.mubr.msk.bf16.mxu0 %vm12598_vm0, %v16593_v27  ;;  %v12437_v18 = vld [vmem:[%s16547_s0 + $0x138] sm:$0xff]  }
 0x214   : > { %v1155_v25 = vpop.f32.mrb[132].mxu1  ;;  %v1993_v10 = vpop.f32.mrb[132].mxu0 }
 0x215   : > { %v1528_v48 = vrot.slane %v1155_v25, 1  ;;  %v2370_v37 = vrot.slane %v1993_v10, 2  ;;  %v10500_v20 = vpop.f32.mrb[133].mxu1  ;;  %v10684_v43 = vpop.f32.mrb[133].mxu0 }
 0x216   : > { %v1158_v47 = vpop.f32.mrb[134].mxu1  ;;  %v1996_v41 = vpop.f32.mrb[134].mxu0 }
 0x217   : > { %v1529_v3 = vsel %vm1480_vm1, %v1526_v55, %v1528_v48  ;;  %v2371_v53 = vsel %vm2326_vm2, %v2368_v16, %v2370_v37  ;;  %v1530_v52 = vrot.slane %v1158_v47, 1  ;;  %v2372_v29 = vrot.slane %v1996_v41, 2  ;;  %v10685_v38 = vpop.f32.mrb[135].mxu0  ;;  %v10501_v39 = vpop.f32.mrb[135].mxu1 }
 0x218   : > { %v1748_v51 = vadd.f32 %v1529_v3, %v13231_v15  ;;  %v13574_v32 = vadd.f32 %v2371_v53, %v1746_v49 }
 0x219   : > { %v1531_v31 = vsel %vm1480_vm1, %v1528_v48, %v1530_v52  ;;  %v2373_v36 = vsel %vm2326_vm2, %v2370_v37, %v2372_v29  ;;  %10607 = vmatmul.mubr.bf16.gmra.mrb[240].mxu1 %v12437_v18  ;;  %10791 = vmatmul.mubr.bf16.gmra.mrb[240].mxu0 %v12436_v4 }
 0x21a   : > { %v1749_v55 = vadd.f32 %v1531_v31, %v13242_v5  ;;  %v13582_v16 = vadd.f32 %v2373_v36, %v1747_v1  ;;  %10610 = vmatprep.mubr.msk.bf16.mxu1 %vm12598_vm0, %v16593_v27  ;;  %10794 = vmatprep.mubr.msk.bf16.mxu0 %vm12598_vm0, %v16593_v27  ;;  %v12438_v36 = vld [vmem:[%s16547_s0 + $0x140] sm:$0xff]  }
 0x21c   : > { %v1163_v15 = vpop.f32.mrb[136].mxu1  ;;  %v2001_v49 = vpop.f32.mrb[136].mxu0 }
 0x21d   : > { %v1532_v25 = vrot.slane %v1163_v15, 1  ;;  %v2374_v10 = vrot.slane %v2001_v49, 2  ;;  %v10504_v48 = vpop.f32.mrb[137].mxu1  ;;  %v10688_v37 = vpop.f32.mrb[137].mxu0 }
 0x21e   : > { %v1166_v20 = vpop.f32.mrb[138].mxu1  ;;  %v2004_v43 = vpop.f32.mrb[138].mxu0 }
 0x21f   : > { %v1533_v4 = vsel %vm1480_vm1, %v1530_v52, %v1532_v25  ;;  %v2375_v5 = vsel %vm2326_vm2, %v2372_v29, %v2374_v10  ;;  %v1534_v1 = vrot.slane %v1166_v20, 1  ;;  %v2376_v47 = vrot.slane %v2004_v43, 2  ;;  %v10689_v41 = vpop.f32.mrb[139].mxu0  ;;  %v10505_v3 = vpop.f32.mrb[139].mxu1 }
 0x220   : > { %v1750_v53 = vadd.f32 %v1533_v4, %v13247_v28  ;;  %v13591_v38 = vadd.f32 %v2375_v5, %v1748_v51 }
 0x221   : > { %v1535_v39 = vsel %vm1480_vm1, %v1532_v25, %v1534_v1  ;;  %v2377_v31 = vsel %vm2326_vm2, %v2374_v10, %v2376_v47  ;;  %10611 = vmatmul.mubr.bf16.gmra.mrb[244].mxu1 %v12438_v36  ;;  %10795 = vmatmul.mubr.bf16.gmra.mrb[244].mxu0 %v12437_v18 }
 0x222   : > { %v1751_v52 = vadd.f32 %v1535_v39, %v13258_v34  ;;  %v13599_v29 = vadd.f32 %v2377_v31, %v1749_v55  ;;  %10614 = vmatprep.mubr.msk.bf16.mxu1 %vm12598_vm0, %v16593_v27  ;;  %10798 = vmatprep.mubr.msk.bf16.mxu0 %vm12598_vm0, %v16593_v27  ;;  %v12439_v31 = vld [vmem:[%s16547_s0 + $0x148] sm:$0xff]  }
 0x224   : > { %v1171_v28 = vpop.f32.mrb[140].mxu1  ;;  %v2009_v51 = vpop.f32.mrb[140].mxu0 }
 0x225   : > { %v1536_v15 = vrot.slane %v1171_v28, 1  ;;  %v2378_v49 = vrot.slane %v2009_v51, 2  ;;  %v10508_v25 = vpop.f32.mrb[141].mxu1  ;;  %v10692_v10 = vpop.f32.mrb[141].mxu0 }
 0x226   : > { %v1174_v48 = vpop.f32.mrb[142].mxu1  ;;  %v2012_v37 = vpop.f32.mrb[142].mxu0 }
 0x227   : > { %v1537_v18 = vsel %vm1480_vm1, %v1534_v1, %v1536_v15  ;;  %v2379_v34 = vsel %vm2326_vm2, %v2376_v47, %v2378_v49  ;;  %v1538_v55 = vrot.slane %v1174_v48, 1  ;;  %v2380_v20 = vrot.slane %v2012_v37, 2  ;;  %v10693_v43 = vpop.f32.mrb[143].mxu0  ;;  %v10509_v4 = vpop.f32.mrb[143].mxu1 }
 0x228   : > { %v1752_v5 = vadd.f32 %v1537_v18, %v13263_v57  ;;  %v13608_v41 = vadd.f32 %v2379_v34, %v1750_v53 }
 0x229   : > { %v1539_v3 = vsel %vm1480_vm1, %v1536_v15, %v1538_v55  ;;  %v2381_v39 = vsel %vm2326_vm2, %v2378_v49, %v2380_v20  ;;  %10615 = vmatmul.mubr.bf16.gmra.mrb[248].mxu1 %v12439_v31  ;;  %10799 = vmatmul.mubr.bf16.gmra.mrb[248].mxu0 %v12438_v36 }
 0x22a   : > { %v1753_v1 = vadd.f32 %v1539_v3, %v13273_v56  ;;  %v13616_v47 = vadd.f32 %v2381_v39, %v1751_v52  ;;  %10618 = vmatprep.mubr.msk.bf16.mxu1 %vm12598_vm0, %v16593_v27  ;;  %10802 = vmatprep.mubr.msk.bf16.mxu0 %vm12598_vm0, %v16593_v27  ;;  %v12440_v39 = vld [vmem:[%s16547_s0 + $0x150] sm:$0xff]  }
 0x22c   : > { %v1179_v57 = vpop.f32.mrb[144].mxu1  ;;  %v2017_v53 = vpop.f32.mrb[144].mxu0 }
 0x22d   : > { %v1540_v28 = vrot.slane %v1179_v57, 1  ;;  %v2382_v51 = vrot.slane %v2017_v53, 2  ;;  %v10512_v15 = vpop.f32.mrb[145].mxu1  ;;  %v10696_v49 = vpop.f32.mrb[145].mxu0 }
 0x22e   : > { %v1182_v25 = vpop.f32.mrb[146].mxu1  ;;  %v2020_v10 = vpop.f32.mrb[146].mxu0 }
 0x22f   : > { %v1541_v36 = vsel %vm1480_vm1, %v1538_v55, %v1540_v28  ;;  %v2383_v56 = vsel %vm2326_vm2, %v2380_v20, %v2382_v51  ;;  %v1542_v52 = vrot.slane %v1182_v25, 1  ;;  %v2384_v48 = vrot.slane %v2020_v10, 2  ;;  %v10697_v37 = vpop.f32.mrb[147].mxu0  ;;  %v10513_v18 = vpop.f32.mrb[147].mxu1 }
 0x230   : > { %v1754_v34 = vadd.f32 %v1541_v36, %v13277_v33  ;;  %v13625_v43 = vadd.f32 %v2383_v56, %v1752_v5  ;;  %v12065_v56 = vld [vmem:[%s12662_s25 + $0x140] sm:$0xff]  }
 0x231   : > { %v1543_v4 = vsel %vm1480_vm1, %v1540_v28, %v1542_v52  ;;  %v2385_v3 = vsel %vm2326_vm2, %v2382_v51, %v2384_v48  ;;  %10619 = vmatmul.mubr.bf16.gmra.mrb[252].mxu1 %v12440_v39  ;;  %10803 = vmatmul.mubr.bf16.gmra.mrb[252].mxu0 %v12439_v31 }
 0x232   : > { %v1755_v55 = vadd.f32 %v1543_v4, %v13287_v61  ;;  %v13633_v20 = vadd.f32 %v2385_v3, %v1753_v1  ;;  %10806 = vmatprep.mubr.msk.bf16.mxu0 %vm12598_vm0, %v16593_v27  ;;  %10826 = vmatprep.mubr.msk.bf16.mxu1 %vm12598_vm0, %v16593_v27 }
 0x234   : > { %v1187_v33 = vpop.f32.mrb[148].mxu1  ;;  %v2025_v5 = vpop.f32.mrb[148].mxu0 }
 0x235   : > { %v1544_v57 = vrot.slane %v1187_v33, 1  ;;  %v2386_v53 = vrot.slane %v2025_v5, 2  ;;  %v10516_v28 = vpop.f32.mrb[149].mxu1  ;;  %v10700_v51 = vpop.f32.mrb[149].mxu0 }
 0x236   : > { %v1190_v15 = vpop.f32.mrb[150].mxu1  ;;  %v2028_v49 = vpop.f32.mrb[150].mxu0  ;;  %v12066_v51 = vld [vmem:[%s12662_s25 + $0x180] sm:$0xff]  }
 0x237   : > { %v1545_v31 = vsel %vm1480_vm1, %v1542_v52, %v1544_v57  ;;  %v2387_v61 = vsel %vm2326_vm2, %v2384_v48, %v2386_v53  ;;  %v1546_v1 = vrot.slane %v1190_v15, 1  ;;  %v2388_v25 = vrot.slane %v2028_v49, 2  ;;  %v10701_v10 = vpop.f32.mrb[151].mxu0  ;;  %v10517_v36 = vpop.f32.mrb[151].mxu1  ;;  %v12441_v52 = vld [vmem:[%s16547_s0] sm:$0xff]  }
 0x238   : > { %v1756_v37 = vadd.f32 %v1545_v31, %v13291_v23  ;;  %v13643_v18 = vadd.f32 %v2387_v61, %v1754_v34  ;;  %v12067_v23 = vld [vmem:[%s12662_s25 + $0x148] sm:$0xff]  }
 0x239   : > { %v1547_v4 = vsel %vm1480_vm1, %v1544_v57, %v1546_v1  ;;  %v2389_v3 = vsel %vm2326_vm2, %v2386_v53, %v2388_v25  ;;  %10807 = vmatmul.mubr.bf16.gmra.mrb[0].mxu0 %v12440_v39  ;;  %10827 = vmatmul.mubr.bf16.vlgmr.msra.gmra.mrb[0].mxu1 %v12441_v52 }
 0x23a   : > { %v1757_v48 = vadd.f32 %v1547_v4, %v13301_v63  ;;  %v13651_v33 = vadd.f32 %v2389_v3, %v1755_v55  ;;  %10830 = vmatprep.mubr.msk.bf16.mxu1 %vm12598_vm0, %v16593_v27  ;;  %11014 = vmatprep.mubr.msk.bf16.mxu0 %vm12598_vm0, %v16593_v27  ;;  %v12069_v3 = vld [vmem:[%s12662_s25 + $0x150] sm:$0xff]  }
 0x23b   : > { %11187 = vmatpush3.bf16.msra.mxu1 %v12065_v56 }
 0x23c   : > { %v1195_v34 = vpop.f32.mrb[152].mxu1  ;;  %v2033_v39 = vpop.f32.mrb[152].mxu0  ;;  %11188 = vmatprep.subr.bf16.mxu1 %v16593_v27 }
 0x23d   : > { %v1548_v5 = vrot.slane %v1195_v34, 1  ;;  %v2390_v57 = vrot.slane %v2033_v39, 2  ;;  %v10520_v53 = vpop.f32.mrb[153].mxu1  ;;  %v10704_v28 = vpop.f32.mrb[153].mxu0 }
 0x23e   : > { %v1198_v63 = vpop.f32.mrb[154].mxu1  ;;  %v2036_v55 = vpop.f32.mrb[154].mxu0 }
 0x23f   : > { %v1549_v15 = vsel %vm1480_vm1, %v1546_v1, %v1548_v5  ;;  %v2391_v49 = vsel %vm2326_vm2, %v2388_v25, %v2390_v57  ;;  %v1550_v31 = vrot.slane %v1198_v63, 1  ;;  %v2392_v61 = vrot.slane %v2036_v55, 2  ;;  %v10705_v10 = vpop.f32.mrb[155].mxu0  ;;  %v10521_v36 = vpop.f32.mrb[155].mxu1  ;;  %11189 = vmatpush3.bf16.msra.mxu1 %v12067_v23  ;;  %v12442_v25 = vld [vmem:[%s16547_s0 + $0x8] sm:$0xff]  }
 0x240   : > { %v1758_v56 = vadd.f32 %v1549_v15, %v13305_v11  ;;  %v13663_v4 = vadd.f32 %v2391_v49, %v1756_v37  ;;  %11190 = vmatprep.subr.bf16.mxu1 %v16593_v27  ;;  %v12068_v11 = vld [vmem:[%s12662_s25 + $0x188] sm:$0xff]  }
 0x241   : > { %v1551_v34 = vsel %vm1480_vm1, %v1548_v5, %v1550_v31  ;;  %v2393_v1 = vsel %vm2326_vm2, %v2390_v57, %v2392_v61  ;;  %10831 = vmatmul.mubr.bf16.gmra.mrb[4].mxu1 %v12442_v25  ;;  %11015 = vmatmul.mubr.bf16.vlgmr.msra.gmra.mrb[4].mxu0 %v12441_v52  ;;  %v12071_v57 = vld [vmem:[%s12662_s25 + $0x158] sm:$0xff]  }
 0x242   : > { %v1759_v23 = vadd.f32 %v1551_v34, %v13317_v6  ;;  %v13673_v39 = vadd.f32 %v2393_v1, %v1757_v48  ;;  %11375 = vmatpush3.bf16.msra.mxu0 %v12066_v51  ;;  %10834 = vmatprep.mubr.msk.bf16.mxu1 %vm12598_vm0, %v16593_v27 }
 0x243   : > { %11018 = vmatprep.mubr.msk.bf16.mxu0 %vm12598_vm0, %v16593_v27  ;;  %11376 = vmatprep.subr.bf16.mxu0 %v16593_v27 }
 0x244   : > { %v1203_v37 = vpop.f32.mrb[156].mxu1  ;;  %v2041_v5 = vpop.f32.mrb[156].mxu0  ;;  %11191 = vmatpush3.bf16.msra.mxu1 %v12069_v3  ;;  %v12070_v3 = vld [vmem:[%s12662_s25 + $0x190] sm:$0xff]  }
 0x245   : > { %v1552_v52 = vrot.slane %v1203_v37, 1  ;;  %v2394_v53 = vrot.slane %v2041_v5, 2  ;;  %v10524_v6 = vpop.f32.mrb[157].mxu1  ;;  %v10708_v48 = vpop.f32.mrb[157].mxu0  ;;  %11192 = vmatprep.subr.bf16.mxu1 %v16593_v27 }
 0x246   : > { %v1206_v28 = vpop.f32.mrb[158].mxu1  ;;  %v2044_v63 = vpop.f32.mrb[158].mxu0  ;;  %11377 = vmatpush3.bf16.msra.mxu0 %v12068_v11 }
 0x247   : > { %v1553_v55 = vsel %vm1480_vm1, %v1550_v31, %v1552_v52  ;;  %v2395_v51 = vsel %vm2326_vm2, %v2392_v61, %v2394_v53  ;;  %v1554_v15 = vrot.slane %v1206_v28, 1  ;;  %v2396_v49 = vrot.slane %v2044_v63, 2  ;;  %v10709_v10 = vpop.f32.mrb[159].mxu0  ;;  %v10525_v36 = vpop.f32.mrb[159].mxu1  ;;  %11378 = vmatprep.subr.bf16.mxu0 %v16593_v27  ;;  %v12443_v31 = vld [vmem:[%s16547_s0 + $0x10] sm:$0xff]  }
 0x248   : > { %v1760_v34 = vadd.f32 %v1553_v55, %v13321_v62  ;;  %v13688_v1 = vadd.f32 %v2395_v51, %v1758_v56  ;;  %11193 = vmatpush3.bf16.msra.mxu1 %v12071_v57  ;;  %v12072_v62 = vld [vmem:[%s12662_s25 + $0x198] sm:$0xff]  }
 0x249   : > { %v1555_v37 = vsel %vm1480_vm1, %v1552_v52, %v1554_v15  ;;  %v2397_v11 = vsel %vm2326_vm2, %v2394_v53, %v2396_v49  ;;  %10835 = vmatmul.mubr.bf16.gmra.mrb[8].mxu1 %v12443_v31  ;;  %11019 = vmatmul.mubr.bf16.gmra.mrb[8].mxu0 %v12442_v25 }
 0x24a   : > { %v1761_v61 = vadd.f32 %v1555_v37, %v13334_v9  ;;  %v13696_v5 = vadd.f32 %v2397_v11, %v1759_v23  ;;  %10838 = vmatprep.mubr.msk.bf16.mxu1 %vm12598_vm0, %v16593_v27  ;;  %11022 = vmatprep.mubr.msk.bf16.mxu0 %vm12598_vm0, %v16593_v27 }
 0x24b   : > { %11379 = vmatpush3.bf16.msra.mxu0 %v12070_v3  ;;  %11194 = vmatprep.subr.bf16.mxu1 %v16593_v27 }
 0x24c   : > { %v1211_v56 = vpop.f32.mrb[160].mxu1  ;;  %v2049_v57 = vpop.f32.mrb[160].mxu0  ;;  %11380 = vmatprep.subr.bf16.mxu0 %v16593_v27 }
 0x24d   : > { %v1556_v52 = vrot.slane %v1211_v56, 1  ;;  %v2398_v25 = vrot.slane %v2049_v57, 2  ;;  %v10528_v53 = vpop.f32.mrb[161].mxu1  ;;  %v10712_v9 = vpop.f32.mrb[161].mxu0 }
 0x24e   : > { %v1214_v23 = vpop.f32.mrb[162].mxu1  ;;  %v2052_v6 = vpop.f32.mrb[162].mxu0 }
 0x24f   : > { %v1557_v48 = vsel %vm1480_vm1, %v1554_v15, %v1556_v52  ;;  %v2399_v28 = vsel %vm2326_vm2, %v2396_v49, %v2398_v25  ;;  %v1558_v63 = vrot.slane %v1214_v23, 1  ;;  %v2400_v55 = vrot.slane %v2052_v6, 2  ;;  %v10713_v51 = vpop.f32.mrb[163].mxu0  ;;  %v10529_v10 = vpop.f32.mrb[163].mxu1  ;;  %11381 = vmatpush3.bf16.msra.mxu0 %v12072_v62  ;;  %v12444_v15 = vld [vmem:[%s16547_s0 + $0x18] sm:$0xff]  }
 0x250   : > { %v1762_v36 = vadd.f32 %v1557_v48, %v13340_v2  ;;  %v13708_v3 = vadd.f32 %v2399_v28, %v1760_v34  ;;  %11382 = vmatprep.subr.bf16.mxu0 %v16593_v27 }
 0x251   : > { %v1559_v37 = vsel %vm1480_vm1, %v1556_v52, %v1558_v63  ;;  %v2401_v11 = vsel %vm2326_vm2, %v2398_v25, %v2400_v55  ;;  %10839 = vmatmul.mubr.bf16.gmra.mrb[12].mxu1 %v12444_v15  ;;  %11023 = vmatmul.mubr.bf16.gmra.mrb[12].mxu0 %v12443_v31 }
 0x252   : > { %v1763_v49 = vadd.f32 %v1559_v37, %v13349_v59  ;;  %v13717_v56 = vadd.f32 %v2401_v11, %v1761_v61  ;;  %10842 = vmatprep.mubr.msk.bf16.mxu1 %vm12598_vm0, %v16593_v27  ;;  %11026 = vmatprep.mubr.msk.bf16.mxu0 %vm12598_vm0, %v16593_v27  ;;  %v12445_v11 = vld [vmem:[%s16547_s0 + $0x20] sm:$0xff]  }
 0x254   : > { %v1219_v2 = vpop.f32.mrb[164].mxu1  ;;  %v2057_v34 = vpop.f32.mrb[164].mxu0 }
 0x255   : > { %v1560_v62 = vrot.slane %v1219_v2, 1  ;;  %v2402_v57 = vrot.slane %v2057_v34, 2  ;;  %v10532_v52 = vpop.f32.mrb[165].mxu1  ;;  %v10716_v25 = vpop.f32.mrb[165].mxu0 }
 0x256   : > { %v1222_v53 = vpop.f32.mrb[166].mxu1  ;;  %v2060_v9 = vpop.f32.mrb[166].mxu0 }
 0x257   : > { %v1561_v31 = vsel %vm1480_vm1, %v1558_v63, %v1560_v62  ;;  %v2403_v59 = vsel %vm2326_vm2, %v2400_v55, %v2402_v57  ;;  %v1562_v61 = vrot.slane %v1222_v53, 1  ;;  %v2404_v23 = vrot.slane %v2060_v9, 2  ;;  %v10717_v6 = vpop.f32.mrb[167].mxu0  ;;  %v10533_v48 = vpop.f32.mrb[167].mxu1 }
 0x258   : > { %v1764_v28 = vadd.f32 %v1561_v31, %v13351_v45  ;;  %v13726_v51 = vadd.f32 %v2403_v59, %v1762_v36 }
 0x259   : > { %v1563_v10 = vsel %vm1480_vm1, %v1560_v62, %v1562_v61  ;;  %v2405_v37 = vsel %vm2326_vm2, %v2402_v57, %v2404_v23  ;;  %10843 = vmatmul.mubr.bf16.gmra.mrb[16].mxu1 %v12445_v11  ;;  %11027 = vmatmul.mubr.bf16.gmra.mrb[16].mxu0 %v12444_v15 }
 0x25a   : > { %v1765_v63 = vadd.f32 %v1563_v10, %v13360_v54  ;;  %v13734_v55 = vadd.f32 %v2405_v37, %v1763_v49  ;;  %10846 = vmatprep.mubr.msk.bf16.mxu1 %vm12598_vm0, %v16593_v27  ;;  %11030 = vmatprep.mubr.msk.bf16.mxu0 %vm12598_vm0, %v16593_v27  ;;  %v12446_v37 = vld [vmem:[%s16547_s0 + $0x28] sm:$0xff]  }
 0x25c   : > { %v1227_v45 = vpop.f32.mrb[168].mxu1  ;;  %v2065_v36 = vpop.f32.mrb[168].mxu0 }
 0x25d   : > { %v1564_v2 = vrot.slane %v1227_v45, 1  ;;  %v2406_v34 = vrot.slane %v2065_v36, 2  ;;  %v10536_v62 = vpop.f32.mrb[169].mxu1  ;;  %v10720_v57 = vpop.f32.mrb[169].mxu0 }
 0x25e   : > { %v1230_v52 = vpop.f32.mrb[170].mxu1  ;;  %v2068_v25 = vpop.f32.mrb[170].mxu0 }
 0x25f   : > { %v1565_v15 = vsel %vm1480_vm1, %v1562_v61, %v1564_v2  ;;  %v2407_v54 = vsel %vm2326_vm2, %v2404_v23, %v2406_v34  ;;  %v1566_v49 = vrot.slane %v1230_v52, 1  ;;  %v2408_v53 = vrot.slane %v2068_v25, 2  ;;  %v10721_v9 = vpop.f32.mrb[171].mxu0  ;;  %v10537_v31 = vpop.f32.mrb[171].mxu1  ;;  %v16595_v61 = vld [vmem:[#allocation40_spill] sm:$0xff] }
 0x260   : > { %v1766_v59 = vadd.f32 %v1565_v15, %v13362_v19  ;;  %v13743_v6 = vadd.f32 %v2407_v54, %v1764_v28  ;;  %v16596_v31 = vld [vmem:[#allocation41_spill] sm:$0xff] }
 0x261   : > { %v1567_v48 = vsel %vm1480_vm1, %v1564_v2, %v1566_v49  ;;  %v2409_v10 = vsel %vm2326_vm2, %v2406_v34, %v2408_v53  ;;  %10847 = vmatmul.mubr.bf16.gmra.mrb[20].mxu1 %v12446_v37  ;;  %11031 = vmatmul.mubr.bf16.gmra.mrb[20].mxu0 %v12445_v11 }
 0x262   : > { %v1767_v23 = vadd.f32 %v1567_v48, %v16595_v61  ;;  %v13751_v45 = vadd.f32 %v2409_v10, %v1765_v63  ;;  %10850 = vmatprep.mubr.msk.bf16.mxu1 %vm12598_vm0, %v16593_v27  ;;  %11034 = vmatprep.mubr.msk.bf16.mxu0 %vm12598_vm0, %v16593_v27 }
 0x264   : > { %v1235_v19 = vpop.f32.mrb[172].mxu1  ;;  %v2073_v28 = vpop.f32.mrb[172].mxu0 }
 0x265   : > { %v1568_v36 = vrot.slane %v1235_v19, 1  ;;  %v2410_v2 = vrot.slane %v2073_v28, 2  ;;  %v10540_v34 = vpop.f32.mrb[173].mxu1  ;;  %v10724_v62 = vpop.f32.mrb[173].mxu0  ;;  %v12447_v28 = vld [vmem:[%s16547_s0 + $0x30] sm:$0xff]  }
 0x266   : > { %v1238_v57 = vpop.f32.mrb[174].mxu1  ;;  %v2076_v52 = vpop.f32.mrb[174].mxu0 }
 0x267   : > { %v1569_v11 = vsel %vm1480_vm1, %v1566_v49, %v1568_v36  ;;  %v2411_v25 = vsel %vm2326_vm2, %v2408_v53, %v2410_v2  ;;  %v1570_v63 = vrot.slane %v1238_v57, 1  ;;  %v2412_v15 = vrot.slane %v2076_v52, 2  ;;  %v10725_v54 = vpop.f32.mrb[175].mxu0  ;;  %v10541_v9 = vpop.f32.mrb[175].mxu1  ;;  %v16598_v49 = vld [vmem:[#allocation3_spill] sm:$0xff] }
 0x268   : > { %v1768_v48 = vadd.f32 %v1569_v11, %v16596_v31  ;;  %v13760_v10 = vadd.f32 %v2411_v25, %v1766_v59 }
 0x269   : > { %v1571_v61 = vsel %vm1480_vm1, %v1568_v36, %v1570_v63  ;;  %v2413_v19 = vsel %vm2326_vm2, %v2410_v2, %v2412_v15  ;;  %10851 = vmatmul.mubr.bf16.gmra.mrb[24].mxu1 %v12447_v28  ;;  %11035 = vmatmul.mubr.bf16.gmra.mrb[24].mxu0 %v12446_v37 }
 0x26a   : > { %16597 = vst [vmem:[#allocation40_spill] sm:$0xff] %v13760_v10  ;;  %v1769_v53 = vadd.f32 %v1571_v61, %v16598_v49  ;;  %v13768_v34 = vadd.f32 %v2413_v19, %v1767_v23  ;;  %10854 = vmatprep.mubr.msk.bf16.mxu1 %vm12598_vm0, %v16593_v27  ;;  %11038 = vmatprep.mubr.msk.bf16.mxu0 %vm12598_vm0, %v16593_v27  ;;  %v16600_v19 = vld [vmem:[#allocation4_spill] sm:$0xff]  ;;  %v12073_v10 = vld [vmem:[%s12662_s25 + $0x160] sm:$0xff]  }
 0x26b   : > { %11195 = vmatpush3.bf16.msra.mxu1 %v12073_v10 }
 0x26c   : > { %16599 = vst [vmem:[#allocation41_spill] sm:$0xff] %v13768_v34  ;;  %v1243_v59 = vpop.f32.mrb[176].mxu1  ;;  %v2081_v36 = vpop.f32.mrb[176].mxu0  ;;  %11196 = vmatprep.subr.bf16.mxu1 %v16593_v27 }
 0x26d   : > { %v1572_v2 = vrot.slane %v1243_v59, 1  ;;  %v2414_v62 = vrot.slane %v2081_v36, 2  ;;  %v10544_v57 = vpop.f32.mrb[177].mxu1  ;;  %v10728_v52 = vpop.f32.mrb[177].mxu0 }
 0x26e   : > { %v1246_v11 = vpop.f32.mrb[178].mxu1  ;;  %v2084_v25 = vpop.f32.mrb[178].mxu0 }
 0x26f   : > { %v1573_v37 = vsel %vm1480_vm1, %v1570_v63, %v1572_v2  ;;  %v2415_v23 = vsel %vm2326_vm2, %v2412_v15, %v2414_v62  ;;  %v1574_v54 = vrot.slane %v1246_v11, 1  ;;  %v2416_v9 = vrot.slane %v2084_v25, 2  ;;  %v10729_v31 = vpop.f32.mrb[179].mxu0  ;;  %v10545_v61 = vpop.f32.mrb[179].mxu1  ;;  %v12448_v63 = vld [vmem:[%s16547_s0 + $0x38] sm:$0xff]  }
 0x270   : > { %v1770_v49 = vadd.f32 %v1573_v37, %v16600_v19  ;;  %v13777_v34 = vadd.f32 %v2415_v23, %v1768_v48  ;;  %v16602_v15 = vld [vmem:[#allocation5_spill] sm:$0xff]  ;;  %v12074_v48 = vld [vmem:[%s12662_s25 + $0x1a0] sm:$0xff]  }
 0x271   : > { %v1575_v59 = vsel %vm1480_vm1, %v1572_v2, %v1574_v54  ;;  %v2417_v36 = vsel %vm2326_vm2, %v2414_v62, %v2416_v9  ;;  %10855 = vmatmul.mubr.bf16.gmra.mrb[28].mxu1 %v12448_v63  ;;  %11039 = vmatmul.mubr.bf16.gmra.mrb[28].mxu0 %v12447_v28 }
 0x272   : > { %16601 = vst [vmem:[#allocation3_spill] sm:$0xff] %v13777_v34  ;;  %v1771_v57 = vadd.f32 %v1575_v59, %v16602_v15  ;;  %v13786_v52 = vadd.f32 %v2417_v36, %v1769_v53  ;;  %10858 = vmatprep.mubr.msk.bf16.mxu1 %vm12598_vm0, %v16593_v27  ;;  %11042 = vmatprep.mubr.msk.bf16.mxu0 %vm12598_vm0, %v16593_v27  ;;  %v16604_v15 = vld [vmem:[#allocation6_spill] sm:$0xff] }
 0x273   : > { %11383 = vmatpush3.bf16.msra.mxu0 %v12074_v48 }
 0x274   : > { %16603 = vst [vmem:[#allocation4_spill] sm:$0xff] %v13786_v52  ;;  %v1251_v2 = vpop.f32.mrb[180].mxu1  ;;  %v2089_v62 = vpop.f32.mrb[180].mxu0  ;;  %11384 = vmatprep.subr.bf16.mxu0 %v16593_v27 }
 0x275   : > { %v1576_v11 = vrot.slane %v1251_v2, 1  ;;  %v2418_v25 = vrot.slane %v2089_v62, 2  ;;  %v10548_v28 = vpop.f32.mrb[181].mxu1  ;;  %v10732_v37 = vpop.f32.mrb[181].mxu0 }
 0x276   : > { %v1254_v53 = vpop.f32.mrb[182].mxu1  ;;  %v2092_v23 = vpop.f32.mrb[182].mxu0  ;;  %v12449_v28 = vld [vmem:[%s16547_s0 + $0x40] sm:$0xff]  }
 0x277   : > { %v1577_v31 = vsel %vm1480_vm1, %v1574_v54, %v1576_v11  ;;  %v2419_v61 = vsel %vm2326_vm2, %v2416_v9, %v2418_v25  ;;  %v1578_v19 = vrot.slane %v1254_v53, 1  ;;  %v2420_v59 = vrot.slane %v2092_v23, 2  ;;  %v10733_v10 = vpop.f32.mrb[183].mxu0  ;;  %v10549_v36 = vpop.f32.mrb[183].mxu1  ;;  %v16606_v54 = vld [vmem:[#allocation7_spill] sm:$0xff] }
 0x278   : > { %v1772_v48 = vadd.f32 %v1577_v31, %v16604_v15  ;;  %v13798_v52 = vadd.f32 %v2419_v61, %v1770_v49 }
 0x279   : > { %v1579_v2 = vsel %vm1480_vm1, %v1576_v11, %v1578_v19  ;;  %v2421_v62 = vsel %vm2326_vm2, %v2418_v25, %v2420_v59  ;;  %10859 = vmatmul.mubr.bf16.gmra.mrb[32].mxu1 %v12449_v28  ;;  %11043 = vmatmul.mubr.bf16.gmra.mrb[32].mxu0 %v12448_v63 }
 0x27a   : > { %16605 = vst [vmem:[#allocation5_spill] sm:$0xff] %v13798_v52  ;;  %v1773_v9 = vadd.f32 %v1579_v2, %v16606_v54  ;;  %v13806_v37 = vadd.f32 %v2421_v62, %v1771_v57  ;;  %10862 = vmatprep.mubr.msk.bf16.mxu1 %vm12598_vm0, %v16593_v27  ;;  %11046 = vmatprep.mubr.msk.bf16.mxu0 %vm12598_vm0, %v16593_v27  ;;  %v16608_v54 = vld [vmem:[#allocation8_spill] sm:$0xff] }
 0x27c   : > { %16607 = vst [vmem:[#allocation6_spill] sm:$0xff] %v13806_v37  ;;  %v1259_v49 = vpop.f32.mrb[184].mxu1  ;;  %v2097_v11 = vpop.f32.mrb[184].mxu0 }
 0x27d   : > { %v1580_v53 = vrot.slane %v1259_v49, 1  ;;  %v2422_v25 = vrot.slane %v2097_v11, 2  ;;  %v10552_v23 = vpop.f32.mrb[185].mxu1  ;;  %v10736_v31 = vpop.f32.mrb[185].mxu0  ;;  %v12450_v11 = vld [vmem:[%s16547_s0 + $0x48] sm:$0xff]  }
 0x27e   : > { %v1262_v61 = vpop.f32.mrb[186].mxu1  ;;  %v2100_v10 = vpop.f32.mrb[186].mxu0 }
 0x27f   : > { %v1581_v63 = vsel %vm1480_vm1, %v1578_v19, %v1580_v53  ;;  %v2423_v36 = vsel %vm2326_vm2, %v2420_v59, %v2422_v25  ;;  %v1582_v57 = vrot.slane %v1262_v61, 1  ;;  %v2424_v15 = vrot.slane %v2100_v10, 2  ;;  %v10737_v2 = vpop.f32.mrb[187].mxu0  ;;  %v10553_v62 = vpop.f32.mrb[187].mxu1  ;;  %v16610_v19 = vld [vmem:[#allocation9_spill] sm:$0xff] }
 0x280   : > { %v1774_v37 = vadd.f32 %v1581_v63, %v16608_v54  ;;  %v13815_v52 = vadd.f32 %v2423_v36, %v1772_v48 }
 0x281   : > { %v1583_v34 = vsel %vm1480_vm1, %v1580_v53, %v1582_v57  ;;  %v2425_v49 = vsel %vm2326_vm2, %v2422_v25, %v2424_v15  ;;  %10863 = vmatmul.mubr.bf16.gmra.mrb[36].mxu1 %v12450_v11  ;;  %11047 = vmatmul.mubr.bf16.gmra.mrb[36].mxu0 %v12449_v28 }
 0x282   : > { %16609 = vst [vmem:[#allocation7_spill] sm:$0xff] %v13815_v52  ;;  %v1775_v59 = vadd.f32 %v1583_v34, %v16610_v19  ;;  %v13823_v23 = vadd.f32 %v2425_v49, %v1773_v9  ;;  %10866 = vmatprep.mubr.msk.bf16.mxu1 %vm12598_vm0, %v16593_v27  ;;  %11050 = vmatprep.mubr.msk.bf16.mxu0 %vm12598_vm0, %v16593_v27  ;;  %v16612_v49 = vld [vmem:[#allocation10_spill] sm:$0xff] }
 0x284   : > { %16611 = vst [vmem:[#allocation8_spill] sm:$0xff] %v13823_v23  ;;  %v1267_v48 = vpop.f32.mrb[188].mxu1  ;;  %v2105_v53 = vpop.f32.mrb[188].mxu0 }
 0x285   : > { %v1584_v31 = vrot.slane %v1267_v48, 1  ;;  %v2426_v25 = vrot.slane %v2105_v53, 2  ;;  %v10556_v61 = vpop.f32.mrb[189].mxu1  ;;  %v10740_v10 = vpop.f32.mrb[189].mxu0  ;;  %v12451_v53 = vld [vmem:[%s16547_s0 + $0x50] sm:$0xff]  }
 0x286   : > { %v1270_v63 = vpop.f32.mrb[190].mxu1  ;;  %v2108_v36 = vpop.f32.mrb[190].mxu0 }
 0x287   : > { %v1585_v28 = vsel %vm1480_vm1, %v1582_v57, %v1584_v31  ;;  %v2427_v34 = vsel %vm2326_vm2, %v2424_v15, %v2426_v25  ;;  %v1586_v9 = vrot.slane %v1270_v63, 1  ;;  %v2428_v2 = vrot.slane %v2108_v36, 2  ;;  %v10741_v62 = vpop.f32.mrb[191].mxu0  ;;  %v10557_v54 = vpop.f32.mrb[191].mxu1  ;;  %v16614_v57 = vld [vmem:[#allocation11_spill] sm:$0xff] }
 0x288   : > { %v1776_v19 = vadd.f32 %v1585_v28, %v16612_v49  ;;  %v13832_v23 = vadd.f32 %v2427_v34, %v1774_v37 }
 0x289   : > { %v1587_v52 = vsel %vm1480_vm1, %v1584_v31, %v1586_v9  ;;  %v2429_v48 = vsel %vm2326_vm2, %v2426_v25, %v2428_v2  ;;  %10867 = vmatmul.mubr.bf16.gmra.mrb[40].mxu1 %v12451_v53  ;;  %11051 = vmatmul.mubr.bf16.gmra.mrb[40].mxu0 %v12450_v11 }
 0x28a   : > { %16613 = vst [vmem:[#allocation9_spill] sm:$0xff] %v13832_v23  ;;  %v1777_v15 = vadd.f32 %v1587_v52, %v16614_v57  ;;  %v13840_v61 = vadd.f32 %v2429_v48, %v1775_v59  ;;  %10870 = vmatprep.mubr.msk.bf16.mxu1 %vm12598_vm0, %v16593_v27  ;;  %11054 = vmatprep.mubr.msk.bf16.mxu0 %vm12598_vm0, %v16593_v27  ;;  %v16616_v48 = vld [vmem:[#allocation12_spill] sm:$0xff] }
 0x28c   : > { %16615 = vst [vmem:[#allocation10_spill] sm:$0xff] %v13840_v61  ;;  %v1275_v37 = vpop.f32.mrb[192].mxu1  ;;  %v2113_v31 = vpop.f32.mrb[192].mxu0 }
 0x28d   : > { %v1588_v10 = vrot.slane %v1275_v37, 1  ;;  %v2430_v25 = vrot.slane %v2113_v31, 2  ;;  %v10560_v63 = vpop.f32.mrb[193].mxu1  ;;  %v10744_v36 = vpop.f32.mrb[193].mxu0  ;;  %v12452_v31 = vld [vmem:[%s16547_s0 + $0x58] sm:$0xff]  }
 0x28e   : > { %v1278_v28 = vpop.f32.mrb[194].mxu1  ;;  %v2116_v34 = vpop.f32.mrb[194].mxu0 }
 0x28f   : > { %v1589_v11 = vsel %vm1480_vm1, %v1586_v9, %v1588_v10  ;;  %v2431_v52 = vsel %vm2326_vm2, %v2428_v2, %v2430_v25  ;;  %v1590_v59 = vrot.slane %v1278_v28, 1  ;;  %v2432_v62 = vrot.slane %v2116_v34, 2  ;;  %v10745_v54 = vpop.f32.mrb[195].mxu0  ;;  %v10561_v49 = vpop.f32.mrb[195].mxu1  ;;  %v16618_v9 = vld [vmem:[#allocation13_spill] sm:$0xff] }
 0x290   : > { %v1778_v57 = vadd.f32 %v1589_v11, %v16616_v48  ;;  %v13849_v61 = vadd.f32 %v2431_v52, %v1776_v19 }
 0x291   : > { %v1591_v23 = vsel %vm1480_vm1, %v1588_v10, %v1590_v59  ;;  %v2433_v37 = vsel %vm2326_vm2, %v2430_v25, %v2432_v62  ;;  %10871 = vmatmul.mubr.bf16.gmra.mrb[44].mxu1 %v12452_v31  ;;  %11055 = vmatmul.mubr.bf16.gmra.mrb[44].mxu0 %v12451_v53 }
 0x292   : > { %16617 = vst [vmem:[#allocation11_spill] sm:$0xff] %v13849_v61  ;;  %v1779_v2 = vadd.f32 %v1591_v23, %v16618_v9  ;;  %v13857_v63 = vadd.f32 %v2433_v37, %v1777_v15  ;;  %10874 = vmatprep.mubr.msk.bf16.mxu1 %vm12598_vm0, %v16593_v27  ;;  %11058 = vmatprep.mubr.msk.bf16.mxu0 %vm12598_vm0, %v16593_v27  ;;  %v16620_v37 = vld [vmem:[#allocation14_spill] sm:$0xff] }
 0x294   : > { %16619 = vst [vmem:[#allocation12_spill] sm:$0xff] %v13857_v63  ;;  %v1283_v19 = vpop.f32.mrb[196].mxu1  ;;  %v2121_v10 = vpop.f32.mrb[196].mxu0 }
 0x295   : > { %v1592_v36 = vrot.slane %v1283_v19, 1  ;;  %v2434_v25 = vrot.slane %v2121_v10, 2  ;;  %v10564_v28 = vpop.f32.mrb[197].mxu1  ;;  %v10748_v34 = vpop.f32.mrb[197].mxu0 }
 0x296   : > { %v1286_v11 = vpop.f32.mrb[198].mxu1  ;;  %v2124_v52 = vpop.f32.mrb[198].mxu0 }
 0x297   : > { %v1593_v53 = vsel %vm1480_vm1, %v1590_v59, %v1592_v36  ;;  %v2435_v23 = vsel %vm2326_vm2, %v2432_v62, %v2434_v25  ;;  %v1594_v15 = vrot.slane %v1286_v11, 1  ;;  %v2436_v54 = vrot.slane %v2124_v52, 2  ;;  %v10749_v49 = vpop.f32.mrb[199].mxu0  ;;  %v10565_v48 = vpop.f32.mrb[199].mxu1  ;;  %v12453_v59 = vld [vmem:[%s16547_s0 + $0x60] sm:$0xff]   ;;  %v16622_v62 = vld [vmem:[#allocation15_spill] sm:$0xff] }
 0x298   : > { %v1780_v9 = vadd.f32 %v1593_v53, %v16620_v37  ;;  %v13866_v63 = vadd.f32 %v2435_v23, %v1778_v57  ;;  %v12075_v57 = vld [vmem:[%s12662_s25 + $0x168] sm:$0xff]  }
 0x299   : > { %v1595_v19 = vsel %vm1480_vm1, %v1592_v36, %v1594_v15  ;;  %v2437_v10 = vsel %vm2326_vm2, %v2434_v25, %v2436_v54  ;;  %10875 = vmatmul.mubr.bf16.gmra.mrb[48].mxu1 %v12453_v59  ;;  %11059 = vmatmul.mubr.bf16.gmra.mrb[48].mxu0 %v12452_v31  ;;  %v12076_v36 = vld [vmem:[%s12662_s25 + $0x1a8] sm:$0xff]  }
 0x29a   : > { %16621 = vst [vmem:[#allocation13_spill] sm:$0xff] %v13866_v63  ;;  %v1781_v28 = vadd.f32 %v1595_v19, %v16622_v62  ;;  %v13874_v34 = vadd.f32 %v2437_v10, %v1779_v2  ;;  %10878 = vmatprep.mubr.msk.bf16.mxu1 %vm12598_vm0, %v16593_v27  ;;  %11062 = vmatprep.mubr.msk.bf16.mxu0 %vm12598_vm0, %v16593_v27 }
 0x29b   : > { %11197 = vmatpush3.bf16.msra.mxu1 %v12075_v57  ;;  %11385 = vmatpush3.bf16.msra.mxu0 %v12076_v36  ;;  %v16624_v57 = vld [vmem:[#allocation16_spill] sm:$0xff] }
 0x29c   : > { %16623 = vst [vmem:[#allocation14_spill] sm:$0xff] %v13874_v34  ;;  %v1291_v11 = vpop.f32.mrb[200].mxu1  ;;  %v2129_v25 = vpop.f32.mrb[200].mxu0  ;;  %11198 = vmatprep.subr.bf16.mxu1 %v16593_v27  ;;  %11386 = vmatprep.subr.bf16.mxu0 %v16593_v27 }
 0x29d   : > { %v1596_v52 = vrot.slane %v1291_v11, 1  ;;  %v2438_v53 = vrot.slane %v2129_v25, 2  ;;  %v10568_v23 = vpop.f32.mrb[201].mxu1  ;;  %v10752_v31 = vpop.f32.mrb[201].mxu0 }
 0x29e   : > { %v1294_v2 = vpop.f32.mrb[202].mxu1  ;;  %v2132_v49 = vpop.f32.mrb[202].mxu0  ;;  %v12454_v31 = vld [vmem:[%s16547_s0 + $0x68] sm:$0xff]  }
 0x29f   : > { %v1597_v48 = vsel %vm1480_vm1, %v1594_v15, %v1596_v52  ;;  %v2439_v37 = vsel %vm2326_vm2, %v2436_v54, %v2438_v53  ;;  %v1598_v19 = vrot.slane %v1294_v2, 1  ;;  %v2440_v10 = vrot.slane %v2132_v49, 2  ;;  %v10753_v62 = vpop.f32.mrb[203].mxu0  ;;  %v10569_v34 = vpop.f32.mrb[203].mxu1  ;;  %v16626_v15 = vld [vmem:[#allocation17_spill] sm:$0xff] }
 0x2a0   : > { %v1782_v36 = vadd.f32 %v1597_v48, %v16624_v57  ;;  %v13887_v11 = vadd.f32 %v2439_v37, %v1780_v9 }
 0x2a1   : > { %v1599_v25 = vsel %vm1480_vm1, %v1596_v52, %v1598_v19  ;;  %v2441_v23 = vsel %vm2326_vm2, %v2438_v53, %v2440_v10  ;;  %10879 = vmatmul.mubr.bf16.gmra.mrb[52].mxu1 %v12454_v31  ;;  %11063 = vmatmul.mubr.bf16.gmra.mrb[52].mxu0 %v12453_v59 }
 0x2a2   : > { %16625 = vst [vmem:[#allocation15_spill] sm:$0xff] %v13887_v11  ;;  %v1783_v54 = vadd.f32 %v1599_v25, %v16626_v15  ;;  %v13895_v2 = vadd.f32 %v2441_v23, %v1781_v28  ;;  %10882 = vmatprep.mubr.msk.bf16.mxu1 %vm12598_vm0, %v16593_v27  ;;  %11066 = vmatprep.mubr.msk.bf16.mxu0 %vm12598_vm0, %v16593_v27 }
 0x2a4   : > { %16627 = vst [vmem:[#allocation16_spill] sm:$0xff] %v13895_v2  ;;  %v1299_v9 = vpop.f32.mrb[204].mxu1  ;;  %v2137_v34 = vpop.f32.mrb[204].mxu0  ;;  %v16628_v2 = vld [vmem:[#allocation18_spill] sm:$0xff] }
 0x2a5   : > { %v1600_v52 = vrot.slane %v1299_v9, 1  ;;  %v2442_v53 = vrot.slane %v2137_v34, 2  ;;  %v10572_v49 = vpop.f32.mrb[205].mxu1  ;;  %v10756_v48 = vpop.f32.mrb[205].mxu0  ;;  %v12455_v34 = vld [vmem:[%s16547_s0 + $0x70] sm:$0xff]  }
 0x2a6   : > { %v1302_v37 = vpop.f32.mrb[206].mxu1  ;;  %v2140_v62 = vpop.f32.mrb[206].mxu0 }
 0x2a7   : > { %v1601_v59 = vsel %vm1480_vm1, %v1598_v19, %v1600_v52  ;;  %v2443_v57 = vsel %vm2326_vm2, %v2440_v10, %v2442_v53  ;;  %v1602_v28 = vrot.slane %v1302_v37, 1  ;;  %v2444_v25 = vrot.slane %v2140_v62, 2  ;;  %v10757_v23 = vpop.f32.mrb[207].mxu0  ;;  %v10573_v15 = vpop.f32.mrb[207].mxu1  ;;  %v16630_v19 = vld [vmem:[#allocation19_spill] sm:$0xff] }
 0x2a8   : > { %v1784_v11 = vadd.f32 %v1601_v59, %v16628_v2  ;;  %v13904_v63 = vadd.f32 %v2443_v57, %v1782_v36 }
 0x2a9   : > { %v1603_v61 = vsel %vm1480_vm1, %v1600_v52, %v1602_v28  ;;  %v2445_v9 = vsel %vm2326_vm2, %v2442_v53, %v2444_v25  ;;  %10883 = vmatmul.mubr.bf16.gmra.mrb[56].mxu1 %v12455_v34  ;;  %11067 = vmatmul.mubr.bf16.gmra.mrb[56].mxu0 %v12454_v31 }
 0x2aa   : > { %16629 = vst [vmem:[#allocation17_spill] sm:$0xff] %v13904_v63  ;;  %v1785_v10 = vadd.f32 %v1603_v61, %v16630_v19  ;;  %v13912_v49 = vadd.f32 %v2445_v9, %v1783_v54  ;;  %10886 = vmatprep.mubr.msk.bf16.mxu1 %vm12598_vm0, %v16593_v27  ;;  %11070 = vmatprep.mubr.msk.bf16.mxu0 %vm12598_vm0, %v16593_v27  ;;  %v16632_v9 = vld [vmem:[#allocation20_spill] sm:$0xff] }
 0x2ac   : > { %16631 = vst [vmem:[#allocation18_spill] sm:$0xff] %v13912_v49  ;;  %v1307_v36 = vpop.f32.mrb[208].mxu1  ;;  %v2145_v2 = vpop.f32.mrb[208].mxu0 }
 0x2ad   : > { %v1604_v52 = vrot.slane %v1307_v36, 1  ;;  %v2446_v53 = vrot.slane %v2145_v2, 2  ;;  %v10576_v48 = vpop.f32.mrb[209].mxu1  ;;  %v10760_v37 = vpop.f32.mrb[209].mxu0  ;;  %v12456_v2 = vld [vmem:[%s16547_s0 + $0x78] sm:$0xff]  }
 0x2ae   : > { %v1310_v62 = vpop.f32.mrb[210].mxu1  ;;  %v2148_v59 = vpop.f32.mrb[210].mxu0 }
 0x2af   : > { %v1605_v31 = vsel %vm1480_vm1, %v1602_v28, %v1604_v52  ;;  %v2447_v61 = vsel %vm2326_vm2, %v2444_v25, %v2446_v53  ;;  %v1606_v54 = vrot.slane %v1310_v62, 1  ;;  %v2448_v57 = vrot.slane %v2148_v59, 2  ;;  %v10761_v23 = vpop.f32.mrb[211].mxu0  ;;  %v10577_v15 = vpop.f32.mrb[211].mxu1  ;;  %v16634_v28 = vld [vmem:[#allocation21_spill] sm:$0xff] }
 0x2b0   : > { %v1786_v19 = vadd.f32 %v1605_v31, %v16632_v9  ;;  %v13921_v49 = vadd.f32 %v2447_v61, %v1784_v11 }
 0x2b1   : > { %v1607_v63 = vsel %vm1480_vm1, %v1604_v52, %v1606_v54  ;;  %v2449_v36 = vsel %vm2326_vm2, %v2446_v53, %v2448_v57  ;;  %10887 = vmatmul.mubr.bf16.gmra.mrb[60].mxu1 %v12456_v2  ;;  %11071 = vmatmul.mubr.bf16.gmra.mrb[60].mxu0 %v12455_v34 }
 0x2b2   : > { %16633 = vst [vmem:[#allocation19_spill] sm:$0xff] %v13921_v49  ;;  %v1787_v25 = vadd.f32 %v1607_v63, %v16634_v28  ;;  %v13929_v48 = vadd.f32 %v2449_v36, %v1785_v10  ;;  %10890 = vmatprep.mubr.msk.bf16.mxu1 %vm12598_vm0, %v16593_v27  ;;  %11074 = vmatprep.mubr.msk.bf16.mxu0 %vm12598_vm0, %v16593_v27  ;;  %v16636_v36 = vld [vmem:[#allocation22_spill] sm:$0xff] }
 0x2b4   : > { %16635 = vst [vmem:[#allocation20_spill] sm:$0xff] %v13929_v48  ;;  %v1315_v11 = vpop.f32.mrb[212].mxu1  ;;  %v2153_v52 = vpop.f32.mrb[212].mxu0 }
 0x2b5   : > { %v1608_v37 = vrot.slane %v1315_v11, 1  ;;  %v2450_v53 = vrot.slane %v2153_v52, 2  ;;  %v10580_v62 = vpop.f32.mrb[213].mxu1  ;;  %v10764_v59 = vpop.f32.mrb[213].mxu0  ;;  %v12457_v52 = vld [vmem:[%s16547_s0 + $0x80] sm:$0xff]  }
 0x2b6   : > { %v1318_v31 = vpop.f32.mrb[214].mxu1  ;;  %v2156_v61 = vpop.f32.mrb[214].mxu0 }
 0x2b7   : > { %v1609_v34 = vsel %vm1480_vm1, %v1606_v54, %v1608_v37  ;;  %v2451_v63 = vsel %vm2326_vm2, %v2448_v57, %v2450_v53  ;;  %v1610_v10 = vrot.slane %v1318_v31, 1  ;;  %v2452_v23 = vrot.slane %v2156_v61, 2  ;;  %v10765_v15 = vpop.f32.mrb[215].mxu0  ;;  %v10581_v9 = vpop.f32.mrb[215].mxu1  ;;  %v16638_v54 = vld [vmem:[#allocation23_spill] sm:$0xff] }
 0x2b8   : > { %v1788_v28 = vadd.f32 %v1609_v34, %v16636_v36  ;;  %v13938_v48 = vadd.f32 %v2451_v63, %v1786_v19 }
 0x2b9   : > { %v1611_v49 = vsel %vm1480_vm1, %v1608_v37, %v1610_v10  ;;  %v2453_v11 = vsel %vm2326_vm2, %v2450_v53, %v2452_v23  ;;  %10891 = vmatmul.mubr.bf16.gmra.mrb[64].mxu1 %v12457_v52  ;;  %11075 = vmatmul.mubr.bf16.gmra.mrb[64].mxu0 %v12456_v2 }
 0x2ba   : > { %16637 = vst [vmem:[#allocation21_spill] sm:$0xff] %v13938_v48  ;;  %v1789_v57 = vadd.f32 %v1611_v49, %v16638_v54  ;;  %v13946_v62 = vadd.f32 %v2453_v11, %v1787_v25  ;;  %10894 = vmatprep.mubr.msk.bf16.mxu1 %vm12598_vm0, %v16593_v27  ;;  %11078 = vmatprep.mubr.msk.bf16.mxu0 %vm12598_vm0, %v16593_v27  ;;  %v16640_v11 = vld [vmem:[#allocation24_spill] sm:$0xff] }
 0x2bc   : > { %16639 = vst [vmem:[#allocation22_spill] sm:$0xff] %v13946_v62  ;;  %v1323_v19 = vpop.f32.mrb[216].mxu1  ;;  %v2161_v37 = vpop.f32.mrb[216].mxu0 }
 0x2bd   : > { %v1612_v59 = vrot.slane %v1323_v19, 1  ;;  %v2454_v53 = vrot.slane %v2161_v37, 2  ;;  %v10584_v31 = vpop.f32.mrb[217].mxu1  ;;  %v10768_v61 = vpop.f32.mrb[217].mxu0 }
 0x2be   : > { %v1326_v34 = vpop.f32.mrb[218].mxu1  ;;  %v2164_v63 = vpop.f32.mrb[218].mxu0  ;;  %v12458_v31 = vld [vmem:[%s16547_s0 + $0x88] sm:$0xff]  }
 0x2bf   : > { %v1613_v2 = vsel %vm1480_vm1, %v1610_v10, %v1612_v59  ;;  %v2455_v49 = vsel %vm2326_vm2, %v2452_v23, %v2454_v53  ;;  %v1614_v25 = vrot.slane %v1326_v34, 1  ;;  %v2456_v15 = vrot.slane %v2164_v63, 2  ;;  %v10769_v9 = vpop.f32.mrb[219].mxu0  ;;  %v10585_v36 = vpop.f32.mrb[219].mxu1  ;;  %v16642_v10 = vld [vmem:[#allocation25_spill] sm:$0xff] }
 0x2c0   : > { %v1790_v54 = vadd.f32 %v1613_v2, %v16640_v11  ;;  %v13955_v62 = vadd.f32 %v2455_v49, %v1788_v28  ;;  %v12077_v28 = vld [vmem:[%s12662_s25 + $0x170] sm:$0xff]  }
 0x2c1   : > { %v1615_v19 = vsel %vm1480_vm1, %v1612_v59, %v1614_v25  ;;  %v2457_v37 = vsel %vm2326_vm2, %v2454_v53, %v2456_v15  ;;  %10895 = vmatmul.mubr.bf16.gmra.mrb[68].mxu1 %v12458_v31  ;;  %11079 = vmatmul.mubr.bf16.gmra.mrb[68].mxu0 %v12457_v52 }
 0x2c2   : > { %16641 = vst [vmem:[#allocation23_spill] sm:$0xff] %v13955_v62  ;;  %v1791_v23 = vadd.f32 %v1615_v19, %v16642_v10  ;;  %v13963_v61 = vadd.f32 %v2457_v37, %v1789_v57  ;;  %10898 = vmatprep.mubr.msk.bf16.mxu1 %vm12598_vm0, %v16593_v27  ;;  %11082 = vmatprep.mubr.msk.bf16.mxu0 %vm12598_vm0, %v16593_v27 }
 0x2c3   : > { %11199 = vmatpush3.bf16.msra.mxu1 %v12077_v28 }
 0x2c4   : > { %16643 = vst [vmem:[#allocation24_spill] sm:$0xff] %v13963_v61  ;;  %v1331_v59 = vpop.f32.mrb[220].mxu1  ;;  %v2169_v34 = vpop.f32.mrb[220].mxu0  ;;  %11200 = vmatprep.subr.bf16.mxu1 %v16593_v27  ;;  %v16644_v61 = vld [vmem:[#allocation26_spill] sm:$0xff] }
 0x2c5   : > { %v1616_v53 = vrot.slane %v1331_v59, 1  ;;  %v2458_v63 = vrot.slane %v2169_v34, 2  ;;  %v10588_v2 = vpop.f32.mrb[221].mxu1  ;;  %v10772_v49 = vpop.f32.mrb[221].mxu0  ;;  %v12078_v59 = vld [vmem:[%s12662_s25 + $0x1b0] sm:$0xff]  }
 0x2c6   : > { %v1334_v52 = vpop.f32.mrb[222].mxu1  ;;  %v2172_v57 = vpop.f32.mrb[222].mxu0  ;;  %v12459_v49 = vld [vmem:[%s16547_s0 + $0x90] sm:$0xff]   ;;  %11387 = vmatpush3.bf16.msra.mxu0 %v12078_v59 }
 0x2c7   : > { %v1617_v9 = vsel %vm1480_vm1, %v1614_v25, %v1616_v53  ;;  %v2459_v36 = vsel %vm2326_vm2, %v2456_v15, %v2458_v63  ;;  %v1618_v11 = vrot.slane %v1334_v52, 1  ;;  %v2460_v19 = vrot.slane %v2172_v57, 2  ;;  %v10773_v37 = vpop.f32.mrb[223].mxu0  ;;  %v10589_v10 = vpop.f32.mrb[223].mxu1  ;;  %v16646_v25 = vld [vmem:[#allocation27_spill] sm:$0xff]  ;;  %11388 = vmatprep.subr.bf16.mxu0 %v16593_v27 }
 0x2c8   : > { %v1792_v62 = vadd.f32 %v1617_v9, %v16644_v61  ;;  %v13974_v28 = vadd.f32 %v2459_v36, %v1790_v54 }
 0x2c9   : > { %v1619_v34 = vsel %vm1480_vm1, %v1616_v53, %v1618_v11  ;;  %v2461_v2 = vsel %vm2326_vm2, %v2458_v63, %v2460_v19  ;;  %10899 = vmatmul.mubr.bf16.gmra.mrb[72].mxu1 %v12459_v49  ;;  %11083 = vmatmul.mubr.bf16.gmra.mrb[72].mxu0 %v12458_v31 }
 0x2ca   : > { %16645 = vst [vmem:[#allocation25_spill] sm:$0xff] %v13974_v28  ;;  %v1793_v15 = vadd.f32 %v1619_v34, %v16646_v25  ;;  %v13983_v52 = vadd.f32 %v2461_v2, %v1791_v23  ;;  %10902 = vmatprep.mubr.msk.bf16.mxu1 %vm12598_vm0, %v16593_v27  ;;  %11086 = vmatprep.mubr.msk.bf16.mxu0 %vm12598_vm0, %v16593_v27 }
 0x2cc   : > { %16647 = vst [vmem:[#allocation26_spill] sm:$0xff] %v13983_v52  ;;  %v1339_v54 = vpop.f32.mrb[224].mxu1  ;;  %v2177_v61 = vpop.f32.mrb[224].mxu0  ;;  %v16648_v52 = vld [vmem:[#allocation28_spill] sm:$0xff] }
 0x2cd   : > { %v1620_v53 = vrot.slane %v1339_v54, 1  ;;  %v2462_v63 = vrot.slane %v2177_v61, 2  ;;  %v10592_v57 = vpop.f32.mrb[225].mxu1  ;;  %v10776_v9 = vpop.f32.mrb[225].mxu0  ;;  %v12460_v61 = vld [vmem:[%s16547_s0 + $0x98] sm:$0xff]  }
 0x2ce   : > { %v1342_v31 = vpop.f32.mrb[226].mxu1  ;;  %v2180_v36 = vpop.f32.mrb[226].mxu0 }
 0x2cf   : > { %v1621_v23 = vsel %vm1480_vm1, %v1618_v11, %v1620_v53  ;;  %v2463_v37 = vsel %vm2326_vm2, %v2460_v19, %v2462_v63  ;;  %v1622_v10 = vrot.slane %v1342_v31, 1  ;;  %v2464_v34 = vrot.slane %v2180_v36, 2  ;;  %v10777_v2 = vpop.f32.mrb[227].mxu0  ;;  %v10593_v25 = vpop.f32.mrb[227].mxu1  ;;  %v16650_v11 = vld [vmem:[#allocation29_spill] sm:$0xff] }
 0x2d0   : > { %v1794_v59 = vadd.f32 %v1621_v23, %v16648_v52  ;;  %v13993_v28 = vadd.f32 %v2463_v37, %v1792_v62 }
 0x2d1   : > { %v1623_v48 = vsel %vm1480_vm1, %v1620_v53, %v1622_v10  ;;  %v2465_v54 = vsel %vm2326_vm2, %v2462_v63, %v2464_v34  ;;  %10903 = vmatmul.mubr.bf16.gmra.mrb[76].mxu1 %v12460_v61  ;;  %11087 = vmatmul.mubr.bf16.gmra.mrb[76].mxu0 %v12459_v49 }
 0x2d2   : > { %16649 = vst [vmem:[#allocation27_spill] sm:$0xff] %v13993_v28  ;;  %v1795_v19 = vadd.f32 %v1623_v48, %v16650_v11  ;;  %v14001_v57 = vadd.f32 %v2465_v54, %v1793_v15  ;;  %10906 = vmatprep.mubr.msk.bf16.mxu1 %vm12598_vm0, %v16593_v27  ;;  %11090 = vmatprep.mubr.msk.bf16.mxu0 %vm12598_vm0, %v16593_v27  ;;  %v16652_v54 = vld [vmem:[#allocation30_spill] sm:$0xff] }
 0x2d4   : > { %16651 = vst [vmem:[#allocation28_spill] sm:$0xff] %v14001_v57  ;;  %v1347_v62 = vpop.f32.mrb[228].mxu1  ;;  %v2185_v52 = vpop.f32.mrb[228].mxu0 }
 0x2d5   : > { %v1624_v53 = vrot.slane %v1347_v62, 1  ;;  %v2466_v63 = vrot.slane %v2185_v52, 2  ;;  %v10596_v9 = vpop.f32.mrb[229].mxu1  ;;  %v10780_v31 = vpop.f32.mrb[229].mxu0  ;;  %v12461_v52 = vld [vmem:[%s16547_s0 + $0xa0] sm:$0xff]  }
 0x2d6   : > { %v1350_v36 = vpop.f32.mrb[230].mxu1  ;;  %v2188_v23 = vpop.f32.mrb[230].mxu0 }
 0x2d7   : > { %v1625_v49 = vsel %vm1480_vm1, %v1622_v10, %v1624_v53  ;;  %v2467_v48 = vsel %vm2326_vm2, %v2464_v34, %v2466_v63  ;;  %v1626_v15 = vrot.slane %v1350_v36, 1  ;;  %v2468_v37 = vrot.slane %v2188_v23, 2  ;;  %v10781_v2 = vpop.f32.mrb[231].mxu0  ;;  %v10597_v25 = vpop.f32.mrb[231].mxu1  ;;  %v16654_v10 = vld [vmem:[#allocation31_spill] sm:$0xff] }
 0x2d8   : > { %v1796_v11 = vadd.f32 %v1625_v49, %v16652_v54  ;;  %v14010_v57 = vadd.f32 %v2467_v48, %v1794_v59 }
 0x2d9   : > { %v1627_v28 = vsel %vm1480_vm1, %v1624_v53, %v1626_v15  ;;  %v2469_v62 = vsel %vm2326_vm2, %v2466_v63, %v2468_v37  ;;  %10907 = vmatmul.mubr.bf16.gmra.mrb[80].mxu1 %v12461_v52  ;;  %11091 = vmatmul.mubr.bf16.gmra.mrb[80].mxu0 %v12460_v61 }
 0x2da   : > { %16653 = vst [vmem:[#allocation29_spill] sm:$0xff] %v14010_v57  ;;  %v1797_v34 = vadd.f32 %v1627_v28, %v16654_v10  ;;  %v14018_v9 = vadd.f32 %v2469_v62, %v1795_v19  ;;  %10910 = vmatprep.mubr.msk.bf16.mxu1 %vm12598_vm0, %v16593_v27  ;;  %11094 = vmatprep.mubr.msk.bf16.mxu0 %vm12598_vm0, %v16593_v27  ;;  %v16656_v62 = vld [vmem:[#allocation32_spill] sm:$0xff] }
 0x2dc   : > { %16655 = vst [vmem:[#allocation30_spill] sm:$0xff] %v14018_v9  ;;  %v1355_v59 = vpop.f32.mrb[232].mxu1  ;;  %v2193_v53 = vpop.f32.mrb[232].mxu0 }
 0x2dd   : > { %v1628_v31 = vrot.slane %v1355_v59, 1  ;;  %v2470_v63 = vrot.slane %v2193_v53, 2  ;;  %v10600_v36 = vpop.f32.mrb[233].mxu1  ;;  %v10784_v23 = vpop.f32.mrb[233].mxu0  ;;  %v12462_v53 = vld [vmem:[%s16547_s0 + $0xa8] sm:$0xff]  }
 0x2de   : > { %v1358_v49 = vpop.f32.mrb[234].mxu1  ;;  %v2196_v48 = vpop.f32.mrb[234].mxu0 }
 0x2df   : > { %v1629_v61 = vsel %vm1480_vm1, %v1626_v15, %v1628_v31  ;;  %v2471_v28 = vsel %vm2326_vm2, %v2468_v37, %v2470_v63  ;;  %v1630_v19 = vrot.slane %v1358_v49, 1  ;;  %v2472_v2 = vrot.slane %v2196_v48, 2  ;;  %v10785_v25 = vpop.f32.mrb[235].mxu0  ;;  %v10601_v54 = vpop.f32.mrb[235].mxu1  ;;  %v16658_v15 = vld [vmem:[#allocation33_spill] sm:$0xff] }
 0x2e0   : > { %v1798_v10 = vadd.f32 %v1629_v61, %v16656_v62  ;;  %v14027_v9 = vadd.f32 %v2471_v28, %v1796_v11 }
 0x2e1   : > { %v1631_v57 = vsel %vm1480_vm1, %v1628_v31, %v1630_v19  ;;  %v2473_v59 = vsel %vm2326_vm2, %v2470_v63, %v2472_v2  ;;  %10911 = vmatmul.mubr.bf16.gmra.mrb[84].mxu1 %v12462_v53  ;;  %11095 = vmatmul.mubr.bf16.gmra.mrb[84].mxu0 %v12461_v52 }
 0x2e2   : > { %16657 = vst [vmem:[#allocation31_spill] sm:$0xff] %v14027_v9  ;;  %v1799_v37 = vadd.f32 %v1631_v57, %v16658_v15  ;;  %v14035_v36 = vadd.f32 %v2473_v59, %v1797_v34  ;;  %10914 = vmatprep.mubr.msk.bf16.mxu1 %vm12598_vm0, %v16593_v27  ;;  %11098 = vmatprep.mubr.msk.bf16.mxu0 %vm12598_vm0, %v16593_v27  ;;  %v16660_v59 = vld [vmem:[#allocation34_spill] sm:$0xff] }
 0x2e4   : > { %16659 = vst [vmem:[#allocation32_spill] sm:$0xff] %v14035_v36  ;;  %v1363_v11 = vpop.f32.mrb[236].mxu1  ;;  %v2201_v31 = vpop.f32.mrb[236].mxu0 }
 0x2e5   : > { %v1632_v23 = vrot.slane %v1363_v11, 1  ;;  %v2474_v63 = vrot.slane %v2201_v31, 2  ;;  %v10604_v49 = vpop.f32.mrb[237].mxu1  ;;  %v10788_v48 = vpop.f32.mrb[237].mxu0  ;;  %v12463_v31 = vld [vmem:[%s16547_s0 + $0xb0] sm:$0xff]  }
 0x2e6   : > { %v1366_v61 = vpop.f32.mrb[238].mxu1  ;;  %v2204_v28 = vpop.f32.mrb[238].mxu0 }
 0x2e7   : > { %v1633_v52 = vsel %vm1480_vm1, %v1630_v19, %v1632_v23  ;;  %v2475_v57 = vsel %vm2326_vm2, %v2472_v2, %v2474_v63  ;;  %v1634_v34 = vrot.slane %v1366_v61, 1  ;;  %v2476_v25 = vrot.slane %v2204_v28, 2  ;;  %v10789_v54 = vpop.f32.mrb[239].mxu0  ;;  %v10605_v62 = vpop.f32.mrb[239].mxu1  ;;  %v16662_v19 = vld [vmem:[#allocation35_spill] sm:$0xff] }
 0x2e8   : > { %v1800_v15 = vadd.f32 %v1633_v52, %v16660_v59  ;;  %v14044_v36 = vadd.f32 %v2475_v57, %v1798_v10 }
 0x2e9   : > { %v1635_v9 = vsel %vm1480_vm1, %v1632_v23, %v1634_v34  ;;  %v2477_v11 = vsel %vm2326_vm2, %v2474_v63, %v2476_v25  ;;  %10915 = vmatmul.mubr.bf16.gmra.mrb[88].mxu1 %v12463_v31  ;;  %11099 = vmatmul.mubr.bf16.gmra.mrb[88].mxu0 %v12462_v53 }
 0x2ea   : > { %16661 = vst [vmem:[#allocation33_spill] sm:$0xff] %v14044_v36  ;;  %v1801_v2 = vadd.f32 %v1635_v9, %v16662_v19  ;;  %v14052_v49 = vadd.f32 %v2477_v11, %v1799_v37  ;;  %10918 = vmatprep.mubr.msk.bf16.mxu1 %vm12598_vm0, %v16593_v27  ;;  %11102 = vmatprep.mubr.msk.bf16.mxu0 %vm12598_vm0, %v16593_v27  ;;  %v16664_v11 = vld [vmem:[#allocation36_spill] sm:$0xff]  ;;  %v12079_v36 = vld [vmem:[%s12662_s25 + $0x178] sm:$0xff]  }
 0x2eb   : > { %11201 = vmatpush3.bf16.msra.mxu1 %v12079_v36 }
 0x2ec   : > { %16663 = vst [vmem:[#allocation34_spill] sm:$0xff] %v14052_v49  ;;  %v1371_v10 = vpop.f32.mrb[240].mxu1  ;;  %v2209_v23 = vpop.f32.mrb[240].mxu0  ;;  %11562 = vmatprep.subr.bf16.mxu1 %v16593_v27 }
 0x2ed   : > { %v1636_v63 = vrot.slane %v1371_v10, 1  ;;  %v2478_v48 = vrot.slane %v2209_v23, 2  ;;  %v10608_v61 = vpop.f32.mrb[241].mxu1  ;;  %v10792_v28 = vpop.f32.mrb[241].mxu0 }
 0x2ee   : > { %v1374_v52 = vpop.f32.mrb[242].mxu1  ;;  %v2212_v57 = vpop.f32.mrb[242].mxu0 }
 0x2ef   : > { %v1637_v53 = vsel %vm1480_vm1, %v1634_v34, %v1636_v63  ;;  %v2479_v9 = vsel %vm2326_vm2, %v2476_v25, %v2478_v48  ;;  %v1638_v37 = vrot.slane %v1374_v52, 1  ;;  %v2480_v54 = vrot.slane %v2212_v57, 2  ;;  %v10793_v62 = vpop.f32.mrb[243].mxu0  ;;  %v10609_v59 = vpop.f32.mrb[243].mxu1  ;;  %v12464_v34 = vld [vmem:[%s16547_s0 + $0xb8] sm:$0xff]  }
 0x2f0   : > { %v1802_v19 = vadd.f32 %v1637_v53, %v16664_v11  ;;  %v14061_v49 = vadd.f32 %v2479_v9, %v1800_v15  ;;  %v16665_v25 = vld [vmem:[#allocation37_spill] sm:$0xff] }
 0x2f1   : > { %v1639_v10 = vsel %vm1480_vm1, %v1636_v63, %v1638_v37  ;;  %v2481_v23 = vsel %vm2326_vm2, %v2478_v48, %v2480_v54  ;;  %10919 = vmatmul.mubr.bf16.gmra.mrb[92].mxu1 %v12464_v34  ;;  %11103 = vmatmul.mubr.bf16.gmra.mrb[92].mxu0 %v12463_v31  ;;  %v12080_v15 = vld [vmem:[%s12662_s25 + $0x1b8] sm:$0xff]  }
 0x2f2   : > { %v1803_v61 = vadd.f32 %v1639_v10, %v16665_v25  ;;  %v14070_v28 = vadd.f32 %v2481_v23, %v1801_v2  ;;  %10922 = vmatprep.mubr.msk.bf16.mxu1 %vm12598_vm0, %v16593_v27  ;;  %11106 = vmatprep.mubr.msk.bf16.mxu0 %vm12598_vm0, %v16593_v27  ;;  %v16667_v25 = vld [vmem:[#allocation38_spill] sm:$0xff] }
 0x2f3   : > { %11389 = vmatpush3.bf16.msra.mxu0 %v12080_v15 }
 0x2f4   : > { %16666 = vst [vmem:[#allocation35_spill] sm:$0xff] %v14070_v28  ;;  %v1379_v63 = vpop.f32.mrb[244].mxu1  ;;  %v2217_v48 = vpop.f32.mrb[244].mxu0  ;;  %11750 = vmatprep.subr.bf16.mxu0 %v16593_v27 }
 0x2f5   : > { %v1640_v52 = vrot.slane %v1379_v63, 1  ;;  %v2482_v57 = vrot.slane %v2217_v48, 2  ;;  %v10612_v31 = vpop.f32.mrb[245].mxu1  ;;  %v10796_v53 = vpop.f32.mrb[245].mxu0 }
 0x2f6   : > { %v1382_v2 = vpop.f32.mrb[246].mxu1  ;;  %v2220_v9 = vpop.f32.mrb[246].mxu0  ;;  %v12465_v31 = vld [vmem:[%s16547_s0 + $0xc0] sm:$0xff]  }
 0x2f7   : > { %v1641_v62 = vsel %vm1480_vm1, %v1638_v37, %v1640_v52  ;;  %v2483_v59 = vsel %vm2326_vm2, %v2480_v54, %v2482_v57  ;;  %v1642_v11 = vrot.slane %v1382_v2, 1  ;;  %v2484_v10 = vrot.slane %v2220_v9, 2  ;;  %v10797_v36 = vpop.f32.mrb[247].mxu0  ;;  %v10613_v23 = vpop.f32.mrb[247].mxu1  ;;  %v16668_v37 = vld [vmem:[#allocation39_spill] sm:$0xff] }
 0x2f8   : > { %v1804_v15 = vadd.f32 %v1641_v62, %v16667_v25  ;;  %v14082_v28 = vadd.f32 %v2483_v59, %v1802_v19 }
 0x2f9   : > { %v1643_v63 = vsel %vm1480_vm1, %v1640_v52, %v1642_v11  ;;  %v2485_v48 = vsel %vm2326_vm2, %v2482_v57, %v2484_v10  ;;  %10923 = vmatmul.mubr.bf16.gmra.mrb[96].mxu1 %v12465_v31  ;;  %11107 = vmatmul.mubr.bf16.gmra.mrb[96].mxu0 %v12464_v34 }
 0x2fa   : > { %v1805_v54 = vadd.f32 %v1643_v63, %v16668_v37  ;;  %v14090_v53 = vadd.f32 %v2485_v48, %v1803_v61  ;;  %10926 = vmatprep.mubr.msk.bf16.mxu1 %vm12598_vm0, %v16593_v27  ;;  %11110 = vmatprep.mubr.msk.bf16.mxu0 %vm12598_vm0, %v16593_v27  ;;  %v12466_v63 = vld [vmem:[%s16547_s0 + $0xc8] sm:$0xff]  }
 0x2fc   : > { %v2225_v19 = vpop.f32.mrb[248].mxu0  ;;  %v1387_v52 = vpop.f32.mrb[248].mxu1 }
 0x2fd   : > { %v2486_v2 = vrot.slane %v2225_v19, 2  ;;  %v10800_v57 = vpop.f32.mrb[249].mxu0  ;;  %v10616_v9 = vpop.f32.mrb[249].mxu1 }
 0x2fe   : > { %v2228_v62 = vpop.f32.mrb[250].mxu0  ;;  %v1389_v59 = vpop.f32.mrb[250].mxu1 }
 0x2ff   : > { %v2487_v11 = vsel %vm2326_vm2, %v2484_v10, %v2486_v2  ;;  %v2488_v34 = vrot.slane %v2228_v62, 2  ;;  %v10801_v36 = vpop.f32.mrb[251].mxu0  ;;  %v10617_v23 = vpop.f32.mrb[251].mxu1 }
 0x300   : > { %v14097_v61 = vadd.f32 %v2487_v11, %v1804_v15 }
 0x301   : > { %v2489_v25 = vsel %vm2326_vm2, %v2486_v2, %v2488_v34  ;;  %10927 = vmatmul.mubr.bf16.gmra.mrb[100].mxu1 %v12466_v63  ;;  %11111 = vmatmul.mubr.bf16.gmra.mrb[100].mxu0 %v12465_v31  ;;  %v12467_v31 = vld [vmem:[%s16547_s0 + $0xd0] sm:$0xff]  }
 0x302   : > { %16669 = vst [vmem:[#allocation36_spill] sm:$0xff] %v14097_v61  ;;  %v14103_v48 = vadd.f32 %v2489_v25, %v1805_v54  ;;  %10930 = vmatprep.mubr.msk.bf16.mxu1 %vm12598_vm0, %v16593_v27  ;;  %11114 = vmatprep.mubr.msk.bf16.mxu0 %vm12598_vm0, %v16593_v27 }
 0x304   : > { %16670 = vst [vmem:[#allocation37_spill] sm:$0xff] %v14103_v48  ;;  %v2233_v10 = vpop.f32.mrb[252].mxu0  ;;  %v1393_v37 = vpop.f32.mrb[252].mxu1 }
 0x305   : > { %v10804_v15 = vpop.f32.mrb[253].mxu0  ;;  %v10620_v19 = vpop.f32.mrb[253].mxu1  ;;  %v12468_v10 = vld [vmem:[%s16547_s0 + $0xd8] sm:$0xff]  }
 0x306   : > { %v2235_v52 = vpop.f32.mrb[254].mxu0  ;;  %v1395_v2 = vpop.f32.mrb[254].mxu1 }
 0x307   : > { %v10805_v57 = vpop.f32.mrb[255].mxu0  ;;  %v10621_v9 = vpop.f32.mrb[255].mxu1 }
 0x309   : > { %10931 = vmatmul.mubr.bf16.gmra.mrb[104].mxu1 %v12467_v31  ;;  %11115 = vmatmul.mubr.bf16.gmra.mrb[104].mxu0 %v12466_v63 }
 0x30a   : > { %10934 = vmatprep.mubr.msk.bf16.mxu1 %vm12598_vm0, %v16593_v27  ;;  %11118 = vmatprep.mubr.msk.bf16.mxu0 %vm12598_vm0, %v16593_v27 }
 0x30c   : > { %v2239_v54 = vpop.f32.mrb[0].mxu0  ;;  %v2751_v62 = vpop.f32.mrb[0].mxu1 }
 0x30d   : > { %v10808_v59 = vpop.f32.mrb[1].mxu0  ;;  %v10828_v11 = vpop.f32.mrb[1].mxu1 }
 0x30e   : > { %v2241_v34 = vpop.f32.mrb[2].mxu0  ;;  %v2753_v36 = vpop.f32.mrb[2].mxu1  ;;  %v16671_v11 = vld [vmem:[#allocation42_spill] sm:$0xff] }
 0x30f   : > { %v10809_v23 = vpop.f32.mrb[3].mxu0  ;;  %v10829_v25 = vpop.f32.mrb[3].mxu1 }
 0x311   : > { %10935 = vmatmul.mubr.bf16.gmra.mrb[108].mxu1 %v12468_v10  ;;  %11119 = vmatmul.mubr.bf16.gmra.mrb[108].mxu0 %v12467_v31  ;;  %v12469_v31 = vld [vmem:[%s16547_s0 + $0xe0] sm:$0xff]  }
 0x312   : > { %10938 = vmatprep.mubr.msk.bf16.mxu1 %vm12598_vm0, %v16593_v27  ;;  %11122 = vmatprep.mubr.msk.bf16.mxu0 %vm12598_vm0, %v16593_v27 }
 0x314   : > { %v2757_v63 = vpop.f32.mrb[4].mxu1  ;;  %v3596_v37 = vpop.f32.mrb[4].mxu0 }
 0x315   : > { %v3172_v15 = vrot.slane %v2757_v63, 2  ;;  %v10832_v19 = vpop.f32.mrb[5].mxu1  ;;  %v11016_v52 = vpop.f32.mrb[5].mxu0 }
 0x316   : > { %v2760_v2 = vpop.f32.mrb[6].mxu1  ;;  %v3598_v57 = vpop.f32.mrb[6].mxu0 }
 0x317   : > { %v3173_v9 = vrot.slane %v2760_v2, 2  ;;  %v11017_v54 = vpop.f32.mrb[7].mxu0  ;;  %v10833_v62 = vpop.f32.mrb[7].mxu1 }
 0x319   : > { %v3174_v59 = vsel %vm2326_vm2, %v3172_v15, %v3173_v9  ;;  %10939 = vmatmul.mubr.bf16.gmra.mrb[112].mxu1 %v12469_v31  ;;  %11123 = vmatmul.mubr.bf16.gmra.mrb[112].mxu0 %v12468_v10 }
 0x31a   : > { %v3416_v34 = vadd.f32 %v3174_v59, %v16671_v11  ;;  %10942 = vmatprep.mubr.msk.bf16.mxu1 %vm12598_vm0, %v16593_v27  ;;  %11126 = vmatprep.mubr.msk.bf16.mxu0 %vm12598_vm0, %v16593_v27 }
 0x31c   : > { %v2765_v36 = vpop.f32.mrb[8].mxu1  ;;  %v3602_v23 = vpop.f32.mrb[8].mxu0 }
 0x31d   : > { %v3175_v25 = vrot.slane %v2765_v36, 2  ;;  %v10836_v63 = vpop.f32.mrb[9].mxu1  ;;  %v11020_v37 = vpop.f32.mrb[9].mxu0  ;;  %v4018_v2 = vrot.slane %v3602_v23, 3  ;;  %v12470_v36 = vld [vmem:[%s16547_s0 + $0xe8] sm:$0xff]  }
 0x31e   : > { %v2768_v15 = vpop.f32.mrb[10].mxu1  ;;  %v3605_v19 = vpop.f32.mrb[10].mxu0 }
 0x31f   : > { %v3176_v52 = vsel %vm2326_vm2, %v3173_v9, %v3175_v25  ;;  %v3177_v10 = vrot.slane %v2768_v15, 2  ;;  %v4019_v57 = vrot.slane %v3605_v19, 3  ;;  %v11021_v54 = vpop.f32.mrb[11].mxu0  ;;  %v10837_v62 = vpop.f32.mrb[11].mxu1 }
 0x320   : > { %v3417_v59 = vadd.f32 %v3176_v52, %v13400_v22 }
 0x321   : > { %v3178_v11 = vsel %vm2326_vm2, %v3175_v25, %v3177_v10  ;;  %v4020_v48 = vsel %vm4017_vm3, %v4018_v2, %v4019_v57  ;;  %10943 = vmatmul.mubr.bf16.gmra.mrb[116].mxu1 %v12470_v36  ;;  %11127 = vmatmul.mubr.bf16.gmra.mrb[116].mxu0 %v12469_v31 }
 0x322   : > { %v3418_v63 = vadd.f32 %v3178_v11, %v13409_v8  ;;  %v14140_v9 = vadd.f32 %v4020_v48, %v3416_v34  ;;  %10946 = vmatprep.mubr.msk.bf16.mxu1 %vm12598_vm0, %v16593_v27  ;;  %11130 = vmatprep.mubr.msk.bf16.mxu0 %vm12598_vm0, %v16593_v27 }
 0x324   : > { %16672 = vst [vmem:[#allocation38_spill] sm:$0xff] %v14140_v9  ;;  %v2773_v22 = vpop.f32.mrb[12].mxu1  ;;  %v3610_v23 = vpop.f32.mrb[12].mxu0 }
 0x325   : > { %v3179_v25 = vrot.slane %v2773_v22, 2  ;;  %v4021_v37 = vrot.slane %v3610_v23, 3  ;;  %v10840_v15 = vpop.f32.mrb[13].mxu1  ;;  %v11024_v19 = vpop.f32.mrb[13].mxu0  ;;  %v12471_v23 = vld [vmem:[%s16547_s0 + $0xf0] sm:$0xff]  }
 0x326   : > { %v2776_v52 = vpop.f32.mrb[14].mxu1  ;;  %v3613_v2 = vpop.f32.mrb[14].mxu0 }
 0x327   : > { %v3180_v31 = vsel %vm2326_vm2, %v3177_v10, %v3179_v25  ;;  %v4022_v8 = vsel %vm4017_vm3, %v4019_v57, %v4021_v37  ;;  %v3181_v48 = vrot.slane %v2776_v52, 2  ;;  %v4023_v34 = vrot.slane %v3613_v2, 3  ;;  %v11025_v54 = vpop.f32.mrb[15].mxu0  ;;  %v10841_v62 = vpop.f32.mrb[15].mxu1 }
 0x328   : > { %v3419_v11 = vadd.f32 %v3180_v31, %v13418_v13  ;;  %v14149_v9 = vadd.f32 %v4022_v8, %v3417_v59 }
 0x329   : > { %v3182_v61 = vsel %vm2326_vm2, %v3179_v25, %v3181_v48  ;;  %v4024_v22 = vsel %vm4017_vm3, %v4021_v37, %v4023_v34  ;;  %10947 = vmatmul.mubr.bf16.gmra.mrb[120].mxu1 %v12471_v23  ;;  %11131 = vmatmul.mubr.bf16.gmra.mrb[120].mxu0 %v12470_v36 }
 0x32a   : > { %v3420_v10 = vadd.f32 %v3182_v61, %v13427_v14  ;;  %v14157_v57 = vadd.f32 %v4024_v22, %v3418_v63  ;;  %10950 = vmatprep.mubr.msk.bf16.mxu1 %vm12598_vm0, %v16593_v27  ;;  %11134 = vmatprep.mubr.msk.bf16.mxu0 %vm12598_vm0, %v16593_v27 }
 0x32c   : > { %v2781_v13 = vpop.f32.mrb[16].mxu1  ;;  %v3618_v59 = vpop.f32.mrb[16].mxu0 }
 0x32d   : > { %v3183_v25 = vrot.slane %v2781_v13, 2  ;;  %v4025_v37 = vrot.slane %v3618_v59, 3  ;;  %v10844_v15 = vpop.f32.mrb[17].mxu1  ;;  %v11028_v19 = vpop.f32.mrb[17].mxu0  ;;  %v12472_v59 = vld [vmem:[%s16547_s0 + $0xf8] sm:$0xff]  }
 0x32e   : > { %v2784_v52 = vpop.f32.mrb[18].mxu1  ;;  %v3621_v2 = vpop.f32.mrb[18].mxu0 }
 0x32f   : > { %v3184_v36 = vsel %vm2326_vm2, %v3181_v48, %v3183_v25  ;;  %v4026_v14 = vsel %vm4017_vm3, %v4023_v34, %v4025_v37  ;;  %v3185_v61 = vrot.slane %v2784_v52, 2  ;;  %v4027_v63 = vrot.slane %v3621_v2, 3  ;;  %v11029_v31 = vpop.f32.mrb[19].mxu0  ;;  %v10845_v8 = vpop.f32.mrb[19].mxu1 }
 0x330   : > { %v3421_v54 = vadd.f32 %v3184_v36, %v13436_v17  ;;  %v14166_v62 = vadd.f32 %v4026_v14, %v3419_v11 }
 0x331   : > { %v3186_v22 = vsel %vm2326_vm2, %v3183_v25, %v3185_v61  ;;  %v4028_v13 = vsel %vm4017_vm3, %v4025_v37, %v4027_v63  ;;  %10951 = vmatmul.mubr.bf16.gmra.mrb[124].mxu1 %v12472_v59  ;;  %11135 = vmatmul.mubr.bf16.gmra.mrb[124].mxu0 %v12471_v23 }
 0x332   : > { %v3422_v48 = vadd.f32 %v3186_v22, %v13443_v35  ;;  %v14174_v34 = vadd.f32 %v4028_v13, %v3420_v10  ;;  %10954 = vmatprep.mubr.msk.bf16.mxu1 %vm12598_vm0, %v16593_v27  ;;  %11138 = vmatprep.mubr.msk.bf16.mxu0 %vm12598_vm0, %v16593_v27 }
 0x334   : > { %v2789_v17 = vpop.f32.mrb[20].mxu1  ;;  %v3626_v11 = vpop.f32.mrb[20].mxu0 }
 0x335   : > { %v3187_v25 = vrot.slane %v2789_v17, 2  ;;  %v4029_v37 = vrot.slane %v3626_v11, 3  ;;  %v10848_v15 = vpop.f32.mrb[21].mxu1  ;;  %v11032_v19 = vpop.f32.mrb[21].mxu0  ;;  %v12473_v11 = vld [vmem:[%s16547_s0 + $0x100] sm:$0xff]  }
 0x336   : > { %v2792_v52 = vpop.f32.mrb[22].mxu1  ;;  %v3629_v2 = vpop.f32.mrb[22].mxu0 }
 0x337   : > { %v3188_v23 = vsel %vm2326_vm2, %v3185_v61, %v3187_v25  ;;  %v4030_v35 = vsel %vm4017_vm3, %v4027_v63, %v4029_v37  ;;  %v3189_v10 = vrot.slane %v2792_v52, 2  ;;  %v4031_v36 = vrot.slane %v3629_v2, 3  ;;  %v11033_v14 = vpop.f32.mrb[23].mxu0  ;;  %v10849_v31 = vpop.f32.mrb[23].mxu1 }
 0x338   : > { %v3423_v8 = vadd.f32 %v3188_v23, %v13452_v50  ;;  %v14183_v22 = vadd.f32 %v4030_v35, %v3421_v54 }
 0x339   : > { %v3190_v13 = vsel %vm2326_vm2, %v3187_v25, %v3189_v10  ;;  %v4032_v17 = vsel %vm4017_vm3, %v4029_v37, %v4031_v36  ;;  %10955 = vmatmul.mubr.bf16.gmra.mrb[128].mxu1 %v12473_v11  ;;  %11139 = vmatmul.mubr.bf16.gmra.mrb[128].mxu0 %v12472_v59 }
 0x33a   : > { %v3424_v61 = vadd.f32 %v3190_v13, %v13463_v0  ;;  %v14191_v63 = vadd.f32 %v4032_v17, %v3422_v48  ;;  %10958 = vmatprep.mubr.msk.bf16.mxu1 %vm12598_vm0, %v16593_v27  ;;  %11142 = vmatprep.mubr.msk.bf16.mxu0 %vm12598_vm0, %v16593_v27 }
 0x33c   : > { %v2797_v50 = vpop.f32.mrb[24].mxu1  ;;  %v3634_v54 = vpop.f32.mrb[24].mxu0 }
 0x33d   : > { %v3191_v25 = vrot.slane %v2797_v50, 2  ;;  %v4033_v37 = vrot.slane %v3634_v54, 3  ;;  %v10852_v15 = vpop.f32.mrb[25].mxu1  ;;  %v11036_v19 = vpop.f32.mrb[25].mxu0  ;;  %v12474_v54 = vld [vmem:[%s16547_s0 + $0x108] sm:$0xff]  }
 0x33e   : > { %v2800_v52 = vpop.f32.mrb[26].mxu1  ;;  %v3637_v2 = vpop.f32.mrb[26].mxu0 }
 0x33f   : > { %v3192_v59 = vsel %vm2326_vm2, %v3189_v10, %v3191_v25  ;;  %v4034_v0 = vsel %vm4017_vm3, %v4031_v36, %v4033_v37  ;;  %v3193_v48 = vrot.slane %v2800_v52, 2  ;;  %v4035_v23 = vrot.slane %v3637_v2, 3  ;;  %v11037_v35 = vpop.f32.mrb[27].mxu0  ;;  %v10853_v14 = vpop.f32.mrb[27].mxu1 }
 0x340   : > { %v3425_v31 = vadd.f32 %v3192_v59, %v13472_v46  ;;  %v14200_v13 = vadd.f32 %v4034_v0, %v3423_v8 }
 0x341   : > { %v3194_v17 = vsel %vm2326_vm2, %v3191_v25, %v3193_v48  ;;  %v4036_v50 = vsel %vm4017_vm3, %v4033_v37, %v4035_v23  ;;  %10959 = vmatmul.mubr.bf16.gmra.mrb[132].mxu1 %v12474_v54  ;;  %11143 = vmatmul.mubr.bf16.gmra.mrb[132].mxu0 %v12473_v11 }
 0x342   : > { %v3426_v10 = vadd.f32 %v3194_v17, %v13480_v40  ;;  %v14208_v36 = vadd.f32 %v4036_v50, %v3424_v61  ;;  %10962 = vmatprep.mubr.msk.bf16.mxu1 %vm12598_vm0, %v16593_v27  ;;  %11146 = vmatprep.mubr.msk.bf16.mxu0 %vm12598_vm0, %v16593_v27 }
 0x344   : > { %v2805_v46 = vpop.f32.mrb[28].mxu1  ;;  %v3642_v8 = vpop.f32.mrb[28].mxu0 }
 0x345   : > { %v3195_v25 = vrot.slane %v2805_v46, 2  ;;  %v4037_v37 = vrot.slane %v3642_v8, 3  ;;  %v10856_v15 = vpop.f32.mrb[29].mxu1  ;;  %v11040_v19 = vpop.f32.mrb[29].mxu0  ;;  %v12475_v8 = vld [vmem:[%s16547_s0 + $0x110] sm:$0xff]  }
 0x346   : > { %v2808_v52 = vpop.f32.mrb[30].mxu1  ;;  %v3645_v2 = vpop.f32.mrb[30].mxu0 }
 0x347   : > { %v3196_v11 = vsel %vm2326_vm2, %v3193_v48, %v3195_v25  ;;  %v4038_v40 = vsel %vm4017_vm3, %v4035_v23, %v4037_v37  ;;  %v3197_v61 = vrot.slane %v2808_v52, 2  ;;  %v4039_v59 = vrot.slane %v3645_v2, 3  ;;  %v11041_v0 = vpop.f32.mrb[31].mxu0  ;;  %v10857_v35 = vpop.f32.mrb[31].mxu1 }
 0x348   : > { %v3427_v14 = vadd.f32 %v3196_v11, %v13489_v42  ;;  %v14217_v17 = vadd.f32 %v4038_v40, %v3425_v31 }
 0x349   : > { %v3198_v50 = vsel %vm2326_vm2, %v3195_v25, %v3197_v61  ;;  %v4040_v46 = vsel %vm4017_vm3, %v4037_v37, %v4039_v59  ;;  %10963 = vmatmul.mubr.bf16.gmra.mrb[136].mxu1 %v12475_v8  ;;  %11147 = vmatmul.mubr.bf16.gmra.mrb[136].mxu0 %v12474_v54 }
 0x34a   : > { %v3428_v48 = vadd.f32 %v3198_v50, %v13497_v44  ;;  %v14225_v23 = vadd.f32 %v4040_v46, %v3426_v10  ;;  %10966 = vmatprep.mubr.msk.bf16.mxu1 %vm12598_vm0, %v16593_v27  ;;  %11150 = vmatprep.mubr.msk.bf16.mxu0 %vm12598_vm0, %v16593_v27 }
 0x34c   : > { %v2813_v42 = vpop.f32.mrb[32].mxu1  ;;  %v3650_v31 = vpop.f32.mrb[32].mxu0 }
 0x34d   : > { %v3199_v25 = vrot.slane %v2813_v42, 2  ;;  %v4041_v37 = vrot.slane %v3650_v31, 3  ;;  %v10860_v15 = vpop.f32.mrb[33].mxu1  ;;  %v11044_v19 = vpop.f32.mrb[33].mxu0  ;;  %v12476_v31 = vld [vmem:[%s16547_s0 + $0x118] sm:$0xff]  }
 0x34e   : > { %v2816_v52 = vpop.f32.mrb[34].mxu1  ;;  %v3653_v2 = vpop.f32.mrb[34].mxu0 }
 0x34f   : > { %v3200_v54 = vsel %vm2326_vm2, %v3197_v61, %v3199_v25  ;;  %v4042_v44 = vsel %vm4017_vm3, %v4039_v59, %v4041_v37  ;;  %v3201_v10 = vrot.slane %v2816_v52, 2  ;;  %v4043_v11 = vrot.slane %v3653_v2, 3  ;;  %v11045_v40 = vpop.f32.mrb[35].mxu0  ;;  %v10861_v0 = vpop.f32.mrb[35].mxu1 }
 0x350   : > { %v3429_v35 = vadd.f32 %v3200_v54, %v13506_v12  ;;  %v14234_v50 = vadd.f32 %v4042_v44, %v3427_v14 }
 0x351   : > { %v3202_v46 = vsel %vm2326_vm2, %v3199_v25, %v3201_v10  ;;  %v4044_v42 = vsel %vm4017_vm3, %v4041_v37, %v4043_v11  ;;  %10967 = vmatmul.mubr.bf16.gmra.mrb[140].mxu1 %v12476_v31  ;;  %11151 = vmatmul.mubr.bf16.gmra.mrb[140].mxu0 %v12475_v8 }
 0x352   : > { %v3430_v61 = vadd.f32 %v3202_v46, %v13514_v26  ;;  %v14242_v59 = vadd.f32 %v4044_v42, %v3428_v48  ;;  %10970 = vmatprep.mubr.msk.bf16.mxu1 %vm12598_vm0, %v16593_v27  ;;  %11154 = vmatprep.mubr.msk.bf16.mxu0 %vm12598_vm0, %v16593_v27 }
 0x354   : > { %v2821_v12 = vpop.f32.mrb[36].mxu1  ;;  %v3658_v14 = vpop.f32.mrb[36].mxu0 }
 0x355   : > { %v3203_v25 = vrot.slane %v2821_v12, 2  ;;  %v4045_v37 = vrot.slane %v3658_v14, 3  ;;  %v10864_v15 = vpop.f32.mrb[37].mxu1  ;;  %v11048_v19 = vpop.f32.mrb[37].mxu0  ;;  %v12477_v14 = vld [vmem:[%s16547_s0 + $0x120] sm:$0xff]  }
 0x356   : > { %v2824_v52 = vpop.f32.mrb[38].mxu1  ;;  %v3661_v2 = vpop.f32.mrb[38].mxu0 }
 0x357   : > { %v3204_v8 = vsel %vm2326_vm2, %v3201_v10, %v3203_v25  ;;  %v4046_v26 = vsel %vm4017_vm3, %v4043_v11, %v4045_v37  ;;  %v3205_v48 = vrot.slane %v2824_v52, 2  ;;  %v4047_v54 = vrot.slane %v3661_v2, 3  ;;  %v11049_v44 = vpop.f32.mrb[39].mxu0  ;;  %v10865_v40 = vpop.f32.mrb[39].mxu1 }
 0x358   : > { %v3431_v0 = vadd.f32 %v3204_v8, %v13523_v30  ;;  %v14251_v46 = vadd.f32 %v4046_v26, %v3429_v35 }
 0x359   : > { %v3206_v42 = vsel %vm2326_vm2, %v3203_v25, %v3205_v48  ;;  %v4048_v12 = vsel %vm4017_vm3, %v4045_v37, %v4047_v54  ;;  %10971 = vmatmul.mubr.bf16.gmra.mrb[144].mxu1 %v12477_v14  ;;  %11155 = vmatmul.mubr.bf16.gmra.mrb[144].mxu0 %v12476_v31 }
 0x35a   : > { %v3432_v10 = vadd.f32 %v3206_v42, %v13531_v24  ;;  %v14259_v11 = vadd.f32 %v4048_v12, %v3430_v61  ;;  %10974 = vmatprep.mubr.msk.bf16.mxu1 %vm12598_vm0, %v16593_v27  ;;  %11158 = vmatprep.mubr.msk.bf16.mxu0 %vm12598_vm0, %v16593_v27 }
 0x35c   : > { %v2829_v30 = vpop.f32.mrb[40].mxu1  ;;  %v3666_v35 = vpop.f32.mrb[40].mxu0 }
 0x35d   : > { %v3207_v25 = vrot.slane %v2829_v30, 2  ;;  %v4049_v37 = vrot.slane %v3666_v35, 3  ;;  %v10868_v15 = vpop.f32.mrb[41].mxu1  ;;  %v11052_v19 = vpop.f32.mrb[41].mxu0  ;;  %v12478_v35 = vld [vmem:[%s16547_s0 + $0x128] sm:$0xff]  }
 0x35e   : > { %v2832_v52 = vpop.f32.mrb[42].mxu1  ;;  %v3669_v2 = vpop.f32.mrb[42].mxu0 }
 0x35f   : > { %v3208_v31 = vsel %vm2326_vm2, %v3205_v48, %v3207_v25  ;;  %v4050_v24 = vsel %vm4017_vm3, %v4047_v54, %v4049_v37  ;;  %v3209_v61 = vrot.slane %v2832_v52, 2  ;;  %v4051_v8 = vrot.slane %v3669_v2, 3  ;;  %v11053_v26 = vpop.f32.mrb[43].mxu0  ;;  %v10869_v44 = vpop.f32.mrb[43].mxu1 }
 0x360   : > { %v3433_v40 = vadd.f32 %v3208_v31, %v13540_v60  ;;  %v14268_v42 = vadd.f32 %v4050_v24, %v3431_v0 }
 0x361   : > { %v3210_v12 = vsel %vm2326_vm2, %v3207_v25, %v3209_v61  ;;  %v4052_v30 = vsel %vm4017_vm3, %v4049_v37, %v4051_v8  ;;  %10975 = vmatmul.mubr.bf16.gmra.mrb[148].mxu1 %v12478_v35  ;;  %11159 = vmatmul.mubr.bf16.gmra.mrb[148].mxu0 %v12477_v14 }
 0x362   : > { %v3434_v48 = vadd.f32 %v3210_v12, %v13548_v58  ;;  %v14276_v54 = vadd.f32 %v4052_v30, %v3432_v10  ;;  %10978 = vmatprep.mubr.msk.bf16.mxu1 %vm12598_vm0, %v16593_v27  ;;  %11162 = vmatprep.mubr.msk.bf16.mxu0 %vm12598_vm0, %v16593_v27 }
 0x364   : > { %v2837_v60 = vpop.f32.mrb[44].mxu1  ;;  %v3674_v0 = vpop.f32.mrb[44].mxu0 }
 0x365   : > { %v3211_v25 = vrot.slane %v2837_v60, 2  ;;  %v4053_v37 = vrot.slane %v3674_v0, 3  ;;  %v10872_v15 = vpop.f32.mrb[45].mxu1  ;;  %v11056_v19 = vpop.f32.mrb[45].mxu0  ;;  %v12479_v0 = vld [vmem:[%s16547_s0 + $0x130] sm:$0xff]  }
 0x366   : > { %v2840_v52 = vpop.f32.mrb[46].mxu1  ;;  %v3677_v2 = vpop.f32.mrb[46].mxu0 }
 0x367   : > { %v3212_v14 = vsel %vm2326_vm2, %v3209_v61, %v3211_v25  ;;  %v4054_v58 = vsel %vm4017_vm3, %v4051_v8, %v4053_v37  ;;  %v3213_v10 = vrot.slane %v2840_v52, 2  ;;  %v4055_v31 = vrot.slane %v3677_v2, 3  ;;  %v11057_v24 = vpop.f32.mrb[47].mxu0  ;;  %v10873_v26 = vpop.f32.mrb[47].mxu1 }
 0x368   : > { %v3435_v44 = vadd.f32 %v3212_v14, %v13557_v21  ;;  %v14285_v12 = vadd.f32 %v4054_v58, %v3433_v40 }
 0x369   : > { %v3214_v30 = vsel %vm2326_vm2, %v3211_v25, %v3213_v10  ;;  %v4056_v60 = vsel %vm4017_vm3, %v4053_v37, %v4055_v31  ;;  %10979 = vmatmul.mubr.bf16.gmra.mrb[152].mxu1 %v12479_v0  ;;  %11163 = vmatmul.mubr.bf16.gmra.mrb[152].mxu0 %v12478_v35 }
 0x36a   : > { %v3436_v61 = vadd.f32 %v3214_v30, %v13565_v7  ;;  %v14293_v8 = vadd.f32 %v4056_v60, %v3434_v48  ;;  %10982 = vmatprep.mubr.msk.bf16.mxu1 %vm12598_vm0, %v16593_v27  ;;  %11166 = vmatprep.mubr.msk.bf16.mxu0 %vm12598_vm0, %v16593_v27 }
 0x36c   : > { %v2845_v21 = vpop.f32.mrb[48].mxu1  ;;  %v3682_v40 = vpop.f32.mrb[48].mxu0 }
 0x36d   : > { %v3215_v25 = vrot.slane %v2845_v21, 2  ;;  %v4057_v37 = vrot.slane %v3682_v40, 3  ;;  %v10876_v15 = vpop.f32.mrb[49].mxu1  ;;  %v11060_v19 = vpop.f32.mrb[49].mxu0  ;;  %v12480_v40 = vld [vmem:[%s16547_s0 + $0x138] sm:$0xff]  }
 0x36e   : > { %v2848_v52 = vpop.f32.mrb[50].mxu1  ;;  %v3685_v2 = vpop.f32.mrb[50].mxu0 }
 0x36f   : > { %v3216_v35 = vsel %vm2326_vm2, %v3213_v10, %v3215_v25  ;;  %v4058_v7 = vsel %vm4017_vm3, %v4055_v31, %v4057_v37  ;;  %v3217_v48 = vrot.slane %v2848_v52, 2  ;;  %v4059_v14 = vrot.slane %v3685_v2, 3  ;;  %v11061_v58 = vpop.f32.mrb[51].mxu0  ;;  %v10877_v24 = vpop.f32.mrb[51].mxu1 }
 0x370   : > { %v3437_v26 = vadd.f32 %v3216_v35, %v13574_v32  ;;  %v14302_v30 = vadd.f32 %v4058_v7, %v3435_v44 }
 0x371   : > { %v3218_v60 = vsel %vm2326_vm2, %v3215_v25, %v3217_v48  ;;  %v4060_v21 = vsel %vm4017_vm3, %v4057_v37, %v4059_v14  ;;  %10983 = vmatmul.mubr.bf16.gmra.mrb[156].mxu1 %v12480_v40  ;;  %11167 = vmatmul.mubr.bf16.gmra.mrb[156].mxu0 %v12479_v0 }
 0x372   : > { %v3438_v10 = vadd.f32 %v3218_v60, %v13582_v16  ;;  %v14310_v31 = vadd.f32 %v4060_v21, %v3436_v61  ;;  %10986 = vmatprep.mubr.msk.bf16.mxu1 %vm12598_vm0, %v16593_v27  ;;  %11170 = vmatprep.mubr.msk.bf16.mxu0 %vm12598_vm0, %v16593_v27 }
 0x374   : > { %v2853_v32 = vpop.f32.mrb[52].mxu1  ;;  %v3690_v44 = vpop.f32.mrb[52].mxu0 }
 0x375   : > { %v3219_v25 = vrot.slane %v2853_v32, 2  ;;  %v4061_v37 = vrot.slane %v3690_v44, 3  ;;  %v10880_v15 = vpop.f32.mrb[53].mxu1  ;;  %v11064_v19 = vpop.f32.mrb[53].mxu0  ;;  %v12481_v44 = vld [vmem:[%s16547_s0 + $0x140] sm:$0xff]  }
 0x376   : > { %v2856_v52 = vpop.f32.mrb[54].mxu1  ;;  %v3693_v2 = vpop.f32.mrb[54].mxu0 }
 0x377   : > { %v3220_v0 = vsel %vm2326_vm2, %v3217_v48, %v3219_v25  ;;  %v4062_v16 = vsel %vm4017_vm3, %v4059_v14, %v4061_v37  ;;  %v3221_v61 = vrot.slane %v2856_v52, 2  ;;  %v4063_v35 = vrot.slane %v3693_v2, 3  ;;  %v11065_v7 = vpop.f32.mrb[55].mxu0  ;;  %v10881_v58 = vpop.f32.mrb[55].mxu1 }
 0x378   : > { %v3439_v24 = vadd.f32 %v3220_v0, %v13591_v38  ;;  %v14319_v60 = vadd.f32 %v4062_v16, %v3437_v26 }
 0x379   : > { %v3222_v21 = vsel %vm2326_vm2, %v3219_v25, %v3221_v61  ;;  %v4064_v32 = vsel %vm4017_vm3, %v4061_v37, %v4063_v35  ;;  %10987 = vmatmul.mubr.bf16.gmra.mrb[160].mxu1 %v12481_v44  ;;  %11171 = vmatmul.mubr.bf16.gmra.mrb[160].mxu0 %v12480_v40 }
 0x37a   : > { %v3440_v48 = vadd.f32 %v3222_v21, %v13599_v29  ;;  %v14327_v14 = vadd.f32 %v4064_v32, %v3438_v10  ;;  %10990 = vmatprep.mubr.msk.bf16.mxu1 %vm12598_vm0, %v16593_v27  ;;  %11174 = vmatprep.mubr.msk.bf16.mxu0 %vm12598_vm0, %v16593_v27 }
 0x37c   : > { %v2861_v38 = vpop.f32.mrb[56].mxu1  ;;  %v3698_v26 = vpop.f32.mrb[56].mxu0 }
 0x37d   : > { %v3223_v25 = vrot.slane %v2861_v38, 2  ;;  %v4065_v37 = vrot.slane %v3698_v26, 3  ;;  %v10884_v15 = vpop.f32.mrb[57].mxu1  ;;  %v11068_v19 = vpop.f32.mrb[57].mxu0  ;;  %v12482_v26 = vld [vmem:[%s16547_s0 + $0x148] sm:$0xff]  }
 0x37e   : > { %v2864_v52 = vpop.f32.mrb[58].mxu1  ;;  %v3701_v2 = vpop.f32.mrb[58].mxu0 }
 0x37f   : > { %v3224_v40 = vsel %vm2326_vm2, %v3221_v61, %v3223_v25  ;;  %v4066_v29 = vsel %vm4017_vm3, %v4063_v35, %v4065_v37  ;;  %v3225_v10 = vrot.slane %v2864_v52, 2  ;;  %v4067_v0 = vrot.slane %v3701_v2, 3  ;;  %v11069_v16 = vpop.f32.mrb[59].mxu0  ;;  %v10885_v7 = vpop.f32.mrb[59].mxu1 }
 0x380   : > { %v3441_v58 = vadd.f32 %v3224_v40, %v13608_v41  ;;  %v14336_v21 = vadd.f32 %v4066_v29, %v3439_v24 }
 0x381   : > { %v3226_v32 = vsel %vm2326_vm2, %v3223_v25, %v3225_v10  ;;  %v4068_v38 = vsel %vm4017_vm3, %v4065_v37, %v4067_v0  ;;  %10991 = vmatmul.mubr.bf16.gmra.mrb[164].mxu1 %v12482_v26  ;;  %11175 = vmatmul.mubr.bf16.gmra.mrb[164].mxu0 %v12481_v44 }
 0x382   : > { %v3442_v61 = vadd.f32 %v3226_v32, %v13616_v47  ;;  %v14344_v35 = vadd.f32 %v4068_v38, %v3440_v48  ;;  %10994 = vmatprep.mubr.msk.bf16.mxu1 %vm12598_vm0, %v16593_v27  ;;  %11178 = vmatprep.mubr.msk.bf16.mxu0 %vm12598_vm0, %v16593_v27 }
 0x384   : > { %v2869_v41 = vpop.f32.mrb[60].mxu1  ;;  %v3706_v24 = vpop.f32.mrb[60].mxu0 }
 0x385   : > { %v3227_v25 = vrot.slane %v2869_v41, 2  ;;  %v4069_v37 = vrot.slane %v3706_v24, 3  ;;  %v10888_v15 = vpop.f32.mrb[61].mxu1  ;;  %v11072_v19 = vpop.f32.mrb[61].mxu0  ;;  %v12483_v24 = vld [vmem:[%s16547_s0 + $0x150] sm:$0xff]  }
 0x386   : > { %v2872_v52 = vpop.f32.mrb[62].mxu1  ;;  %v3709_v2 = vpop.f32.mrb[62].mxu0 }
 0x387   : > { %v3228_v44 = vsel %vm2326_vm2, %v3225_v10, %v3227_v25  ;;  %v4070_v47 = vsel %vm4017_vm3, %v4067_v0, %v4069_v37  ;;  %v3229_v48 = vrot.slane %v2872_v52, 2  ;;  %v4071_v40 = vrot.slane %v3709_v2, 3  ;;  %v11073_v29 = vpop.f32.mrb[63].mxu0  ;;  %v10889_v16 = vpop.f32.mrb[63].mxu1 }
 0x388   : > { %v3443_v7 = vadd.f32 %v3228_v44, %v13625_v43  ;;  %v14353_v32 = vadd.f32 %v4070_v47, %v3441_v58  ;;  %v12081_v16 = vld [vmem:[%s12662_s25 + $0x1c0] sm:$0xff]  }
 0x389   : > { %v3230_v38 = vsel %vm2326_vm2, %v3227_v25, %v3229_v48  ;;  %v4072_v41 = vsel %vm4017_vm3, %v4069_v37, %v4071_v40  ;;  %10995 = vmatmul.mubr.bf16.gmra.mrb[168].mxu1 %v12483_v24  ;;  %11179 = vmatmul.mubr.bf16.gmra.mrb[168].mxu0 %v12482_v26 }
 0x38a   : > { %v3444_v10 = vadd.f32 %v3230_v38, %v13633_v20  ;;  %v14361_v0 = vadd.f32 %v4072_v41, %v3442_v61  ;;  %11182 = vmatprep.mubr.msk.bf16.mxu0 %vm12598_vm0, %v16593_v27  ;;  %11202 = vmatprep.mubr.msk.bf16.mxu1 %vm12598_vm0, %v16593_v27 }
 0x38c   : > { %v2877_v43 = vpop.f32.mrb[64].mxu1  ;;  %v3714_v58 = vpop.f32.mrb[64].mxu0 }
 0x38d   : > { %v3231_v25 = vrot.slane %v2877_v43, 2  ;;  %v4073_v37 = vrot.slane %v3714_v58, 3  ;;  %v10892_v15 = vpop.f32.mrb[65].mxu1  ;;  %v11076_v19 = vpop.f32.mrb[65].mxu0 }
 0x38e   : > { %v2880_v52 = vpop.f32.mrb[66].mxu1  ;;  %v3717_v2 = vpop.f32.mrb[66].mxu0 }
 0x38f   : > { %v3232_v26 = vsel %vm2326_vm2, %v3229_v48, %v3231_v25  ;;  %v4074_v20 = vsel %vm4017_vm3, %v4071_v40, %v4073_v37  ;;  %v3233_v61 = vrot.slane %v2880_v52, 2  ;;  %v4075_v44 = vrot.slane %v3717_v2, 3  ;;  %v11077_v47 = vpop.f32.mrb[67].mxu0  ;;  %v10893_v29 = vpop.f32.mrb[67].mxu1  ;;  %v12484_v48 = vld [vmem:[%s16547_s0] sm:$0xff]  }
 0x390   : > { %v3445_v38 = vadd.f32 %v3232_v26, %v13643_v18  ;;  %v14371_v41 = vadd.f32 %v4074_v20, %v3443_v7  ;;  %v12083_v18 = vld [vmem:[%s12662_s25 + $0x1c8] sm:$0xff]   ;;  %v12082_v2 = vld [vmem:[%s12662_s25 + $0x200] sm:$0xff]  }
 0x391   : > { %v3234_v43 = vsel %vm2326_vm2, %v3231_v25, %v3233_v61  ;;  %v4076_v58 = vsel %vm4017_vm3, %v4073_v37, %v4075_v44  ;;  %11183 = vmatmul.mubr.bf16.gmra.mrb[172].mxu0 %v12483_v24  ;;  %11203 = vmatmul.mubr.bf16.vlgmr.msra.gmra.mrb[172].mxu1 %v12484_v48 }
 0x392   : > { %v3446_v40 = vadd.f32 %v3234_v43, %v13651_v33  ;;  %v14379_v15 = vadd.f32 %v4076_v58, %v3444_v10  ;;  %11206 = vmatprep.mubr.msk.bf16.mxu1 %vm12598_vm0, %v16593_v27  ;;  %11390 = vmatprep.mubr.msk.bf16.mxu0 %vm12598_vm0, %v16593_v27 }
 0x393   : > { %11563 = vmatpush3.bf16.msra.mxu1 %v12081_v16 }
 0x394   : > { %v2885_v7 = vpop.f32.mrb[68].mxu1  ;;  %v3722_v24 = vpop.f32.mrb[68].mxu0  ;;  %11564 = vmatprep.subr.bf16.mxu1 %v16593_v27 }
 0x395   : > { %v3235_v25 = vrot.slane %v2885_v7, 2  ;;  %v4077_v37 = vrot.slane %v3722_v24, 3  ;;  %v10896_v19 = vpop.f32.mrb[69].mxu1  ;;  %v11080_v52 = vpop.f32.mrb[69].mxu0  ;;  %v12085_v24 = vld [vmem:[%s12662_s25 + $0x1d0] sm:$0xff]  }
 0x396   : > { %v2888_v33 = vpop.f32.mrb[70].mxu1  ;;  %v3725_v10 = vpop.f32.mrb[70].mxu0 }
 0x397   : > { %v3236_v26 = vsel %vm2326_vm2, %v3233_v61, %v3235_v25  ;;  %v4078_v20 = vsel %vm4017_vm3, %v4075_v44, %v4077_v37  ;;  %v3237_v47 = vrot.slane %v2888_v33, 2  ;;  %v4079_v29 = vrot.slane %v3725_v10, 3  ;;  %v11081_v16 = vpop.f32.mrb[71].mxu0  ;;  %v10897_v43 = vpop.f32.mrb[71].mxu1  ;;  %11565 = vmatpush3.bf16.msra.mxu1 %v12083_v18  ;;  %v12485_v44 = vld [vmem:[%s16547_s0 + $0x8] sm:$0xff]  }
 0x398   : > { %v3447_v58 = vadd.f32 %v3236_v26, %v13663_v4  ;;  %v14391_v7 = vadd.f32 %v4078_v20, %v3445_v38  ;;  %11566 = vmatprep.subr.bf16.mxu1 %v16593_v27  ;;  %v12084_v4 = vld [vmem:[%s12662_s25 + $0x208] sm:$0xff]  }
 0x399   : > { %v3238_v19 = vsel %vm2326_vm2, %v3235_v25, %v3237_v47  ;;  %v4080_v61 = vsel %vm4017_vm3, %v4077_v37, %v4079_v29  ;;  %11207 = vmatmul.mubr.bf16.gmra.mrb[176].mxu1 %v12485_v44  ;;  %11391 = vmatmul.mubr.bf16.vlgmr.msra.gmra.mrb[176].mxu0 %v12484_v48  ;;  %v12087_v37 = vld [vmem:[%s12662_s25 + $0x1d8] sm:$0xff]  }
 0x39a   : > { %v3448_v18 = vadd.f32 %v3238_v19, %v13673_v39  ;;  %v14401_v52 = vadd.f32 %v4080_v61, %v3446_v40  ;;  %11751 = vmatpush3.bf16.msra.mxu0 %v12082_v2  ;;  %11210 = vmatprep.mubr.msk.bf16.mxu1 %vm12598_vm0, %v16593_v27 }
 0x39b   : > { %11394 = vmatprep.mubr.msk.bf16.mxu0 %vm12598_vm0, %v16593_v27  ;;  %11752 = vmatprep.subr.bf16.mxu0 %v16593_v27 }
 0x39c   : > { %v2893_v38 = vpop.f32.mrb[72].mxu1  ;;  %v3730_v25 = vpop.f32.mrb[72].mxu0  ;;  %11567 = vmatpush3.bf16.msra.mxu1 %v12085_v24  ;;  %v12086_v24 = vld [vmem:[%s12662_s25 + $0x210] sm:$0xff]  }
 0x39d   : > { %v3239_v48 = vrot.slane %v2893_v38, 2  ;;  %v4081_v33 = vrot.slane %v3730_v25, 3  ;;  %v10900_v39 = vpop.f32.mrb[73].mxu1  ;;  %v11084_v40 = vpop.f32.mrb[73].mxu0  ;;  %11568 = vmatprep.subr.bf16.mxu1 %v16593_v27 }
 0x39e   : > { %v2896_v10 = vpop.f32.mrb[74].mxu1  ;;  %v3733_v2 = vpop.f32.mrb[74].mxu0  ;;  %11753 = vmatpush3.bf16.msra.mxu0 %v12084_v4 }
 0x39f   : > { %v3240_v26 = vsel %vm2326_vm2, %v3237_v47, %v3239_v48  ;;  %v4082_v20 = vsel %vm4017_vm3, %v4079_v29, %v4081_v33  ;;  %v3241_v16 = vrot.slane %v2896_v10, 2  ;;  %v4083_v43 = vrot.slane %v3733_v2, 3  ;;  %v11085_v19 = vpop.f32.mrb[75].mxu0  ;;  %v10901_v61 = vpop.f32.mrb[75].mxu1  ;;  %11754 = vmatprep.subr.bf16.mxu0 %v16593_v27  ;;  %v12486_v47 = vld [vmem:[%s16547_s0 + $0x10] sm:$0xff]  }
 0x3a0   : > { %v3449_v38 = vadd.f32 %v3240_v26, %v13688_v1  ;;  %v14416_v25 = vadd.f32 %v4082_v20, %v3447_v58  ;;  %11569 = vmatpush3.bf16.msra.mxu1 %v12087_v37  ;;  %v12088_v1 = vld [vmem:[%s12662_s25 + $0x218] sm:$0xff]  }
 0x3a1   : > { %v3242_v39 = vsel %vm2326_vm2, %v3239_v48, %v3241_v16  ;;  %v4084_v4 = vsel %vm4017_vm3, %v4081_v33, %v4083_v43  ;;  %11211 = vmatmul.mubr.bf16.gmra.mrb[180].mxu1 %v12486_v47  ;;  %11395 = vmatmul.mubr.bf16.gmra.mrb[180].mxu0 %v12485_v44 }
 0x3a2   : > { %v3450_v29 = vadd.f32 %v3242_v39, %v13696_v5  ;;  %v14424_v40 = vadd.f32 %v4084_v4, %v3448_v18  ;;  %11214 = vmatprep.mubr.msk.bf16.mxu1 %vm12598_vm0, %v16593_v27  ;;  %11398 = vmatprep.mubr.msk.bf16.mxu0 %vm12598_vm0, %v16593_v27 }
 0x3a3   : > { %11755 = vmatpush3.bf16.msra.mxu0 %v12086_v24  ;;  %11570 = vmatprep.subr.bf16.mxu1 %v16593_v27 }
 0x3a4   : > { %v2901_v58 = vpop.f32.mrb[76].mxu1  ;;  %v3738_v37 = vpop.f32.mrb[76].mxu0  ;;  %11756 = vmatprep.subr.bf16.mxu0 %v16593_v27 }
 0x3a5   : > { %v3243_v48 = vrot.slane %v2901_v58, 2  ;;  %v4085_v44 = vrot.slane %v3738_v37, 3  ;;  %v10904_v33 = vpop.f32.mrb[77].mxu1  ;;  %v11088_v5 = vpop.f32.mrb[77].mxu0 }
 0x3a6   : > { %v2904_v18 = vpop.f32.mrb[78].mxu1  ;;  %v3741_v10 = vpop.f32.mrb[78].mxu0 }
 0x3a7   : > { %v3244_v2 = vsel %vm2326_vm2, %v3241_v16, %v3243_v48  ;;  %v4086_v26 = vsel %vm4017_vm3, %v4083_v43, %v4085_v44  ;;  %v3245_v20 = vrot.slane %v2904_v18, 2  ;;  %v4087_v19 = vrot.slane %v3741_v10, 3  ;;  %v11089_v61 = vpop.f32.mrb[79].mxu0  ;;  %v10905_v24 = vpop.f32.mrb[79].mxu1  ;;  %11757 = vmatpush3.bf16.msra.mxu0 %v12088_v1  ;;  %v12487_v16 = vld [vmem:[%s16547_s0 + $0x18] sm:$0xff]  }
 0x3a8   : > { %v3451_v39 = vadd.f32 %v3244_v2, %v13708_v3  ;;  %v14436_v4 = vadd.f32 %v4086_v26, %v3449_v38  ;;  %11758 = vmatprep.subr.bf16.mxu0 %v16593_v27 }
 0x3a9   : > { %v3246_v58 = vsel %vm2326_vm2, %v3243_v48, %v3245_v20  ;;  %v4088_v37 = vsel %vm4017_vm3, %v4085_v44, %v4087_v19  ;;  %11215 = vmatmul.mubr.bf16.gmra.mrb[184].mxu1 %v12487_v16  ;;  %11399 = vmatmul.mubr.bf16.gmra.mrb[184].mxu0 %v12486_v47 }
 0x3aa   : > { %v3452_v43 = vadd.f32 %v3246_v58, %v13717_v56  ;;  %v14445_v33 = vadd.f32 %v4088_v37, %v3450_v29  ;;  %11218 = vmatprep.mubr.msk.bf16.mxu1 %vm12598_vm0, %v16593_v27  ;;  %11402 = vmatprep.mubr.msk.bf16.mxu0 %vm12598_vm0, %v16593_v27 }
 0x3ac   : > { %v2909_v3 = vpop.f32.mrb[80].mxu1  ;;  %v3746_v38 = vpop.f32.mrb[80].mxu0 }
 0x3ad   : > { %v3247_v1 = vrot.slane %v2909_v3, 2  ;;  %v4089_v48 = vrot.slane %v3746_v38, 3  ;;  %v10908_v44 = vpop.f32.mrb[81].mxu1  ;;  %v11092_v5 = vpop.f32.mrb[81].mxu0  ;;  %v12488_v38 = vld [vmem:[%s16547_s0 + $0x20] sm:$0xff]  }
 0x3ae   : > { %v2912_v18 = vpop.f32.mrb[82].mxu1  ;;  %v3749_v10 = vpop.f32.mrb[82].mxu0 }
 0x3af   : > { %v3248_v47 = vsel %vm2326_vm2, %v3245_v20, %v3247_v1  ;;  %v4090_v56 = vsel %vm4017_vm3, %v4087_v19, %v4089_v48  ;;  %v3249_v29 = vrot.slane %v2912_v18, 2  ;;  %v4091_v2 = vrot.slane %v3749_v10, 3  ;;  %v11093_v26 = vpop.f32.mrb[83].mxu0  ;;  %v10909_v61 = vpop.f32.mrb[83].mxu1 }
 0x3b0   : > { %v3453_v24 = vadd.f32 %v3248_v47, %v13726_v51  ;;  %v14454_v58 = vadd.f32 %v4090_v56, %v3451_v39 }
 0x3b1   : > { %v3250_v37 = vsel %vm2326_vm2, %v3247_v1, %v3249_v29  ;;  %v4092_v3 = vsel %vm4017_vm3, %v4089_v48, %v4091_v2  ;;  %11219 = vmatmul.mubr.bf16.gmra.mrb[188].mxu1 %v12488_v38  ;;  %11403 = vmatmul.mubr.bf16.gmra.mrb[188].mxu0 %v12487_v16 }
 0x3b2   : > { %v3454_v20 = vadd.f32 %v3250_v37, %v13734_v55  ;;  %v14462_v19 = vadd.f32 %v4092_v3, %v3452_v43  ;;  %11222 = vmatprep.mubr.msk.bf16.mxu1 %vm12598_vm0, %v16593_v27  ;;  %11406 = vmatprep.mubr.msk.bf16.mxu0 %vm12598_vm0, %v16593_v27 }
 0x3b4   : > { %v2917_v51 = vpop.f32.mrb[84].mxu1  ;;  %v3754_v39 = vpop.f32.mrb[84].mxu0 }
 0x3b5   : > { %v3251_v1 = vrot.slane %v2917_v51, 2  ;;  %v4093_v48 = vrot.slane %v3754_v39, 3  ;;  %v10912_v44 = vpop.f32.mrb[85].mxu1  ;;  %v11096_v5 = vpop.f32.mrb[85].mxu0  ;;  %v12489_v39 = vld [vmem:[%s16547_s0 + $0x28] sm:$0xff]  }
 0x3b6   : > { %v2920_v18 = vpop.f32.mrb[86].mxu1  ;;  %v3757_v10 = vpop.f32.mrb[86].mxu0 }
 0x3b7   : > { %v3252_v16 = vsel %vm2326_vm2, %v3249_v29, %v3251_v1  ;;  %v4094_v55 = vsel %vm4017_vm3, %v4091_v2, %v4093_v48  ;;  %v3253_v43 = vrot.slane %v2920_v18, 2  ;;  %v4095_v47 = vrot.slane %v3757_v10, 3  ;;  %v11097_v56 = vpop.f32.mrb[87].mxu0  ;;  %v10913_v26 = vpop.f32.mrb[87].mxu1 }
 0x3b8   : > { %v3455_v61 = vadd.f32 %v3252_v16, %v13743_v6  ;;  %v14471_v37 = vadd.f32 %v4094_v55, %v3453_v24  ;;  %v16675_v26 = vld [vmem:[#allocation40_spill] sm:$0xff] }
 0x3b9   : > { %v3254_v3 = vsel %vm2326_vm2, %v3251_v1, %v3253_v43  ;;  %v4096_v51 = vsel %vm4017_vm3, %v4093_v48, %v4095_v47  ;;  %11223 = vmatmul.mubr.bf16.gmra.mrb[192].mxu1 %v12489_v39  ;;  %11407 = vmatmul.mubr.bf16.gmra.mrb[192].mxu0 %v12488_v38 }
 0x3ba   : > { %16673 = vst [vmem:[#allocation39_spill] sm:$0xff] %v14471_v37  ;;  %v3456_v29 = vadd.f32 %v3254_v3, %v13751_v45  ;;  %v14479_v2 = vadd.f32 %v4096_v51, %v3454_v20  ;;  %11226 = vmatprep.mubr.msk.bf16.mxu1 %vm12598_vm0, %v16593_v27  ;;  %11410 = vmatprep.mubr.msk.bf16.mxu0 %vm12598_vm0, %v16593_v27 }
 0x3bc   : > { %16674 = vst [vmem:[#allocation42_spill] sm:$0xff] %v14479_v2  ;;  %v2925_v6 = vpop.f32.mrb[88].mxu1  ;;  %v3762_v24 = vpop.f32.mrb[88].mxu0 }
 0x3bd   : > { %v3255_v1 = vrot.slane %v2925_v6, 2  ;;  %v4097_v48 = vrot.slane %v3762_v24, 3  ;;  %v10916_v44 = vpop.f32.mrb[89].mxu1  ;;  %v11100_v5 = vpop.f32.mrb[89].mxu0  ;;  %v12490_v24 = vld [vmem:[%s16547_s0 + $0x30] sm:$0xff]  }
 0x3be   : > { %v2928_v18 = vpop.f32.mrb[90].mxu1  ;;  %v3765_v10 = vpop.f32.mrb[90].mxu0 }
 0x3bf   : > { %v3256_v38 = vsel %vm2326_vm2, %v3253_v43, %v3255_v1  ;;  %v4098_v45 = vsel %vm4017_vm3, %v4095_v47, %v4097_v48  ;;  %v3257_v20 = vrot.slane %v2928_v18, 2  ;;  %v4099_v16 = vrot.slane %v3765_v10, 3  ;;  %v11101_v55 = vpop.f32.mrb[91].mxu0  ;;  %v10917_v56 = vpop.f32.mrb[91].mxu1  ;;  %v16677_v43 = vld [vmem:[#allocation41_spill] sm:$0xff] }
 0x3c0   : > { %v3457_v3 = vadd.f32 %v3256_v38, %v16675_v26  ;;  %v14488_v51 = vadd.f32 %v4098_v45, %v3455_v61 }
 0x3c1   : > { %v3258_v2 = vsel %vm2326_vm2, %v3255_v1, %v3257_v20  ;;  %v4100_v6 = vsel %vm4017_vm3, %v4097_v48, %v4099_v16  ;;  %11227 = vmatmul.mubr.bf16.gmra.mrb[196].mxu1 %v12490_v24  ;;  %11411 = vmatmul.mubr.bf16.gmra.mrb[196].mxu0 %v12489_v39 }
 0x3c2   : > { %16676 = vst [vmem:[#allocation40_spill] sm:$0xff] %v14488_v51  ;;  %v3458_v47 = vadd.f32 %v3258_v2, %v16677_v43  ;;  %v14496_v44 = vadd.f32 %v4100_v6, %v3456_v29  ;;  %11230 = vmatprep.mubr.msk.bf16.mxu1 %vm12598_vm0, %v16593_v27  ;;  %11414 = vmatprep.mubr.msk.bf16.mxu0 %vm12598_vm0, %v16593_v27  ;;  %v16679_v6 = vld [vmem:[#allocation3_spill] sm:$0xff] }
 0x3c4   : > { %16678 = vst [vmem:[#allocation41_spill] sm:$0xff] %v14496_v44  ;;  %v2933_v61 = vpop.f32.mrb[92].mxu1  ;;  %v3770_v1 = vpop.f32.mrb[92].mxu0  ;;  %v12089_v44 = vld [vmem:[%s12662_s25 + $0x1e0] sm:$0xff]  }
 0x3c5   : > { %v3259_v48 = vrot.slane %v2933_v61, 2  ;;  %v4101_v5 = vrot.slane %v3770_v1, 3  ;;  %v10920_v18 = vpop.f32.mrb[93].mxu1  ;;  %v11104_v10 = vpop.f32.mrb[93].mxu0  ;;  %11571 = vmatpush3.bf16.msra.mxu1 %v12089_v44 }
 0x3c6   : > { %v2936_v38 = vpop.f32.mrb[94].mxu1  ;;  %v3773_v45 = vpop.f32.mrb[94].mxu0  ;;  %11572 = vmatprep.subr.bf16.mxu1 %v16593_v27 }
 0x3c7   : > { %v3260_v39 = vsel %vm2326_vm2, %v3257_v20, %v3259_v48  ;;  %v4102_v29 = vsel %vm4017_vm3, %v4099_v16, %v4101_v5  ;;  %v3261_v2 = vrot.slane %v2936_v38, 2  ;;  %v4103_v55 = vrot.slane %v3773_v45, 3  ;;  %v11105_v56 = vpop.f32.mrb[95].mxu0  ;;  %v10921_v26 = vpop.f32.mrb[95].mxu1  ;;  %v12491_v20 = vld [vmem:[%s16547_s0 + $0x38] sm:$0xff]   ;;  %v16681_v16 = vld [vmem:[#allocation4_spill] sm:$0xff] }
 0x3c8   : > { %v3459_v43 = vadd.f32 %v3260_v39, %v16679_v6  ;;  %v14506_v51 = vadd.f32 %v4102_v29, %v3457_v3  ;;  %v12090_v3 = vld [vmem:[%s12662_s25 + $0x220] sm:$0xff]  }
 0x3c9   : > { %v3262_v61 = vsel %vm2326_vm2, %v3259_v48, %v3261_v2  ;;  %v4104_v1 = vsel %vm4017_vm3, %v4101_v5, %v4103_v55  ;;  %11231 = vmatmul.mubr.bf16.gmra.mrb[200].mxu1 %v12491_v20  ;;  %11415 = vmatmul.mubr.bf16.gmra.mrb[200].mxu0 %v12490_v24 }
 0x3ca   : > { %16680 = vst [vmem:[#allocation3_spill] sm:$0xff] %v14506_v51  ;;  %v3460_v18 = vadd.f32 %v3262_v61, %v16681_v16  ;;  %11234 = vmatprep.mubr.msk.bf16.mxu1 %vm12598_vm0, %v16593_v27  ;;  %11418 = vmatprep.mubr.msk.bf16.mxu0 %vm12598_vm0, %v16593_v27  ;;  %v14519_v10 = vadd.f32 %v4104_v1, %v3458_v47  ;;  %v16683_v16 = vld [vmem:[#allocation5_spill] sm:$0xff]  ;;  %v16687_v51 = vld [vmem:[#allocation7_spill] sm:$0xff] }
 0x3cb   : > { %11759 = vmatpush3.bf16.msra.mxu0 %v12090_v3 }
 0x3cc   : > { %16682 = vst [vmem:[#allocation4_spill] sm:$0xff] %v14519_v10  ;;  %v2941_v48 = vpop.f32.mrb[96].mxu1  ;;  %v3778_v5 = vpop.f32.mrb[96].mxu0  ;;  %11760 = vmatprep.subr.bf16.mxu0 %v16593_v27 }
 0x3cd   : > { %v3263_v38 = vrot.slane %v2941_v48, 2  ;;  %v4105_v45 = vrot.slane %v3778_v5, 3  ;;  %v10924_v24 = vpop.f32.mrb[97].mxu1  ;;  %v11108_v39 = vpop.f32.mrb[97].mxu0 }
 0x3ce   : > { %v2944_v29 = vpop.f32.mrb[98].mxu1  ;;  %v3781_v56 = vpop.f32.mrb[98].mxu0  ;;  %v12492_v24 = vld [vmem:[%s16547_s0 + $0x40] sm:$0xff]  }
 0x3cf   : > { %v3264_v26 = vsel %vm2326_vm2, %v3261_v2, %v3263_v38  ;;  %v4106_v6 = vsel %vm4017_vm3, %v4103_v55, %v4105_v45  ;;  %v3265_v47 = vrot.slane %v2944_v29, 2  ;;  %v4107_v61 = vrot.slane %v3781_v56, 3  ;;  %v11109_v44 = vpop.f32.mrb[99].mxu0  ;;  %v10925_v1 = vpop.f32.mrb[99].mxu1  ;;  %v16685_v2 = vld [vmem:[#allocation6_spill] sm:$0xff] }
 0x3d0   : > { %v3461_v3 = vadd.f32 %v3264_v26, %v16683_v16  ;;  %v14526_v10 = vadd.f32 %v4106_v6, %v3459_v43 }
 0x3d1   : > { %v3266_v48 = vsel %vm2326_vm2, %v3263_v38, %v3265_v47  ;;  %v4108_v5 = vsel %vm4017_vm3, %v4105_v45, %v4107_v61  ;;  %11235 = vmatmul.mubr.bf16.gmra.mrb[204].mxu1 %v12492_v24  ;;  %11419 = vmatmul.mubr.bf16.gmra.mrb[204].mxu0 %v12491_v20 }
 0x3d2   : > { %16684 = vst [vmem:[#allocation5_spill] sm:$0xff] %v14526_v10  ;;  %v3462_v55 = vadd.f32 %v3266_v48, %v16685_v2  ;;  %11238 = vmatprep.mubr.msk.bf16.mxu1 %vm12598_vm0, %v16593_v27  ;;  %11422 = vmatprep.mubr.msk.bf16.mxu0 %vm12598_vm0, %v16593_v27  ;;  %v14538_v43 = vadd.f32 %v4108_v5, %v3460_v18 }
 0x3d4   : > { %16686 = vst [vmem:[#allocation6_spill] sm:$0xff] %v14538_v43  ;;  %v2949_v39 = vpop.f32.mrb[100].mxu1  ;;  %v3786_v38 = vpop.f32.mrb[100].mxu0 }
 0x3d5   : > { %v3267_v29 = vrot.slane %v2949_v39, 2  ;;  %v4109_v45 = vrot.slane %v3786_v38, 3  ;;  %v10928_v56 = vpop.f32.mrb[101].mxu1  ;;  %v11112_v26 = vpop.f32.mrb[101].mxu0  ;;  %v12493_v38 = vld [vmem:[%s16547_s0 + $0x48] sm:$0xff]  }
 0x3d6   : > { %v2952_v6 = vpop.f32.mrb[102].mxu1  ;;  %v3789_v44 = vpop.f32.mrb[102].mxu0 }
 0x3d7   : > { %v3268_v20 = vsel %vm2326_vm2, %v3265_v47, %v3267_v29  ;;  %v4110_v1 = vsel %vm4017_vm3, %v4107_v61, %v4109_v45  ;;  %v3269_v16 = vrot.slane %v2952_v6, 2  ;;  %v4111_v48 = vrot.slane %v3789_v44, 3  ;;  %v11113_v2 = vpop.f32.mrb[103].mxu0  ;;  %v10929_v10 = vpop.f32.mrb[103].mxu1  ;;  %v16689_v47 = vld [vmem:[#allocation8_spill] sm:$0xff] }
 0x3d8   : > { %v3463_v37 = vadd.f32 %v3268_v20, %v16687_v51  ;;  %v14543_v18 = vadd.f32 %v4110_v1, %v3461_v3 }
 0x3d9   : > { %v3270_v5 = vsel %vm2326_vm2, %v3267_v29, %v3269_v16  ;;  %v4112_v39 = vsel %vm4017_vm3, %v4109_v45, %v4111_v48  ;;  %11239 = vmatmul.mubr.bf16.gmra.mrb[208].mxu1 %v12493_v38  ;;  %11423 = vmatmul.mubr.bf16.gmra.mrb[208].mxu0 %v12492_v24 }
 0x3da   : > { %16688 = vst [vmem:[#allocation7_spill] sm:$0xff] %v14543_v18  ;;  %v3464_v61 = vadd.f32 %v3270_v5, %v16689_v47  ;;  %11242 = vmatprep.mubr.msk.bf16.mxu1 %vm12598_vm0, %v16593_v27  ;;  %11426 = vmatprep.mubr.msk.bf16.mxu0 %vm12598_vm0, %v16593_v27  ;;  %v14555_v51 = vadd.f32 %v4112_v39, %v3462_v55  ;;  %v16691_v18 = vld [vmem:[#allocation9_spill] sm:$0xff] }
 0x3dc   : > { %16690 = vst [vmem:[#allocation8_spill] sm:$0xff] %v14555_v51  ;;  %v2957_v10 = vpop.f32.mrb[104].mxu1  ;;  %v3794_v3 = vpop.f32.mrb[104].mxu0 }
 0x3dd   : > { %v3271_v29 = vrot.slane %v2957_v10, 2  ;;  %v4113_v45 = vrot.slane %v3794_v3, 3  ;;  %v10932_v56 = vpop.f32.mrb[105].mxu1  ;;  %v11116_v26 = vpop.f32.mrb[105].mxu0  ;;  %v12494_v3 = vld [vmem:[%s16547_s0 + $0x50] sm:$0xff]  }
 0x3de   : > { %v2960_v6 = vpop.f32.mrb[106].mxu1  ;;  %v3797_v44 = vpop.f32.mrb[106].mxu0 }
 0x3df   : > { %v3272_v24 = vsel %vm2326_vm2, %v3269_v16, %v3271_v29  ;;  %v4114_v20 = vsel %vm4017_vm3, %v4111_v48, %v4113_v45  ;;  %v3273_v1 = vrot.slane %v2960_v6, 2  ;;  %v4115_v2 = vrot.slane %v3797_v44, 3  ;;  %v11117_v5 = vpop.f32.mrb[107].mxu0  ;;  %v10933_v47 = vpop.f32.mrb[107].mxu1  ;;  %v16693_v16 = vld [vmem:[#allocation10_spill] sm:$0xff] }
 0x3e0   : > { %v3465_v43 = vadd.f32 %v3272_v24, %v16691_v18  ;;  %v14560_v55 = vadd.f32 %v4114_v20, %v3463_v37 }
 0x3e1   : > { %v3274_v39 = vsel %vm2326_vm2, %v3271_v29, %v3273_v1  ;;  %v4116_v10 = vsel %vm4017_vm3, %v4113_v45, %v4115_v2  ;;  %11243 = vmatmul.mubr.bf16.gmra.mrb[212].mxu1 %v12494_v3  ;;  %11427 = vmatmul.mubr.bf16.gmra.mrb[212].mxu0 %v12493_v38 }
 0x3e2   : > { %16692 = vst [vmem:[#allocation9_spill] sm:$0xff] %v14560_v55  ;;  %v3466_v48 = vadd.f32 %v3274_v39, %v16693_v16  ;;  %11246 = vmatprep.mubr.msk.bf16.mxu1 %vm12598_vm0, %v16593_v27  ;;  %11430 = vmatprep.mubr.msk.bf16.mxu0 %vm12598_vm0, %v16593_v27  ;;  %v14572_v37 = vadd.f32 %v4116_v10, %v3464_v61  ;;  %v16695_v55 = vld [vmem:[#allocation11_spill] sm:$0xff] }
 0x3e4   : > { %16694 = vst [vmem:[#allocation10_spill] sm:$0xff] %v14572_v37  ;;  %v2965_v18 = vpop.f32.mrb[108].mxu1  ;;  %v3802_v29 = vpop.f32.mrb[108].mxu0 }
 0x3e5   : > { %v3275_v56 = vrot.slane %v2965_v18, 2  ;;  %v4117_v45 = vrot.slane %v3802_v29, 3  ;;  %v10936_v26 = vpop.f32.mrb[109].mxu1  ;;  %v11120_v6 = vpop.f32.mrb[109].mxu0  ;;  %v12495_v29 = vld [vmem:[%s16547_s0 + $0x58] sm:$0xff]  }
 0x3e6   : > { %v2968_v44 = vpop.f32.mrb[110].mxu1  ;;  %v3805_v24 = vpop.f32.mrb[110].mxu0 }
 0x3e7   : > { %v3276_v38 = vsel %vm2326_vm2, %v3273_v1, %v3275_v56  ;;  %v4118_v20 = vsel %vm4017_vm3, %v4115_v2, %v4117_v45  ;;  %v3277_v5 = vrot.slane %v2968_v44, 2  ;;  %v4119_v47 = vrot.slane %v3805_v24, 3  ;;  %v11121_v39 = vpop.f32.mrb[111].mxu0  ;;  %v10937_v16 = vpop.f32.mrb[111].mxu1  ;;  %v16697_v1 = vld [vmem:[#allocation12_spill] sm:$0xff] }
 0x3e8   : > { %v3467_v51 = vadd.f32 %v3276_v38, %v16695_v55  ;;  %v14577_v61 = vadd.f32 %v4118_v20, %v3465_v43 }
 0x3e9   : > { %v3278_v10 = vsel %vm2326_vm2, %v3275_v56, %v3277_v5  ;;  %v4120_v18 = vsel %vm4017_vm3, %v4117_v45, %v4119_v47  ;;  %11247 = vmatmul.mubr.bf16.gmra.mrb[216].mxu1 %v12495_v29  ;;  %11431 = vmatmul.mubr.bf16.gmra.mrb[216].mxu0 %v12494_v3 }
 0x3ea   : > { %16696 = vst [vmem:[#allocation11_spill] sm:$0xff] %v14577_v61  ;;  %v3468_v2 = vadd.f32 %v3278_v10, %v16697_v1  ;;  %11250 = vmatprep.mubr.msk.bf16.mxu1 %vm12598_vm0, %v16593_v27  ;;  %11434 = vmatprep.mubr.msk.bf16.mxu0 %vm12598_vm0, %v16593_v27  ;;  %v14589_v43 = vadd.f32 %v4120_v18, %v3466_v48  ;;  %v16699_v48 = vld [vmem:[#allocation13_spill] sm:$0xff] }
 0x3eb   : > { %v16707_v61 = vld [vmem:[#allocation17_spill] sm:$0xff] }
 0x3ec   : > { %16698 = vst [vmem:[#allocation12_spill] sm:$0xff] %v14589_v43  ;;  %v2973_v55 = vpop.f32.mrb[112].mxu1  ;;  %v3810_v56 = vpop.f32.mrb[112].mxu0 }
 0x3ed   : > { %v3279_v26 = vrot.slane %v2973_v55, 2  ;;  %v4121_v45 = vrot.slane %v3810_v56, 3  ;;  %v10940_v6 = vpop.f32.mrb[113].mxu1  ;;  %v11124_v44 = vpop.f32.mrb[113].mxu0 }
 0x3ee   : > { %v2976_v24 = vpop.f32.mrb[114].mxu1  ;;  %v3813_v38 = vpop.f32.mrb[114].mxu0  ;;  %v12092_v44 = vld [vmem:[%s12662_s25 + $0x228] sm:$0xff]  }
 0x3ef   : > { %v3280_v3 = vsel %vm2326_vm2, %v3277_v5, %v3279_v26  ;;  %v4122_v20 = vsel %vm4017_vm3, %v4119_v47, %v4121_v45  ;;  %v3281_v39 = vrot.slane %v2976_v24, 2  ;;  %v4123_v16 = vrot.slane %v3813_v38, 3  ;;  %v11125_v10 = vpop.f32.mrb[115].mxu0  ;;  %v10941_v1 = vpop.f32.mrb[115].mxu1  ;;  %v12496_v5 = vld [vmem:[%s16547_s0 + $0x60] sm:$0xff]   ;;  %11761 = vmatpush3.bf16.msra.mxu0 %v12092_v44 }
 0x3f0   : > { %v3469_v18 = vadd.f32 %v3280_v3, %v16699_v48  ;;  %v14594_v43 = vadd.f32 %v4122_v20, %v3467_v51  ;;  %v16701_v47 = vld [vmem:[#allocation14_spill] sm:$0xff]  ;;  %v12091_v51 = vld [vmem:[%s12662_s25 + $0x1e8] sm:$0xff]   ;;  %11762 = vmatprep.subr.bf16.mxu0 %v16593_v27 }
 0x3f1   : > { %v3282_v55 = vsel %vm2326_vm2, %v3279_v26, %v3281_v39  ;;  %v4124_v56 = vsel %vm4017_vm3, %v4121_v45, %v4123_v16  ;;  %11251 = vmatmul.mubr.bf16.gmra.mrb[220].mxu1 %v12496_v5  ;;  %11435 = vmatmul.mubr.bf16.gmra.mrb[220].mxu0 %v12495_v29 }
 0x3f2   : > { %16700 = vst [vmem:[#allocation13_spill] sm:$0xff] %v14594_v43  ;;  %v3470_v6 = vadd.f32 %v3282_v55, %v16701_v47  ;;  %11254 = vmatprep.mubr.msk.bf16.mxu1 %vm12598_vm0, %v16593_v27  ;;  %11438 = vmatprep.mubr.msk.bf16.mxu0 %vm12598_vm0, %v16593_v27  ;;  %v14608_v24 = vadd.f32 %v4124_v56, %v3468_v2 }
 0x3f3   : > { %11573 = vmatpush3.bf16.msra.mxu1 %v12091_v51  ;;  %v16703_v51 = vld [vmem:[#allocation15_spill] sm:$0xff] }
 0x3f4   : > { %16702 = vst [vmem:[#allocation14_spill] sm:$0xff] %v14608_v24  ;;  %v2981_v26 = vpop.f32.mrb[116].mxu1  ;;  %v3818_v45 = vpop.f32.mrb[116].mxu0  ;;  %11574 = vmatprep.subr.bf16.mxu1 %v16593_v27 }
 0x3f5   : > { %v3283_v38 = vrot.slane %v2981_v26, 2  ;;  %v4125_v3 = vrot.slane %v3818_v45, 3  ;;  %v10944_v20 = vpop.f32.mrb[117].mxu1  ;;  %v11128_v29 = vpop.f32.mrb[117].mxu0 }
 0x3f6   : > { %v2984_v10 = vpop.f32.mrb[118].mxu1  ;;  %v3821_v1 = vpop.f32.mrb[118].mxu0  ;;  %v12497_v29 = vld [vmem:[%s16547_s0 + $0x68] sm:$0xff]  }
 0x3f7   : > { %v3284_v48 = vsel %vm2326_vm2, %v3281_v39, %v3283_v38  ;;  %v4126_v55 = vsel %vm4017_vm3, %v4123_v16, %v4125_v3  ;;  %v3285_v2 = vrot.slane %v2984_v10, 2  ;;  %v4127_v56 = vrot.slane %v3821_v1, 3  ;;  %v11129_v47 = vpop.f32.mrb[119].mxu0  ;;  %v10945_v24 = vpop.f32.mrb[119].mxu1  ;;  %v16705_v39 = vld [vmem:[#allocation16_spill] sm:$0xff] }
 0x3f8   : > { %v3471_v44 = vadd.f32 %v3284_v48, %v16703_v51  ;;  %v14615_v26 = vadd.f32 %v4126_v55, %v3469_v18 }
 0x3f9   : > { %v3286_v45 = vsel %vm2326_vm2, %v3283_v38, %v3285_v2  ;;  %v4128_v20 = vsel %vm4017_vm3, %v4125_v3, %v4127_v56  ;;  %11255 = vmatmul.mubr.bf16.gmra.mrb[224].mxu1 %v12497_v29  ;;  %11439 = vmatmul.mubr.bf16.gmra.mrb[224].mxu0 %v12496_v5 }
 0x3fa   : > { %16704 = vst [vmem:[#allocation15_spill] sm:$0xff] %v14615_v26  ;;  %v3472_v16 = vadd.f32 %v3286_v45, %v16705_v39  ;;  %11258 = vmatprep.mubr.msk.bf16.mxu1 %vm12598_vm0, %v16593_v27  ;;  %11442 = vmatprep.mubr.msk.bf16.mxu0 %vm12598_vm0, %v16593_v27  ;;  %v14627_v18 = vadd.f32 %v4128_v20, %v3470_v6 }
 0x3fc   : > { %16706 = vst [vmem:[#allocation16_spill] sm:$0xff] %v14627_v18  ;;  %v2989_v24 = vpop.f32.mrb[120].mxu1  ;;  %v3826_v38 = vpop.f32.mrb[120].mxu0 }
 0x3fd   : > { %v3287_v10 = vrot.slane %v2989_v24, 2  ;;  %v4129_v3 = vrot.slane %v3826_v38, 3  ;;  %v10948_v1 = vpop.f32.mrb[121].mxu1  ;;  %v11132_v48 = vpop.f32.mrb[121].mxu0  ;;  %v12498_v38 = vld [vmem:[%s16547_s0 + $0x70] sm:$0xff]  }
 0x3fe   : > { %v2992_v55 = vpop.f32.mrb[122].mxu1  ;;  %v3829_v47 = vpop.f32.mrb[122].mxu0 }
 0x3ff   : > { %v3288_v5 = vsel %vm2326_vm2, %v3285_v2, %v3287_v10  ;;  %v4130_v51 = vsel %vm4017_vm3, %v4127_v56, %v4129_v3  ;;  %v3289_v45 = vrot.slane %v2992_v55, 2  ;;  %v4131_v39 = vrot.slane %v3829_v47, 3  ;;  %v11133_v26 = vpop.f32.mrb[123].mxu0  ;;  %v10949_v43 = vpop.f32.mrb[123].mxu1  ;;  %v16709_v2 = vld [vmem:[#allocation18_spill] sm:$0xff] }
 0x400   : > { %v3473_v37 = vadd.f32 %v3288_v5, %v16707_v61  ;;  %v14632_v6 = vadd.f32 %v4130_v51, %v3471_v44 }
 0x401   : > { %v3290_v20 = vsel %vm2326_vm2, %v3287_v10, %v3289_v45  ;;  %v4132_v24 = vsel %vm4017_vm3, %v4129_v3, %v4131_v39  ;;  %11259 = vmatmul.mubr.bf16.gmra.mrb[228].mxu1 %v12498_v38  ;;  %11443 = vmatmul.mubr.bf16.gmra.mrb[228].mxu0 %v12497_v29 }
 0x402   : > { %16708 = vst [vmem:[#allocation17_spill] sm:$0xff] %v14632_v6  ;;  %v3474_v56 = vadd.f32 %v3290_v20, %v16709_v2  ;;  %11262 = vmatprep.mubr.msk.bf16.mxu1 %vm12598_vm0, %v16593_v27  ;;  %11446 = vmatprep.mubr.msk.bf16.mxu0 %vm12598_vm0, %v16593_v27  ;;  %v14644_v61 = vadd.f32 %v4132_v24, %v3472_v16  ;;  %v16711_v6 = vld [vmem:[#allocation19_spill] sm:$0xff] }
 0x404   : > { %16710 = vst [vmem:[#allocation18_spill] sm:$0xff] %v14644_v61  ;;  %v2997_v43 = vpop.f32.mrb[124].mxu1  ;;  %v3834_v44 = vpop.f32.mrb[124].mxu0 }
 0x405   : > { %v3291_v26 = vrot.slane %v2997_v43, 2  ;;  %v4133_v10 = vrot.slane %v3834_v44, 3  ;;  %v10952_v3 = vpop.f32.mrb[125].mxu1  ;;  %v11136_v1 = vpop.f32.mrb[125].mxu0  ;;  %v12499_v44 = vld [vmem:[%s16547_s0 + $0x78] sm:$0xff]  }
 0x406   : > { %v3000_v48 = vpop.f32.mrb[126].mxu1  ;;  %v3837_v55 = vpop.f32.mrb[126].mxu0 }
 0x407   : > { %v3292_v29 = vsel %vm2326_vm2, %v3289_v45, %v3291_v26  ;;  %v4134_v47 = vsel %vm4017_vm3, %v4131_v39, %v4133_v10  ;;  %v3293_v5 = vrot.slane %v3000_v48, 2  ;;  %v4135_v51 = vrot.slane %v3837_v55, 3  ;;  %v11137_v20 = vpop.f32.mrb[127].mxu0  ;;  %v10953_v2 = vpop.f32.mrb[127].mxu1  ;;  %v16713_v45 = vld [vmem:[#allocation20_spill] sm:$0xff] }
 0x408   : > { %v3475_v18 = vadd.f32 %v3292_v29, %v16711_v6  ;;  %v14649_v16 = vadd.f32 %v4134_v47, %v3473_v37 }
 0x409   : > { %v3294_v24 = vsel %vm2326_vm2, %v3291_v26, %v3293_v5  ;;  %v4136_v43 = vsel %vm4017_vm3, %v4133_v10, %v4135_v51  ;;  %11263 = vmatmul.mubr.bf16.gmra.mrb[232].mxu1 %v12499_v44  ;;  %11447 = vmatmul.mubr.bf16.gmra.mrb[232].mxu0 %v12498_v38 }
 0x40a   : > { %16712 = vst [vmem:[#allocation19_spill] sm:$0xff] %v14649_v16  ;;  %v3476_v39 = vadd.f32 %v3294_v24, %v16713_v45  ;;  %11266 = vmatprep.mubr.msk.bf16.mxu1 %vm12598_vm0, %v16593_v27  ;;  %11450 = vmatprep.mubr.msk.bf16.mxu0 %vm12598_vm0, %v16593_v27  ;;  %v14661_v37 = vadd.f32 %v4136_v43, %v3474_v56  ;;  %v16715_v16 = vld [vmem:[#allocation21_spill] sm:$0xff] }
 0x40c   : > { %16714 = vst [vmem:[#allocation20_spill] sm:$0xff] %v14661_v37  ;;  %v3005_v6 = vpop.f32.mrb[128].mxu1  ;;  %v3842_v26 = vpop.f32.mrb[128].mxu0 }
 0x40d   : > { %v3295_v3 = vrot.slane %v3005_v6, 2  ;;  %v4137_v10 = vrot.slane %v3842_v26, 3  ;;  %v10956_v1 = vpop.f32.mrb[129].mxu1  ;;  %v11140_v48 = vpop.f32.mrb[129].mxu0  ;;  %v12500_v26 = vld [vmem:[%s16547_s0 + $0x80] sm:$0xff]  }
 0x40e   : > { %v3008_v55 = vpop.f32.mrb[130].mxu1  ;;  %v3845_v29 = vpop.f32.mrb[130].mxu0 }
 0x40f   : > { %v3296_v38 = vsel %vm2326_vm2, %v3293_v5, %v3295_v3  ;;  %v4138_v47 = vsel %vm4017_vm3, %v4135_v51, %v4137_v10  ;;  %v3297_v20 = vrot.slane %v3008_v55, 2  ;;  %v4139_v2 = vrot.slane %v3845_v29, 3  ;;  %v11141_v24 = vpop.f32.mrb[131].mxu0  ;;  %v10957_v45 = vpop.f32.mrb[131].mxu1  ;;  %v16717_v5 = vld [vmem:[#allocation22_spill] sm:$0xff] }
 0x410   : > { %v3477_v61 = vadd.f32 %v3296_v38, %v16715_v16  ;;  %v14666_v56 = vadd.f32 %v4138_v47, %v3475_v18 }
 0x411   : > { %v3298_v43 = vsel %vm2326_vm2, %v3295_v3, %v3297_v20  ;;  %v4140_v6 = vsel %vm4017_vm3, %v4137_v10, %v4139_v2  ;;  %11267 = vmatmul.mubr.bf16.gmra.mrb[236].mxu1 %v12500_v26  ;;  %11451 = vmatmul.mubr.bf16.gmra.mrb[236].mxu0 %v12499_v44 }
 0x412   : > { %16716 = vst [vmem:[#allocation21_spill] sm:$0xff] %v14666_v56  ;;  %v3478_v51 = vadd.f32 %v3298_v43, %v16717_v5  ;;  %11270 = vmatprep.mubr.msk.bf16.mxu1 %vm12598_vm0, %v16593_v27  ;;  %11454 = vmatprep.mubr.msk.bf16.mxu0 %vm12598_vm0, %v16593_v27  ;;  %v14678_v18 = vadd.f32 %v4140_v6, %v3476_v39  ;;  %v16719_v56 = vld [vmem:[#allocation23_spill] sm:$0xff] }
 0x414   : > { %16718 = vst [vmem:[#allocation22_spill] sm:$0xff] %v14678_v18  ;;  %v3013_v16 = vpop.f32.mrb[132].mxu1  ;;  %v3850_v3 = vpop.f32.mrb[132].mxu0  ;;  %v12094_v18 = vld [vmem:[%s12662_s25 + $0x230] sm:$0xff]  }
 0x415   : > { %v3299_v1 = vrot.slane %v3013_v16, 2  ;;  %v4141_v10 = vrot.slane %v3850_v3, 3  ;;  %v10960_v48 = vpop.f32.mrb[133].mxu1  ;;  %v11144_v55 = vpop.f32.mrb[133].mxu0  ;;  %11763 = vmatpush3.bf16.msra.mxu0 %v12094_v18 }
 0x416   : > { %v3016_v29 = vpop.f32.mrb[134].mxu1  ;;  %v3853_v38 = vpop.f32.mrb[134].mxu0  ;;  %v12501_v48 = vld [vmem:[%s16547_s0 + $0x88] sm:$0xff]   ;;  %11764 = vmatprep.subr.bf16.mxu0 %v16593_v27 }
 0x417   : > { %v3300_v44 = vsel %vm2326_vm2, %v3297_v20, %v3299_v1  ;;  %v4142_v47 = vsel %vm4017_vm3, %v4139_v2, %v4141_v10  ;;  %v3301_v24 = vrot.slane %v3016_v29, 2  ;;  %v4143_v45 = vrot.slane %v3853_v38, 3  ;;  %v11145_v43 = vpop.f32.mrb[135].mxu0  ;;  %v10961_v5 = vpop.f32.mrb[135].mxu1  ;;  %v16721_v20 = vld [vmem:[#allocation24_spill] sm:$0xff] }
 0x418   : > { %v3479_v39 = vadd.f32 %v3300_v44, %v16719_v56  ;;  %v14683_v6 = vadd.f32 %v4142_v47, %v3477_v61  ;;  %v12093_v61 = vld [vmem:[%s12662_s25 + $0x1f0] sm:$0xff]  }
 0x419   : > { %v3302_v16 = vsel %vm2326_vm2, %v3299_v1, %v3301_v24  ;;  %v4144_v3 = vsel %vm4017_vm3, %v4141_v10, %v4143_v45  ;;  %11271 = vmatmul.mubr.bf16.gmra.mrb[240].mxu1 %v12501_v48  ;;  %11455 = vmatmul.mubr.bf16.gmra.mrb[240].mxu0 %v12500_v26 }
 0x41a   : > { %16720 = vst [vmem:[#allocation23_spill] sm:$0xff] %v14683_v6  ;;  %v3480_v2 = vadd.f32 %v3302_v16, %v16721_v20  ;;  %11274 = vmatprep.mubr.msk.bf16.mxu1 %vm12598_vm0, %v16593_v27  ;;  %11458 = vmatprep.mubr.msk.bf16.mxu0 %vm12598_vm0, %v16593_v27  ;;  %v14696_v56 = vadd.f32 %v4144_v3, %v3478_v51 }
 0x41b   : > { %11575 = vmatpush3.bf16.msra.mxu1 %v12093_v61 }
 0x41c   : > { %16722 = vst [vmem:[#allocation24_spill] sm:$0xff] %v14696_v56  ;;  %v3021_v1 = vpop.f32.mrb[136].mxu1  ;;  %v3858_v55 = vpop.f32.mrb[136].mxu0  ;;  %11576 = vmatprep.subr.bf16.mxu1 %v16593_v27  ;;  %v16723_v56 = vld [vmem:[#allocation25_spill] sm:$0xff] }
 0x41d   : > { %v3303_v10 = vrot.slane %v3021_v1, 2  ;;  %v4145_v29 = vrot.slane %v3858_v55, 3  ;;  %v10964_v38 = vpop.f32.mrb[137].mxu1  ;;  %v11148_v44 = vpop.f32.mrb[137].mxu0 }
 0x41e   : > { %v3024_v26 = vpop.f32.mrb[138].mxu1  ;;  %v3861_v47 = vpop.f32.mrb[138].mxu0  ;;  %v12502_v38 = vld [vmem:[%s16547_s0 + $0x90] sm:$0xff]  }
 0x41f   : > { %v3304_v43 = vsel %vm2326_vm2, %v3301_v24, %v3303_v10  ;;  %v4146_v5 = vsel %vm4017_vm3, %v4143_v45, %v4145_v29  ;;  %v3305_v16 = vrot.slane %v3024_v26, 2  ;;  %v4147_v20 = vrot.slane %v3861_v47, 3  ;;  %v11149_v51 = vpop.f32.mrb[139].mxu0  ;;  %v10965_v3 = vpop.f32.mrb[139].mxu1  ;;  %v16725_v24 = vld [vmem:[#allocation26_spill] sm:$0xff] }
 0x420   : > { %v3481_v6 = vadd.f32 %v3304_v43, %v16723_v56  ;;  %v14703_v61 = vadd.f32 %v4146_v5, %v3479_v39 }
 0x421   : > { %v3306_v1 = vsel %vm2326_vm2, %v3303_v10, %v3305_v16  ;;  %v4148_v55 = vsel %vm4017_vm3, %v4145_v29, %v4147_v20  ;;  %11275 = vmatmul.mubr.bf16.gmra.mrb[244].mxu1 %v12502_v38  ;;  %11459 = vmatmul.mubr.bf16.gmra.mrb[244].mxu0 %v12501_v48 }
 0x422   : > { %16724 = vst [vmem:[#allocation25_spill] sm:$0xff] %v14703_v61  ;;  %v3482_v45 = vadd.f32 %v3306_v1, %v16725_v24  ;;  %11278 = vmatprep.mubr.msk.bf16.mxu1 %vm12598_vm0, %v16593_v27  ;;  %11462 = vmatprep.mubr.msk.bf16.mxu0 %vm12598_vm0, %v16593_v27  ;;  %v14715_v39 = vadd.f32 %v4148_v55, %v3480_v2  ;;  %v16727_v55 = vld [vmem:[#allocation27_spill] sm:$0xff] }
 0x424   : > { %16726 = vst [vmem:[#allocation26_spill] sm:$0xff] %v14715_v39  ;;  %v3029_v56 = vpop.f32.mrb[140].mxu1  ;;  %v3866_v10 = vpop.f32.mrb[140].mxu0 }
 0x425   : > { %v3307_v29 = vrot.slane %v3029_v56, 2  ;;  %v4149_v44 = vrot.slane %v3866_v10, 3  ;;  %v10968_v26 = vpop.f32.mrb[141].mxu1  ;;  %v11152_v47 = vpop.f32.mrb[141].mxu0  ;;  %v12503_v10 = vld [vmem:[%s16547_s0 + $0x98] sm:$0xff]  }
 0x426   : > { %v3032_v48 = vpop.f32.mrb[142].mxu1  ;;  %v3869_v43 = vpop.f32.mrb[142].mxu0 }
 0x427   : > { %v3308_v5 = vsel %vm2326_vm2, %v3305_v16, %v3307_v29  ;;  %v4150_v51 = vsel %vm4017_vm3, %v4147_v20, %v4149_v44  ;;  %v3309_v3 = vrot.slane %v3032_v48, 2  ;;  %v4151_v1 = vrot.slane %v3869_v43, 3  ;;  %v11153_v24 = vpop.f32.mrb[143].mxu0  ;;  %v10969_v2 = vpop.f32.mrb[143].mxu1  ;;  %v16729_v16 = vld [vmem:[#allocation28_spill] sm:$0xff] }
 0x428   : > { %v3483_v18 = vadd.f32 %v3308_v5, %v16727_v55  ;;  %v14721_v39 = vadd.f32 %v4150_v51, %v3481_v6 }
 0x429   : > { %v3310_v61 = vsel %vm2326_vm2, %v3307_v29, %v3309_v3  ;;  %v4152_v56 = vsel %vm4017_vm3, %v4149_v44, %v4151_v1  ;;  %11279 = vmatmul.mubr.bf16.gmra.mrb[248].mxu1 %v12503_v10  ;;  %11463 = vmatmul.mubr.bf16.gmra.mrb[248].mxu0 %v12502_v38 }
 0x42a   : > { %16728 = vst [vmem:[#allocation27_spill] sm:$0xff] %v14721_v39  ;;  %v3484_v20 = vadd.f32 %v3310_v61, %v16729_v16  ;;  %11282 = vmatprep.mubr.msk.bf16.mxu1 %vm12598_vm0, %v16593_v27  ;;  %11466 = vmatprep.mubr.msk.bf16.mxu0 %vm12598_vm0, %v16593_v27  ;;  %v14733_v6 = vadd.f32 %v4152_v56, %v3482_v45  ;;  %v16731_v39 = vld [vmem:[#allocation29_spill] sm:$0xff] }
 0x42c   : > { %16730 = vst [vmem:[#allocation28_spill] sm:$0xff] %v14733_v6  ;;  %v3037_v26 = vpop.f32.mrb[144].mxu1  ;;  %v3874_v29 = vpop.f32.mrb[144].mxu0 }
 0x42d   : > { %v3311_v47 = vrot.slane %v3037_v26, 2  ;;  %v4153_v44 = vrot.slane %v3874_v29, 3  ;;  %v10972_v48 = vpop.f32.mrb[145].mxu1  ;;  %v11156_v43 = vpop.f32.mrb[145].mxu0  ;;  %v12504_v29 = vld [vmem:[%s16547_s0 + $0xa0] sm:$0xff]  }
 0x42e   : > { %v3040_v5 = vpop.f32.mrb[146].mxu1  ;;  %v3877_v51 = vpop.f32.mrb[146].mxu0 }
 0x42f   : > { %v3312_v38 = vsel %vm2326_vm2, %v3309_v3, %v3311_v47  ;;  %v4154_v61 = vsel %vm4017_vm3, %v4151_v1, %v4153_v44  ;;  %v3313_v24 = vrot.slane %v3040_v5, 2  ;;  %v4155_v2 = vrot.slane %v3877_v51, 3  ;;  %v11157_v55 = vpop.f32.mrb[147].mxu0  ;;  %v10973_v16 = vpop.f32.mrb[147].mxu1  ;;  %v16733_v3 = vld [vmem:[#allocation30_spill] sm:$0xff] }
 0x430   : > { %v3485_v37 = vadd.f32 %v3312_v38, %v16731_v39  ;;  %v14738_v45 = vadd.f32 %v4154_v61, %v3483_v18 }
 0x431   : > { %v3314_v56 = vsel %vm2326_vm2, %v3311_v47, %v3313_v24  ;;  %v4156_v26 = vsel %vm4017_vm3, %v4153_v44, %v4155_v2  ;;  %11283 = vmatmul.mubr.bf16.gmra.mrb[252].mxu1 %v12504_v29  ;;  %11467 = vmatmul.mubr.bf16.gmra.mrb[252].mxu0 %v12503_v10 }
 0x432   : > { %16732 = vst [vmem:[#allocation29_spill] sm:$0xff] %v14738_v45  ;;  %v3486_v1 = vadd.f32 %v3314_v56, %v16733_v3  ;;  %11286 = vmatprep.mubr.msk.bf16.mxu1 %vm12598_vm0, %v16593_v27  ;;  %11470 = vmatprep.mubr.msk.bf16.mxu0 %vm12598_vm0, %v16593_v27  ;;  %v14750_v39 = vadd.f32 %v4156_v26, %v3484_v20  ;;  %v16735_v45 = vld [vmem:[#allocation31_spill] sm:$0xff] }
 0x434   : > { %16734 = vst [vmem:[#allocation30_spill] sm:$0xff] %v14750_v39  ;;  %v3045_v18 = vpop.f32.mrb[148].mxu1  ;;  %v3882_v47 = vpop.f32.mrb[148].mxu0 }
 0x435   : > { %v3315_v48 = vrot.slane %v3045_v18, 2  ;;  %v4157_v44 = vrot.slane %v3882_v47, 3  ;;  %v10976_v43 = vpop.f32.mrb[149].mxu1  ;;  %v11160_v5 = vpop.f32.mrb[149].mxu0  ;;  %v12505_v47 = vld [vmem:[%s16547_s0 + $0xa8] sm:$0xff]  }
 0x436   : > { %v3048_v51 = vpop.f32.mrb[150].mxu1  ;;  %v3885_v38 = vpop.f32.mrb[150].mxu0 }
 0x437   : > { %v3316_v10 = vsel %vm2326_vm2, %v3313_v24, %v3315_v48  ;;  %v4158_v61 = vsel %vm4017_vm3, %v4155_v2, %v4157_v44  ;;  %v3317_v55 = vrot.slane %v3048_v51, 2  ;;  %v4159_v16 = vrot.slane %v3885_v38, 3  ;;  %v11161_v56 = vpop.f32.mrb[151].mxu0  ;;  %v10977_v3 = vpop.f32.mrb[151].mxu1  ;;  %v16737_v24 = vld [vmem:[#allocation32_spill] sm:$0xff] }
 0x438   : > { %v3487_v6 = vadd.f32 %v3316_v10, %v16735_v45  ;;  %v14755_v20 = vadd.f32 %v4158_v61, %v3485_v37 }
 0x439   : > { %v3318_v26 = vsel %vm2326_vm2, %v3315_v48, %v3317_v55  ;;  %v4160_v18 = vsel %vm4017_vm3, %v4157_v44, %v4159_v16  ;;  %11287 = vmatmul.mubr.bf16.gmra.mrb[0].mxu1 %v12505_v47  ;;  %11471 = vmatmul.mubr.bf16.gmra.mrb[0].mxu0 %v12504_v29 }
 0x43a   : > { %16736 = vst [vmem:[#allocation31_spill] sm:$0xff] %v14755_v20  ;;  %v3488_v2 = vadd.f32 %v3318_v26, %v16737_v24  ;;  %11290 = vmatprep.mubr.msk.bf16.mxu1 %vm12598_vm0, %v16593_v27  ;;  %11474 = vmatprep.mubr.msk.bf16.mxu0 %vm12598_vm0, %v16593_v27  ;;  %v14767_v37 = vadd.f32 %v4160_v18, %v3486_v1  ;;  %v16738_v20 = vld [vmem:[#allocation33_spill] sm:$0xff] }
 0x43c   : > { %v3053_v45 = vpop.f32.mrb[152].mxu1  ;;  %v3890_v48 = vpop.f32.mrb[152].mxu0 }
 0x43d   : > { %v3319_v43 = vrot.slane %v3053_v45, 2  ;;  %v4161_v44 = vrot.slane %v3890_v48, 3  ;;  %v10980_v5 = vpop.f32.mrb[153].mxu1  ;;  %v11164_v51 = vpop.f32.mrb[153].mxu0  ;;  %v12506_v48 = vld [vmem:[%s16547_s0 + $0xb0] sm:$0xff]  }
 0x43e   : > { %v3056_v38 = vpop.f32.mrb[154].mxu1  ;;  %v3893_v10 = vpop.f32.mrb[154].mxu0 }
 0x43f   : > { %v3320_v29 = vsel %vm2326_vm2, %v3317_v55, %v3319_v43  ;;  %v4162_v61 = vsel %vm4017_vm3, %v4159_v16, %v4161_v44  ;;  %v3321_v56 = vrot.slane %v3056_v38, 2  ;;  %v4163_v3 = vrot.slane %v3893_v10, 3  ;;  %v11165_v26 = vpop.f32.mrb[155].mxu0  ;;  %v10981_v24 = vpop.f32.mrb[155].mxu1  ;;  %v16740_v55 = vld [vmem:[#allocation34_spill] sm:$0xff] }
 0x440   : > { %v3489_v39 = vadd.f32 %v3320_v29, %v16738_v20  ;;  %v14772_v1 = vadd.f32 %v4162_v61, %v3487_v6 }
 0x441   : > { %v3322_v18 = vsel %vm2326_vm2, %v3319_v43, %v3321_v56  ;;  %v4164_v45 = vsel %vm4017_vm3, %v4161_v44, %v4163_v3  ;;  %11291 = vmatmul.mubr.bf16.gmra.mrb[4].mxu1 %v12506_v48  ;;  %11475 = vmatmul.mubr.bf16.gmra.mrb[4].mxu0 %v12505_v47 }
 0x442   : > { %16739 = vst [vmem:[#allocation32_spill] sm:$0xff] %v14772_v1  ;;  %v3490_v16 = vadd.f32 %v3322_v18, %v16740_v55  ;;  %11294 = vmatprep.mubr.msk.bf16.mxu1 %vm12598_vm0, %v16593_v27  ;;  %11478 = vmatprep.mubr.msk.bf16.mxu0 %vm12598_vm0, %v16593_v27  ;;  %v14784_v6 = vadd.f32 %v4164_v45, %v3488_v2  ;;  %v12095_v45 = vld [vmem:[%s12662_s25 + $0x1f8] sm:$0xff]  }
 0x443   : > { %11577 = vmatpush3.bf16.msra.mxu1 %v12095_v45 }
 0x444   : > { %16741 = vst [vmem:[#allocation33_spill] sm:$0xff] %v14784_v6  ;;  %v3061_v20 = vpop.f32.mrb[156].mxu1  ;;  %v3898_v43 = vpop.f32.mrb[156].mxu0 }
 0x445   : > { %v3323_v44 = vrot.slane %v3061_v20, 2  ;;  %v4165_v5 = vrot.slane %v3898_v43, 3  ;;  %v10984_v51 = vpop.f32.mrb[157].mxu1  ;;  %v11168_v38 = vpop.f32.mrb[157].mxu0 }
 0x446   : > { %v3064_v10 = vpop.f32.mrb[158].mxu1  ;;  %v3901_v29 = vpop.f32.mrb[158].mxu0 }
 0x447   : > { %v3324_v47 = vsel %vm2326_vm2, %v3321_v56, %v3323_v44  ;;  %v4166_v61 = vsel %vm4017_vm3, %v4163_v3, %v4165_v5  ;;  %v3325_v26 = vrot.slane %v3064_v10, 2  ;;  %v4167_v24 = vrot.slane %v3901_v29, 3  ;;  %v11169_v18 = vpop.f32.mrb[159].mxu0  ;;  %v10985_v55 = vpop.f32.mrb[159].mxu1  ;;  %v12507_v56 = vld [vmem:[%s16547_s0 + $0xb8] sm:$0xff]   ;;  %v16743_v3 = vld [vmem:[#allocation35_spill] sm:$0xff] }
 0x448   : > { %v3491_v2 = vadd.f32 %v3324_v47, %v14061_v49  ;;  %v14790_v6 = vadd.f32 %v4166_v61, %v3489_v39  ;;  %v12096_v49 = vld [vmem:[%s12662_s25 + $0x238] sm:$0xff]   ;;  %s15585_s25 = scalar_lea.vmem %s16549_s2, %s12652_s21 }
 0x449   : > { %v3326_v20 = vsel %vm2326_vm2, %v3323_v44, %v3325_v26  ;;  %v4168_v43 = vsel %vm4017_vm3, %v4165_v5, %v4167_v24  ;;  %11295 = vmatmul.mubr.bf16.gmra.mrb[8].mxu1 %v12507_v56  ;;  %11479 = vmatmul.mubr.bf16.gmra.mrb[8].mxu0 %v12506_v48 }
 0x44a   : > { %16742 = vst [vmem:[#allocation34_spill] sm:$0xff] %v14790_v6  ;;  %v3492_v51 = vadd.f32 %v3326_v20, %v16743_v3  ;;  %11298 = vmatprep.mubr.msk.bf16.mxu1 %vm12598_vm0, %v16593_v27  ;;  %11482 = vmatprep.mubr.msk.bf16.mxu0 %vm12598_vm0, %v16593_v27  ;;  %v14803_v39 = vadd.f32 %v4168_v43, %v3490_v16 }
 0x44b   : > { %11765 = vmatpush3.bf16.msra.mxu0 %v12096_v49 }
 0x44c   : > { %v3069_v44 = vpop.f32.mrb[160].mxu1  ;;  %v3906_v5 = vpop.f32.mrb[160].mxu0 }
 0x44d   : > { %v3327_v38 = vrot.slane %v3069_v44, 2  ;;  %v4169_v10 = vrot.slane %v3906_v5, 3  ;;  %v10988_v29 = vpop.f32.mrb[161].mxu1  ;;  %v11172_v47 = vpop.f32.mrb[161].mxu0  ;;  %v12508_v44 = vld [vmem:[%s16547_s0 + $0xc0] sm:$0xff]  }
 0x44e   : > { %v3072_v48 = vpop.f32.mrb[162].mxu1  ;;  %v3909_v61 = vpop.f32.mrb[162].mxu0 }
 0x44f   : > { %v3328_v18 = vsel %vm2326_vm2, %v3325_v26, %v3327_v38  ;;  %v4170_v55 = vsel %vm4017_vm3, %v4167_v24, %v4169_v10  ;;  %v3329_v20 = vrot.slane %v3072_v48, 2  ;;  %v4171_v3 = vrot.slane %v3909_v61, 3  ;;  %v11173_v6 = vpop.f32.mrb[163].mxu0  ;;  %v10989_v1 = vpop.f32.mrb[163].mxu1 }
 0x450   : > { %v3493_v16 = vadd.f32 %v3328_v18, %v14082_v28  ;;  %v14808_v45 = vadd.f32 %v4170_v55, %v3491_v2  ;;  %v16744_v55 = vld [vmem:[#allocation36_spill] sm:$0xff] }
 0x451   : > { %v3330_v43 = vsel %vm2326_vm2, %v3327_v38, %v3329_v20  ;;  %v4172_v49 = vsel %vm4017_vm3, %v4169_v10, %v4171_v3  ;;  %11299 = vmatmul.mubr.bf16.gmra.mrb[12].mxu1 %v12508_v44  ;;  %11483 = vmatmul.mubr.bf16.gmra.mrb[12].mxu0 %v12507_v56 }
 0x452   : > { %v3494_v26 = vadd.f32 %v3330_v43, %v14090_v53  ;;  %11302 = vmatprep.mubr.msk.bf16.mxu1 %vm12598_vm0, %v16593_v27  ;;  %11486 = vmatprep.mubr.msk.bf16.mxu0 %vm12598_vm0, %v16593_v27  ;;  %v14820_v28 = vadd.f32 %v4172_v49, %v3492_v51 }
 0x454   : > { %v3077_v1 = vpop.f32.mrb[164].mxu1  ;;  %v3914_v6 = vpop.f32.mrb[164].mxu0 }
 0x455   : > { %v3331_v24 = vrot.slane %v3077_v1, 2  ;;  %v4173_v2 = vrot.slane %v3914_v6, 3  ;;  %v10992_v5 = vpop.f32.mrb[165].mxu1  ;;  %v11176_v38 = vpop.f32.mrb[165].mxu0  ;;  %v12509_v6 = vld [vmem:[%s16547_s0 + $0xc8] sm:$0xff]  }
 0x456   : > { %v3080_v10 = vpop.f32.mrb[166].mxu1  ;;  %v3917_v29 = vpop.f32.mrb[166].mxu0 }
 0x457   : > { %v3332_v56 = vsel %vm2326_vm2, %v3329_v20, %v3331_v24  ;;  %v4174_v53 = vsel %vm4017_vm3, %v4171_v3, %v4173_v2  ;;  %v3333_v47 = vrot.slane %v3080_v10, 2  ;;  %v4175_v48 = vrot.slane %v3917_v29, 3  ;;  %v11177_v61 = vpop.f32.mrb[167].mxu0  ;;  %v10993_v18 = vpop.f32.mrb[167].mxu1  ;;  %v16745_v20 = vld [vmem:[#allocation37_spill] sm:$0xff] }
 0x458   : > { %v3495_v43 = vadd.f32 %v3332_v56, %v16744_v55  ;;  %v14825_v51 = vadd.f32 %v4174_v53, %v3493_v16 }
 0x459   : > { %v3334_v49 = vsel %vm2326_vm2, %v3331_v24, %v3333_v47  ;;  %v4176_v1 = vsel %vm4017_vm3, %v4173_v2, %v4175_v48  ;;  %11303 = vmatmul.mubr.bf16.gmra.mrb[16].mxu1 %v12509_v6  ;;  %11487 = vmatmul.mubr.bf16.gmra.mrb[16].mxu0 %v12508_v44 }
 0x45a   : > { %v3496_v3 = vadd.f32 %v3334_v49, %v16745_v20  ;;  %11306 = vmatprep.mubr.msk.bf16.mxu1 %vm12598_vm0, %v16593_v27  ;;  %11490 = vmatprep.mubr.msk.bf16.mxu0 %vm12598_vm0, %v16593_v27  ;;  %v14837_v16 = vadd.f32 %v4176_v1, %v3494_v26  ;;  %v12510_v26 = vld [vmem:[%s16547_s0 + $0xd0] sm:$0xff]  }
 0x45c   : > { %v3922_v5 = vpop.f32.mrb[168].mxu0  ;;  %v3085_v24 = vpop.f32.mrb[168].mxu1 }
 0x45d   : > { %v4177_v38 = vrot.slane %v3922_v5, 3  ;;  %v11180_v2 = vpop.f32.mrb[169].mxu0  ;;  %v10996_v10 = vpop.f32.mrb[169].mxu1 }
 0x45e   : > { %v3925_v29 = vpop.f32.mrb[170].mxu0  ;;  %v3087_v56 = vpop.f32.mrb[170].mxu1 }
 0x45f   : > { %v4178_v53 = vsel %vm4017_vm3, %v4175_v48, %v4177_v38  ;;  %v4179_v44 = vrot.slane %v3925_v29, 3  ;;  %v11181_v47 = vpop.f32.mrb[171].mxu0  ;;  %v10997_v61 = vpop.f32.mrb[171].mxu1 }
 0x460   : > { %v14840_v18 = vadd.f32 %v4178_v53, %v3495_v43 }
 0x461   : > { %v4180_v55 = vsel %vm4017_vm3, %v4177_v38, %v4179_v44  ;;  %11307 = vmatmul.mubr.bf16.gmra.mrb[20].mxu1 %v12510_v26  ;;  %11491 = vmatmul.mubr.bf16.gmra.mrb[20].mxu0 %v12509_v6  ;;  %v12511_v6 = vld [vmem:[%s16547_s0 + $0xd8] sm:$0xff]  }
 0x462   : > { %16746 = vst [vmem:[#allocation35_spill] sm:$0xff] %v14840_v18  ;;  %11310 = vmatprep.mubr.msk.bf16.mxu1 %vm12598_vm0, %v16593_v27  ;;  %11494 = vmatprep.mubr.msk.bf16.mxu0 %vm12598_vm0, %v16593_v27  ;;  %v14850_v48 = vadd.f32 %v4180_v55, %v3496_v3 }
 0x464   : > { %16747 = vst [vmem:[#allocation36_spill] sm:$0xff] %v14850_v48  ;;  %v3930_v49 = vpop.f32.mrb[172].mxu0  ;;  %v4442_v1 = vpop.f32.mrb[172].mxu1 }
 0x465   : > { %v11184_v43 = vpop.f32.mrb[173].mxu0  ;;  %v11204_v20 = vpop.f32.mrb[173].mxu1 }
 0x466   : > { %v3932_v5 = vpop.f32.mrb[174].mxu0  ;;  %v4444_v24 = vpop.f32.mrb[174].mxu1  ;;  %v16748_v43 = vld [vmem:[#allocation38_spill] sm:$0xff] }
 0x467   : > { %v11185_v38 = vpop.f32.mrb[175].mxu0  ;;  %v11205_v2 = vpop.f32.mrb[175].mxu1 }
 0x469   : > { %11311 = vmatmul.mubr.bf16.gmra.mrb[24].mxu1 %v12511_v6  ;;  %11495 = vmatmul.mubr.bf16.gmra.mrb[24].mxu0 %v12510_v26  ;;  %v12512_v26 = vld [vmem:[%s16547_s0 + $0xe0] sm:$0xff]  }
 0x46a   : > { %11314 = vmatprep.mubr.msk.bf16.mxu1 %vm12598_vm0, %v16593_v27  ;;  %11498 = vmatprep.mubr.msk.bf16.mxu0 %vm12598_vm0, %v16593_v27 }
 0x46c   : > { %v4448_v3 = vpop.f32.mrb[176].mxu1  ;;  %v5288_v10 = vpop.f32.mrb[176].mxu0 }
 0x46d   : > { %v4864_v29 = vrot.slane %v4448_v3, 4  ;;  %v11208_v56 = vpop.f32.mrb[177].mxu1  ;;  %v11392_v53 = vpop.f32.mrb[177].mxu0 }
 0x46e   : > { %v4451_v44 = vpop.f32.mrb[178].mxu1  ;;  %v5290_v47 = vpop.f32.mrb[178].mxu0 }
 0x46f   : > { %v4865_v61 = vrot.slane %v4451_v44, 4  ;;  %v11393_v55 = vpop.f32.mrb[179].mxu0  ;;  %v11209_v49 = vpop.f32.mrb[179].mxu1 }
 0x470   : > { %v12513_v49 = vld [vmem:[%s16547_s0 + $0xe8] sm:$0xff]  }
 0x471   : > { %v4866_v1 = vsel %vm4863_vm4, %v4864_v29, %v4865_v61  ;;  %11315 = vmatmul.mubr.bf16.gmra.mrb[28].mxu1 %v12512_v26  ;;  %11499 = vmatmul.mubr.bf16.gmra.mrb[28].mxu0 %v12511_v6 }
 0x472   : > { %v5108_v20 = vadd.f32 %v4866_v1, %v16748_v43  ;;  %11318 = vmatprep.mubr.msk.bf16.mxu1 %vm12598_vm0, %v16593_v27  ;;  %11502 = vmatprep.mubr.msk.bf16.mxu0 %vm12598_vm0, %v16593_v27 }
 0x474   : > { %v4456_v5 = vpop.f32.mrb[180].mxu1  ;;  %v5294_v24 = vpop.f32.mrb[180].mxu0 }
 0x475   : > { %v4867_v38 = vrot.slane %v4456_v5, 4  ;;  %v11212_v2 = vpop.f32.mrb[181].mxu1  ;;  %v11396_v3 = vpop.f32.mrb[181].mxu0 }
 0x476   : > { %v4459_v10 = vpop.f32.mrb[182].mxu1  ;;  %v5296_v29 = vpop.f32.mrb[182].mxu0 }
 0x477   : > { %v4868_v56 = vsel %vm4863_vm4, %v4865_v61, %v4867_v38  ;;  %v4869_v53 = vrot.slane %v4459_v10, 4  ;;  %v11397_v44 = vpop.f32.mrb[183].mxu0  ;;  %v11213_v6 = vpop.f32.mrb[183].mxu1 }
 0x478   : > { %v5109_v47 = vadd.f32 %v4868_v56, %v14149_v9 }
 0x479   : > { %v4870_v55 = vsel %vm4863_vm4, %v4867_v38, %v4869_v53  ;;  %11319 = vmatmul.mubr.bf16.gmra.mrb[32].mxu1 %v12513_v49  ;;  %11503 = vmatmul.mubr.bf16.gmra.mrb[32].mxu0 %v12512_v26 }
 0x47a   : > { %v5110_v1 = vadd.f32 %v4870_v55, %v14157_v57  ;;  %11322 = vmatprep.mubr.msk.bf16.mxu1 %vm12598_vm0, %v16593_v27  ;;  %11506 = vmatprep.mubr.msk.bf16.mxu0 %vm12598_vm0, %v16593_v27 }
 0x47c   : > { %v4464_v61 = vpop.f32.mrb[184].mxu1  ;;  %v5300_v43 = vpop.f32.mrb[184].mxu0 }
 0x47d   : > { %v4871_v5 = vrot.slane %v4464_v61, 4  ;;  %v11216_v9 = vpop.f32.mrb[185].mxu1  ;;  %v11400_v24 = vpop.f32.mrb[185].mxu0  ;;  %v5709_v10 = vrot.slane %v5300_v43, 4  ;;  %v12514_v61 = vld [vmem:[%s16547_s0 + $0xf0] sm:$0xff]  }
 0x47e   : > { %v4467_v38 = vpop.f32.mrb[186].mxu1  ;;  %v5303_v2 = vpop.f32.mrb[186].mxu0 }
 0x47f   : > { %v4872_v3 = vsel %vm4863_vm4, %v4869_v53, %v4871_v5  ;;  %v4873_v29 = vrot.slane %v4467_v38, 4  ;;  %v5710_v26 = vrot.slane %v5303_v2, 4  ;;  %v11401_v56 = vpop.f32.mrb[187].mxu0  ;;  %v11217_v57 = vpop.f32.mrb[187].mxu1 }
 0x480   : > { %v5111_v44 = vadd.f32 %v4872_v3, %v14166_v62 }
 0x481   : > { %v4874_v6 = vsel %vm4863_vm4, %v4871_v5, %v4873_v29  ;;  %v5711_v55 = vsel %vm4863_vm4, %v5709_v10, %v5710_v26  ;;  %11323 = vmatmul.mubr.bf16.gmra.mrb[36].mxu1 %v12514_v61  ;;  %11507 = vmatmul.mubr.bf16.gmra.mrb[36].mxu0 %v12513_v49 }
 0x482   : > { %v5112_v9 = vadd.f32 %v4874_v6, %v14174_v34  ;;  %11326 = vmatprep.mubr.msk.bf16.mxu1 %vm12598_vm0, %v16593_v27  ;;  %11510 = vmatprep.mubr.msk.bf16.mxu0 %vm12598_vm0, %v16593_v27  ;;  %v14891_v53 = vadd.f32 %v5711_v55, %v5108_v20 }
 0x484   : > { %v4472_v62 = vpop.f32.mrb[188].mxu1  ;;  %v5308_v43 = vpop.f32.mrb[188].mxu0 }
 0x485   : > { %v4875_v5 = vrot.slane %v4472_v62, 4  ;;  %v5712_v24 = vrot.slane %v5308_v43, 4  ;;  %v11220_v38 = vpop.f32.mrb[189].mxu1  ;;  %v11404_v2 = vpop.f32.mrb[189].mxu0  ;;  %v12515_v43 = vld [vmem:[%s16547_s0 + $0xf8] sm:$0xff]  }
 0x486   : > { %v4475_v3 = vpop.f32.mrb[190].mxu1  ;;  %v5311_v10 = vpop.f32.mrb[190].mxu0 }
 0x487   : > { %v4876_v49 = vsel %vm4863_vm4, %v4873_v29, %v4875_v5  ;;  %v5713_v34 = vsel %vm4863_vm4, %v5710_v26, %v5712_v24  ;;  %v4877_v56 = vrot.slane %v4475_v3, 4  ;;  %v5714_v57 = vrot.slane %v5311_v10, 4  ;;  %v11405_v6 = vpop.f32.mrb[191].mxu0  ;;  %v11221_v48 = vpop.f32.mrb[191].mxu1 }
 0x488   : > { %v5113_v18 = vadd.f32 %v4876_v49, %v14183_v22  ;;  %v14896_v20 = vadd.f32 %v5713_v34, %v5109_v47 }
 0x489   : > { %v4878_v55 = vsel %vm4863_vm4, %v4875_v5, %v4877_v56  ;;  %v5715_v62 = vsel %vm4863_vm4, %v5712_v24, %v5714_v57  ;;  %11327 = vmatmul.mubr.bf16.gmra.mrb[40].mxu1 %v12515_v43  ;;  %11511 = vmatmul.mubr.bf16.gmra.mrb[40].mxu0 %v12514_v61 }
 0x48a   : > { %v5114_v29 = vadd.f32 %v4878_v55, %v14191_v63  ;;  %11330 = vmatprep.mubr.msk.bf16.mxu1 %vm12598_vm0, %v16593_v27  ;;  %11514 = vmatprep.mubr.msk.bf16.mxu0 %vm12598_vm0, %v16593_v27  ;;  %v14908_v22 = vadd.f32 %v5715_v62, %v5110_v1 }
 0x48c   : > { %v4480_v48 = vpop.f32.mrb[192].mxu1  ;;  %v5316_v47 = vpop.f32.mrb[192].mxu0 }
 0x48d   : > { %v4879_v26 = vrot.slane %v4480_v48, 4  ;;  %v5716_v5 = vrot.slane %v5316_v47, 4  ;;  %v11224_v24 = vpop.f32.mrb[193].mxu1  ;;  %v11408_v38 = vpop.f32.mrb[193].mxu0  ;;  %v12516_v47 = vld [vmem:[%s16547_s0 + $0x100] sm:$0xff]  }
 0x48e   : > { %v4483_v2 = vpop.f32.mrb[194].mxu1  ;;  %v5319_v3 = vpop.f32.mrb[194].mxu0 }
 0x48f   : > { %v4880_v61 = vsel %vm4863_vm4, %v4877_v56, %v4879_v26  ;;  %v5717_v63 = vsel %vm4863_vm4, %v5714_v57, %v5716_v5  ;;  %v4881_v10 = vrot.slane %v4483_v2, 4  ;;  %v5718_v49 = vrot.slane %v5319_v3, 4  ;;  %v11409_v34 = vpop.f32.mrb[195].mxu0  ;;  %v11225_v6 = vpop.f32.mrb[195].mxu1 }
 0x490   : > { %v5115_v55 = vadd.f32 %v4880_v61, %v14200_v13  ;;  %v14913_v1 = vadd.f32 %v5717_v63, %v5111_v44 }
 0x491   : > { %v4882_v62 = vsel %vm4863_vm4, %v4879_v26, %v4881_v10  ;;  %v5719_v48 = vsel %vm4863_vm4, %v5716_v5, %v5718_v49  ;;  %11331 = vmatmul.mubr.bf16.gmra.mrb[44].mxu1 %v12516_v47  ;;  %11515 = vmatmul.mubr.bf16.gmra.mrb[44].mxu0 %v12515_v43 }
 0x492   : > { %v5116_v56 = vadd.f32 %v4882_v62, %v14208_v36  ;;  %11334 = vmatprep.mubr.msk.bf16.mxu1 %vm12598_vm0, %v16593_v27  ;;  %11518 = vmatprep.mubr.msk.bf16.mxu0 %vm12598_vm0, %v16593_v27  ;;  %v14925_v13 = vadd.f32 %v5719_v48, %v5112_v9 }
 0x494   : > { %v4488_v44 = vpop.f32.mrb[196].mxu1  ;;  %v5324_v57 = vpop.f32.mrb[196].mxu0 }
 0x495   : > { %v4883_v26 = vrot.slane %v4488_v44, 4  ;;  %v5720_v5 = vrot.slane %v5324_v57, 4  ;;  %v11228_v24 = vpop.f32.mrb[197].mxu1  ;;  %v11412_v38 = vpop.f32.mrb[197].mxu0  ;;  %v12517_v57 = vld [vmem:[%s16547_s0 + $0x108] sm:$0xff]  }
 0x496   : > { %v4491_v2 = vpop.f32.mrb[198].mxu1  ;;  %v5327_v3 = vpop.f32.mrb[198].mxu0 }
 0x497   : > { %v4884_v43 = vsel %vm4863_vm4, %v4881_v10, %v4883_v26  ;;  %v5721_v36 = vsel %vm4863_vm4, %v5718_v49, %v5720_v5  ;;  %v4885_v61 = vrot.slane %v4491_v2, 4  ;;  %v5722_v63 = vrot.slane %v5327_v3, 4  ;;  %v11413_v34 = vpop.f32.mrb[199].mxu0  ;;  %v11229_v6 = vpop.f32.mrb[199].mxu1 }
 0x498   : > { %v5117_v62 = vadd.f32 %v4884_v43, %v14217_v17  ;;  %v14930_v9 = vadd.f32 %v5721_v36, %v5113_v18 }
 0x499   : > { %v4886_v48 = vsel %vm4863_vm4, %v4883_v26, %v4885_v61  ;;  %v5723_v44 = vsel %vm4863_vm4, %v5720_v5, %v5722_v63  ;;  %11335 = vmatmul.mubr.bf16.gmra.mrb[48].mxu1 %v12517_v57  ;;  %11519 = vmatmul.mubr.bf16.gmra.mrb[48].mxu0 %v12516_v47 }
 0x49a   : > { %v5118_v10 = vadd.f32 %v4886_v48, %v14225_v23  ;;  %11338 = vmatprep.mubr.msk.bf16.mxu1 %vm12598_vm0, %v16593_v27  ;;  %11522 = vmatprep.mubr.msk.bf16.mxu0 %vm12598_vm0, %v16593_v27  ;;  %v14942_v17 = vadd.f32 %v5723_v44, %v5114_v29 }
 0x49c   : > { %v4496_v18 = vpop.f32.mrb[200].mxu1  ;;  %v5332_v49 = vpop.f32.mrb[200].mxu0 }
 0x49d   : > { %v4887_v26 = vrot.slane %v4496_v18, 4  ;;  %v5724_v5 = vrot.slane %v5332_v49, 4  ;;  %v11232_v24 = vpop.f32.mrb[201].mxu1  ;;  %v11416_v38 = vpop.f32.mrb[201].mxu0  ;;  %v12518_v49 = vld [vmem:[%s16547_s0 + $0x110] sm:$0xff]  }
 0x49e   : > { %v4499_v2 = vpop.f32.mrb[202].mxu1  ;;  %v5335_v3 = vpop.f32.mrb[202].mxu0 }
 0x49f   : > { %v4888_v47 = vsel %vm4863_vm4, %v4885_v61, %v4887_v26  ;;  %v5725_v23 = vsel %vm4863_vm4, %v5722_v63, %v5724_v5  ;;  %v4889_v43 = vrot.slane %v4499_v2, 4  ;;  %v5726_v36 = vrot.slane %v5335_v3, 4  ;;  %v11417_v34 = vpop.f32.mrb[203].mxu0  ;;  %v11233_v6 = vpop.f32.mrb[203].mxu1 }
 0x4a0   : > { %v5119_v48 = vadd.f32 %v4888_v47, %v14234_v50  ;;  %v14947_v29 = vadd.f32 %v5725_v23, %v5115_v55 }
 0x4a1   : > { %v4890_v44 = vsel %vm4863_vm4, %v4887_v26, %v4889_v43  ;;  %v5727_v18 = vsel %vm4863_vm4, %v5724_v5, %v5726_v36  ;;  %11339 = vmatmul.mubr.bf16.gmra.mrb[52].mxu1 %v12518_v49  ;;  %11523 = vmatmul.mubr.bf16.gmra.mrb[52].mxu0 %v12517_v57 }
 0x4a2   : > { %v5120_v61 = vadd.f32 %v4890_v44, %v14242_v59  ;;  %11342 = vmatprep.mubr.msk.bf16.mxu1 %vm12598_vm0, %v16593_v27  ;;  %11526 = vmatprep.mubr.msk.bf16.mxu0 %vm12598_vm0, %v16593_v27  ;;  %v14959_v50 = vadd.f32 %v5727_v18, %v5116_v56 }
 0x4a4   : > { %v4504_v55 = vpop.f32.mrb[204].mxu1  ;;  %v5340_v63 = vpop.f32.mrb[204].mxu0 }
 0x4a5   : > { %v4891_v26 = vrot.slane %v4504_v55, 4  ;;  %v5728_v5 = vrot.slane %v5340_v63, 4  ;;  %v11236_v24 = vpop.f32.mrb[205].mxu1  ;;  %v11420_v38 = vpop.f32.mrb[205].mxu0  ;;  %v12519_v63 = vld [vmem:[%s16547_s0 + $0x118] sm:$0xff]  }
 0x4a6   : > { %v4507_v2 = vpop.f32.mrb[206].mxu1  ;;  %v5343_v3 = vpop.f32.mrb[206].mxu0 }
 0x4a7   : > { %v4892_v57 = vsel %vm4863_vm4, %v4889_v43, %v4891_v26  ;;  %v5729_v59 = vsel %vm4863_vm4, %v5726_v36, %v5728_v5  ;;  %v4893_v47 = vrot.slane %v4507_v2, 4  ;;  %v5730_v23 = vrot.slane %v5343_v3, 4  ;;  %v11421_v34 = vpop.f32.mrb[207].mxu0  ;;  %v11237_v6 = vpop.f32.mrb[207].mxu1 }
 0x4a8   : > { %v5121_v44 = vadd.f32 %v4892_v57, %v14251_v46  ;;  %v14964_v56 = vadd.f32 %v5729_v59, %v5117_v62 }
 0x4a9   : > { %v4894_v18 = vsel %vm4863_vm4, %v4891_v26, %v4893_v47  ;;  %v5731_v55 = vsel %vm4863_vm4, %v5728_v5, %v5730_v23  ;;  %11343 = vmatmul.mubr.bf16.gmra.mrb[56].mxu1 %v12519_v63  ;;  %11527 = vmatmul.mubr.bf16.gmra.mrb[56].mxu0 %v12518_v49 }
 0x4aa   : > { %v5122_v43 = vadd.f32 %v4894_v18, %v14259_v11  ;;  %11346 = vmatprep.mubr.msk.bf16.mxu1 %vm12598_vm0, %v16593_v27  ;;  %11530 = vmatprep.mubr.msk.bf16.mxu0 %vm12598_vm0, %v16593_v27  ;;  %v14976_v46 = vadd.f32 %v5731_v55, %v5118_v10 }
 0x4ac   : > { %v4512_v62 = vpop.f32.mrb[208].mxu1  ;;  %v5348_v36 = vpop.f32.mrb[208].mxu0 }
 0x4ad   : > { %v4895_v26 = vrot.slane %v4512_v62, 4  ;;  %v5732_v5 = vrot.slane %v5348_v36, 4  ;;  %v11240_v24 = vpop.f32.mrb[209].mxu1  ;;  %v11424_v38 = vpop.f32.mrb[209].mxu0  ;;  %v12520_v36 = vld [vmem:[%s16547_s0 + $0x120] sm:$0xff]  }
 0x4ae   : > { %v4515_v2 = vpop.f32.mrb[210].mxu1  ;;  %v5351_v3 = vpop.f32.mrb[210].mxu0 }
 0x4af   : > { %v4896_v49 = vsel %vm4863_vm4, %v4893_v47, %v4895_v26  ;;  %v5733_v11 = vsel %vm4863_vm4, %v5730_v23, %v5732_v5  ;;  %v4897_v57 = vrot.slane %v4515_v2, 4  ;;  %v5734_v59 = vrot.slane %v5351_v3, 4  ;;  %v11425_v34 = vpop.f32.mrb[211].mxu0  ;;  %v11241_v6 = vpop.f32.mrb[211].mxu1 }
 0x4b0   : > { %v5123_v18 = vadd.f32 %v4896_v49, %v14268_v42  ;;  %v14981_v10 = vadd.f32 %v5733_v11, %v5119_v48 }
 0x4b1   : > { %v4898_v55 = vsel %vm4863_vm4, %v4895_v26, %v4897_v57  ;;  %v5735_v62 = vsel %vm4863_vm4, %v5732_v5, %v5734_v59  ;;  %11347 = vmatmul.mubr.bf16.gmra.mrb[60].mxu1 %v12520_v36  ;;  %11531 = vmatmul.mubr.bf16.gmra.mrb[60].mxu0 %v12519_v63 }
 0x4b2   : > { %v5124_v47 = vadd.f32 %v4898_v55, %v14276_v54  ;;  %11350 = vmatprep.mubr.msk.bf16.mxu1 %vm12598_vm0, %v16593_v27  ;;  %11534 = vmatprep.mubr.msk.bf16.mxu0 %vm12598_vm0, %v16593_v27  ;;  %v14993_v42 = vadd.f32 %v5735_v62, %v5120_v61 }
 0x4b4   : > { %v4520_v48 = vpop.f32.mrb[212].mxu1  ;;  %v5356_v23 = vpop.f32.mrb[212].mxu0 }
 0x4b5   : > { %v4899_v26 = vrot.slane %v4520_v48, 4  ;;  %v5736_v5 = vrot.slane %v5356_v23, 4  ;;  %v11244_v24 = vpop.f32.mrb[213].mxu1  ;;  %v11428_v38 = vpop.f32.mrb[213].mxu0  ;;  %v12521_v23 = vld [vmem:[%s16547_s0 + $0x128] sm:$0xff]  }
 0x4b6   : > { %v4523_v2 = vpop.f32.mrb[214].mxu1  ;;  %v5359_v3 = vpop.f32.mrb[214].mxu0 }
 0x4b7   : > { %v4900_v63 = vsel %vm4863_vm4, %v4897_v57, %v4899_v26  ;;  %v5737_v54 = vsel %vm4863_vm4, %v5734_v59, %v5736_v5  ;;  %v4901_v49 = vrot.slane %v4523_v2, 4  ;;  %v5738_v11 = vrot.slane %v5359_v3, 4  ;;  %v11429_v34 = vpop.f32.mrb[215].mxu0  ;;  %v11245_v6 = vpop.f32.mrb[215].mxu1 }
 0x4b8   : > { %v5125_v55 = vadd.f32 %v4900_v63, %v14285_v12  ;;  %v14998_v61 = vadd.f32 %v5737_v54, %v5121_v44 }
 0x4b9   : > { %v4902_v62 = vsel %vm4863_vm4, %v4899_v26, %v4901_v49  ;;  %v5739_v48 = vsel %vm4863_vm4, %v5736_v5, %v5738_v11  ;;  %11351 = vmatmul.mubr.bf16.gmra.mrb[64].mxu1 %v12521_v23  ;;  %11535 = vmatmul.mubr.bf16.gmra.mrb[64].mxu0 %v12520_v36 }
 0x4ba   : > { %v5126_v57 = vadd.f32 %v4902_v62, %v14293_v8  ;;  %11354 = vmatprep.mubr.msk.bf16.mxu1 %vm12598_vm0, %v16593_v27  ;;  %11538 = vmatprep.mubr.msk.bf16.mxu0 %vm12598_vm0, %v16593_v27  ;;  %v15010_v12 = vadd.f32 %v5739_v48, %v5122_v43 }
 0x4bc   : > { %v4528_v44 = vpop.f32.mrb[216].mxu1  ;;  %v5364_v59 = vpop.f32.mrb[216].mxu0 }
 0x4bd   : > { %v4903_v26 = vrot.slane %v4528_v44, 4  ;;  %v5740_v5 = vrot.slane %v5364_v59, 4  ;;  %v11248_v24 = vpop.f32.mrb[217].mxu1  ;;  %v11432_v38 = vpop.f32.mrb[217].mxu0  ;;  %v12522_v59 = vld [vmem:[%s16547_s0 + $0x130] sm:$0xff]  }
 0x4be   : > { %v4531_v2 = vpop.f32.mrb[218].mxu1  ;;  %v5367_v3 = vpop.f32.mrb[218].mxu0 }
 0x4bf   : > { %v4904_v36 = vsel %vm4863_vm4, %v4901_v49, %v4903_v26  ;;  %v5741_v8 = vsel %vm4863_vm4, %v5738_v11, %v5740_v5  ;;  %v4905_v63 = vrot.slane %v4531_v2, 4  ;;  %v5742_v54 = vrot.slane %v5367_v3, 4  ;;  %v11433_v34 = vpop.f32.mrb[219].mxu0  ;;  %v11249_v6 = vpop.f32.mrb[219].mxu1 }
 0x4c0   : > { %v5127_v62 = vadd.f32 %v4904_v36, %v14302_v30  ;;  %v15015_v43 = vadd.f32 %v5741_v8, %v5123_v18 }
 0x4c1   : > { %v4906_v48 = vsel %vm4863_vm4, %v4903_v26, %v4905_v63  ;;  %v5743_v44 = vsel %vm4863_vm4, %v5740_v5, %v5742_v54  ;;  %11355 = vmatmul.mubr.bf16.gmra.mrb[68].mxu1 %v12522_v59  ;;  %11539 = vmatmul.mubr.bf16.gmra.mrb[68].mxu0 %v12521_v23 }
 0x4c2   : > { %v5128_v49 = vadd.f32 %v4906_v48, %v14310_v31  ;;  %11358 = vmatprep.mubr.msk.bf16.mxu1 %vm12598_vm0, %v16593_v27  ;;  %11542 = vmatprep.mubr.msk.bf16.mxu0 %vm12598_vm0, %v16593_v27  ;;  %v15027_v30 = vadd.f32 %v5743_v44, %v5124_v47 }
 0x4c4   : > { %v4536_v18 = vpop.f32.mrb[220].mxu1  ;;  %v5372_v11 = vpop.f32.mrb[220].mxu0 }
 0x4c5   : > { %v4907_v26 = vrot.slane %v4536_v18, 4  ;;  %v5744_v5 = vrot.slane %v5372_v11, 4  ;;  %v11252_v24 = vpop.f32.mrb[221].mxu1  ;;  %v11436_v38 = vpop.f32.mrb[221].mxu0  ;;  %v12523_v11 = vld [vmem:[%s16547_s0 + $0x138] sm:$0xff]  }
 0x4c6   : > { %v4539_v2 = vpop.f32.mrb[222].mxu1  ;;  %v5375_v3 = vpop.f32.mrb[222].mxu0 }
 0x4c7   : > { %v4908_v23 = vsel %vm4863_vm4, %v4905_v63, %v4907_v26  ;;  %v5745_v31 = vsel %vm4863_vm4, %v5742_v54, %v5744_v5  ;;  %v4909_v36 = vrot.slane %v4539_v2, 4  ;;  %v5746_v8 = vrot.slane %v5375_v3, 4  ;;  %v11437_v34 = vpop.f32.mrb[223].mxu0  ;;  %v11253_v6 = vpop.f32.mrb[223].mxu1 }
 0x4c8   : > { %v5129_v48 = vadd.f32 %v4908_v23, %v14319_v60  ;;  %v15032_v47 = vadd.f32 %v5745_v31, %v5125_v55 }
 0x4c9   : > { %v4910_v44 = vsel %vm4863_vm4, %v4907_v26, %v4909_v36  ;;  %v5747_v18 = vsel %vm4863_vm4, %v5744_v5, %v5746_v8  ;;  %11359 = vmatmul.mubr.bf16.gmra.mrb[72].mxu1 %v12523_v11  ;;  %11543 = vmatmul.mubr.bf16.gmra.mrb[72].mxu0 %v12522_v59 }
 0x4ca   : > { %v5130_v63 = vadd.f32 %v4910_v44, %v14327_v14  ;;  %11362 = vmatprep.mubr.msk.bf16.mxu1 %vm12598_vm0, %v16593_v27  ;;  %11546 = vmatprep.mubr.msk.bf16.mxu0 %vm12598_vm0, %v16593_v27  ;;  %v15044_v60 = vadd.f32 %v5747_v18, %v5126_v57 }
 0x4cc   : > { %v4544_v55 = vpop.f32.mrb[224].mxu1  ;;  %v5380_v54 = vpop.f32.mrb[224].mxu0 }
 0x4cd   : > { %v4911_v26 = vrot.slane %v4544_v55, 4  ;;  %v5748_v5 = vrot.slane %v5380_v54, 4  ;;  %v11256_v24 = vpop.f32.mrb[225].mxu1  ;;  %v11440_v38 = vpop.f32.mrb[225].mxu0  ;;  %v12524_v54 = vld [vmem:[%s16547_s0 + $0x140] sm:$0xff]  }
 0x4ce   : > { %v4547_v2 = vpop.f32.mrb[226].mxu1  ;;  %v5383_v3 = vpop.f32.mrb[226].mxu0 }
 0x4cf   : > { %v4912_v59 = vsel %vm4863_vm4, %v4909_v36, %v4911_v26  ;;  %v5749_v14 = vsel %vm4863_vm4, %v5746_v8, %v5748_v5  ;;  %v4913_v23 = vrot.slane %v4547_v2, 4  ;;  %v5750_v31 = vrot.slane %v5383_v3, 4  ;;  %v11441_v34 = vpop.f32.mrb[227].mxu0  ;;  %v11257_v6 = vpop.f32.mrb[227].mxu1 }
 0x4d0   : > { %v5131_v44 = vadd.f32 %v4912_v59, %v14336_v21  ;;  %v15049_v57 = vadd.f32 %v5749_v14, %v5127_v62 }
 0x4d1   : > { %v4914_v18 = vsel %vm4863_vm4, %v4911_v26, %v4913_v23  ;;  %v5751_v55 = vsel %vm4863_vm4, %v5748_v5, %v5750_v31  ;;  %11363 = vmatmul.mubr.bf16.gmra.mrb[76].mxu1 %v12524_v54  ;;  %11547 = vmatmul.mubr.bf16.gmra.mrb[76].mxu0 %v12523_v11 }
 0x4d2   : > { %v5132_v36 = vadd.f32 %v4914_v18, %v14344_v35  ;;  %11366 = vmatprep.mubr.msk.bf16.mxu1 %vm12598_vm0, %v16593_v27  ;;  %11550 = vmatprep.mubr.msk.bf16.mxu0 %vm12598_vm0, %v16593_v27  ;;  %v15061_v21 = vadd.f32 %v5751_v55, %v5128_v49 }
 0x4d4   : > { %v4552_v62 = vpop.f32.mrb[228].mxu1  ;;  %v5388_v8 = vpop.f32.mrb[228].mxu0 }
 0x4d5   : > { %v4915_v26 = vrot.slane %v4552_v62, 4  ;;  %v5752_v5 = vrot.slane %v5388_v8, 4  ;;  %v11260_v24 = vpop.f32.mrb[229].mxu1  ;;  %v11444_v38 = vpop.f32.mrb[229].mxu0  ;;  %v12525_v8 = vld [vmem:[%s16547_s0 + $0x148] sm:$0xff]  }
 0x4d6   : > { %v4555_v2 = vpop.f32.mrb[230].mxu1  ;;  %v5391_v3 = vpop.f32.mrb[230].mxu0 }
 0x4d7   : > { %v4916_v11 = vsel %vm4863_vm4, %v4913_v23, %v4915_v26  ;;  %v5753_v35 = vsel %vm4863_vm4, %v5750_v31, %v5752_v5  ;;  %v4917_v59 = vrot.slane %v4555_v2, 4  ;;  %v5754_v14 = vrot.slane %v5391_v3, 4  ;;  %v11445_v34 = vpop.f32.mrb[231].mxu0  ;;  %v11261_v6 = vpop.f32.mrb[231].mxu1 }
 0x4d8   : > { %v5133_v18 = vadd.f32 %v4916_v11, %v14353_v32  ;;  %v15066_v49 = vadd.f32 %v5753_v35, %v5129_v48 }
 0x4d9   : > { %v4918_v55 = vsel %vm4863_vm4, %v4915_v26, %v4917_v59  ;;  %v5755_v62 = vsel %vm4863_vm4, %v5752_v5, %v5754_v14  ;;  %11367 = vmatmul.mubr.bf16.gmra.mrb[80].mxu1 %v12525_v8  ;;  %11551 = vmatmul.mubr.bf16.gmra.mrb[80].mxu0 %v12524_v54 }
 0x4da   : > { %v5134_v23 = vadd.f32 %v4918_v55, %v14361_v0  ;;  %11370 = vmatprep.mubr.msk.bf16.mxu1 %vm12598_vm0, %v16593_v27  ;;  %11554 = vmatprep.mubr.msk.bf16.mxu0 %vm12598_vm0, %v16593_v27  ;;  %v15078_v32 = vadd.f32 %v5755_v62, %v5130_v63 }
 0x4dc   : > { %v4560_v48 = vpop.f32.mrb[232].mxu1  ;;  %v5396_v31 = vpop.f32.mrb[232].mxu0 }
 0x4dd   : > { %v4919_v26 = vrot.slane %v4560_v48, 4  ;;  %v5756_v5 = vrot.slane %v5396_v31, 4  ;;  %v11264_v24 = vpop.f32.mrb[233].mxu1  ;;  %v11448_v38 = vpop.f32.mrb[233].mxu0  ;;  %v12526_v31 = vld [vmem:[%s16547_s0 + $0x150] sm:$0xff]  }
 0x4de   : > { %v4563_v2 = vpop.f32.mrb[234].mxu1  ;;  %v5399_v3 = vpop.f32.mrb[234].mxu0 }
 0x4df   : > { %v4920_v54 = vsel %vm4863_vm4, %v4917_v59, %v4919_v26  ;;  %v5757_v0 = vsel %vm4863_vm4, %v5754_v14, %v5756_v5  ;;  %v4921_v11 = vrot.slane %v4563_v2, 4  ;;  %v5758_v35 = vrot.slane %v5399_v3, 4  ;;  %v11449_v34 = vpop.f32.mrb[235].mxu0  ;;  %v11265_v6 = vpop.f32.mrb[235].mxu1 }
 0x4e0   : > { %v5135_v55 = vadd.f32 %v4920_v54, %v14371_v41  ;;  %v15083_v63 = vadd.f32 %v5757_v0, %v5131_v44 }
 0x4e1   : > { %v4922_v62 = vsel %vm4863_vm4, %v4919_v26, %v4921_v11  ;;  %v5759_v48 = vsel %vm4863_vm4, %v5756_v5, %v5758_v35  ;;  %11371 = vmatmul.mubr.bf16.gmra.mrb[84].mxu1 %v12526_v31  ;;  %11555 = vmatmul.mubr.bf16.gmra.mrb[84].mxu0 %v12525_v8 }
 0x4e2   : > { %v5136_v59 = vadd.f32 %v4922_v62, %v14379_v15  ;;  %11558 = vmatprep.mubr.msk.bf16.mxu0 %vm12598_vm0, %v16593_v27  ;;  %11578 = vmatprep.mubr.msk.bf16.mxu1 %vm12598_vm0, %v16593_v27  ;;  %v15095_v41 = vadd.f32 %v5759_v48, %v5132_v36 }
 0x4e4   : > { %v4568_v44 = vpop.f32.mrb[236].mxu1  ;;  %v5404_v14 = vpop.f32.mrb[236].mxu0 }
 0x4e5   : > { %v4923_v26 = vrot.slane %v4568_v44, 4  ;;  %v5760_v5 = vrot.slane %v5404_v14, 4  ;;  %v11268_v24 = vpop.f32.mrb[237].mxu1  ;;  %v11452_v38 = vpop.f32.mrb[237].mxu0  ;;  %v12527_v14 = vld [vmem:[%s16547_s0] sm:$0xff]  }
 0x4e6   : > { %v4571_v2 = vpop.f32.mrb[238].mxu1  ;;  %v5407_v3 = vpop.f32.mrb[238].mxu0 }
 0x4e7   : > { %v4924_v8 = vsel %vm4863_vm4, %v4921_v11, %v4923_v26  ;;  %v5761_v15 = vsel %vm4863_vm4, %v5758_v35, %v5760_v5  ;;  %v4925_v54 = vrot.slane %v4571_v2, 4  ;;  %v5762_v0 = vrot.slane %v5407_v3, 4  ;;  %v11453_v34 = vpop.f32.mrb[239].mxu0  ;;  %v11269_v6 = vpop.f32.mrb[239].mxu1 }
 0x4e8   : > { %v5137_v62 = vadd.f32 %v4924_v8, %v14391_v7  ;;  %v15100_v36 = vadd.f32 %v5761_v15, %v5133_v18 }
 0x4e9   : > { %v4926_v48 = vsel %vm4863_vm4, %v4923_v26, %v4925_v54  ;;  %v5763_v44 = vsel %vm4863_vm4, %v5760_v5, %v5762_v0  ;;  %11559 = vmatmul.mubr.bf16.gmra.mrb[88].mxu0 %v12526_v31  ;;  %11579 = vmatmul.mubr.bf16.vlgmr.msra.gmra.mrb[88].mxu1 %v12527_v14 }
 0x4ea   : > { %v5138_v11 = vadd.f32 %v4926_v48, %v14401_v52  ;;  %11582 = vmatprep.mubr.msk.bf16.mxu1 %vm12598_vm0, %v16593_v27  ;;  %11766 = vmatprep.mubr.msk.bf16.mxu0 %vm12598_vm0, %v16593_v27  ;;  %v15112_v7 = vadd.f32 %v5763_v44, %v5134_v23 }
 0x4ec   : > { %v4576_v18 = vpop.f32.mrb[240].mxu1  ;;  %v5412_v35 = vpop.f32.mrb[240].mxu0 }
 0x4ed   : > { %v4927_v26 = vrot.slane %v4576_v18, 4  ;;  %v5764_v5 = vrot.slane %v5412_v35, 4  ;;  %v11272_v31 = vpop.f32.mrb[241].mxu1  ;;  %v11456_v24 = vpop.f32.mrb[241].mxu0  ;;  %v12528_v35 = vld [vmem:[%s16547_s0 + $0x8] sm:$0xff]  }
 0x4ee   : > { %v4579_v38 = vpop.f32.mrb[242].mxu1  ;;  %v5415_v2 = vpop.f32.mrb[242].mxu0 }
 0x4ef   : > { %v4928_v3 = vsel %vm4863_vm4, %v4925_v54, %v4927_v26  ;;  %v5765_v52 = vsel %vm4863_vm4, %v5762_v0, %v5764_v5  ;;  %v4929_v8 = vrot.slane %v4579_v38, 4  ;;  %v5766_v15 = vrot.slane %v5415_v2, 4  ;;  %v11457_v34 = vpop.f32.mrb[243].mxu0  ;;  %v11273_v6 = vpop.f32.mrb[243].mxu1 }
 0x4f0   : > { %v5139_v48 = vadd.f32 %v4928_v3, %v14416_v25  ;;  %v15117_v23 = vadd.f32 %v5765_v52, %v5135_v55 }
 0x4f1   : > { %v4930_v44 = vsel %vm4863_vm4, %v4927_v26, %v4929_v8  ;;  %v5767_v18 = vsel %vm4863_vm4, %v5764_v5, %v5766_v15  ;;  %11583 = vmatmul.mubr.bf16.gmra.mrb[92].mxu1 %v12528_v35  ;;  %11767 = vmatmul.mubr.bf16.vlgmr.msra.gmra.mrb[92].mxu0 %v12527_v14 }
 0x4f2   : > { %v5140_v54 = vadd.f32 %v4930_v44, %v14424_v40  ;;  %11586 = vmatprep.mubr.msk.bf16.mxu1 %vm12598_vm0, %v16593_v27  ;;  %11770 = vmatprep.mubr.msk.bf16.mxu0 %vm12598_vm0, %v16593_v27  ;;  %v15129_v25 = vadd.f32 %v5767_v18, %v5136_v59 }
 0x4f4   : > { %v4584_v55 = vpop.f32.mrb[244].mxu1  ;;  %v5420_v0 = vpop.f32.mrb[244].mxu0 }
 0x4f5   : > { %v4931_v26 = vrot.slane %v4584_v55, 4  ;;  %v5768_v5 = vrot.slane %v5420_v0, 4  ;;  %v11276_v31 = vpop.f32.mrb[245].mxu1  ;;  %v11460_v24 = vpop.f32.mrb[245].mxu0  ;;  %v12529_v0 = vld [vmem:[%s16547_s0 + $0x10] sm:$0xff]  }
 0x4f6   : > { %v4587_v38 = vpop.f32.mrb[246].mxu1  ;;  %v5423_v2 = vpop.f32.mrb[246].mxu0 }
 0x4f7   : > { %v4932_v14 = vsel %vm4863_vm4, %v4929_v8, %v4931_v26  ;;  %v5769_v40 = vsel %vm4863_vm4, %v5766_v15, %v5768_v5  ;;  %v4933_v3 = vrot.slane %v4587_v38, 4  ;;  %v5770_v52 = vrot.slane %v5423_v2, 4  ;;  %v11461_v34 = vpop.f32.mrb[247].mxu0  ;;  %v11277_v6 = vpop.f32.mrb[247].mxu1 }
 0x4f8   : > { %v5141_v44 = vadd.f32 %v4932_v14, %v14436_v4  ;;  %v15134_v59 = vadd.f32 %v5769_v40, %v5137_v62 }
 0x4f9   : > { %v4934_v18 = vsel %vm4863_vm4, %v4931_v26, %v4933_v3  ;;  %v5771_v55 = vsel %vm4863_vm4, %v5768_v5, %v5770_v52  ;;  %11587 = vmatmul.mubr.bf16.gmra.mrb[96].mxu1 %v12529_v0  ;;  %11771 = vmatmul.mubr.bf16.gmra.mrb[96].mxu0 %v12528_v35 }
 0x4fa   : > { %v5142_v8 = vadd.f32 %v4934_v18, %v14445_v33  ;;  %11590 = vmatprep.mubr.msk.bf16.mxu1 %vm12598_vm0, %v16593_v27  ;;  %11774 = vmatprep.mubr.msk.bf16.mxu0 %vm12598_vm0, %v16593_v27  ;;  %v15146_v4 = vadd.f32 %v5771_v55, %v5138_v11 }
 0x4fc   : > { %16749 = vst [vmem:[#allocation37_spill] sm:$0xff] %v15146_v4  ;;  %v4592_v62 = vpop.f32.mrb[248].mxu1  ;;  %v5428_v15 = vpop.f32.mrb[248].mxu0  ;;  %v16759_v4 = vld [vmem:[#allocation3_spill] sm:$0xff] }
 0x4fd   : > { %v4935_v26 = vrot.slane %v4592_v62, 4  ;;  %v5772_v5 = vrot.slane %v5428_v15, 4  ;;  %v11280_v31 = vpop.f32.mrb[249].mxu1  ;;  %v11464_v24 = vpop.f32.mrb[249].mxu0  ;;  %v12530_v15 = vld [vmem:[%s16547_s0 + $0x18] sm:$0xff]  }
 0x4fe   : > { %v4595_v38 = vpop.f32.mrb[250].mxu1  ;;  %v5431_v2 = vpop.f32.mrb[250].mxu0 }
 0x4ff   : > { %v4936_v35 = vsel %vm4863_vm4, %v4933_v3, %v4935_v26  ;;  %v5773_v33 = vsel %vm4863_vm4, %v5770_v52, %v5772_v5  ;;  %v4937_v14 = vrot.slane %v4595_v38, 4  ;;  %v5774_v40 = vrot.slane %v5431_v2, 4  ;;  %v11465_v34 = vpop.f32.mrb[251].mxu0  ;;  %v11281_v6 = vpop.f32.mrb[251].mxu1 }
 0x500   : > { %v5143_v18 = vadd.f32 %v4936_v35, %v14454_v58  ;;  %v15151_v11 = vadd.f32 %v5773_v33, %v5139_v48 }
 0x501   : > { %v4938_v55 = vsel %vm4863_vm4, %v4935_v26, %v4937_v14  ;;  %v5775_v62 = vsel %vm4863_vm4, %v5772_v5, %v5774_v40  ;;  %11591 = vmatmul.mubr.bf16.gmra.mrb[100].mxu1 %v12530_v15  ;;  %11775 = vmatmul.mubr.bf16.gmra.mrb[100].mxu0 %v12529_v0 }
 0x502   : > { %16750 = vst [vmem:[#allocation38_spill] sm:$0xff] %v15151_v11  ;;  %v5144_v3 = vadd.f32 %v4938_v55, %v14462_v19  ;;  %11594 = vmatprep.mubr.msk.bf16.mxu1 %vm12598_vm0, %v16593_v27  ;;  %11778 = vmatprep.mubr.msk.bf16.mxu0 %vm12598_vm0, %v16593_v27  ;;  %v15163_v58 = vadd.f32 %v5775_v62, %v5140_v54  ;;  %v16752_v55 = vld [vmem:[#allocation39_spill] sm:$0xff] }
 0x504   : > { %16751 = vst [vmem:[#allocation43_spill] sm:$0xff] %v15163_v58  ;;  %v4600_v48 = vpop.f32.mrb[252].mxu1  ;;  %v5436_v52 = vpop.f32.mrb[252].mxu0 }
 0x505   : > { %v4939_v26 = vrot.slane %v4600_v48, 4  ;;  %v5776_v5 = vrot.slane %v5436_v52, 4  ;;  %v11284_v31 = vpop.f32.mrb[253].mxu1  ;;  %v11468_v24 = vpop.f32.mrb[253].mxu0  ;;  %v12531_v52 = vld [vmem:[%s16547_s0 + $0x20] sm:$0xff]  }
 0x506   : > { %v4603_v38 = vpop.f32.mrb[254].mxu1  ;;  %v5439_v2 = vpop.f32.mrb[254].mxu0 }
 0x507   : > { %v4940_v0 = vsel %vm4863_vm4, %v4937_v14, %v4939_v26  ;;  %v5777_v19 = vsel %vm4863_vm4, %v5774_v40, %v5776_v5  ;;  %v4941_v35 = vrot.slane %v4603_v38, 4  ;;  %v5778_v33 = vrot.slane %v5439_v2, 4  ;;  %v11469_v34 = vpop.f32.mrb[255].mxu0  ;;  %v11285_v6 = vpop.f32.mrb[255].mxu1  ;;  %v16754_v14 = vld [vmem:[#allocation42_spill] sm:$0xff] }
 0x508   : > { %v5145_v11 = vadd.f32 %v4940_v0, %v16752_v55  ;;  %v15168_v54 = vadd.f32 %v5777_v19, %v5141_v44 }
 0x509   : > { %v4942_v62 = vsel %vm4863_vm4, %v4939_v26, %v4941_v35  ;;  %v5779_v48 = vsel %vm4863_vm4, %v5776_v5, %v5778_v33  ;;  %11595 = vmatmul.mubr.bf16.gmra.mrb[104].mxu1 %v12531_v52  ;;  %11779 = vmatmul.mubr.bf16.gmra.mrb[104].mxu0 %v12530_v15 }
 0x50a   : > { %16753 = vst [vmem:[#allocation39_spill] sm:$0xff] %v15168_v54  ;;  %v5146_v40 = vadd.f32 %v4942_v62, %v16754_v14  ;;  %11598 = vmatprep.mubr.msk.bf16.mxu1 %vm12598_vm0, %v16593_v27  ;;  %11782 = vmatprep.mubr.msk.bf16.mxu0 %vm12598_vm0, %v16593_v27  ;;  %v15180_v44 = vadd.f32 %v5779_v48, %v5142_v8  ;;  %v16756_v54 = vld [vmem:[#allocation40_spill] sm:$0xff] }
 0x50c   : > { %16755 = vst [vmem:[#allocation42_spill] sm:$0xff] %v15180_v44  ;;  %v4608_v31 = vpop.f32.mrb[0].mxu1  ;;  %v5444_v26 = vpop.f32.mrb[0].mxu0 }
 0x50d   : > { %v4943_v24 = vrot.slane %v4608_v31, 4  ;;  %v5780_v5 = vrot.slane %v5444_v26, 4  ;;  %v11288_v38 = vpop.f32.mrb[1].mxu1  ;;  %v11472_v2 = vpop.f32.mrb[1].mxu0  ;;  %v12532_v26 = vld [vmem:[%s16547_s0 + $0x28] sm:$0xff]  }
 0x50e   : > { %v4611_v0 = vpop.f32.mrb[2].mxu1  ;;  %v5447_v19 = vpop.f32.mrb[2].mxu0 }
 0x50f   : > { %v4944_v15 = vsel %vm4863_vm4, %v4941_v35, %v4943_v24  ;;  %v5781_v34 = vsel %vm4863_vm4, %v5778_v33, %v5780_v5  ;;  %v4945_v6 = vrot.slane %v4611_v0, 4  ;;  %v5782_v55 = vrot.slane %v5447_v19, 4  ;;  %v11473_v62 = vpop.f32.mrb[3].mxu0  ;;  %v11289_v14 = vpop.f32.mrb[3].mxu1  ;;  %v16758_v35 = vld [vmem:[#allocation41_spill] sm:$0xff] }
 0x510   : > { %v5147_v58 = vadd.f32 %v4944_v15, %v16756_v54  ;;  %v15185_v8 = vadd.f32 %v5781_v34, %v5143_v18 }
 0x511   : > { %v4946_v48 = vsel %vm4863_vm4, %v4943_v24, %v4945_v6  ;;  %v5783_v31 = vsel %vm4863_vm4, %v5780_v5, %v5782_v55  ;;  %11599 = vmatmul.mubr.bf16.gmra.mrb[108].mxu1 %v12532_v26  ;;  %11783 = vmatmul.mubr.bf16.gmra.mrb[108].mxu0 %v12531_v52 }
 0x512   : > { %16757 = vst [vmem:[#allocation40_spill] sm:$0xff] %v15185_v8  ;;  %11602 = vmatprep.mubr.msk.bf16.mxu1 %vm12598_vm0, %v16593_v27  ;;  %11786 = vmatprep.mubr.msk.bf16.mxu0 %vm12598_vm0, %v16593_v27  ;;  %v5148_v33 = vadd.f32 %v4946_v48, %v16758_v35  ;;  %v15197_v18 = vadd.f32 %v5783_v31, %v5144_v3 }
 0x514   : > { %v4616_v54 = vpop.f32.mrb[4].mxu1  ;;  %v5452_v24 = vpop.f32.mrb[4].mxu0 }
 0x515   : > { %v4947_v38 = vrot.slane %v4616_v54, 4  ;;  %v5784_v5 = vrot.slane %v5452_v24, 4  ;;  %v11292_v2 = vpop.f32.mrb[5].mxu1  ;;  %v11476_v0 = vpop.f32.mrb[5].mxu0  ;;  %v12533_v54 = vld [vmem:[%s16547_s0 + $0x30] sm:$0xff]  }
 0x516   : > { %v4619_v19 = vpop.f32.mrb[6].mxu1  ;;  %v5455_v15 = vpop.f32.mrb[6].mxu0 }
 0x517   : > { %v4948_v52 = vsel %vm4863_vm4, %v4945_v6, %v4947_v38  ;;  %v5785_v34 = vsel %vm4863_vm4, %v5782_v55, %v5784_v5  ;;  %v4949_v62 = vrot.slane %v4619_v19, 4  ;;  %v5786_v14 = vrot.slane %v5455_v15, 4  ;;  %v11477_v8 = vpop.f32.mrb[7].mxu0  ;;  %v11293_v44 = vpop.f32.mrb[7].mxu1  ;;  %v16761_v6 = vld [vmem:[#allocation4_spill] sm:$0xff] }
 0x518   : > { %v5149_v48 = vadd.f32 %v4948_v52, %v16759_v4  ;;  %v15202_v3 = vadd.f32 %v5785_v34, %v5145_v11 }
 0x519   : > { %v4950_v31 = vsel %vm4863_vm4, %v4947_v38, %v4949_v62  ;;  %v5787_v35 = vsel %vm4863_vm4, %v5784_v5, %v5786_v14  ;;  %11603 = vmatmul.mubr.bf16.gmra.mrb[112].mxu1 %v12533_v54  ;;  %11787 = vmatmul.mubr.bf16.gmra.mrb[112].mxu0 %v12532_v26 }
 0x51a   : > { %16760 = vst [vmem:[#allocation41_spill] sm:$0xff] %v15202_v3  ;;  %v5150_v55 = vadd.f32 %v4950_v31, %v16761_v6  ;;  %11606 = vmatprep.mubr.msk.bf16.mxu1 %vm12598_vm0, %v16593_v27  ;;  %11790 = vmatprep.mubr.msk.bf16.mxu0 %vm12598_vm0, %v16593_v27  ;;  %v15214_v4 = vadd.f32 %v5787_v35, %v5146_v40  ;;  %v16762_v6 = vld [vmem:[#allocation5_spill] sm:$0xff] }
 0x51c   : > { %v4624_v11 = vpop.f32.mrb[8].mxu1  ;;  %v5460_v44 = vpop.f32.mrb[8].mxu0 }
 0x51d   : > { %v4951_v8 = vrot.slane %v4624_v11, 4  ;;  %v5788_v24 = vrot.slane %v5460_v44, 4  ;;  %v11296_v38 = vpop.f32.mrb[9].mxu1  ;;  %v11480_v5 = vpop.f32.mrb[9].mxu0  ;;  %v12534_v44 = vld [vmem:[%s16547_s0 + $0x38] sm:$0xff]  }
 0x51e   : > { %v4627_v2 = vpop.f32.mrb[10].mxu1  ;;  %v5463_v0 = vpop.f32.mrb[10].mxu0 }
 0x51f   : > { %v4952_v26 = vsel %vm4863_vm4, %v4949_v62, %v4951_v8  ;;  %v5789_v19 = vsel %vm4863_vm4, %v5786_v14, %v5788_v24  ;;  %v4953_v15 = vrot.slane %v4627_v2, 4  ;;  %v5790_v52 = vrot.slane %v5463_v0, 4  ;;  %v11481_v34 = vpop.f32.mrb[11].mxu0  ;;  %v11297_v31 = vpop.f32.mrb[11].mxu1  ;;  %v16764_v62 = vld [vmem:[#allocation6_spill] sm:$0xff] }
 0x520   : > { %v5151_v3 = vadd.f32 %v4952_v26, %v16762_v6  ;;  %v15219_v40 = vadd.f32 %v5789_v19, %v5147_v58 }
 0x521   : > { %v4954_v35 = vsel %vm4863_vm4, %v4951_v8, %v4953_v15  ;;  %v5791_v11 = vsel %vm4863_vm4, %v5788_v24, %v5790_v52  ;;  %11607 = vmatmul.mubr.bf16.gmra.mrb[116].mxu1 %v12534_v44  ;;  %11791 = vmatmul.mubr.bf16.gmra.mrb[116].mxu0 %v12533_v54 }
 0x522   : > { %16763 = vst [vmem:[#allocation3_spill] sm:$0xff] %v15219_v40  ;;  %v5152_v14 = vadd.f32 %v4954_v35, %v16764_v62  ;;  %v15227_v38 = vadd.f32 %v5791_v11, %v5148_v33  ;;  %11610 = vmatprep.mubr.msk.bf16.mxu1 %vm12598_vm0, %v16593_v27  ;;  %11794 = vmatprep.mubr.msk.bf16.mxu0 %vm12598_vm0, %v16593_v27  ;;  %v16766_v11 = vld [vmem:[#allocation7_spill] sm:$0xff] }
 0x524   : > { %16765 = vst [vmem:[#allocation4_spill] sm:$0xff] %v15227_v38  ;;  %v4632_v58 = vpop.f32.mrb[12].mxu1  ;;  %v5468_v8 = vpop.f32.mrb[12].mxu0 }
 0x525   : > { %v4955_v5 = vrot.slane %v4632_v58, 4  ;;  %v5792_v24 = vrot.slane %v5468_v8, 4  ;;  %v11300_v2 = vpop.f32.mrb[13].mxu1  ;;  %v11484_v0 = vpop.f32.mrb[13].mxu0  ;;  %v12535_v8 = vld [vmem:[%s16547_s0 + $0x40] sm:$0xff]  }
 0x526   : > { %v4635_v26 = vpop.f32.mrb[14].mxu1  ;;  %v5471_v19 = vpop.f32.mrb[14].mxu0 }
 0x527   : > { %v4956_v54 = vsel %vm4863_vm4, %v4953_v15, %v4955_v5  ;;  %v5793_v34 = vsel %vm4863_vm4, %v5790_v52, %v5792_v24  ;;  %v4957_v33 = vrot.slane %v4635_v26, 4  ;;  %v5794_v31 = vrot.slane %v5471_v19, 4  ;;  %v11485_v6 = vpop.f32.mrb[15].mxu0  ;;  %v11301_v35 = vpop.f32.mrb[15].mxu1  ;;  %v16768_v15 = vld [vmem:[#allocation8_spill] sm:$0xff] }
 0x528   : > { %v5153_v62 = vadd.f32 %v4956_v54, %v16766_v11  ;;  %v15236_v38 = vadd.f32 %v5793_v34, %v5149_v48 }
 0x529   : > { %v4958_v40 = vsel %vm4863_vm4, %v4955_v5, %v4957_v33  ;;  %v5795_v58 = vsel %vm4863_vm4, %v5792_v24, %v5794_v31  ;;  %11611 = vmatmul.mubr.bf16.gmra.mrb[120].mxu1 %v12535_v8  ;;  %11795 = vmatmul.mubr.bf16.gmra.mrb[120].mxu0 %v12534_v44 }
 0x52a   : > { %16767 = vst [vmem:[#allocation5_spill] sm:$0xff] %v15236_v38  ;;  %v5154_v52 = vadd.f32 %v4958_v40, %v16768_v15  ;;  %v15244_v2 = vadd.f32 %v5795_v58, %v5150_v55  ;;  %11614 = vmatprep.mubr.msk.bf16.mxu1 %vm12598_vm0, %v16593_v27  ;;  %11798 = vmatprep.mubr.msk.bf16.mxu0 %vm12598_vm0, %v16593_v27  ;;  %v16770_v58 = vld [vmem:[#allocation9_spill] sm:$0xff] }
 0x52c   : > { %16769 = vst [vmem:[#allocation6_spill] sm:$0xff] %v15244_v2  ;;  %v4640_v48 = vpop.f32.mrb[16].mxu1  ;;  %v5476_v5 = vpop.f32.mrb[16].mxu0 }
 0x52d   : > { %v4959_v0 = vrot.slane %v4640_v48, 4  ;;  %v5796_v24 = vrot.slane %v5476_v5, 4  ;;  %v11304_v26 = vpop.f32.mrb[17].mxu1  ;;  %v11488_v19 = vpop.f32.mrb[17].mxu0  ;;  %v12536_v5 = vld [vmem:[%s16547_s0 + $0x48] sm:$0xff]  }
 0x52e   : > { %v4643_v54 = vpop.f32.mrb[18].mxu1  ;;  %v5479_v34 = vpop.f32.mrb[18].mxu0 }
 0x52f   : > { %v4960_v44 = vsel %vm4863_vm4, %v4957_v33, %v4959_v0  ;;  %v5797_v40 = vsel %vm4863_vm4, %v5794_v31, %v5796_v24  ;;  %v4961_v55 = vrot.slane %v4643_v54, 4  ;;  %v5798_v6 = vrot.slane %v5479_v34, 4  ;;  %v11489_v35 = vpop.f32.mrb[19].mxu0  ;;  %v11305_v11 = vpop.f32.mrb[19].mxu1  ;;  %v16772_v33 = vld [vmem:[#allocation10_spill] sm:$0xff] }
 0x530   : > { %v5155_v15 = vadd.f32 %v4960_v44, %v16770_v58  ;;  %v15253_v2 = vadd.f32 %v5797_v40, %v5151_v3 }
 0x531   : > { %v4962_v38 = vsel %vm4863_vm4, %v4959_v0, %v4961_v55  ;;  %v5799_v48 = vsel %vm4863_vm4, %v5796_v24, %v5798_v6  ;;  %11615 = vmatmul.mubr.bf16.gmra.mrb[124].mxu1 %v12536_v5  ;;  %11799 = vmatmul.mubr.bf16.gmra.mrb[124].mxu0 %v12535_v8 }
 0x532   : > { %16771 = vst [vmem:[#allocation7_spill] sm:$0xff] %v15253_v2  ;;  %v5156_v31 = vadd.f32 %v4962_v38, %v16772_v33  ;;  %v15261_v26 = vadd.f32 %v5799_v48, %v5152_v14  ;;  %11618 = vmatprep.mubr.msk.bf16.mxu1 %vm12598_vm0, %v16593_v27  ;;  %11802 = vmatprep.mubr.msk.bf16.mxu0 %vm12598_vm0, %v16593_v27  ;;  %v16774_v48 = vld [vmem:[#allocation11_spill] sm:$0xff] }
 0x534   : > { %16773 = vst [vmem:[#allocation8_spill] sm:$0xff] %v15261_v26  ;;  %v4648_v3 = vpop.f32.mrb[20].mxu1  ;;  %v5484_v0 = vpop.f32.mrb[20].mxu0 }
 0x535   : > { %v4963_v19 = vrot.slane %v4648_v3, 4  ;;  %v5800_v24 = vrot.slane %v5484_v0, 4  ;;  %v11308_v54 = vpop.f32.mrb[21].mxu1  ;;  %v11492_v34 = vpop.f32.mrb[21].mxu0  ;;  %v12537_v0 = vld [vmem:[%s16547_s0 + $0x50] sm:$0xff]  }
 0x536   : > { %v4651_v44 = vpop.f32.mrb[22].mxu1  ;;  %v5487_v40 = vpop.f32.mrb[22].mxu0 }
 0x537   : > { %v4964_v8 = vsel %vm4863_vm4, %v4961_v55, %v4963_v19  ;;  %v5801_v38 = vsel %vm4863_vm4, %v5798_v6, %v5800_v24  ;;  %v4965_v14 = vrot.slane %v4651_v44, 4  ;;  %v5802_v35 = vrot.slane %v5487_v40, 4  ;;  %v11493_v11 = vpop.f32.mrb[23].mxu0  ;;  %v11309_v58 = vpop.f32.mrb[23].mxu1  ;;  %v16776_v55 = vld [vmem:[#allocation12_spill] sm:$0xff] }
 0x538   : > { %v5157_v33 = vadd.f32 %v4964_v8, %v16774_v48  ;;  %v15270_v26 = vadd.f32 %v5801_v38, %v5153_v62 }
 0x539   : > { %v4966_v2 = vsel %vm4863_vm4, %v4963_v19, %v4965_v14  ;;  %v5803_v3 = vsel %vm4863_vm4, %v5800_v24, %v5802_v35  ;;  %11619 = vmatmul.mubr.bf16.gmra.mrb[128].mxu1 %v12537_v0  ;;  %11803 = vmatmul.mubr.bf16.gmra.mrb[128].mxu0 %v12536_v5 }
 0x53a   : > { %16775 = vst [vmem:[#allocation9_spill] sm:$0xff] %v15270_v26  ;;  %v5158_v6 = vadd.f32 %v4966_v2, %v16776_v55  ;;  %v15278_v54 = vadd.f32 %v5803_v3, %v5154_v52  ;;  %11622 = vmatprep.mubr.msk.bf16.mxu1 %vm12598_vm0, %v16593_v27  ;;  %11806 = vmatprep.mubr.msk.bf16.mxu0 %vm12598_vm0, %v16593_v27  ;;  %v16778_v3 = vld [vmem:[#allocation13_spill] sm:$0xff] }
 0x53c   : > { %16777 = vst [vmem:[#allocation10_spill] sm:$0xff] %v15278_v54  ;;  %v4656_v62 = vpop.f32.mrb[24].mxu1  ;;  %v5492_v19 = vpop.f32.mrb[24].mxu0 }
 0x53d   : > { %v4967_v34 = vrot.slane %v4656_v62, 4  ;;  %v5804_v24 = vrot.slane %v5492_v19, 4  ;;  %v11312_v44 = vpop.f32.mrb[25].mxu1  ;;  %v11496_v40 = vpop.f32.mrb[25].mxu0  ;;  %v12538_v19 = vld [vmem:[%s16547_s0 + $0x58] sm:$0xff]  }
 0x53e   : > { %v4659_v8 = vpop.f32.mrb[26].mxu1  ;;  %v5495_v38 = vpop.f32.mrb[26].mxu0 }
 0x53f   : > { %v4968_v5 = vsel %vm4863_vm4, %v4965_v14, %v4967_v34  ;;  %v5805_v2 = vsel %vm4863_vm4, %v5802_v35, %v5804_v24  ;;  %v4969_v52 = vrot.slane %v4659_v8, 4  ;;  %v5806_v11 = vrot.slane %v5495_v38, 4  ;;  %v11497_v58 = vpop.f32.mrb[27].mxu0  ;;  %v11313_v48 = vpop.f32.mrb[27].mxu1  ;;  %v16780_v14 = vld [vmem:[#allocation14_spill] sm:$0xff] }
 0x540   : > { %v5159_v55 = vadd.f32 %v4968_v5, %v16778_v3  ;;  %v15287_v54 = vadd.f32 %v5805_v2, %v5155_v15 }
 0x541   : > { %v4970_v26 = vsel %vm4863_vm4, %v4967_v34, %v4969_v52  ;;  %v5807_v62 = vsel %vm4863_vm4, %v5804_v24, %v5806_v11  ;;  %11623 = vmatmul.mubr.bf16.gmra.mrb[132].mxu1 %v12538_v19  ;;  %11807 = vmatmul.mubr.bf16.gmra.mrb[132].mxu0 %v12537_v0 }
 0x542   : > { %16779 = vst [vmem:[#allocation11_spill] sm:$0xff] %v15287_v54  ;;  %v5160_v35 = vadd.f32 %v4970_v26, %v16780_v14  ;;  %v15295_v44 = vadd.f32 %v5807_v62, %v5156_v31  ;;  %11626 = vmatprep.mubr.msk.bf16.mxu1 %vm12598_vm0, %v16593_v27  ;;  %11810 = vmatprep.mubr.msk.bf16.mxu0 %vm12598_vm0, %v16593_v27  ;;  %v16782_v62 = vld [vmem:[#allocation15_spill] sm:$0xff] }
 0x544   : > { %16781 = vst [vmem:[#allocation12_spill] sm:$0xff] %v15295_v44  ;;  %v4664_v15 = vpop.f32.mrb[28].mxu1  ;;  %v5500_v34 = vpop.f32.mrb[28].mxu0 }
 0x545   : > { %v4971_v40 = vrot.slane %v4664_v15, 4  ;;  %v5808_v24 = vrot.slane %v5500_v34, 4  ;;  %v11316_v8 = vpop.f32.mrb[29].mxu1  ;;  %v11500_v38 = vpop.f32.mrb[29].mxu0  ;;  %v12539_v34 = vld [vmem:[%s16547_s0 + $0x60] sm:$0xff]  }
 0x546   : > { %v4667_v5 = vpop.f32.mrb[30].mxu1  ;;  %v5503_v2 = vpop.f32.mrb[30].mxu0 }
 0x547   : > { %v4972_v0 = vsel %vm4863_vm4, %v4969_v52, %v4971_v40  ;;  %v5809_v26 = vsel %vm4863_vm4, %v5806_v11, %v5808_v24  ;;  %v4973_v31 = vrot.slane %v4667_v5, 4  ;;  %v5810_v58 = vrot.slane %v5503_v2, 4  ;;  %v11501_v48 = vpop.f32.mrb[31].mxu0  ;;  %v11317_v3 = vpop.f32.mrb[31].mxu1  ;;  %v16784_v52 = vld [vmem:[#allocation16_spill] sm:$0xff] }
 0x548   : > { %v5161_v14 = vadd.f32 %v4972_v0, %v16782_v62  ;;  %v15304_v44 = vadd.f32 %v5809_v26, %v5157_v33 }
 0x549   : > { %v4974_v54 = vsel %vm4863_vm4, %v4971_v40, %v4973_v31  ;;  %v5811_v15 = vsel %vm4863_vm4, %v5808_v24, %v5810_v58  ;;  %11627 = vmatmul.mubr.bf16.gmra.mrb[136].mxu1 %v12539_v34  ;;  %11811 = vmatmul.mubr.bf16.gmra.mrb[136].mxu0 %v12538_v19 }
 0x54a   : > { %16783 = vst [vmem:[#allocation13_spill] sm:$0xff] %v15304_v44  ;;  %v5162_v11 = vadd.f32 %v4974_v54, %v16784_v52  ;;  %v15312_v8 = vadd.f32 %v5811_v15, %v5158_v6  ;;  %11630 = vmatprep.mubr.msk.bf16.mxu1 %vm12598_vm0, %v16593_v27  ;;  %11814 = vmatprep.mubr.msk.bf16.mxu0 %vm12598_vm0, %v16593_v27  ;;  %v16786_v15 = vld [vmem:[#allocation17_spill] sm:$0xff] }
 0x54c   : > { %16785 = vst [vmem:[#allocation14_spill] sm:$0xff] %v15312_v8  ;;  %v4672_v33 = vpop.f32.mrb[32].mxu1  ;;  %v5508_v40 = vpop.f32.mrb[32].mxu0 }
 0x54d   : > { %v4975_v38 = vrot.slane %v4672_v33, 4  ;;  %v5812_v24 = vrot.slane %v5508_v40, 4  ;;  %v11320_v5 = vpop.f32.mrb[33].mxu1  ;;  %v11504_v2 = vpop.f32.mrb[33].mxu0  ;;  %v12540_v40 = vld [vmem:[%s16547_s0 + $0x68] sm:$0xff]  }
 0x54e   : > { %v4675_v0 = vpop.f32.mrb[34].mxu1  ;;  %v5511_v26 = vpop.f32.mrb[34].mxu0 }
 0x54f   : > { %v4976_v19 = vsel %vm4863_vm4, %v4973_v31, %v4975_v38  ;;  %v5813_v54 = vsel %vm4863_vm4, %v5810_v58, %v5812_v24  ;;  %v4977_v6 = vrot.slane %v4675_v0, 4  ;;  %v5814_v48 = vrot.slane %v5511_v26, 4  ;;  %v11505_v3 = vpop.f32.mrb[35].mxu0  ;;  %v11321_v62 = vpop.f32.mrb[35].mxu1  ;;  %v16788_v31 = vld [vmem:[#allocation18_spill] sm:$0xff] }
 0x550   : > { %v5163_v52 = vadd.f32 %v4976_v19, %v16786_v15  ;;  %v15321_v8 = vadd.f32 %v5813_v54, %v5159_v55 }
 0x551   : > { %v4978_v44 = vsel %vm4863_vm4, %v4975_v38, %v4977_v6  ;;  %v5815_v33 = vsel %vm4863_vm4, %v5812_v24, %v5814_v48  ;;  %11631 = vmatmul.mubr.bf16.gmra.mrb[140].mxu1 %v12540_v40  ;;  %11815 = vmatmul.mubr.bf16.gmra.mrb[140].mxu0 %v12539_v34 }
 0x552   : > { %16787 = vst [vmem:[#allocation15_spill] sm:$0xff] %v15321_v8  ;;  %v5164_v58 = vadd.f32 %v4978_v44, %v16788_v31  ;;  %v15329_v5 = vadd.f32 %v5815_v33, %v5160_v35  ;;  %11634 = vmatprep.mubr.msk.bf16.mxu1 %vm12598_vm0, %v16593_v27  ;;  %11818 = vmatprep.mubr.msk.bf16.mxu0 %vm12598_vm0, %v16593_v27  ;;  %v16790_v33 = vld [vmem:[#allocation19_spill] sm:$0xff] }
 0x554   : > { %16789 = vst [vmem:[#allocation16_spill] sm:$0xff] %v15329_v5  ;;  %v4680_v55 = vpop.f32.mrb[36].mxu1  ;;  %v5516_v38 = vpop.f32.mrb[36].mxu0 }
 0x555   : > { %v4979_v2 = vrot.slane %v4680_v55, 4  ;;  %v5816_v24 = vrot.slane %v5516_v38, 4  ;;  %v11324_v0 = vpop.f32.mrb[37].mxu1  ;;  %v11508_v26 = vpop.f32.mrb[37].mxu0  ;;  %v12541_v38 = vld [vmem:[%s16547_s0 + $0x70] sm:$0xff]  }
 0x556   : > { %v4683_v19 = vpop.f32.mrb[38].mxu1  ;;  %v5519_v54 = vpop.f32.mrb[38].mxu0 }
 0x557   : > { %v4980_v34 = vsel %vm4863_vm4, %v4977_v6, %v4979_v2  ;;  %v5817_v44 = vsel %vm4863_vm4, %v5814_v48, %v5816_v24  ;;  %v4981_v35 = vrot.slane %v4683_v19, 4  ;;  %v5818_v3 = vrot.slane %v5519_v54, 4  ;;  %v11509_v62 = vpop.f32.mrb[39].mxu0  ;;  %v11325_v15 = vpop.f32.mrb[39].mxu1  ;;  %v16792_v6 = vld [vmem:[#allocation20_spill] sm:$0xff] }
 0x558   : > { %v5165_v31 = vadd.f32 %v4980_v34, %v16790_v33  ;;  %v15338_v5 = vadd.f32 %v5817_v44, %v5161_v14 }
 0x559   : > { %v4982_v8 = vsel %vm4863_vm4, %v4979_v2, %v4981_v35  ;;  %v5819_v55 = vsel %vm4863_vm4, %v5816_v24, %v5818_v3  ;;  %11635 = vmatmul.mubr.bf16.gmra.mrb[144].mxu1 %v12541_v38  ;;  %11819 = vmatmul.mubr.bf16.gmra.mrb[144].mxu0 %v12540_v40 }
 0x55a   : > { %16791 = vst [vmem:[#allocation17_spill] sm:$0xff] %v15338_v5  ;;  %v5166_v48 = vadd.f32 %v4982_v8, %v16792_v6  ;;  %v15346_v0 = vadd.f32 %v5819_v55, %v5162_v11  ;;  %11638 = vmatprep.mubr.msk.bf16.mxu1 %vm12598_vm0, %v16593_v27  ;;  %11822 = vmatprep.mubr.msk.bf16.mxu0 %vm12598_vm0, %v16593_v27  ;;  %v16794_v55 = vld [vmem:[#allocation21_spill] sm:$0xff] }
 0x55c   : > { %16793 = vst [vmem:[#allocation18_spill] sm:$0xff] %v15346_v0  ;;  %v4688_v14 = vpop.f32.mrb[40].mxu1  ;;  %v5524_v2 = vpop.f32.mrb[40].mxu0 }
 0x55d   : > { %v4983_v26 = vrot.slane %v4688_v14, 4  ;;  %v5820_v24 = vrot.slane %v5524_v2, 4  ;;  %v11328_v19 = vpop.f32.mrb[41].mxu1  ;;  %v11512_v54 = vpop.f32.mrb[41].mxu0  ;;  %v12542_v2 = vld [vmem:[%s16547_s0 + $0x78] sm:$0xff]  }
 0x55e   : > { %v4691_v34 = vpop.f32.mrb[42].mxu1  ;;  %v5527_v44 = vpop.f32.mrb[42].mxu0 }
 0x55f   : > { %v4984_v40 = vsel %vm4863_vm4, %v4981_v35, %v4983_v26  ;;  %v5821_v8 = vsel %vm4863_vm4, %v5818_v3, %v5820_v24  ;;  %v4985_v11 = vrot.slane %v4691_v34, 4  ;;  %v5822_v62 = vrot.slane %v5527_v44, 4  ;;  %v11513_v15 = vpop.f32.mrb[43].mxu0  ;;  %v11329_v33 = vpop.f32.mrb[43].mxu1  ;;  %v16796_v35 = vld [vmem:[#allocation22_spill] sm:$0xff] }
 0x560   : > { %v5167_v6 = vadd.f32 %v4984_v40, %v16794_v55  ;;  %v15355_v0 = vadd.f32 %v5821_v8, %v5163_v52 }
 0x561   : > { %v4986_v5 = vsel %vm4863_vm4, %v4983_v26, %v4985_v11  ;;  %v5823_v14 = vsel %vm4863_vm4, %v5820_v24, %v5822_v62  ;;  %11639 = vmatmul.mubr.bf16.gmra.mrb[148].mxu1 %v12542_v2  ;;  %11823 = vmatmul.mubr.bf16.gmra.mrb[148].mxu0 %v12541_v38 }
 0x562   : > { %16795 = vst [vmem:[#allocation19_spill] sm:$0xff] %v15355_v0  ;;  %v5168_v3 = vadd.f32 %v4986_v5, %v16796_v35  ;;  %v15363_v19 = vadd.f32 %v5823_v14, %v5164_v58  ;;  %11642 = vmatprep.mubr.msk.bf16.mxu1 %vm12598_vm0, %v16593_v27  ;;  %11826 = vmatprep.mubr.msk.bf16.mxu0 %vm12598_vm0, %v16593_v27  ;;  %v16798_v14 = vld [vmem:[#allocation23_spill] sm:$0xff] }
 0x564   : > { %16797 = vst [vmem:[#allocation20_spill] sm:$0xff] %v15363_v19  ;;  %v4696_v52 = vpop.f32.mrb[44].mxu1  ;;  %v5532_v26 = vpop.f32.mrb[44].mxu0 }
 0x565   : > { %v4987_v54 = vrot.slane %v4696_v52, 4  ;;  %v5824_v24 = vrot.slane %v5532_v26, 4  ;;  %v11332_v34 = vpop.f32.mrb[45].mxu1  ;;  %v11516_v44 = vpop.f32.mrb[45].mxu0  ;;  %v12543_v26 = vld [vmem:[%s16547_s0 + $0x80] sm:$0xff]  }
 0x566   : > { %v4699_v40 = vpop.f32.mrb[46].mxu1  ;;  %v5535_v8 = vpop.f32.mrb[46].mxu0 }
 0x567   : > { %v4988_v38 = vsel %vm4863_vm4, %v4985_v11, %v4987_v54  ;;  %v5825_v5 = vsel %vm4863_vm4, %v5822_v62, %v5824_v24  ;;  %v4989_v58 = vrot.slane %v4699_v40, 4  ;;  %v5826_v15 = vrot.slane %v5535_v8, 4  ;;  %v11517_v33 = vpop.f32.mrb[47].mxu0  ;;  %v11333_v55 = vpop.f32.mrb[47].mxu1  ;;  %v16800_v11 = vld [vmem:[#allocation24_spill] sm:$0xff] }
 0x568   : > { %v5169_v35 = vadd.f32 %v4988_v38, %v16798_v14  ;;  %v15372_v19 = vadd.f32 %v5825_v5, %v5165_v31 }
 0x569   : > { %v4990_v0 = vsel %vm4863_vm4, %v4987_v54, %v4989_v58  ;;  %v5827_v52 = vsel %vm4863_vm4, %v5824_v24, %v5826_v15  ;;  %11643 = vmatmul.mubr.bf16.gmra.mrb[152].mxu1 %v12543_v26  ;;  %11827 = vmatmul.mubr.bf16.gmra.mrb[152].mxu0 %v12542_v2 }
 0x56a   : > { %16799 = vst [vmem:[#allocation21_spill] sm:$0xff] %v15372_v19  ;;  %v5170_v62 = vadd.f32 %v4990_v0, %v16800_v11  ;;  %v15380_v34 = vadd.f32 %v5827_v52, %v5166_v48  ;;  %11646 = vmatprep.mubr.msk.bf16.mxu1 %vm12598_vm0, %v16593_v27  ;;  %11830 = vmatprep.mubr.msk.bf16.mxu0 %vm12598_vm0, %v16593_v27  ;;  %v16802_v52 = vld [vmem:[#allocation25_spill] sm:$0xff] }
 0x56c   : > { %16801 = vst [vmem:[#allocation22_spill] sm:$0xff] %v15380_v34  ;;  %v4704_v31 = vpop.f32.mrb[48].mxu1  ;;  %v5540_v54 = vpop.f32.mrb[48].mxu0 }
 0x56d   : > { %v4991_v44 = vrot.slane %v4704_v31, 4  ;;  %v5828_v24 = vrot.slane %v5540_v54, 4  ;;  %v11336_v40 = vpop.f32.mrb[49].mxu1  ;;  %v11520_v8 = vpop.f32.mrb[49].mxu0  ;;  %v12544_v54 = vld [vmem:[%s16547_s0 + $0x88] sm:$0xff]  }
 0x56e   : > { %v4707_v38 = vpop.f32.mrb[50].mxu1  ;;  %v5543_v5 = vpop.f32.mrb[50].mxu0 }
 0x56f   : > { %v4992_v2 = vsel %vm4863_vm4, %v4989_v58, %v4991_v44  ;;  %v5829_v0 = vsel %vm4863_vm4, %v5826_v15, %v5828_v24  ;;  %v4993_v48 = vrot.slane %v4707_v38, 4  ;;  %v5830_v33 = vrot.slane %v5543_v5, 4  ;;  %v11521_v55 = vpop.f32.mrb[51].mxu0  ;;  %v11337_v14 = vpop.f32.mrb[51].mxu1  ;;  %v16804_v58 = vld [vmem:[#allocation26_spill] sm:$0xff] }
 0x570   : > { %v5171_v11 = vadd.f32 %v4992_v2, %v16802_v52  ;;  %v15389_v34 = vadd.f32 %v5829_v0, %v5167_v6 }
 0x571   : > { %v4994_v19 = vsel %vm4863_vm4, %v4991_v44, %v4993_v48  ;;  %v5831_v31 = vsel %vm4863_vm4, %v5828_v24, %v5830_v33  ;;  %11647 = vmatmul.mubr.bf16.gmra.mrb[156].mxu1 %v12544_v54  ;;  %11831 = vmatmul.mubr.bf16.gmra.mrb[156].mxu0 %v12543_v26 }
 0x572   : > { %16803 = vst [vmem:[#allocation23_spill] sm:$0xff] %v15389_v34  ;;  %v5172_v15 = vadd.f32 %v4994_v19, %v16804_v58  ;;  %v15397_v40 = vadd.f32 %v5831_v31, %v5168_v3  ;;  %11650 = vmatprep.mubr.msk.bf16.mxu1 %vm12598_vm0, %v16593_v27  ;;  %11834 = vmatprep.mubr.msk.bf16.mxu0 %vm12598_vm0, %v16593_v27  ;;  %v16806_v31 = vld [vmem:[#allocation27_spill] sm:$0xff] }
 0x574   : > { %16805 = vst [vmem:[#allocation24_spill] sm:$0xff] %v15397_v40  ;;  %v4712_v6 = vpop.f32.mrb[52].mxu1  ;;  %v5548_v44 = vpop.f32.mrb[52].mxu0 }
 0x575   : > { %v4995_v8 = vrot.slane %v4712_v6, 4  ;;  %v5832_v24 = vrot.slane %v5548_v44, 4  ;;  %v11340_v38 = vpop.f32.mrb[53].mxu1  ;;  %v11524_v5 = vpop.f32.mrb[53].mxu0  ;;  %v12545_v44 = vld [vmem:[%s16547_s0 + $0x90] sm:$0xff]  }
 0x576   : > { %v4715_v2 = vpop.f32.mrb[54].mxu1  ;;  %v5551_v0 = vpop.f32.mrb[54].mxu0 }
 0x577   : > { %v4996_v26 = vsel %vm4863_vm4, %v4993_v48, %v4995_v8  ;;  %v5833_v19 = vsel %vm4863_vm4, %v5830_v33, %v5832_v24  ;;  %v4997_v3 = vrot.slane %v4715_v2, 4  ;;  %v5834_v55 = vrot.slane %v5551_v0, 4  ;;  %v11525_v14 = vpop.f32.mrb[55].mxu0  ;;  %v11341_v52 = vpop.f32.mrb[55].mxu1  ;;  %v16808_v48 = vld [vmem:[#allocation28_spill] sm:$0xff] }
 0x578   : > { %v5173_v58 = vadd.f32 %v4996_v26, %v16806_v31  ;;  %v15406_v40 = vadd.f32 %v5833_v19, %v5169_v35 }
 0x579   : > { %v4998_v34 = vsel %vm4863_vm4, %v4995_v8, %v4997_v3  ;;  %v5835_v6 = vsel %vm4863_vm4, %v5832_v24, %v5834_v55  ;;  %11651 = vmatmul.mubr.bf16.gmra.mrb[160].mxu1 %v12545_v44  ;;  %11835 = vmatmul.mubr.bf16.gmra.mrb[160].mxu0 %v12544_v54 }
 0x57a   : > { %16807 = vst [vmem:[#allocation25_spill] sm:$0xff] %v15406_v40  ;;  %v5174_v33 = vadd.f32 %v4998_v34, %v16808_v48  ;;  %v15414_v38 = vadd.f32 %v5835_v6, %v5170_v62  ;;  %11654 = vmatprep.mubr.msk.bf16.mxu1 %vm12598_vm0, %v16593_v27  ;;  %11838 = vmatprep.mubr.msk.bf16.mxu0 %vm12598_vm0, %v16593_v27  ;;  %v16810_v6 = vld [vmem:[#allocation29_spill] sm:$0xff] }
 0x57c   : > { %16809 = vst [vmem:[#allocation26_spill] sm:$0xff] %v15414_v38  ;;  %v4720_v35 = vpop.f32.mrb[56].mxu1  ;;  %v5556_v8 = vpop.f32.mrb[56].mxu0 }
 0x57d   : > { %v4999_v5 = vrot.slane %v4720_v35, 4  ;;  %v5836_v24 = vrot.slane %v5556_v8, 4  ;;  %v11344_v2 = vpop.f32.mrb[57].mxu1  ;;  %v11528_v0 = vpop.f32.mrb[57].mxu0  ;;  %v12546_v8 = vld [vmem:[%s16547_s0 + $0x98] sm:$0xff]  }
 0x57e   : > { %v4723_v26 = vpop.f32.mrb[58].mxu1  ;;  %v5559_v19 = vpop.f32.mrb[58].mxu0 }
 0x57f   : > { %v5000_v54 = vsel %vm4863_vm4, %v4997_v3, %v4999_v5  ;;  %v5837_v34 = vsel %vm4863_vm4, %v5834_v55, %v5836_v24  ;;  %v5001_v62 = vrot.slane %v4723_v26, 4  ;;  %v5838_v14 = vrot.slane %v5559_v19, 4  ;;  %v11529_v52 = vpop.f32.mrb[59].mxu0  ;;  %v11345_v31 = vpop.f32.mrb[59].mxu1  ;;  %v16812_v3 = vld [vmem:[#allocation30_spill] sm:$0xff] }
 0x580   : > { %v5175_v48 = vadd.f32 %v5000_v54, %v16810_v6  ;;  %v15423_v38 = vadd.f32 %v5837_v34, %v5171_v11 }
 0x581   : > { %v5002_v40 = vsel %vm4863_vm4, %v4999_v5, %v5001_v62  ;;  %v5839_v35 = vsel %vm4863_vm4, %v5836_v24, %v5838_v14  ;;  %11655 = vmatmul.mubr.bf16.gmra.mrb[164].mxu1 %v12546_v8  ;;  %11839 = vmatmul.mubr.bf16.gmra.mrb[164].mxu0 %v12545_v44 }
 0x582   : > { %16811 = vst [vmem:[#allocation27_spill] sm:$0xff] %v15423_v38  ;;  %v5176_v55 = vadd.f32 %v5002_v40, %v16812_v3  ;;  %v15431_v2 = vadd.f32 %v5839_v35, %v5172_v15  ;;  %11658 = vmatprep.mubr.msk.bf16.mxu1 %vm12598_vm0, %v16593_v27  ;;  %11842 = vmatprep.mubr.msk.bf16.mxu0 %vm12598_vm0, %v16593_v27  ;;  %v16814_v35 = vld [vmem:[#allocation31_spill] sm:$0xff] }
 0x584   : > { %16813 = vst [vmem:[#allocation28_spill] sm:$0xff] %v15431_v2  ;;  %v4728_v11 = vpop.f32.mrb[60].mxu1  ;;  %v5564_v5 = vpop.f32.mrb[60].mxu0 }
 0x585   : > { %v5003_v0 = vrot.slane %v4728_v11, 4  ;;  %v5840_v24 = vrot.slane %v5564_v5, 4  ;;  %v11348_v26 = vpop.f32.mrb[61].mxu1  ;;  %v11532_v19 = vpop.f32.mrb[61].mxu0  ;;  %v12547_v5 = vld [vmem:[%s16547_s0 + $0xa0] sm:$0xff]  }
 0x586   : > { %v4731_v54 = vpop.f32.mrb[62].mxu1  ;;  %v5567_v34 = vpop.f32.mrb[62].mxu0 }
 0x587   : > { %v5004_v44 = vsel %vm4863_vm4, %v5001_v62, %v5003_v0  ;;  %v5841_v40 = vsel %vm4863_vm4, %v5838_v14, %v5840_v24  ;;  %v5005_v15 = vrot.slane %v4731_v54, 4  ;;  %v5842_v52 = vrot.slane %v5567_v34, 4  ;;  %v11533_v31 = vpop.f32.mrb[63].mxu0  ;;  %v11349_v6 = vpop.f32.mrb[63].mxu1 }
 0x588   : > { %v5177_v3 = vadd.f32 %v5004_v44, %v16814_v35  ;;  %v15440_v2 = vadd.f32 %v5841_v40, %v5173_v58  ;;  %v16816_v6 = vld [vmem:[#allocation32_spill] sm:$0xff] }
 0x589   : > { %v5006_v38 = vsel %vm4863_vm4, %v5003_v0, %v5005_v15  ;;  %v5843_v11 = vsel %vm4863_vm4, %v5840_v24, %v5842_v52  ;;  %11659 = vmatmul.mubr.bf16.gmra.mrb[168].mxu1 %v12547_v5  ;;  %11843 = vmatmul.mubr.bf16.gmra.mrb[168].mxu0 %v12546_v8 }
 0x58a   : > { %v5178_v62 = vadd.f32 %v5006_v38, %v14767_v37  ;;  %v15448_v14 = vadd.f32 %v5843_v11, %v5174_v33  ;;  %11662 = vmatprep.mubr.msk.bf16.mxu1 %vm12598_vm0, %v16593_v27  ;;  %11846 = vmatprep.mubr.msk.bf16.mxu0 %vm12598_vm0, %v16593_v27 }
 0x58c   : > { %16815 = vst [vmem:[#allocation29_spill] sm:$0xff] %v15448_v14  ;;  %v4736_v58 = vpop.f32.mrb[64].mxu1  ;;  %v5572_v0 = vpop.f32.mrb[64].mxu0 }
 0x58d   : > { %v5007_v26 = vrot.slane %v4736_v58, 4  ;;  %v5844_v24 = vrot.slane %v5572_v0, 4  ;;  %v11352_v19 = vpop.f32.mrb[65].mxu1  ;;  %v11536_v54 = vpop.f32.mrb[65].mxu0  ;;  %v12548_v0 = vld [vmem:[%s16547_s0 + $0xa8] sm:$0xff]  }
 0x58e   : > { %v4739_v34 = vpop.f32.mrb[66].mxu1  ;;  %v5575_v44 = vpop.f32.mrb[66].mxu0 }
 0x58f   : > { %v5008_v8 = vsel %vm4863_vm4, %v5005_v15, %v5007_v26  ;;  %v5845_v37 = vsel %vm4863_vm4, %v5842_v52, %v5844_v24  ;;  %v5009_v33 = vrot.slane %v4739_v34, 4  ;;  %v5846_v38 = vrot.slane %v5575_v44, 4  ;;  %v11537_v40 = vpop.f32.mrb[67].mxu0  ;;  %v11353_v31 = vpop.f32.mrb[67].mxu1  ;;  %v16818_v15 = vld [vmem:[#allocation33_spill] sm:$0xff] }
 0x590   : > { %v5179_v35 = vadd.f32 %v5008_v8, %v16816_v6  ;;  %v15457_v11 = vadd.f32 %v5845_v37, %v5175_v48 }
 0x591   : > { %v5010_v14 = vsel %vm4863_vm4, %v5007_v26, %v5009_v33  ;;  %v5847_v58 = vsel %vm4863_vm4, %v5844_v24, %v5846_v38  ;;  %11663 = vmatmul.mubr.bf16.gmra.mrb[172].mxu1 %v12548_v0  ;;  %11847 = vmatmul.mubr.bf16.gmra.mrb[172].mxu0 %v12547_v5 }
 0x592   : > { %16817 = vst [vmem:[#allocation30_spill] sm:$0xff] %v15457_v11  ;;  %v5180_v52 = vadd.f32 %v5010_v14, %v16818_v15  ;;  %v15465_v19 = vadd.f32 %v5847_v58, %v5176_v55  ;;  %11666 = vmatprep.mubr.msk.bf16.mxu1 %vm12598_vm0, %v16593_v27  ;;  %11850 = vmatprep.mubr.msk.bf16.mxu0 %vm12598_vm0, %v16593_v27  ;;  %v16820_v58 = vld [vmem:[#allocation34_spill] sm:$0xff] }
 0x594   : > { %16819 = vst [vmem:[#allocation31_spill] sm:$0xff] %v15465_v19  ;;  %v4744_v48 = vpop.f32.mrb[68].mxu1  ;;  %v5580_v26 = vpop.f32.mrb[68].mxu0 }
 0x595   : > { %v5011_v54 = vrot.slane %v4744_v48, 4  ;;  %v5848_v24 = vrot.slane %v5580_v26, 4  ;;  %v11356_v34 = vpop.f32.mrb[69].mxu1  ;;  %v11540_v44 = vpop.f32.mrb[69].mxu0  ;;  %v12549_v26 = vld [vmem:[%s16547_s0 + $0xb0] sm:$0xff]  }
 0x596   : > { %v4747_v8 = vpop.f32.mrb[70].mxu1  ;;  %v5583_v37 = vpop.f32.mrb[70].mxu0 }
 0x597   : > { %v5012_v5 = vsel %vm4863_vm4, %v5009_v33, %v5011_v54  ;;  %v5849_v14 = vsel %vm4863_vm4, %v5846_v38, %v5848_v24  ;;  %v5013_v55 = vrot.slane %v4747_v8, 4  ;;  %v5850_v40 = vrot.slane %v5583_v37, 4  ;;  %v11541_v31 = vpop.f32.mrb[71].mxu0  ;;  %v11357_v6 = vpop.f32.mrb[71].mxu1 }
 0x598   : > { %v5181_v15 = vadd.f32 %v5012_v5, %v16820_v58  ;;  %v15474_v19 = vadd.f32 %v5849_v14, %v5177_v3 }
 0x599   : > { %v5014_v11 = vsel %vm4863_vm4, %v5011_v54, %v5013_v55  ;;  %v5851_v48 = vsel %vm4863_vm4, %v5848_v24, %v5850_v40  ;;  %11667 = vmatmul.mubr.bf16.gmra.mrb[176].mxu1 %v12549_v26  ;;  %11851 = vmatmul.mubr.bf16.gmra.mrb[176].mxu0 %v12548_v0 }
 0x59a   : > { %v5182_v33 = vadd.f32 %v5014_v11, %v14803_v39  ;;  %v15482_v38 = vadd.f32 %v5851_v48, %v5178_v62  ;;  %11670 = vmatprep.mubr.msk.bf16.mxu1 %vm12598_vm0, %v16593_v27  ;;  %11854 = vmatprep.mubr.msk.bf16.mxu0 %vm12598_vm0, %v16593_v27 }
 0x59c   : > { %v4752_v3 = vpop.f32.mrb[72].mxu1  ;;  %v5588_v54 = vpop.f32.mrb[72].mxu0 }
 0x59d   : > { %v5015_v34 = vrot.slane %v4752_v3, 4  ;;  %v5852_v24 = vrot.slane %v5588_v54, 4  ;;  %v11360_v44 = vpop.f32.mrb[73].mxu1  ;;  %v11544_v8 = vpop.f32.mrb[73].mxu0  ;;  %v12550_v54 = vld [vmem:[%s16547_s0 + $0xb8] sm:$0xff]  }
 0x59e   : > { %v4755_v37 = vpop.f32.mrb[74].mxu1  ;;  %v5591_v5 = vpop.f32.mrb[74].mxu0 }
 0x59f   : > { %v5016_v0 = vsel %vm4863_vm4, %v5013_v55, %v5015_v34  ;;  %v5853_v39 = vsel %vm4863_vm4, %v5850_v40, %v5852_v24  ;;  %v5017_v62 = vrot.slane %v4755_v37, 4  ;;  %v5854_v11 = vrot.slane %v5591_v5, 4  ;;  %v11545_v14 = vpop.f32.mrb[75].mxu0  ;;  %v11361_v31 = vpop.f32.mrb[75].mxu1 }
 0x5a0   : > { %v5183_v6 = vadd.f32 %v5016_v0, %v14808_v45  ;;  %v15491_v58 = vadd.f32 %v5853_v39, %v5179_v35 }
 0x5a1   : > { %v5018_v48 = vsel %vm4863_vm4, %v5015_v34, %v5017_v62  ;;  %v5855_v3 = vsel %vm4863_vm4, %v5852_v24, %v5854_v11  ;;  %11671 = vmatmul.mubr.bf16.gmra.mrb[180].mxu1 %v12550_v54  ;;  %11855 = vmatmul.mubr.bf16.gmra.mrb[180].mxu0 %v12549_v26 }
 0x5a2   : > { %v5184_v55 = vadd.f32 %v5018_v48, %v14820_v28  ;;  %v15499_v40 = vadd.f32 %v5855_v3, %v5180_v52  ;;  %11674 = vmatprep.mubr.msk.bf16.mxu1 %vm12598_vm0, %v16593_v27  ;;  %11858 = vmatprep.mubr.msk.bf16.mxu0 %vm12598_vm0, %v16593_v27 }
 0x5a4   : > { %v4760_v45 = vpop.f32.mrb[76].mxu1  ;;  %v5596_v35 = vpop.f32.mrb[76].mxu0 }
 0x5a5   : > { %v5019_v34 = vrot.slane %v4760_v45, 4  ;;  %v5856_v24 = vrot.slane %v5596_v35, 4  ;;  %v11364_v44 = vpop.f32.mrb[77].mxu1  ;;  %v11548_v8 = vpop.f32.mrb[77].mxu0  ;;  %v12551_v35 = vld [vmem:[%s16547_s0 + $0xc0] sm:$0xff]  }
 0x5a6   : > { %v4763_v37 = vpop.f32.mrb[78].mxu1  ;;  %v5599_v5 = vpop.f32.mrb[78].mxu0 }
 0x5a7   : > { %v5020_v26 = vsel %vm4863_vm4, %v5017_v62, %v5019_v34  ;;  %v5857_v28 = vsel %vm4863_vm4, %v5854_v11, %v5856_v24  ;;  %v5021_v52 = vrot.slane %v4763_v37, 4  ;;  %v5858_v0 = vrot.slane %v5599_v5, 4  ;;  %v11549_v39 = vpop.f32.mrb[79].mxu0  ;;  %v11365_v14 = vpop.f32.mrb[79].mxu1 }
 0x5a8   : > { %v5185_v31 = vadd.f32 %v5020_v26, %v14825_v51  ;;  %v15508_v48 = vadd.f32 %v5857_v28, %v5181_v15  ;;  %v16822_v14 = vld [vmem:[#allocation35_spill] sm:$0xff] }
 0x5a9   : > { %v5022_v3 = vsel %vm4863_vm4, %v5019_v34, %v5021_v52  ;;  %v5859_v45 = vsel %vm4863_vm4, %v5856_v24, %v5858_v0  ;;  %11675 = vmatmul.mubr.bf16.gmra.mrb[184].mxu1 %v12551_v35  ;;  %11859 = vmatmul.mubr.bf16.gmra.mrb[184].mxu0 %v12550_v54 }
 0x5aa   : > { %v5186_v62 = vadd.f32 %v5022_v3, %v14837_v16  ;;  %v15516_v11 = vadd.f32 %v5859_v45, %v5182_v33  ;;  %11678 = vmatprep.mubr.msk.bf16.mxu1 %vm12598_vm0, %v16593_v27  ;;  %11862 = vmatprep.mubr.msk.bf16.mxu0 %vm12598_vm0, %v16593_v27 }
 0x5ac   : > { %16821 = vst [vmem:[#allocation32_spill] sm:$0xff] %v15516_v11  ;;  %v4768_v51 = vpop.f32.mrb[80].mxu1  ;;  %v5604_v15 = vpop.f32.mrb[80].mxu0 }
 0x5ad   : > { %v5023_v34 = vrot.slane %v4768_v51, 4  ;;  %v5860_v24 = vrot.slane %v5604_v15, 4  ;;  %v11368_v44 = vpop.f32.mrb[81].mxu1  ;;  %v11552_v8 = vpop.f32.mrb[81].mxu0  ;;  %v12552_v15 = vld [vmem:[%s16547_s0 + $0xc8] sm:$0xff]  }
 0x5ae   : > { %v4771_v37 = vpop.f32.mrb[82].mxu1  ;;  %v5607_v5 = vpop.f32.mrb[82].mxu0 }
 0x5af   : > { %v5024_v54 = vsel %vm4863_vm4, %v5021_v52, %v5023_v34  ;;  %v5861_v16 = vsel %vm4863_vm4, %v5858_v0, %v5860_v24  ;;  %v5025_v33 = vrot.slane %v4771_v37, 4  ;;  %v5862_v26 = vrot.slane %v5607_v5, 4  ;;  %v11553_v28 = vpop.f32.mrb[83].mxu0  ;;  %v11369_v39 = vpop.f32.mrb[83].mxu1  ;;  %v16823_v52 = vld [vmem:[#allocation36_spill] sm:$0xff] }
 0x5b0   : > { %v5187_v3 = vadd.f32 %v5024_v54, %v16822_v14  ;;  %v15525_v45 = vadd.f32 %v5861_v16, %v5183_v6  ;;  %v12553_v39 = vld [vmem:[%s16547_s0 + $0xd0] sm:$0xff]  }
 0x5b1   : > { %v5026_v11 = vsel %vm4863_vm4, %v5023_v34, %v5025_v33  ;;  %v5863_v51 = vsel %vm4863_vm4, %v5860_v24, %v5862_v26  ;;  %11679 = vmatmul.mubr.bf16.gmra.mrb[188].mxu1 %v12552_v15  ;;  %11863 = vmatmul.mubr.bf16.gmra.mrb[188].mxu0 %v12551_v35 }
 0x5b2   : > { %v5188_v0 = vadd.f32 %v5026_v11, %v16823_v52  ;;  %v15533_v44 = vadd.f32 %v5863_v51, %v5184_v55  ;;  %11682 = vmatprep.mubr.msk.bf16.mxu1 %vm12598_vm0, %v16593_v27  ;;  %11866 = vmatprep.mubr.msk.bf16.mxu0 %vm12598_vm0, %v16593_v27 }
 0x5b4   : > { %16824 = vst [vmem:[#allocation33_spill] sm:$0xff] %v15533_v44  ;;  %v5612_v6 = vpop.f32.mrb[84].mxu0  ;;  %v4776_v34 = vpop.f32.mrb[84].mxu1 }
 0x5b5   : > { %v5864_v8 = vrot.slane %v5612_v6, 4  ;;  %v11556_v24 = vpop.f32.mrb[85].mxu0  ;;  %v11372_v37 = vpop.f32.mrb[85].mxu1 }
 0x5b6   : > { %v5615_v5 = vpop.f32.mrb[86].mxu0  ;;  %v4778_v54 = vpop.f32.mrb[86].mxu1 }
 0x5b7   : > { %v5865_v16 = vsel %vm4863_vm4, %v5862_v26, %v5864_v8  ;;  %v5866_v35 = vrot.slane %v5615_v5, 4  ;;  %v11557_v33 = vpop.f32.mrb[87].mxu0  ;;  %v11373_v11 = vpop.f32.mrb[87].mxu1 }
 0x5b8   : > { %v15540_v55 = vadd.f32 %v5865_v16, %v5185_v31  ;;  %v12554_v16 = vld [vmem:[%s16547_s0 + $0xd8] sm:$0xff]  }
 0x5b9   : > { %v5867_v28 = vsel %vm4863_vm4, %v5864_v8, %v5866_v35  ;;  %11683 = vmatmul.mubr.bf16.gmra.mrb[192].mxu1 %v12553_v39  ;;  %11867 = vmatmul.mubr.bf16.gmra.mrb[192].mxu0 %v12552_v15 }
 0x5ba   : > { %16825 = vst [vmem:[#allocation34_spill] sm:$0xff] %v15540_v55  ;;  %v15546_v14 = vadd.f32 %v5867_v28, %v5186_v62  ;;  %11686 = vmatprep.mubr.msk.bf16.mxu1 %vm12598_vm0, %v16593_v27  ;;  %11870 = vmatprep.mubr.msk.bf16.mxu0 %vm12598_vm0, %v16593_v27 }
 0x5bc   : > { %16826 = vst [vmem:[#allocation35_spill] sm:$0xff] %v15546_v14  ;;  %v5620_v26 = vpop.f32.mrb[88].mxu0  ;;  %v6133_v51 = vpop.f32.mrb[88].mxu1 }
 0x5bd   : > { %v5868_v31 = vrot.slane %v5620_v26, 4  ;;  %v11560_v52 = vpop.f32.mrb[89].mxu0  ;;  %v11580_v6 = vpop.f32.mrb[89].mxu1 }
 0x5be   : > { %v5623_v34 = vpop.f32.mrb[90].mxu0  ;;  %v6135_v8 = vpop.f32.mrb[90].mxu1 }
 0x5bf   : > { %v5869_v24 = vsel %vm4863_vm4, %v5866_v35, %v5868_v31  ;;  %v5870_v37 = vrot.slane %v5623_v34, 4  ;;  %v11561_v5 = vpop.f32.mrb[91].mxu0  ;;  %v11581_v15 = vpop.f32.mrb[91].mxu1 }
 0x5c0   : > { %v15553_v62 = vadd.f32 %v5869_v24, %v5187_v3 }
 0x5c1   : > { %v5871_v54 = vsel %vm4863_vm4, %v5868_v31, %v5870_v37  ;;  %11687 = vmatmul.mubr.bf16.gmra.mrb[196].mxu1 %v12554_v16  ;;  %11871 = vmatmul.mubr.bf16.gmra.mrb[196].mxu0 %v12553_v39  ;;  %v12555_v39 = vld [vmem:[%s16547_s0 + $0xe0] sm:$0xff]  }
 0x5c2   : > { %16827 = vst [vmem:[#allocation36_spill] sm:$0xff] %v15553_v62  ;;  %v15559_v33 = vadd.f32 %v5871_v54, %v5188_v0  ;;  %11690 = vmatprep.mubr.msk.bf16.mxu1 %vm12598_vm0, %v16593_v27  ;;  %11874 = vmatprep.mubr.msk.bf16.mxu0 %vm12598_vm0, %v16593_v27 }
 0x5c4   : > { %16828 = vst [vmem:[#allocation44_spill] sm:$0xff] %v15559_v33  ;;  %v6979_v35 = vpop.f32.mrb[92].mxu0  ;;  %v6139_v11 = vpop.f32.mrb[92].mxu1 }
 0x5c5   : > { %v11768_v3 = vpop.f32.mrb[93].mxu0  ;;  %v11584_v28 = vpop.f32.mrb[93].mxu1  ;;  %v12556_v11 = vld [vmem:[%s16547_s0 + $0xe8] sm:$0xff]  }
 0x5c6   : > { %v6981_v26 = vpop.f32.mrb[94].mxu0  ;;  %v6141_v51 = vpop.f32.mrb[94].mxu1 }
 0x5c7   : > { %v11769_v31 = vpop.f32.mrb[95].mxu0  ;;  %v11585_v52 = vpop.f32.mrb[95].mxu1 }
 0x5c9   : > { %11691 = vmatmul.mubr.bf16.gmra.mrb[200].mxu1 %v12555_v39  ;;  %11875 = vmatmul.mubr.bf16.gmra.mrb[200].mxu0 %v12554_v16 }
 0x5ca   : > { %11694 = vmatprep.mubr.msk.bf16.mxu1 %vm12598_vm0, %v16593_v27  ;;  %11878 = vmatprep.mubr.msk.bf16.mxu0 %vm12598_vm0, %v16593_v27 }
 0x5cc   : > { %v6145_v0 = vpop.f32.mrb[96].mxu1  ;;  %v6985_v6 = vpop.f32.mrb[96].mxu0 }
 0x5cd   : > { %v6555_v34 = vrot.slane %v6145_v0, 5  ;;  %v11588_v8 = vpop.f32.mrb[97].mxu1  ;;  %v11772_v24 = vpop.f32.mrb[97].mxu0 }
 0x5ce   : > { %v6148_v37 = vpop.f32.mrb[98].mxu1  ;;  %v6987_v5 = vpop.f32.mrb[98].mxu0 }
 0x5cf   : > { %v6556_v15 = vrot.slane %v6148_v37, 5  ;;  %v11773_v54 = vpop.f32.mrb[99].mxu0  ;;  %v11589_v35 = vpop.f32.mrb[99].mxu1 }
 0x5d1   : > { %v6557_v16 = vsel %vm6554_vm5, %v6555_v34, %v6556_v15  ;;  %11695 = vmatmul.mubr.bf16.gmra.mrb[204].mxu1 %v12556_v11  ;;  %11879 = vmatmul.mubr.bf16.gmra.mrb[204].mxu0 %v12555_v39 }
 0x5d2   : > { %v6799_v3 = vadd.f32 %v6557_v16, %v14891_v53  ;;  %11698 = vmatprep.mubr.msk.bf16.mxu1 %vm12598_vm0, %v16593_v27  ;;  %11882 = vmatprep.mubr.msk.bf16.mxu0 %vm12598_vm0, %v16593_v27  ;;  %v15592_v16 = vld [vmem:[%s15585_s25] ss:$0 sm:$0xff] }
 0x5d4   : > { %v6153_v28 = vpop.f32.mrb[100].mxu1  ;;  %v6991_v26 = vpop.f32.mrb[100].mxu0 }
 0x5d5   : > { %v6558_v51 = vrot.slane %v6153_v28, 5  ;;  %v11592_v31 = vpop.f32.mrb[101].mxu1  ;;  %v11776_v52 = vpop.f32.mrb[101].mxu0  ;;  %v7401_v6 = vrot.slane %v6991_v26, 6  ;;  %v12557_v28 = vld [vmem:[%s16547_s0 + $0xf0] sm:$0xff]  }
 0x5d6   : > { %v6156_v0 = vpop.f32.mrb[102].mxu1  ;;  %v6994_v39 = vpop.f32.mrb[102].mxu0 }
 0x5d7   : > { %v6559_v53 = vsel %vm6554_vm5, %v6556_v15, %v6558_v51  ;;  %v6560_v34 = vrot.slane %v6156_v0, 5  ;;  %v7402_v8 = vrot.slane %v6994_v39, 6  ;;  %v11777_v24 = vpop.f32.mrb[103].mxu0  ;;  %v11593_v37 = vpop.f32.mrb[103].mxu1 }
 0x5d8   : > { %v6800_v5 = vadd.f32 %v6559_v53, %v14896_v20 }
 0x5d9   : > { %v6561_v54 = vsel %vm6554_vm5, %v6558_v51, %v6560_v34  ;;  %v7403_v35 = vsel %vm7400_vm6, %v7401_v6, %v7402_v8  ;;  %11699 = vmatmul.mubr.bf16.gmra.mrb[208].mxu1 %v12557_v28  ;;  %11883 = vmatmul.mubr.bf16.gmra.mrb[208].mxu0 %v12556_v11 }
 0x5da   : > { %v6801_v15 = vadd.f32 %v6561_v54, %v14908_v22  ;;  %v7645_v26 = vadd.f32 %v7403_v35, %v6799_v3  ;;  %11702 = vmatprep.mubr.msk.bf16.mxu1 %vm12598_vm0, %v16593_v27  ;;  %11886 = vmatprep.mubr.msk.bf16.mxu0 %vm12598_vm0, %v16593_v27 }
 0x5dc   : > { %v15603_v20 = vadd.f32 %v15592_v16, %v7645_v26  ;;  %v6161_v51 = vpop.f32.mrb[104].mxu1  ;;  %v6999_v31 = vpop.f32.mrb[104].mxu0 }
 0x5dd   : > { %v6562_v52 = vrot.slane %v6161_v51, 5  ;;  %v7404_v0 = vrot.slane %v6999_v31, 6  ;;  %v11596_v39 = vpop.f32.mrb[105].mxu1  ;;  %v11780_v53 = vpop.f32.mrb[105].mxu0 }
 0x5de   : > { %v7814_v11 = vsub.f32 0.0, %v15603_v20  ;;  %v6164_v6 = vpop.f32.mrb[106].mxu1  ;;  %v7002_v22 = vpop.f32.mrb[106].mxu0  ;;  %v12558_v39 = vld [vmem:[%s16547_s0 + $0xf8] sm:$0xff]  }
 0x5df   : > { %v6563_v3 = vsel %vm6554_vm5, %v6560_v34, %v6562_v52  ;;  %v7405_v24 = vsel %vm7400_vm6, %v7402_v8, %v7404_v0  ;;  %v6564_v37 = vrot.slane %v6164_v6, 5  ;;  %v7406_v54 = vrot.slane %v7002_v22, 6  ;;  %v11781_v35 = vpop.f32.mrb[107].mxu0  ;;  %v11597_v33 = vpop.f32.mrb[107].mxu1 }
 0x5e0   : > { %v7895_v26 = vmul.f32 1.442695, %v7814_v11  ;;  %v6802_v62 = vadd.f32 %v6563_v3, %v14913_v1  ;;  %v7646_v14 = vadd.f32 %v7405_v24, %v6800_v5 }
 0x5e1   : > { %v6565_v51 = vsel %vm6554_vm5, %v6562_v52, %v6564_v37  ;;  %v7407_v31 = vsel %vm7400_vm6, %v7404_v0, %v7406_v54  ;;  %11703 = vmatmul.mubr.bf16.gmra.mrb[212].mxu1 %v12558_v39  ;;  %11887 = vmatmul.mubr.bf16.gmra.mrb[212].mxu0 %v12557_v28 }
 0x5e2   : > { %12097 = vpow2.f32 %v7895_v26  ;;  %v15615_v34 = vadd.f32 %v15592_v16, %v7646_v14  ;;  %v6803_v33 = vadd.f32 %v6565_v51, %v14925_v13  ;;  %v7647_v8 = vadd.f32 %v7407_v31, %v6801_v15  ;;  %11706 = vmatprep.mubr.msk.bf16.mxu1 %vm12598_vm0, %v16593_v27  ;;  %11890 = vmatprep.mubr.msk.bf16.mxu0 %vm12598_vm0, %v16593_v27 }
 0x5e4   : > { %v7815_v1 = vsub.f32 0.0, %v15615_v34  ;;  %v15624_v5 = vadd.f32 %v15592_v16, %v7647_v8  ;;  %v6169_v52 = vpop.f32.mrb[108].mxu1  ;;  %v7007_v28 = vpop.f32.mrb[108].mxu0 }
 0x5e5   : > { %v6566_v0 = vrot.slane %v6169_v52, 5  ;;  %v7408_v53 = vrot.slane %v7007_v28, 6  ;;  %v11600_v14 = vpop.f32.mrb[109].mxu1  ;;  %v11784_v11 = vpop.f32.mrb[109].mxu0 }
 0x5e6   : > { %v7897_v6 = vmul.f32 1.442695, %v7815_v1  ;;  %v7816_v13 = vsub.f32 0.0, %v15624_v5  ;;  %v6172_v15 = vpop.f32.mrb[110].mxu1  ;;  %v7010_v22 = vpop.f32.mrb[110].mxu0  ;;  %v12559_v11 = vld [vmem:[%s16547_s0 + $0x100] sm:$0xff]  }
 0x5e7   : > { %v6567_v3 = vsel %vm6554_vm5, %v6564_v37, %v6566_v0  ;;  %v7409_v24 = vsel %vm7400_vm6, %v7406_v54, %v7408_v53  ;;  %v6568_v35 = vrot.slane %v6172_v15, 5  ;;  %v7410_v26 = vrot.slane %v7010_v22, 6  ;;  %v11785_v51 = vpop.f32.mrb[111].mxu0  ;;  %v11601_v31 = vpop.f32.mrb[111].mxu1 }
 0x5e8   : > { %12099 = vpow2.f32 %v7897_v6  ;;  %v7899_v8 = vmul.f32 1.442695, %v7816_v13  ;;  %v6804_v52 = vadd.f32 %v6567_v3, %v14930_v9  ;;  %v7648_v28 = vadd.f32 %v7409_v24, %v6802_v62 }
 0x5e9   : > { %v6569_v14 = vsel %vm6554_vm5, %v6566_v0, %v6568_v35  ;;  %v7411_v1 = vsel %vm7400_vm6, %v7408_v53, %v7410_v26  ;;  %11707 = vmatmul.mubr.bf16.gmra.mrb[216].mxu1 %v12559_v11  ;;  %11891 = vmatmul.mubr.bf16.gmra.mrb[216].mxu0 %v12558_v39 }
 0x5ea   : > { %12101 = vpow2.f32 %v7899_v8  ;;  %v15636_v37 = vadd.f32 %v15592_v16, %v7648_v28  ;;  %v6805_v54 = vadd.f32 %v6569_v14, %v14942_v17  ;;  %v7649_v6 = vadd.f32 %v7411_v1, %v6803_v33  ;;  %11710 = vmatprep.mubr.msk.bf16.mxu1 %vm12598_vm0, %v16593_v27  ;;  %11894 = vmatprep.mubr.msk.bf16.mxu0 %vm12598_vm0, %v16593_v27 }
 0x5ec   : > { %v12098_v9 = vpop.eup %12097  ;;  %v7817_v62 = vsub.f32 0.0, %v15636_v37  ;;  %v15645_v0 = vadd.f32 %v15592_v16, %v7649_v6  ;;  %v6177_v39 = vpop.f32.mrb[112].mxu1 }
 0x5ed   : > { %v7015_v53 = vpop.f32.mrb[112].mxu0  ;;  %v8057_v13 = vadd.f32 1.0, %v12098_v9  ;;  %v6570_v15 = vrot.slane %v6177_v39, 5  ;;  %v11604_v3 = vpop.f32.mrb[113].mxu1 }
 0x5ee   : > { %v7412_v22 = vrot.slane %v7015_v53, 6  ;;  %v11788_v17 = vpop.f32.mrb[113].mxu0  ;;  %v7901_v33 = vmul.f32 1.442695, %v7817_v62  ;;  %v7818_v24 = vsub.f32 0.0, %v15645_v0  ;;  %v6180_v51 = vpop.f32.mrb[114].mxu1 }
 0x5ef   : > { %v7018_v31 = vpop.f32.mrb[114].mxu0  ;;  %v6571_v8 = vsel %vm6554_vm5, %v6568_v35, %v6570_v15  ;;  %v6572_v14 = vrot.slane %v6180_v51, 5  ;;  %v11605_v6 = vpop.f32.mrb[115].mxu1  ;;  %v12560_v3 = vld [vmem:[%s16547_s0 + $0x108] sm:$0xff]  }
 0x5f0   : > { %v7413_v28 = vsel %vm7400_vm6, %v7410_v26, %v7412_v22  ;;  %v11789_v1 = vpop.f32.mrb[115].mxu0  ;;  %12103 = vpow2.f32 %v7901_v33  ;;  %v7903_v55 = vmul.f32 1.442695, %v7818_v24  ;;  %v6806_v9 = vadd.f32 %v6571_v8, %v14947_v29 }
 0x5f1   : > { %v7650_v39 = vadd.f32 %v7413_v28, %v6804_v52  ;;  %12105 = vrcp.f32 %v8057_v13  ;;  %v6573_v53 = vsel %vm6554_vm5, %v6570_v15, %v6572_v14  ;;  %v7414_v62 = vrot.slane %v7018_v31, 6  ;;  %11711 = vmatmul.mubr.bf16.gmra.mrb[220].mxu1 %v12560_v3  ;;  %11895 = vmatmul.mubr.bf16.gmra.mrb[220].mxu0 %v12559_v11 }
 0x5f2   : > { %v12100_v35 = vpop.eup %12099  ;;  %12107 = vpow2.f32 %v7903_v55  ;;  %v6807_v17 = vadd.f32 %v6573_v53, %v14959_v50  ;;  %11714 = vmatprep.mubr.msk.bf16.mxu1 %vm12598_vm0, %v16593_v27  ;;  %11898 = vmatprep.mubr.msk.bf16.mxu0 %vm12598_vm0, %v16593_v27 }
 0x5f3   : > { %v15656_v26 = vadd.f32 %v15592_v16, %v7650_v39  ;;  %v8058_v29 = vadd.f32 1.0, %v12100_v35  ;;  %v7415_v52 = vsel %vm7400_vm6, %v7412_v22, %v7414_v62 }
 0x5f4   : > { %v12102_v13 = vpop.eup %12101  ;;  %v7651_v11 = vadd.f32 %v7415_v52, %v6805_v54  ;;  %v6185_v33 = vpop.f32.mrb[116].mxu1 }
 0x5f5   : > { %v7819_v15 = vsub.f32 0.0, %v15656_v26  ;;  %v7023_v55 = vpop.f32.mrb[116].mxu0  ;;  %12109 = vrcp.f32 %v8058_v29  ;;  %v8059_v24 = vadd.f32 1.0, %v12102_v13  ;;  %v6574_v51 = vrot.slane %v6185_v33, 5  ;;  %v11608_v50 = vpop.f32.mrb[117].mxu1 }
 0x5f6   : > { %v7416_v31 = vrot.slane %v7023_v55, 6  ;;  %v11792_v8 = vpop.f32.mrb[117].mxu0  ;;  %v15666_v1 = vadd.f32 %v15592_v16, %v7651_v11  ;;  %v6188_v6 = vpop.f32.mrb[118].mxu1 }
 0x5f7   : > { %v7905_v28 = vmul.f32 1.442695, %v7819_v15  ;;  %v7026_v39 = vpop.f32.mrb[118].mxu0  ;;  %v6575_v22 = vsel %vm6554_vm5, %v6572_v14, %v6574_v51  ;;  %v6576_v54 = vrot.slane %v6188_v6, 5  ;;  %v11609_v52 = vpop.f32.mrb[119].mxu1  ;;  %v12561_v14 = vld [vmem:[%s16547_s0 + $0x110] sm:$0xff]  }
 0x5f8   : > { %v7417_v53 = vsel %vm7400_vm6, %v7414_v62, %v7416_v31  ;;  %v11793_v35 = vpop.f32.mrb[119].mxu0  ;;  %v7820_v29 = vsub.f32 0.0, %v15666_v1  ;;  %v6808_v13 = vadd.f32 %v6575_v22, %v14964_v56  ;;  %v7418_v11 = vrot.slane %v7026_v39, 6 }
 0x5f9   : > { %12111 = vpow2.f32 %v7905_v28  ;;  %v7652_v33 = vadd.f32 %v7417_v53, %v6806_v9  ;;  %v6577_v15 = vsel %vm6554_vm5, %v6574_v51, %v6576_v54  ;;  %11715 = vmatmul.mubr.bf16.gmra.mrb[224].mxu1 %v12561_v14  ;;  %11899 = vmatmul.mubr.bf16.gmra.mrb[224].mxu0 %v12560_v3 }
 0x5fa   : > { %12113 = vrcp.f32 %v8059_v24  ;;  %v12104_v62 = vpop.eup %12103  ;;  %v7907_v55 = vmul.f32 1.442695, %v7820_v29  ;;  %v6809_v8 = vadd.f32 %v6577_v15, %v14976_v46  ;;  %11718 = vmatprep.mubr.msk.bf16.mxu1 %vm12598_vm0, %v16593_v27  ;;  %11902 = vmatprep.mubr.msk.bf16.mxu0 %vm12598_vm0, %v16593_v27  ;;  %v7419_v24 = vsel %vm7400_vm6, %v7416_v31, %v7418_v11 }
 0x5fb   : > { %v15678_v50 = vadd.f32 %v15592_v16, %v7652_v33  ;;  %v12106_v56 = vpop.eup %12105  ;;  %v8060_v9 = vadd.f32 1.0, %v12104_v62  ;;  %v7653_v28 = vadd.f32 %v7419_v24, %v6807_v17 }
 0x5fc   : > { %v12108_v51 = vpop.eup %12107  ;;  %12115 = vpow2.f32 %v7907_v55  ;;  %v6193_v6 = vpop.f32.mrb[120].mxu1  ;;  %v8219_v55 = vmul.f32 %v12106_v56, %v15603_v20 }
 0x5fd   : > { %v7821_v3 = vsub.f32 0.0, %v15678_v50  ;;  %v7031_v39 = vpop.f32.mrb[120].mxu0  ;;  %12117 = vrcp.f32 %v8060_v9  ;;  %v8061_v46 = vadd.f32 1.0, %v12108_v51  ;;  %v6578_v22 = vrot.slane %v6193_v6, 5  ;;  %v11612_v35 = vpop.f32.mrb[121].mxu1 }
 0x5fe   : > { %v7420_v53 = vrot.slane %v7031_v39, 6  ;;  %v11796_v52 = vpop.f32.mrb[121].mxu0  ;;  %v15690_v33 = vadd.f32 %v15592_v16, %v7653_v28  ;;  %v6196_v31 = vpop.f32.mrb[122].mxu1 }
 0x5ff   : > { %v7909_v29 = vmul.f32 1.442695, %v7821_v3  ;;  %v7034_v15 = vpop.f32.mrb[122].mxu0  ;;  %v12110_v62 = vpop.eup %12109  ;;  %v6579_v17 = vsel %vm6554_vm5, %v6576_v54, %v6578_v22  ;;  %v6580_v44 = vrot.slane %v6196_v31, 5  ;;  %v12562_v54 = vld [vmem:[%s16547_s0 + $0x118] sm:$0xff]  }
 0x600   : > { %v7421_v24 = vsel %vm7400_vm6, %v7418_v11, %v7420_v53  ;;  %v11797_v9 = vpop.f32.mrb[123].mxu0  ;;  %v11613_v51 = vpop.f32.mrb[123].mxu1  ;;  %v8220_v6 = vmul.f32 %v12110_v62, %v15615_v34  ;;  %v7822_v3 = vsub.f32 0.0, %v15690_v33  ;;  %v6810_v28 = vadd.f32 %v6579_v17, %v14981_v10 }
 0x601   : > { %12119 = vpow2.f32 %v7909_v29  ;;  %v7654_v39 = vadd.f32 %v7421_v24, %v6808_v13  ;;  %v6581_v35 = vsel %vm6554_vm5, %v6578_v22, %v6580_v44  ;;  %v7422_v20 = vrot.slane %v7034_v15, 6  ;;  %11719 = vmatmul.mubr.bf16.gmra.mrb[228].mxu1 %v12562_v54  ;;  %11903 = vmatmul.mubr.bf16.gmra.mrb[228].mxu0 %v12561_v14 }
 0x602   : > { %12121 = vrcp.f32 %v8061_v46  ;;  %v9551_v56 = vpack.c.bf16 %v8220_v6, %v8219_v55  ;;  %v7911_v34 = vmul.f32 1.442695, %v7822_v3  ;;  %v6811_v52 = vadd.f32 %v6581_v35, %v14993_v42  ;;  %11722 = vmatprep.mubr.msk.bf16.mxu1 %vm12598_vm0, %v16593_v27  ;;  %11906 = vmatprep.mubr.msk.bf16.mxu0 %vm12598_vm0, %v16593_v27 }
 0x603   : > { %v12112_v11 = vpop.eup %12111  ;;  %v15708_v46 = vadd.f32 %v15592_v16, %v7654_v39  ;;  %v7423_v22 = vsel %vm7400_vm6, %v7420_v53, %v7422_v20 }
 0x604   : > { %v12114_v10 = vpop.eup %12113  ;;  %v8062_v13 = vadd.f32 1.0, %v12112_v11  ;;  %9552 = vst [vmem:[%s15712_s5] sm:$0xff] %v9551_v56   ;;  %12123 = vpow2.f32 %v7911_v34  ;;  %v7655_v14 = vadd.f32 %v7423_v22, %v6809_v8  ;;  %v6201_v42 = vpop.f32.mrb[124].mxu1 }
 0x605   : > { %v7039_v29 = vpop.f32.mrb[124].mxu0  ;;  %v7823_v31 = vsub.f32 0.0, %v15708_v46  ;;  %v6582_v15 = vrot.slane %v6201_v42, 5  ;;  %v11616_v55 = vpop.f32.mrb[125].mxu1  ;;  %v8221_v9 = vmul.f32 %v12114_v10, %v15624_v5 }
 0x606   : > { %12125 = vrcp.f32 %v8062_v13  ;;  %v7424_v62 = vrot.slane %v7039_v29, 6  ;;  %v11800_v17 = vpop.f32.mrb[125].mxu0  ;;  %v12116_v24 = vpop.eup %12115  ;;  %v15718_v53 = vadd.f32 %v15592_v16, %v7655_v14  ;;  %v12563_v29 = vld [vmem:[%s16547_s0 + $0x120] sm:$0xff]  }
 0x607   : > { %v6204_v51 = vpop.f32.mrb[126].mxu1  ;;  %v7042_v6 = vpop.f32.mrb[126].mxu0  ;;  %v8063_v39 = vadd.f32 1.0, %v12116_v24  ;;  %v7913_v8 = vmul.f32 1.442695, %v7823_v31  ;;  %v6583_v35 = vsel %vm6554_vm5, %v6580_v44, %v6582_v15 }
 0x608   : > { %v12118_v3 = vpop.eup %12117  ;;  %v7425_v11 = vsel %vm7400_vm6, %v7422_v20, %v7424_v62  ;;  %v11801_v56 = vpop.f32.mrb[127].mxu0  ;;  %v7824_v22 = vsub.f32 0.0, %v15718_v53  ;;  %v6812_v5 = vadd.f32 %v6583_v35, %v14998_v61  ;;  %v6584_v14 = vrot.slane %v6204_v51, 5 }
 0x609   : > { %v11617_v34 = vpop.f32.mrb[127].mxu1  ;;  %v8222_v13 = vmul.f32 %v12118_v3, %v15636_v37  ;;  %v7656_v10 = vadd.f32 %v7425_v11, %v6810_v28  ;;  %12127 = vrcp.f32 %v8063_v39  ;;  %v7426_v42 = vrot.slane %v7042_v6, 6  ;;  %11723 = vmatmul.mubr.bf16.gmra.mrb[232].mxu1 %v12563_v29  ;;  %11907 = vmatmul.mubr.bf16.gmra.mrb[232].mxu0 %v12562_v54 }
 0x60a   : > { %12129 = vpow2.f32 %v7913_v8  ;;  %v7915_v31 = vmul.f32 1.442695, %v7824_v22  ;;  %11726 = vmatprep.mubr.msk.bf16.mxu1 %vm12598_vm0, %v16593_v27  ;;  %11910 = vmatprep.mubr.msk.bf16.mxu0 %vm12598_vm0, %v16593_v27  ;;  %v6585_v55 = vsel %vm6554_vm5, %v6582_v15, %v6584_v14 }
 0x60b   : > { %v12120_v44 = vpop.eup %12119  ;;  %v9556_v20 = vpack.c.bf16 %v8222_v13, %v8221_v9  ;;  %v15733_v28 = vadd.f32 %v15592_v16, %v7656_v10  ;;  %v7427_v17 = vsel %vm7400_vm6, %v7424_v62, %v7426_v42  ;;  %v6813_v54 = vadd.f32 %v6585_v55, %v15010_v12 }
 0x60c   : > { %v12122_v61 = vpop.eup %12121  ;;  %v8064_v37 = vadd.f32 1.0, %v12120_v44  ;;  %12131 = vpow2.f32 %v7915_v31  ;;  %v7657_v24 = vadd.f32 %v7427_v17, %v6811_v52  ;;  %v6209_v9 = vpop.f32.mrb[128].mxu1 }
 0x60d   : > { %9748 = vst [vmem:[%s15712_s5 + $0x8] sm:$0xff] %v9556_v20   ;;  %v7047_v51 = vpop.f32.mrb[128].mxu0  ;;  %v7825_v6 = vsub.f32 0.0, %v15733_v28  ;;  %v6586_v3 = vrot.slane %v6209_v9, 5  ;;  %v11620_v8 = vpop.f32.mrb[129].mxu1  ;;  %v8223_v56 = vmul.f32 %v12122_v61, %v15645_v0 }
 0x60e   : > { %12133 = vrcp.f32 %v8064_v37  ;;  %v7428_v39 = vrot.slane %v7047_v51, 6  ;;  %v11804_v35 = vpop.f32.mrb[129].mxu0  ;;  %v12124_v11 = vpop.eup %12123  ;;  %v15742_v15 = vadd.f32 %v15592_v16, %v7657_v24  ;;  %v12564_v24 = vld [vmem:[%s16547_s0 + $0x128] sm:$0xff]  }
 0x60f   : > { %v6212_v62 = vpop.f32.mrb[130].mxu1  ;;  %v7050_v34 = vpop.f32.mrb[130].mxu0  ;;  %v8065_v12 = vadd.f32 1.0, %v12124_v11  ;;  %v7917_v52 = vmul.f32 1.442695, %v7825_v6  ;;  %v6587_v22 = vsel %vm6554_vm5, %v6584_v14, %v6586_v3 }
 0x610   : > { %v12126_v13 = vpop.eup %12125  ;;  %v7429_v10 = vsel %vm7400_vm6, %v7426_v42, %v7428_v39  ;;  %v11805_v44 = vpop.f32.mrb[131].mxu0  ;;  %v7826_v37 = vsub.f32 0.0, %v15742_v15  ;;  %v6814_v0 = vadd.f32 %v6587_v22, %v15015_v43  ;;  %v6588_v55 = vrot.slane %v6212_v62, 5 }
 0x611   : > { %v11621_v20 = vpop.f32.mrb[131].mxu1  ;;  %v8224_v31 = vmul.f32 %v12126_v13, %v15656_v26  ;;  %v7658_v61 = vadd.f32 %v7429_v10, %v6812_v5  ;;  %12135 = vrcp.f32 %v8065_v12  ;;  %v7430_v17 = vrot.slane %v7050_v34, 6  ;;  %11727 = vmatmul.mubr.bf16.gmra.mrb[236].mxu1 %v12564_v24  ;;  %11911 = vmatmul.mubr.bf16.gmra.mrb[236].mxu0 %v12563_v29 }
 0x612   : > { %12137 = vpow2.f32 %v7917_v52  ;;  %v7919_v42 = vmul.f32 1.442695, %v7826_v37  ;;  %11730 = vmatprep.mubr.msk.bf16.mxu1 %vm12598_vm0, %v16593_v27  ;;  %11914 = vmatprep.mubr.msk.bf16.mxu0 %vm12598_vm0, %v16593_v27  ;;  %v6589_v5 = vsel %vm6554_vm5, %v6586_v3, %v6588_v55 }
 0x613   : > { %v9561_v14 = vpack.c.bf16 %v8224_v31, %v8223_v56  ;;  %v15753_v26 = vadd.f32 %v15592_v16, %v7658_v61  ;;  %v12128_v43 = vpop.eup %12127  ;;  %v7431_v9 = vsel %vm7400_vm6, %v7428_v39, %v7430_v17  ;;  %v6815_v6 = vadd.f32 %v6589_v5, %v15027_v30 }
 0x614   : > { %v12130_v51 = vpop.eup %12129  ;;  %12139 = vpow2.f32 %v7919_v42  ;;  %v6217_v8 = vpop.f32.mrb[132].mxu1  ;;  %v7659_v56 = vadd.f32 %v7431_v9, %v6813_v54  ;;  %v8225_v3 = vmul.f32 %v12128_v43, %v15666_v1  ;;  %v12565_v9 = vld [vmem:[%s16547_s0 + $0x130] sm:$0xff]  }
 0x615   : > { %9749 = vst [vmem:[%s15712_s5 + $0x10] sm:$0xff] %v9561_v14   ;;  %v7827_v29 = vsub.f32 0.0, %v15753_v26  ;;  %v7055_v35 = vpop.f32.mrb[132].mxu0  ;;  %v8066_v11 = vadd.f32 1.0, %v12130_v51  ;;  %v6590_v62 = vrot.slane %v6217_v8, 5  ;;  %v11624_v13 = vpop.f32.mrb[133].mxu1 }
 0x616   : > { %v7432_v34 = vrot.slane %v7055_v35, 6  ;;  %v11808_v12 = vpop.f32.mrb[133].mxu0  ;;  %v12132_v52 = vpop.eup %12131  ;;  %v15766_v31 = vadd.f32 %v15592_v16, %v7659_v56 }
 0x617   : > { %v7921_v22 = vmul.f32 1.442695, %v7827_v29  ;;  %v6220_v39 = vpop.f32.mrb[134].mxu1  ;;  %v7058_v10 = vpop.f32.mrb[134].mxu0  ;;  %12141 = vrcp.f32 %v8066_v11  ;;  %v8067_v20 = vadd.f32 1.0, %v12132_v52  ;;  %v6591_v30 = vsel %vm6554_vm5, %v6588_v55, %v6590_v62 }
 0x618   : > { %v12134_v44 = vpop.eup %12133  ;;  %v11809_v37 = vpop.f32.mrb[135].mxu0  ;;  %v6816_v14 = vadd.f32 %v6591_v30, %v15032_v47  ;;  %v7433_v1 = vsel %vm7400_vm6, %v7430_v17, %v7432_v34  ;;  %v7828_v42 = vsub.f32 0.0, %v15766_v31  ;;  %v6592_v5 = vrot.slane %v6220_v39, 5 }
 0x619   : > { %v11625_v54 = vpop.f32.mrb[135].mxu1  ;;  %v8226_v61 = vmul.f32 %v12134_v44, %v15678_v50  ;;  %12143 = vpow2.f32 %v7921_v22  ;;  %v7660_v43 = vadd.f32 %v7433_v1, %v6814_v0  ;;  %11731 = vmatmul.mubr.bf16.gmra.mrb[240].mxu1 %v12565_v9  ;;  %11915 = vmatmul.mubr.bf16.gmra.mrb[240].mxu0 %v12564_v24  ;;  %v7434_v51 = vrot.slane %v7058_v10, 6 }
 0x61a   : > { %11734 = vmatprep.mubr.msk.bf16.mxu1 %vm12598_vm0, %v16593_v27  ;;  %11918 = vmatprep.mubr.msk.bf16.mxu0 %vm12598_vm0, %v16593_v27  ;;  %v7923_v50 = vmul.f32 1.442695, %v7828_v42  ;;  %v6593_v0 = vsel %vm6554_vm5, %v6590_v62, %v6592_v5  ;;  %12145 = vrcp.f32 %v8067_v20 }
 0x61b   : > { %v9566_v55 = vpack.c.bf16 %v8226_v61, %v8225_v3  ;;  %v12136_v47 = vpop.eup %12135  ;;  %v15781_v17 = vadd.f32 %v15592_v16, %v7660_v43  ;;  %v6817_v24 = vadd.f32 %v6593_v0, %v15044_v60  ;;  %v7435_v8 = vsel %vm7400_vm6, %v7432_v34, %v7434_v51 }
 0x61c   : > { %v12138_v29 = vpop.eup %12137  ;;  %v6225_v35 = vpop.f32.mrb[136].mxu1  ;;  %12147 = vpow2.f32 %v7923_v50  ;;  %v7661_v12 = vadd.f32 %v7435_v8, %v6815_v6  ;;  %v8227_v39 = vmul.f32 %v12136_v47, %v15690_v33  ;;  %v12566_v50 = vld [vmem:[%s16547_s0 + $0x138] sm:$0xff]  }
 0x61d   : > { %9750 = vst [vmem:[%s15712_s5 + $0x18] sm:$0xff] %v9566_v55   ;;  %v7063_v11 = vpop.f32.mrb[136].mxu0  ;;  %v8068_v56 = vadd.f32 1.0, %v12138_v29  ;;  %v7829_v13 = vsub.f32 0.0, %v15781_v17  ;;  %v11628_v52 = vpop.f32.mrb[137].mxu1  ;;  %v6594_v62 = vrot.slane %v6225_v35, 5 }
 0x61e   : > { %v11812_v3 = vpop.f32.mrb[137].mxu0  ;;  %v12140_v22 = vpop.eup %12139  ;;  %v7436_v10 = vrot.slane %v7063_v11, 6  ;;  %v15790_v34 = vadd.f32 %v15592_v16, %v7661_v12 }
 0x61f   : > { %v6228_v44 = vpop.f32.mrb[138].mxu1  ;;  %v7066_v20 = vpop.f32.mrb[138].mxu0  ;;  %12149 = vrcp.f32 %v8068_v56  ;;  %v8069_v60 = vadd.f32 1.0, %v12140_v22  ;;  %v7925_v30 = vmul.f32 1.442695, %v7829_v13  ;;  %v6595_v61 = vsel %vm6554_vm5, %v6592_v5, %v6594_v62 }
 0x620   : > { %v11813_v37 = vpop.f32.mrb[139].mxu0  ;;  %v11629_v54 = vpop.f32.mrb[139].mxu1  ;;  %v7437_v6 = vsel %vm7400_vm6, %v7434_v51, %v7436_v10  ;;  %v6596_v1 = vrot.slane %v6228_v44, 5  ;;  %v7438_v42 = vrot.slane %v7066_v20, 6  ;;  %v7830_v33 = vsub.f32 0.0, %v15790_v34 }
 0x621   : > { %v12142_v43 = vpop.eup %12141  ;;  %12151 = vrcp.f32 %v8069_v60  ;;  %v6818_v55 = vadd.f32 %v6595_v61, %v15049_v57  ;;  %v7662_v47 = vadd.f32 %v7437_v6, %v6816_v14  ;;  %11735 = vmatmul.mubr.bf16.gmra.mrb[244].mxu1 %v12566_v50  ;;  %11919 = vmatmul.mubr.bf16.gmra.mrb[244].mxu0 %v12565_v9 }
 0x622   : > { %v8228_v5 = vmul.f32 %v12142_v43, %v15708_v46  ;;  %12153 = vpow2.f32 %v7925_v30  ;;  %v6597_v51 = vsel %vm6554_vm5, %v6594_v62, %v6596_v1  ;;  %v7439_v29 = vsel %vm7400_vm6, %v7436_v10, %v7438_v42  ;;  %11738 = vmatprep.mubr.msk.bf16.mxu1 %vm12598_vm0, %v16593_v27  ;;  %11922 = vmatprep.mubr.msk.bf16.mxu0 %vm12598_vm0, %v16593_v27 }
 0x623   : > { %v12144_v0 = vpop.eup %12143  ;;  %v7927_v14 = vmul.f32 1.442695, %v7830_v33  ;;  %v15807_v8 = vadd.f32 %v15592_v16, %v7662_v47  ;;  %v6819_v9 = vadd.f32 %v6597_v51, %v15061_v21  ;;  %v7663_v35 = vadd.f32 %v7439_v29, %v6817_v24 }
 0x624   : > { %v8070_v57 = vadd.f32 1.0, %v12144_v0  ;;  %v9571_v46 = vpack.c.bf16 %v8228_v5, %v8227_v39  ;;  %v6233_v11 = vpop.f32.mrb[140].mxu1  ;;  %v7071_v56 = vpop.f32.mrb[140].mxu0 }
 0x625   : > { %v7831_v13 = vsub.f32 0.0, %v15807_v8  ;;  %v6598_v12 = vrot.slane %v6233_v11, 5  ;;  %v7440_v52 = vrot.slane %v7071_v56, 6  ;;  %v11632_v3 = vpop.f32.mrb[141].mxu1  ;;  %v11816_v22 = vpop.f32.mrb[141].mxu0  ;;  %v15813_v10 = vadd.f32 %v15592_v16, %v7663_v35 }
 0x626   : > { %12155 = vrcp.f32 %v8070_v57  ;;  %v12146_v62 = vpop.eup %12145  ;;  %9751 = vst [vmem:[%s15712_s5 + $0x20] sm:$0xff] %v9571_v46   ;;  %v6236_v44 = vpop.f32.mrb[142].mxu1 }
 0x627   : > { %12157 = vpow2.f32 %v7927_v14  ;;  %v7074_v20 = vpop.f32.mrb[142].mxu0  ;;  %v12148_v21 = vpop.eup %12147  ;;  %v7929_v39 = vmul.f32 1.442695, %v7831_v13  ;;  %v6599_v24 = vsel %vm6554_vm5, %v6596_v1, %v6598_v12  ;;  %v7441_v60 = vsel %vm7400_vm6, %v7438_v42, %v7440_v52  ;;  %v12567_v1 = vld [vmem:[%s16547_s0 + $0x140] sm:$0xff]  }
 0x628   : > { %v6600_v30 = vrot.slane %v6236_v44, 5  ;;  %v11817_v37 = vpop.f32.mrb[143].mxu0  ;;  %v11633_v54 = vpop.f32.mrb[143].mxu1  ;;  %v8071_v61 = vadd.f32 1.0, %v12148_v21  ;;  %v7832_v6 = vsub.f32 0.0, %v15813_v10  ;;  %v6820_v43 = vadd.f32 %v6599_v24, %v15066_v49 }
 0x629   : > { %v7664_v33 = vadd.f32 %v7441_v60, %v6818_v55  ;;  %v12150_v47 = vpop.eup %12149  ;;  %12159 = vpow2.f32 %v7929_v39  ;;  %v7442_v5 = vrot.slane %v7074_v20, 6  ;;  %11739 = vmatmul.mubr.bf16.gmra.mrb[248].mxu1 %v12567_v1  ;;  %11923 = vmatmul.mubr.bf16.gmra.mrb[248].mxu0 %v12566_v50  ;;  %v8229_v42 = vmul.f32 %v12146_v62, %v15718_v53 }
 0x62a   : > { %v6601_v0 = vsel %vm6554_vm5, %v6598_v12, %v6600_v30  ;;  %v8230_v51 = vmul.f32 %v12150_v47, %v15733_v28  ;;  %v7931_v29 = vmul.f32 1.442695, %v7832_v6  ;;  %11742 = vmatprep.mubr.msk.bf16.mxu1 %vm12598_vm0, %v16593_v27  ;;  %11926 = vmatprep.mubr.msk.bf16.mxu0 %vm12598_vm0, %v16593_v27  ;;  %12161 = vrcp.f32 %v8071_v61 }
 0x62b   : > { %v15826_v57 = vadd.f32 %v15592_v16, %v7664_v33  ;;  %v12152_v49 = vpop.eup %12151  ;;  %v6821_v55 = vadd.f32 %v6601_v0, %v15078_v32  ;;  %v7443_v50 = vsel %vm7400_vm6, %v7440_v52, %v7442_v5 }
 0x62c   : > { %v12154_v53 = vpop.eup %12153  ;;  %v9576_v14 = vpack.c.bf16 %v8230_v51, %v8229_v42  ;;  %12163 = vpow2.f32 %v7931_v29  ;;  %v6241_v46 = vpop.f32.mrb[144].mxu1  ;;  %v7665_v56 = vadd.f32 %v7443_v50, %v6819_v9  ;;  %v8231_v62 = vmul.f32 %v12152_v49, %v15742_v15 }
 0x62d   : > { %v7833_v28 = vsub.f32 0.0, %v15826_v57  ;;  %v7079_v35 = vpop.f32.mrb[144].mxu0  ;;  %v8072_v11 = vadd.f32 1.0, %v12154_v53  ;;  %v6602_v13 = vrot.slane %v6241_v46, 5  ;;  %v11636_v3 = vpop.f32.mrb[145].mxu1 }
 0x62e   : > { %v7444_v12 = vrot.slane %v7079_v35, 6  ;;  %v11820_v22 = vpop.f32.mrb[145].mxu0  ;;  %9752 = vst [vmem:[%s15712_s5 + $0x28] sm:$0xff] %v9576_v14   ;;  %v6244_v32 = vpop.f32.mrb[146].mxu1  ;;  %v15838_v21 = vadd.f32 %v15592_v16, %v7665_v56 }
 0x62f   : > { %v7933_v44 = vmul.f32 1.442695, %v7833_v28  ;;  %v7082_v20 = vpop.f32.mrb[146].mxu0  ;;  %12165 = vrcp.f32 %v8072_v11  ;;  %v6603_v39 = vsel %vm6554_vm5, %v6600_v30, %v6602_v13  ;;  %v11637_v60 = vpop.f32.mrb[147].mxu1  ;;  %v6604_v47 = vrot.slane %v6244_v32, 5  ;;  %v12568_v30 = vld [vmem:[%s16547_s0 + $0x148] sm:$0xff]  }
 0x630   : > { %v12156_v52 = vpop.eup %12155  ;;  %v7445_v24 = vsel %vm7400_vm6, %v7442_v5, %v7444_v12  ;;  %v11821_v9 = vpop.f32.mrb[147].mxu0  ;;  %v6822_v15 = vadd.f32 %v6603_v39, %v15083_v63  ;;  %v7834_v33 = vsub.f32 0.0, %v15838_v21  ;;  %v7446_v0 = vrot.slane %v7082_v20, 6 }
 0x631   : > { %v12158_v37 = vpop.eup %12157  ;;  %v8232_v54 = vmul.f32 %v12156_v52, %v15753_v26  ;;  %12167 = vpow2.f32 %v7933_v44  ;;  %v7666_v61 = vadd.f32 %v7445_v24, %v6820_v43  ;;  %11743 = vmatmul.mubr.bf16.gmra.mrb[252].mxu1 %v12568_v30  ;;  %11927 = vmatmul.mubr.bf16.gmra.mrb[252].mxu0 %v12567_v1  ;;  %v6605_v43 = vsel %vm6554_vm5, %v6602_v13, %v6604_v47 }
 0x632   : > { %v8073_v6 = vadd.f32 1.0, %v12158_v37  ;;  %11746 = vmatprep.mubr.msk.bf16.mxu1 %vm12598_vm0, %v16593_v27  ;;  %11930 = vmatprep.mubr.msk.bf16.mxu0 %vm12598_vm0, %v16593_v27  ;;  %v7935_v26 = vmul.f32 1.442695, %v7834_v33  ;;  %v7447_v51 = vsel %vm7400_vm6, %v7444_v12, %v7446_v0  ;;  %v6823_v49 = vadd.f32 %v6605_v43, %v15095_v41 }
 0x633   : > { %v9581_v5 = vpack.c.bf16 %v8232_v54, %v8231_v62  ;;  %v15849_v42 = vadd.f32 %v15592_v16, %v7666_v61  ;;  %v12160_v63 = vpop.eup %12159  ;;  %v7667_v50 = vadd.f32 %v7447_v51, %v6821_v55 }
 0x634   : > { %12169 = vrcp.f32 %v8073_v6  ;;  %v8074_v29 = vadd.f32 1.0, %v12160_v63  ;;  %v6249_v53 = vpop.f32.mrb[148].mxu1  ;;  %v7087_v14 = vpop.f32.mrb[148].mxu0  ;;  %v12569_v6 = vld [vmem:[%s16547_s0 + $0x150] sm:$0xff]  }
 0x635   : > { %9753 = vst [vmem:[%s15712_s5 + $0x30] sm:$0xff] %v9581_v5   ;;  %v7835_v1 = vsub.f32 0.0, %v15849_v42  ;;  %v12162_v28 = vpop.eup %12161  ;;  %12171 = vpow2.f32 %v7935_v26  ;;  %v6606_v46 = vrot.slane %v6249_v53, 5  ;;  %v7448_v35 = vrot.slane %v7087_v14, 6  ;;  %v11640_v11 = vpop.f32.mrb[149].mxu1 }
 0x636   : > { %v11824_v56 = vpop.f32.mrb[149].mxu0  ;;  %v12164_v3 = vpop.eup %12163  ;;  %12173 = vrcp.f32 %v8074_v29  ;;  %v15861_v12 = vadd.f32 %v15592_v16, %v7667_v50  ;;  %v8233_v37 = vmul.f32 %v12162_v28, %v15766_v31 }
 0x637   : > { %v7937_v13 = vmul.f32 1.442695, %v7835_v1  ;;  %v6252_v22 = vpop.f32.mrb[150].mxu1  ;;  %v7090_v62 = vpop.f32.mrb[150].mxu0  ;;  %v8075_v44 = vadd.f32 1.0, %v12164_v3  ;;  %v6607_v41 = vsel %vm6554_vm5, %v6604_v47, %v6606_v46  ;;  %v7449_v55 = vsel %vm7400_vm6, %v7446_v0, %v7448_v35 }
 0x638   : > { %v6608_v32 = vrot.slane %v6252_v22, 5  ;;  %v11825_v20 = vpop.f32.mrb[151].mxu0  ;;  %v11641_v52 = vpop.f32.mrb[151].mxu1  ;;  %v7836_v39 = vsub.f32 0.0, %v15861_v12  ;;  %v6824_v24 = vadd.f32 %v6607_v41, %v15100_v36  ;;  %v7668_v9 = vadd.f32 %v7449_v55, %v6822_v15 }
 0x639   : > { %12175 = vpow2.f32 %v7937_v13  ;;  %v12166_v60 = vpop.eup %12165  ;;  %v7450_v61 = vrot.slane %v7090_v62, 6  ;;  %11747 = vmatmul.mubr.bf16.gmra.mrb[0].mxu1 %v12569_v6  ;;  %11931 = vmatmul.mubr.bf16.gmra.mrb[0].mxu0 %v12568_v30 }
 0x63a   : > { %12177 = vrcp.f32 %v8075_v44  ;;  %v6609_v54 = vsel %vm6554_vm5, %v6606_v46, %v6608_v32  ;;  %v8234_v47 = vmul.f32 %v12166_v60, %v15781_v17  ;;  %v7939_v0 = vmul.f32 1.442695, %v7836_v39  ;;  %11934 = vmatprep.mubr.msk.bf16.mxu0 %vm12598_vm0, %v16593_v27 }
 0x63b   : > { %v12168_v33 = vpop.eup %12167  ;;  %v15874_v36 = vadd.f32 %v15592_v16, %v7668_v9  ;;  %v6825_v15 = vadd.f32 %v6609_v54, %v15112_v7  ;;  %v7451_v5 = vsel %vm7400_vm6, %v7448_v35, %v7450_v61 }
 0x63c   : > { %v8076_v31 = vadd.f32 1.0, %v12168_v33  ;;  %v9586_v63 = vpack.c.bf16 %v8234_v47, %v8233_v37  ;;  %12179 = vpow2.f32 %v7939_v0  ;;  %v7669_v26 = vadd.f32 %v7451_v5, %v6823_v49  ;;  %v6257_v43 = vpop.f32.mrb[152].mxu1  ;;  %v7095_v17 = vpop.f32.mrb[152].mxu0  ;;  %v15895_v33 = vld [vmem:[%s15585_s25] ss:$0 sm:$0xff] }
 0x63d   : > { %v7837_v30 = vsub.f32 0.0, %v15874_v36  ;;  %v6610_v29 = vrot.slane %v6257_v43, 5  ;;  %v7452_v1 = vrot.slane %v7095_v17, 6  ;;  %v11644_v50 = vpop.f32.mrb[153].mxu1  ;;  %v11828_v7 = vpop.f32.mrb[153].mxu0 }
 0x63e   : > { %v12170_v51 = vpop.eup %12169  ;;  %12181 = vrcp.f32 %v8076_v31  ;;  %9754 = vst [vmem:[%s15712_s5 + $0x38] sm:$0xff] %v9586_v63   ;;  %v15884_v14 = vadd.f32 %v15592_v16, %v7669_v26  ;;  %v6260_v28 = vpop.f32.mrb[154].mxu1 }
 0x63f   : > { %v8235_v53 = vmul.f32 %v12170_v51, %v15790_v34  ;;  %v7941_v27 = vmul.f32 1.442695, %v7837_v30  ;;  %v7098_v46 = vpop.f32.mrb[154].mxu0  ;;  %v12172_v35 = vpop.eup %12171  ;;  %v6611_v49 = vsel %vm6554_vm5, %v6608_v32, %v6610_v29  ;;  %v7453_v11 = vsel %vm7400_vm6, %v7450_v61, %v7452_v1 }
 0x640   : > { %v6612_v56 = vrot.slane %v6260_v28, 5  ;;  %v7454_v3 = vrot.slane %v7098_v46, 6  ;;  %v11829_v13 = vpop.f32.mrb[155].mxu0  ;;  %v11645_v22 = vpop.f32.mrb[155].mxu1  ;;  %v8077_v44 = vadd.f32 1.0, %v12172_v35  ;;  %v7838_v34 = vsub.f32 0.0, %v15884_v14 }
 0x641   : > { %v12174_v62 = vpop.eup %12173  ;;  %12183 = vpow2.f32 %v7941_v27  ;;  %v6826_v16 = vadd.f32 %v6611_v49, %v15117_v23  ;;  %v7670_v55 = vadd.f32 %v7453_v11, %v6824_v24  ;;  %11935 = vmatmul.mubr.bf16.gmra.mrb[4].mxu0 %v12569_v6 }
 0x642   : > { %v8236_v41 = vmul.f32 %v12174_v62, %v15807_v8  ;;  %v6613_v20 = vsel %vm6554_vm5, %v6610_v29, %v6612_v56  ;;  %v7455_v32 = vsel %vm7400_vm6, %v7452_v1, %v7454_v3  ;;  %12185 = vrcp.f32 %v8077_v44  ;;  %v16829_v44 = vld [vmem:[#allocation37_spill] sm:$0xff] }
 0x643   : > { %v12176_v52 = vpop.eup %12175  ;;  %v7943_v39 = vmul.f32 1.442695, %v7838_v34  ;;  %v6827_v9 = vadd.f32 %v6613_v20, %v15129_v25  ;;  %v7671_v60 = vadd.f32 %v7455_v32, %v6825_v15  ;;  %v15898_v23 = vadd.f32 %v15895_v33, %v7670_v55 }
 0x644   : > { %v12178_v37 = vpop.eup %12177  ;;  %v9591_v54 = vpack.c.bf16 %v8236_v41, %v8235_v53  ;;  %v8078_v61 = vadd.f32 1.0, %v12176_v52  ;;  %v6265_v24 = vpop.f32.mrb[156].mxu1 }
 0x645   : > { %12187 = vpow2.f32 %v7943_v39  ;;  %v15901_v8 = vadd.f32 %v15895_v33, %v7671_v60  ;;  %v7103_v6 = vpop.f32.mrb[156].mxu0  ;;  %v7839_v47 = vsub.f32 0.0, %v15898_v23  ;;  %v6614_v25 = vrot.slane %v6265_v24, 5  ;;  %v11648_v15 = vpop.f32.mrb[157].mxu1 }
 0x646   : > { %9755 = vst [vmem:[%s15712_s5 + $0x40] sm:$0xff] %v9591_v54   ;;  %12189 = vrcp.f32 %v8078_v61  ;;  %v7456_v0 = vrot.slane %v7103_v6, 6  ;;  %v11832_v31 = vpop.f32.mrb[157].mxu0  ;;  %v12180_v5 = vpop.eup %12179  ;;  %v8237_v63 = vmul.f32 %v12178_v37, %v15813_v10 }
 0x647   : > { %v7840_v30 = vsub.f32 0.0, %v15901_v8  ;;  %v6268_v26 = vpop.f32.mrb[158].mxu1  ;;  %v7106_v43 = vpop.f32.mrb[158].mxu0  ;;  %v8079_v51 = vadd.f32 1.0, %v12180_v5  ;;  %v7945_v29 = vmul.f32 1.442695, %v7839_v47  ;;  %v6615_v1 = vsel %vm6554_vm5, %v6612_v56, %v6614_v25 }
 0x648   : > { %v12182_v17 = vpop.eup %12181  ;;  %v7457_v50 = vsel %vm7400_vm6, %v7454_v3, %v7456_v0  ;;  %v11833_v7 = vpop.f32.mrb[159].mxu0  ;;  %v6828_v46 = vadd.f32 %v6615_v1, %v15134_v59  ;;  %v6616_v35 = vrot.slane %v6268_v26, 5  ;;  %v7458_v49 = vrot.slane %v7106_v43, 6 }
 0x649   : > { %v11649_v53 = vpop.f32.mrb[159].mxu1  ;;  %v8238_v27 = vmul.f32 %v12182_v17, %v15826_v57  ;;  %v7947_v28 = vmul.f32 1.442695, %v7840_v30  ;;  %v7672_v10 = vadd.f32 %v7457_v50, %v6826_v16  ;;  %12191 = vrcp.f32 %v8079_v51  ;;  %v16830_v30 = vld [vmem:[#allocation38_spill] sm:$0xff]  ;;  %v16831_v50 = vld [vmem:[#allocation43_spill] sm:$0xff] }
 0x64a   : > { %12193 = vpow2.f32 %v7945_v29  ;;  %v6617_v3 = vsel %vm6554_vm5, %v6614_v25, %v6616_v35  ;;  %v7459_v57 = vsel %vm7400_vm6, %v7456_v0, %v7458_v49 }
 0x64b   : > { %v12184_v11 = vpop.eup %12183  ;;  %v9596_v13 = vpack.c.bf16 %v8238_v27, %v8237_v63  ;;  %v15912_v22 = vadd.f32 %v15895_v33, %v7672_v10  ;;  %12195 = vpow2.f32 %v7947_v28  ;;  %v6829_v34 = vadd.f32 %v6617_v3, %v16829_v44 }
 0x64c   : > { %v8080_v56 = vadd.f32 1.0, %v12184_v11  ;;  %v12186_v62 = vpop.eup %12185  ;;  %v7673_v16 = vadd.f32 %v7459_v57, %v6827_v9  ;;  %v6273_v41 = vpop.f32.mrb[160].mxu1 }
 0x64d   : > { %9756 = vst [vmem:[%s15712_s5 + $0x48] sm:$0xff] %v9596_v13   ;;  %v7841_v59 = vsub.f32 0.0, %v15912_v22  ;;  %v7111_v55 = vpop.f32.mrb[160].mxu0  ;;  %v6618_v20 = vrot.slane %v6273_v41, 5  ;;  %v11652_v52 = vpop.f32.mrb[161].mxu1  ;;  %v8239_v37 = vmul.f32 %v12186_v62, %v15838_v21 }
 0x64e   : > { %12197 = vrcp.f32 %v8080_v56  ;;  %v7460_v32 = vrot.slane %v7111_v55, 6  ;;  %v11836_v39 = vpop.f32.mrb[161].mxu0  ;;  %v15921_v61 = vadd.f32 %v15895_v33, %v7673_v16  ;;  %v6276_v24 = vpop.f32.mrb[162].mxu1 }
 0x64f   : > { %v12188_v60 = vpop.eup %12187  ;;  %v7949_v54 = vmul.f32 1.442695, %v7841_v59  ;;  %v7114_v6 = vpop.f32.mrb[162].mxu0  ;;  %v6619_v9 = vsel %vm6554_vm5, %v6616_v35, %v6618_v20  ;;  %v6620_v15 = vrot.slane %v6276_v24, 5 }
 0x650   : > { %v12190_v47 = vpop.eup %12189  ;;  %v8081_v25 = vadd.f32 1.0, %v12188_v60  ;;  %v7461_v0 = vsel %vm7400_vm6, %v7458_v49, %v7460_v32  ;;  %v11837_v31 = vpop.f32.mrb[163].mxu0  ;;  %v7842_v21 = vsub.f32 0.0, %v15921_v61  ;;  %v6830_v26 = vadd.f32 %v6619_v9, %v16830_v30 }
 0x651   : > { %v11653_v5 = vpop.f32.mrb[163].mxu1  ;;  %v8240_v63 = vmul.f32 %v12190_v47, %v15849_v42  ;;  %12199 = vpow2.f32 %v7949_v54  ;;  %v7674_v43 = vadd.f32 %v7461_v0, %v6828_v46  ;;  %v6621_v17 = vsel %vm6554_vm5, %v6618_v20, %v6620_v15  ;;  %v16832_v54 = vld [vmem:[#allocation39_spill] sm:$0xff] }
 0x652   : > { %v7462_v51 = vrot.slane %v7114_v6, 6  ;;  %v7951_v1 = vmul.f32 1.442695, %v7842_v21  ;;  %v6831_v7 = vadd.f32 %v6621_v17, %v16831_v50  ;;  %12201 = vrcp.f32 %v8081_v25  ;;  %v16833_v21 = vld [vmem:[#allocation42_spill] sm:$0xff] }
 0x653   : > { %v9601_v29 = vpack.c.bf16 %v8240_v63, %v8239_v37  ;;  %v12192_v53 = vpop.eup %12191  ;;  %v15931_v27 = vadd.f32 %v15895_v33, %v7674_v43 }
 0x654   : > { %v7463_v42 = vsel %vm7400_vm6, %v7460_v32, %v7462_v51  ;;  %v12194_v28 = vpop.eup %12193  ;;  %12203 = vpow2.f32 %v7951_v1  ;;  %v6281_v35 = vpop.f32.mrb[164].mxu1  ;;  %v8241_v59 = vmul.f32 %v12192_v53, %v15861_v12 }
 0x655   : > { %9757 = vst [vmem:[%s15712_s5 + $0x50] sm:$0xff] %v9601_v29   ;;  %v7675_v10 = vadd.f32 %v7463_v42, %v6829_v34  ;;  %v7119_v46 = vpop.f32.mrb[164].mxu0  ;;  %v12196_v49 = vpop.eup %12195  ;;  %v8082_v11 = vadd.f32 1.0, %v12194_v28  ;;  %v7843_v13 = vsub.f32 0.0, %v15931_v27  ;;  %v6622_v56 = vrot.slane %v6281_v35, 5 }
 0x656   : > { %v7464_v3 = vrot.slane %v7119_v46, 6  ;;  %v11656_v57 = vpop.f32.mrb[165].mxu1  ;;  %v11840_v62 = vpop.f32.mrb[165].mxu0  ;;  %v8083_v44 = vadd.f32 1.0, %v12196_v49 }
 0x657   : > { %v15938_v16 = vadd.f32 %v15895_v33, %v7675_v10  ;;  %v6284_v41 = vpop.f32.mrb[166].mxu1  ;;  %v7122_v55 = vpop.f32.mrb[166].mxu0  ;;  %12205 = vrcp.f32 %v8082_v11  ;;  %v7953_v34 = vmul.f32 1.442695, %v7843_v13  ;;  %v6623_v32 = vsel %vm6554_vm5, %v6620_v15, %v6622_v56  ;;  %v16834_v62 = vld [vmem:[#allocation40_spill] sm:$0xff] }
 0x658   : > { %v12198_v20 = vpop.eup %12197  ;;  %v7465_v52 = vsel %vm7400_vm6, %v7462_v51, %v7464_v3  ;;  %v11841_v39 = vpop.f32.mrb[167].mxu0  ;;  %12207 = vrcp.f32 %v8083_v44  ;;  %v6832_v24 = vadd.f32 %v6623_v32, %v16832_v54  ;;  %v6624_v47 = vrot.slane %v6284_v41, 5 }
 0x659   : > { %v11657_v60 = vpop.f32.mrb[167].mxu1  ;;  %v8242_v37 = vmul.f32 %v12198_v20, %v15874_v36  ;;  %v7844_v12 = vsub.f32 0.0, %v15938_v16  ;;  %12209 = vpow2.f32 %v7953_v34  ;;  %v7676_v6 = vadd.f32 %v7465_v52, %v6830_v26 }
 0x65a   : > { %v7466_v25 = vrot.slane %v7122_v55, 6  ;;  %v6625_v63 = vsel %vm6554_vm5, %v6622_v56, %v6624_v47 }
 0x65b   : > { %v12200_v9 = vpop.eup %12199  ;;  %v9606_v0 = vpack.c.bf16 %v8242_v37, %v8241_v59  ;;  %v7955_v31 = vmul.f32 1.442695, %v7844_v12  ;;  %v15946_v5 = vadd.f32 %v15895_v33, %v7676_v6  ;;  %v6833_v30 = vadd.f32 %v6625_v63, %v16833_v21 }
 0x65c   : > { %v8084_v15 = vadd.f32 1.0, %v12200_v9  ;;  %v7467_v36 = vsel %vm7400_vm6, %v7464_v3, %v7466_v25  ;;  %v6289_v17 = vpop.f32.mrb[168].mxu1  ;;  %v7127_v26 = vpop.f32.mrb[168].mxu0 }
 0x65d   : > { %9758 = vst [vmem:[%s15712_s5 + $0x58] sm:$0xff] %v9606_v0   ;;  %12211 = vpow2.f32 %v7955_v31  ;;  %v7677_v43 = vadd.f32 %v7467_v36, %v6831_v7  ;;  %v12202_v51 = vpop.eup %12201  ;;  %v7845_v29 = vsub.f32 0.0, %v15946_v5  ;;  %v6626_v1 = vrot.slane %v6289_v17, 5  ;;  %v11660_v53 = vpop.f32.mrb[169].mxu1 }
 0x65e   : > { %12213 = vrcp.f32 %v8084_v15  ;;  %v7468_v50 = vrot.slane %v7127_v26, 6  ;;  %v11844_v42 = vpop.f32.mrb[169].mxu0  ;;  %v12204_v28 = vpop.eup %12203  ;;  %v8243_v20 = vmul.f32 %v12202_v51, %v15884_v14 }
 0x65f   : > { %v15954_v10 = vadd.f32 %v15895_v33, %v7677_v43  ;;  %v6292_v35 = vpop.f32.mrb[170].mxu1  ;;  %v7130_v46 = vpop.f32.mrb[170].mxu0  ;;  %v8085_v49 = vadd.f32 1.0, %v12204_v28  ;;  %v7957_v11 = vmul.f32 1.442695, %v7845_v29  ;;  %v6627_v7 = vsel %vm6554_vm5, %v6624_v47, %v6626_v1 }
 0x660   : > { %v7469_v13 = vsel %vm7400_vm6, %v7466_v25, %v7468_v50  ;;  %v11845_v56 = vpop.f32.mrb[171].mxu0  ;;  %v11661_v3 = vpop.f32.mrb[171].mxu1  ;;  %v6834_v59 = vadd.f32 %v6627_v7, %v16834_v62  ;;  %v6628_v41 = vrot.slane %v6292_v35, 5  ;;  %v7470_v34 = vrot.slane %v7130_v46, 6 }
 0x661   : > { %v7846_v57 = vsub.f32 0.0, %v15954_v10  ;;  %v7678_v44 = vadd.f32 %v7469_v13, %v6832_v24  ;;  %v12206_v55 = vpop.eup %12205  ;;  %12215 = vrcp.f32 %v8085_v49 }
 0x662   : > { %v12208_v32 = vpop.eup %12207  ;;  %v8244_v52 = vmul.f32 %v12206_v55, %v15898_v23  ;;  %12217 = vpow2.f32 %v7957_v11  ;;  %v6629_v12 = vsel %vm6554_vm5, %v6626_v1, %v6628_v41  ;;  %v7471_v54 = vsel %vm7400_vm6, %v7468_v50, %v7470_v34 }
 0x663   : > { %v7959_v39 = vmul.f32 1.442695, %v7846_v57  ;;  %v15963_v60 = vadd.f32 %v15895_v33, %v7678_v44  ;;  %v12210_v37 = vpop.eup %12209  ;;  %v6835_v23 = vadd.f32 %v6629_v12, %v15197_v18  ;;  %v7679_v9 = vadd.f32 %v7471_v54, %v6833_v30 }
 0x664   : > { %v9611_v24 = vpack.c.bf16 %v8244_v52, %v8243_v20  ;;  %v8086_v6 = vadd.f32 1.0, %v12210_v37  ;;  %v6297_v47 = vpop.f32.mrb[172].mxu1  ;;  %v7135_v25 = vpop.f32.mrb[172].mxu0  ;;  %v8245_v21 = vmul.f32 %v12208_v32, %v15901_v8  ;;  %v16835_v8 = vld [vmem:[#allocation41_spill] sm:$0xff] }
 0x665   : > { %12219 = vpow2.f32 %v7959_v39  ;;  %v7847_v14 = vsub.f32 0.0, %v15963_v60  ;;  %v6630_v0 = vrot.slane %v6297_v47, 5  ;;  %v7472_v31 = vrot.slane %v7135_v25, 6  ;;  %v11664_v15 = vpop.f32.mrb[173].mxu1  ;;  %v11848_v63 = vpop.f32.mrb[173].mxu0 }
 0x666   : > { %9759 = vst [vmem:[%s15712_s5 + $0x60] sm:$0xff] %v9611_v24   ;;  %12221 = vrcp.f32 %v8086_v6  ;;  %v6300_v17 = vpop.f32.mrb[174].mxu1  ;;  %v7138_v26 = vpop.f32.mrb[174].mxu0  ;;  %v15972_v1 = vadd.f32 %v15895_v33, %v7679_v9  ;;  %v16836_v63 = vld [vmem:[#allocation3_spill] sm:$0xff] }
 0x667   : > { %v12212_v36 = vpop.eup %12211  ;;  %v7961_v43 = vmul.f32 1.442695, %v7847_v14  ;;  %v6631_v18 = vsel %vm6554_vm5, %v6628_v41, %v6630_v0  ;;  %v7473_v30 = vsel %vm7400_vm6, %v7470_v34, %v7472_v31  ;;  %v11849_v50 = vpop.f32.mrb[175].mxu0  ;;  %v6632_v49 = vrot.slane %v6300_v17, 5 }
 0x668   : > { %v12214_v51 = vpop.eup %12213  ;;  %v8087_v29 = vadd.f32 1.0, %v12212_v36  ;;  %v11665_v53 = vpop.f32.mrb[175].mxu1  ;;  %v6836_v28 = vadd.f32 %v6631_v18, %v16835_v8  ;;  %v7680_v35 = vadd.f32 %v7473_v30, %v6834_v59  ;;  %v7848_v46 = vsub.f32 0.0, %v15972_v1  ;;  %v16837_v8 = vld [vmem:[#allocation4_spill] sm:$0xff] }
 0x669   : > { %v8246_v42 = vmul.f32 %v12214_v51, %v15912_v22  ;;  %12223 = vpow2.f32 %v7961_v43  ;;  %v7474_v11 = vrot.slane %v7138_v26, 6  ;;  %v6633_v57 = vsel %vm6554_vm5, %v6630_v0, %v6632_v49 }
 0x66a   : > { %v15980_v13 = vadd.f32 %v15895_v33, %v7680_v35  ;;  %v7963_v3 = vmul.f32 1.442695, %v7848_v46  ;;  %12225 = vrcp.f32 %v8087_v29  ;;  %v6837_v59 = vadd.f32 %v6633_v57, %v15214_v4 }
 0x66b   : > { %v9616_v7 = vpack.c.bf16 %v8246_v42, %v8245_v21  ;;  %v12216_v56 = vpop.eup %12215  ;;  %v7475_v62 = vsel %vm7400_vm6, %v7472_v31, %v7474_v11 }
 0x66c   : > { %v12218_v44 = vpop.eup %12217  ;;  %v7849_v22 = vsub.f32 0.0, %v15980_v13  ;;  %v7681_v41 = vadd.f32 %v7475_v62, %v6835_v23  ;;  %v6305_v55 = vpop.f32.mrb[176].mxu1  ;;  %12227 = vpow2.f32 %v7963_v3  ;;  %v8247_v54 = vmul.f32 %v12216_v56, %v15921_v61 }
 0x66d   : > { %9760 = vst [vmem:[%s15712_s5 + $0x68] sm:$0xff] %v9616_v7   ;;  %v7143_v20 = vpop.f32.mrb[176].mxu0  ;;  %v8088_v34 = vadd.f32 1.0, %v12218_v44  ;;  %v6634_v32 = vrot.slane %v6305_v55, 5  ;;  %v11668_v39 = vpop.f32.mrb[177].mxu1 }
 0x66e   : > { %v7476_v52 = vrot.slane %v7143_v20, 6  ;;  %v11852_v37 = vpop.f32.mrb[177].mxu0  ;;  %v7965_v24 = vmul.f32 1.442695, %v7849_v22  ;;  %v15989_v6 = vadd.f32 %v15895_v33, %v7681_v41  ;;  %v6308_v14 = vpop.f32.mrb[178].mxu1  ;;  %v16838_v39 = vld [vmem:[#allocation5_spill] sm:$0xff] }
 0x66f   : > { %v12220_v12 = vpop.eup %12219  ;;  %v7146_v47 = vpop.f32.mrb[178].mxu0  ;;  %12229 = vrcp.f32 %v8088_v34  ;;  %v6635_v25 = vsel %vm6554_vm5, %v6632_v49, %v6634_v32  ;;  %v6636_v43 = vrot.slane %v6308_v14, 5 }
 0x670   : > { %v8089_v4 = vadd.f32 1.0, %v12220_v12  ;;  %v7477_v23 = vsel %vm7400_vm6, %v7474_v11, %v7476_v52  ;;  %v11853_v9 = vpop.f32.mrb[179].mxu0  ;;  %v11669_v0 = vpop.f32.mrb[179].mxu1  ;;  %12231 = vpow2.f32 %v7965_v24  ;;  %v7850_v15 = vsub.f32 0.0, %v15989_v6 }
 0x671   : > { %v12222_v31 = vpop.eup %12221  ;;  %v6838_v61 = vadd.f32 %v6635_v25, %v16836_v63  ;;  %v7682_v36 = vadd.f32 %v7477_v23, %v6836_v28  ;;  %v7478_v17 = vrot.slane %v7146_v47, 6  ;;  %v6637_v50 = vsel %vm6554_vm5, %v6634_v32, %v6636_v43  ;;  %v16839_v0 = vld [vmem:[#allocation6_spill] sm:$0xff] }
 0x672   : > { %v8248_v21 = vmul.f32 %v12222_v31, %v15931_v27  ;;  %12233 = vrcp.f32 %v8089_v4  ;;  %v7967_v51 = vmul.f32 1.442695, %v7850_v15  ;;  %v6839_v27 = vadd.f32 %v6637_v50, %v16837_v8 }
 0x673   : > { %v12224_v26 = vpop.eup %12223  ;;  %v15997_v29 = vadd.f32 %v15895_v33, %v7682_v36  ;;  %v7479_v53 = vsel %vm7400_vm6, %v7476_v52, %v7478_v17 }
 0x674   : > { %v9621_v18 = vpack.c.bf16 %v8248_v21, %v8247_v54  ;;  %v8090_v30 = vadd.f32 1.0, %v12224_v26  ;;  %12235 = vpow2.f32 %v7967_v51  ;;  %v6313_v28 = vpop.f32.mrb[180].mxu1  ;;  %v7151_v35 = vpop.f32.mrb[180].mxu0  ;;  %v7683_v46 = vadd.f32 %v7479_v53, %v6837_v59 }
 0x675   : > { %v7851_v42 = vsub.f32 0.0, %v15997_v29  ;;  %v6638_v49 = vrot.slane %v6313_v28, 5  ;;  %v7480_v11 = vrot.slane %v7151_v35, 6  ;;  %v11672_v7 = vpop.f32.mrb[181].mxu1  ;;  %v11856_v56 = vpop.f32.mrb[181].mxu0 }
 0x676   : > { %9761 = vst [vmem:[%s15712_s5 + $0x70] sm:$0xff] %v9621_v18   ;;  %12237 = vrcp.f32 %v8090_v30  ;;  %v12226_v3 = vpop.eup %12225  ;;  %v6316_v62 = vpop.f32.mrb[182].mxu1  ;;  %v16005_v41 = vadd.f32 %v15895_v33, %v7683_v46 }
 0x677   : > { %v7969_v57 = vmul.f32 1.442695, %v7851_v42  ;;  %v7154_v44 = vpop.f32.mrb[182].mxu0  ;;  %v12228_v22 = vpop.eup %12227  ;;  %v6639_v55 = vsel %vm6554_vm5, %v6636_v43, %v6638_v49  ;;  %v7481_v20 = vsel %vm7400_vm6, %v7478_v17, %v7480_v11  ;;  %v6640_v34 = vrot.slane %v6316_v62, 5  ;;  %v16840_v62 = vld [vmem:[#allocation7_spill] sm:$0xff] }
 0x678   : > { %v11857_v32 = vpop.f32.mrb[183].mxu0  ;;  %v11673_v52 = vpop.f32.mrb[183].mxu1  ;;  %v8091_v59 = vadd.f32 1.0, %v12228_v22  ;;  %v6840_v37 = vadd.f32 %v6639_v55, %v16838_v39  ;;  %v7684_v12 = vadd.f32 %v7481_v20, %v6838_v61  ;;  %v8249_v24 = vmul.f32 %v12226_v3, %v15938_v16 }
 0x679   : > { %12239 = vpow2.f32 %v7969_v57  ;;  %v12230_v54 = vpop.eup %12229  ;;  %v7852_v14 = vsub.f32 0.0, %v16005_v41  ;;  %v6641_v47 = vsel %vm6554_vm5, %v6638_v49, %v6640_v34  ;;  %v7482_v4 = vrot.slane %v7154_v44, 6 }
 0x67a   : > { %v12232_v25 = vpop.eup %12231  ;;  %v8250_v23 = vmul.f32 %v12230_v54, %v15946_v5  ;;  %12241 = vrcp.f32 %v8091_v59  ;;  %v16015_v9 = vadd.f32 %v15895_v33, %v7684_v12  ;;  %v6841_v31 = vadd.f32 %v6641_v47, %v16839_v0  ;;  %v16841_v59 = vld [vmem:[#allocation8_spill] sm:$0xff] }
 0x67b   : > { %v8092_v63 = vadd.f32 1.0, %v12232_v25  ;;  %v7971_v61 = vmul.f32 1.442695, %v7852_v14  ;;  %v7483_v16 = vsel %vm7400_vm6, %v7480_v11, %v7482_v4 }
 0x67c   : > { %v12234_v15 = vpop.eup %12233  ;;  %v9626_v36 = vpack.c.bf16 %v8250_v23, %v8249_v24  ;;  %v7853_v21 = vsub.f32 0.0, %v16015_v9  ;;  %v7685_v43 = vadd.f32 %v7483_v16, %v6839_v27  ;;  %v6321_v17 = vpop.f32.mrb[184].mxu1 }
 0x67d   : > { %v7159_v26 = vpop.f32.mrb[184].mxu0  ;;  %12243 = vrcp.f32 %v8092_v63  ;;  %v6642_v5 = vrot.slane %v6321_v17, 5  ;;  %v11676_v18 = vpop.f32.mrb[185].mxu1  ;;  %v8251_v53 = vmul.f32 %v12234_v15, %v15954_v10 }
 0x67e   : > { %v7484_v51 = vrot.slane %v7159_v26, 6  ;;  %v11860_v30 = vpop.f32.mrb[185].mxu0  ;;  %v12236_v50 = vpop.eup %12235  ;;  %9762 = vst [vmem:[%s15712_s5 + $0x78] sm:$0xff] %v9626_v36   ;;  %12245 = vpow2.f32 %v7971_v61  ;;  %v7973_v42 = vmul.f32 1.442695, %v7853_v21  ;;  %v16023_v8 = vadd.f32 %v15895_v33, %v7685_v43 }
 0x67f   : > { %v6324_v28 = vpop.f32.mrb[186].mxu1  ;;  %v7162_v35 = vpop.f32.mrb[186].mxu0  ;;  %v8093_v27 = vadd.f32 1.0, %v12236_v50  ;;  %v6643_v49 = vsel %vm6554_vm5, %v6640_v34, %v6642_v5 }
 0x680   : > { %v12238_v46 = vpop.eup %12237  ;;  %v7485_v11 = vsel %vm7400_vm6, %v7482_v4, %v7484_v51  ;;  %v6644_v7 = vrot.slane %v6324_v28, 5  ;;  %v11861_v56 = vpop.f32.mrb[187].mxu0  ;;  %12247 = vpow2.f32 %v7973_v42  ;;  %v7854_v10 = vsub.f32 0.0, %v16023_v8 }
 0x681   : > { %v11677_v3 = vpop.f32.mrb[187].mxu1  ;;  %v8252_v57 = vmul.f32 %v12238_v46, %v15963_v60  ;;  %v6842_v44 = vadd.f32 %v6643_v49, %v16840_v62  ;;  %12249 = vrcp.f32 %v8093_v27  ;;  %v7686_v22 = vadd.f32 %v7485_v11, %v6840_v37 }
 0x682   : > { %v6645_v55 = vsel %vm6554_vm5, %v6642_v5, %v6644_v7  ;;  %v7486_v20 = vrot.slane %v7162_v35, 6  ;;  %v7975_v52 = vmul.f32 1.442695, %v7854_v10 }
 0x683   : > { %v12240_v32 = vpop.eup %12239  ;;  %v9631_v34 = vpack.c.bf16 %v8252_v57, %v8251_v53  ;;  %v6843_v39 = vadd.f32 %v6645_v55, %v16841_v59  ;;  %v16033_v54 = vadd.f32 %v15895_v33, %v7686_v22 }
 0x684   : > { %v8094_v12 = vadd.f32 1.0, %v12240_v32  ;;  %v7487_v60 = vsel %vm7400_vm6, %v7484_v51, %v7486_v20  ;;  %v12242_v24 = vpop.eup %12241  ;;  %12251 = vpow2.f32 %v7975_v52  ;;  %v6329_v47 = vpop.f32.mrb[188].mxu1 }
 0x685   : > { %9763 = vst [vmem:[%s15712_s5 + $0x80] sm:$0xff] %v9631_v34   ;;  %v7687_v14 = vadd.f32 %v7487_v60, %v6841_v31  ;;  %v7167_v37 = vpop.f32.mrb[188].mxu0  ;;  %v7855_v4 = vsub.f32 0.0, %v16033_v54  ;;  %v6646_v25 = vrot.slane %v6329_v47, 5  ;;  %v11680_v23 = vpop.f32.mrb[189].mxu1  ;;  %v8253_v15 = vmul.f32 %v12242_v24, %v15972_v1  ;;  %v16842_v1 = vld [vmem:[#allocation9_spill] sm:$0xff] }
 0x686   : > { %12253 = vrcp.f32 %v8094_v12  ;;  %v11864_v0 = vpop.f32.mrb[189].mxu0  ;;  %v7488_v61 = vrot.slane %v7167_v37, 6  ;;  %v6332_v16 = vpop.f32.mrb[190].mxu1 }
 0x687   : > { %v16040_v63 = vadd.f32 %v15895_v33, %v7687_v14  ;;  %v7170_v36 = vpop.f32.mrb[190].mxu0  ;;  %v12244_v21 = vpop.eup %12243  ;;  %v7977_v43 = vmul.f32 1.442695, %v7855_v4  ;;  %v6647_v31 = vsel %vm6554_vm5, %v6644_v7, %v6646_v25  ;;  %v6648_v17 = vrot.slane %v6332_v16, 5  ;;  %v16843_v7 = vld [vmem:[#allocation10_spill] sm:$0xff] }
 0x688   : > { %v7490_v26 = vrot.slane %v7170_v36, 6  ;;  %v11865_v5 = vpop.f32.mrb[191].mxu0  ;;  %v11681_v51 = vpop.f32.mrb[191].mxu1  ;;  %v8254_v30 = vmul.f32 %v12244_v21, %v15980_v13  ;;  %v6844_v53 = vadd.f32 %v6647_v31, %v16842_v1  ;;  %v7489_v42 = vsel %vm7400_vm6, %v7486_v20, %v7488_v61 }
 0x689   : > { %v12246_v18 = vpop.eup %12245  ;;  %v7856_v50 = vsub.f32 0.0, %v16040_v63  ;;  %12255 = vpow2.f32 %v7977_v43  ;;  %v7688_v35 = vadd.f32 %v7489_v42, %v6842_v44  ;;  %v6649_v46 = vsel %vm6554_vm5, %v6646_v25, %v6648_v17 }
 0x68a   : > { %v8095_v28 = vadd.f32 1.0, %v12246_v18  ;;  %v12248_v27 = vpop.eup %12247  ;;  %v9636_v49 = vpack.c.bf16 %v8254_v30, %v8253_v15  ;;  %v6845_v56 = vadd.f32 %v6649_v46, %v16843_v7  ;;  %v7491_v3 = vsel %vm7400_vm6, %v7488_v61, %v7490_v26  ;;  %v16844_v61 = vld [vmem:[#allocation11_spill] sm:$0xff] }
 0x68b   : > { %v7979_v11 = vmul.f32 1.442695, %v7856_v50  ;;  %v12250_v13 = vpop.eup %12249  ;;  %v8096_v57 = vadd.f32 1.0, %v12248_v27  ;;  %v16051_v10 = vadd.f32 %v15895_v33, %v7688_v35  ;;  %v7689_v62 = vadd.f32 %v7491_v3, %v6843_v39 }
 0x68c   : > { %12257 = vrcp.f32 %v8095_v28  ;;  %9764 = vst [vmem:[%s15712_s5 + $0x88] sm:$0xff] %v9636_v49   ;;  %v6337_v22 = vpop.f32.mrb[192].mxu1  ;;  %v7175_v44 = vpop.f32.mrb[192].mxu0  ;;  %v8255_v12 = vmul.f32 %v12250_v13, %v15989_v6 }
 0x68d   : > { %12259 = vpow2.f32 %v7979_v11  ;;  %v7857_v55 = vsub.f32 0.0, %v16051_v10  ;;  %v16056_v20 = vadd.f32 %v15895_v33, %v7689_v62  ;;  %v6650_v32 = vrot.slane %v6337_v22, 5  ;;  %v11684_v34 = vpop.f32.mrb[193].mxu1  ;;  %v11868_v52 = vpop.f32.mrb[193].mxu0 }
 0x68e   : > { %12261 = vrcp.f32 %v8096_v57  ;;  %v12252_v59 = vpop.eup %12251  ;;  %v7492_v60 = vrot.slane %v7175_v44, 6  ;;  %v6340_v24 = vpop.f32.mrb[194].mxu1 }
 0x68f   : > { %v7178_v14 = vpop.f32.mrb[194].mxu0  ;;  %v8097_v47 = vadd.f32 1.0, %v12252_v59  ;;  %v7981_v37 = vmul.f32 1.442695, %v7857_v55  ;;  %v7858_v4 = vsub.f32 0.0, %v16056_v20  ;;  %v6651_v25 = vsel %vm6554_vm5, %v6648_v17, %v6650_v32  ;;  %v11685_v0 = vpop.f32.mrb[195].mxu1 }
 0x690   : > { %v12254_v39 = vpop.eup %12253  ;;  %v11869_v23 = vpop.f32.mrb[195].mxu0  ;;  %v6846_v16 = vadd.f32 %v6651_v25, %v16844_v61  ;;  %v7493_v36 = vsel %vm7400_vm6, %v7490_v26, %v7492_v60  ;;  %v6652_v6 = vrot.slane %v6340_v24, 5  ;;  %v7494_v31 = vrot.slane %v7178_v14, 6  ;;  %v16847_v61 = vld [vmem:[#allocation14_spill] sm:$0xff] }
 0x691   : > { %v8256_v15 = vmul.f32 %v12254_v39, %v15997_v29  ;;  %12263 = vrcp.f32 %v8097_v47  ;;  %v7983_v21 = vmul.f32 1.442695, %v7858_v4  ;;  %v7690_v43 = vadd.f32 %v7493_v36, %v6844_v53  ;;  %v16845_v29 = vld [vmem:[#allocation12_spill] sm:$0xff] }
 0x692   : > { %12265 = vpow2.f32 %v7981_v37  ;;  %v6653_v51 = vsel %vm6554_vm5, %v6650_v32, %v6652_v6  ;;  %v7495_v50 = vsel %vm7400_vm6, %v7492_v60, %v7494_v31 }
 0x693   : > { %v9641_v5 = vpack.c.bf16 %v8256_v15, %v8255_v12  ;;  %v12256_v18 = vpop.eup %12255  ;;  %12267 = vpow2.f32 %v7983_v21  ;;  %v16066_v17 = vadd.f32 %v15895_v33, %v7690_v43  ;;  %v6847_v30 = vadd.f32 %v6653_v51, %v16845_v29  ;;  %v16846_v12 = vld [vmem:[#allocation13_spill] sm:$0xff] }
 0x694   : > { %v8098_v26 = vadd.f32 1.0, %v12256_v18  ;;  %v7691_v1 = vadd.f32 %v7495_v50, %v6845_v56  ;;  %v6345_v42 = vpop.f32.mrb[196].mxu1  ;;  %v7183_v28 = vpop.f32.mrb[196].mxu0 }
 0x695   : > { %9765 = vst [vmem:[%s15712_s5 + $0x90] sm:$0xff] %v9641_v5   ;;  %v7859_v35 = vsub.f32 0.0, %v16066_v17  ;;  %v6654_v46 = vrot.slane %v6345_v42, 5  ;;  %v7496_v27 = vrot.slane %v7183_v28, 6  ;;  %v11688_v49 = vpop.f32.mrb[197].mxu1  ;;  %v11872_v11 = vpop.f32.mrb[197].mxu0 }
 0x696   : > { %v12258_v53 = vpop.eup %12257  ;;  %12269 = vrcp.f32 %v8098_v26  ;;  %v16074_v13 = vadd.f32 %v15895_v33, %v7691_v1  ;;  %v6348_v57 = vpop.f32.mrb[198].mxu1  ;;  %v16848_v11 = vld [vmem:[#allocation15_spill] sm:$0xff] }
 0x697   : > { %v12260_v7 = vpop.eup %12259  ;;  %v8257_v3 = vmul.f32 %v12258_v53, %v16005_v41  ;;  %v7186_v62 = vpop.f32.mrb[198].mxu0  ;;  %v7985_v44 = vmul.f32 1.442695, %v7859_v35  ;;  %v6655_v55 = vsel %vm6554_vm5, %v6652_v6, %v6654_v46  ;;  %v7497_v32 = vsel %vm7400_vm6, %v7494_v31, %v7496_v27 }
 0x698   : > { %v12262_v22 = vpop.eup %12261  ;;  %v8099_v56 = vadd.f32 1.0, %v12260_v7  ;;  %v11873_v34 = vpop.f32.mrb[199].mxu0  ;;  %v7860_v41 = vsub.f32 0.0, %v16074_v13  ;;  %v6848_v60 = vadd.f32 %v6655_v55, %v16846_v12  ;;  %v7692_v24 = vadd.f32 %v7497_v32, %v6846_v16 }
 0x699   : > { %v11689_v52 = vpop.f32.mrb[199].mxu1  ;;  %v8258_v59 = vmul.f32 %v12262_v22, %v16015_v9  ;;  %v6656_v14 = vrot.slane %v6348_v57, 5  ;;  %v7498_v39 = vrot.slane %v7186_v62, 6  ;;  %12271 = vpow2.f32 %v7985_v44  ;;  %v16849_v34 = vld [vmem:[#allocation16_spill] sm:$0xff] }
 0x69a   : > { %v7987_v37 = vmul.f32 1.442695, %v7860_v41  ;;  %v16082_v4 = vadd.f32 %v15895_v33, %v7692_v24  ;;  %12273 = vrcp.f32 %v8099_v56 }
 0x69b   : > { %v9646_v47 = vpack.c.bf16 %v8258_v59, %v8257_v3  ;;  %v12264_v25 = vpop.eup %12263  ;;  %v6657_v23 = vsel %vm6554_vm5, %v6654_v46, %v6656_v14  ;;  %v7499_v0 = vsel %vm7400_vm6, %v7496_v27, %v7498_v39 }
 0x69c   : > { %v12266_v9 = vpop.eup %12265  ;;  %12275 = vpow2.f32 %v7987_v37  ;;  %v7861_v15 = vsub.f32 0.0, %v16082_v4  ;;  %v6849_v16 = vadd.f32 %v6657_v23, %v16847_v61  ;;  %v6353_v36 = vpop.f32.mrb[200].mxu1  ;;  %v7693_v31 = vadd.f32 %v7499_v0, %v6847_v30 }
 0x69d   : > { %9766 = vst [vmem:[%s15712_s5 + $0x98] sm:$0xff] %v9646_v47   ;;  %v7191_v6 = vpop.f32.mrb[200].mxu0  ;;  %v12268_v21 = vpop.eup %12267  ;;  %v8100_v43 = vadd.f32 1.0, %v12266_v9  ;;  %v6658_v5 = vrot.slane %v6353_v36, 5  ;;  %v8259_v50 = vmul.f32 %v12264_v25, %v16023_v8 }
 0x69e   : > { %v7500_v51 = vrot.slane %v7191_v6, 6  ;;  %v11692_v18 = vpop.f32.mrb[201].mxu1  ;;  %v11876_v29 = vpop.f32.mrb[201].mxu0  ;;  %v7989_v26 = vmul.f32 1.442695, %v7861_v15  ;;  %v16091_v28 = vadd.f32 %v15895_v33, %v7693_v31  ;;  %v8101_v49 = vadd.f32 1.0, %v12268_v21 }
 0x69f   : > { %v6356_v1 = vpop.f32.mrb[202].mxu1  ;;  %v7194_v42 = vpop.f32.mrb[202].mxu0  ;;  %12277 = vrcp.f32 %v8100_v43  ;;  %v6659_v53 = vsel %vm6554_vm5, %v6656_v14, %v6658_v5 }
 0x6a0   : > { %v7501_v35 = vsel %vm7400_vm6, %v7498_v39, %v7500_v51  ;;  %v11877_v46 = vpop.f32.mrb[203].mxu0  ;;  %v11693_v27 = vpop.f32.mrb[203].mxu1  ;;  %v6850_v7 = vadd.f32 %v6659_v53, %v16848_v11  ;;  %v6660_v57 = vrot.slane %v6356_v1, 5  ;;  %12279 = vpow2.f32 %v7989_v26 }
 0x6a1   : > { %v12270_v30 = vpop.eup %12269  ;;  %v7694_v3 = vadd.f32 %v7501_v35, %v6848_v60  ;;  %v7862_v62 = vsub.f32 0.0, %v16091_v28  ;;  %v7502_v22 = vrot.slane %v7194_v42, 6  ;;  %12281 = vrcp.f32 %v8101_v49  ;;  %v16116_v35 = vld [vmem:[%s15585_s25] ss:$0 sm:$0xff] }
 0x6a2   : > { %v8260_v8 = vmul.f32 %v12270_v30, %v16033_v54  ;;  %v6661_v44 = vsel %vm6554_vm5, %v6658_v5, %v6660_v57 }
 0x6a3   : > { %v16099_v56 = vadd.f32 %v15895_v33, %v7694_v3  ;;  %v7991_v32 = vmul.f32 1.442695, %v7862_v62  ;;  %v6851_v52 = vadd.f32 %v6661_v44, %v16849_v34  ;;  %v7503_v59 = vsel %vm7400_vm6, %v7500_v51, %v7502_v22  ;;  %v12272_v41 = vpop.eup %12271  ;;  %v16850_v51 = vld [vmem:[#allocation17_spill] sm:$0xff] }
 0x6a4   : > { %v9651_v55 = vpack.c.bf16 %v8260_v8, %v8259_v50  ;;  %v7695_v12 = vadd.f32 %v7503_v59, %v6849_v16  ;;  %v6361_v60 = vpop.f32.mrb[204].mxu1  ;;  %v7199_v24 = vpop.f32.mrb[204].mxu0  ;;  %v8102_v39 = vadd.f32 1.0, %v12272_v41 }
 0x6a5   : > { %v7863_v54 = vsub.f32 0.0, %v16099_v56  ;;  %v12274_v14 = vpop.eup %12273  ;;  %12283 = vpow2.f32 %v7991_v32  ;;  %v6662_v47 = vrot.slane %v6361_v60, 5  ;;  %v7504_v37 = vrot.slane %v7199_v24, 6  ;;  %v11696_v25 = vpop.f32.mrb[205].mxu1 }
 0x6a6   : > { %9767 = vst [vmem:[%s15712_s5 + $0xa0] sm:$0xff] %v9651_v55   ;;  %v11880_v23 = vpop.f32.mrb[205].mxu0  ;;  %v12276_v0 = vpop.eup %12275  ;;  %v16107_v15 = vadd.f32 %v15895_v33, %v7695_v12  ;;  %12285 = vrcp.f32 %v8102_v39  ;;  %v8261_v1 = vmul.f32 %v12274_v14, %v16040_v63  ;;  %v16852_v25 = vld [vmem:[#allocation19_spill] sm:$0xff] }
 0x6a7   : > { %v7993_v9 = vmul.f32 1.442695, %v7863_v54  ;;  %v6364_v61 = vpop.f32.mrb[206].mxu1  ;;  %v7202_v36 = vpop.f32.mrb[206].mxu0  ;;  %v8103_v6 = vadd.f32 1.0, %v12276_v0  ;;  %v6663_v16 = vsel %vm6554_vm5, %v6660_v57, %v6662_v47  ;;  %v7505_v21 = vsel %vm7400_vm6, %v7502_v22, %v7504_v37 }
 0x6a8   : > { %v11881_v43 = vpop.f32.mrb[207].mxu0  ;;  %v11697_v31 = vpop.f32.mrb[207].mxu1  ;;  %v7864_v5 = vsub.f32 0.0, %v16107_v15  ;;  %v6852_v18 = vadd.f32 %v6663_v16, %v16850_v51  ;;  %v7696_v29 = vadd.f32 %v7505_v21, %v6850_v7  ;;  %v6664_v33 = vrot.slane %v6364_v61, 5 }
 0x6a9   : > { %12287 = vpow2.f32 %v7993_v9  ;;  %v12278_v50 = vpop.eup %12277  ;;  %v7506_v26 = vrot.slane %v7202_v36, 6 }
 0x6aa   : > { %12289 = vrcp.f32 %v8103_v6  ;;  %v8262_v42 = vmul.f32 %v12278_v50, %v16051_v10  ;;  %v7995_v53 = vmul.f32 1.442695, %v7864_v5  ;;  %v16119_v46 = vadd.f32 %v16116_v35, %v7696_v29  ;;  %v12280_v27 = vpop.eup %12279  ;;  %v16851_v10 = vld [vmem:[#allocation18_spill] sm:$0xff]  ;;  %v16853_v5 = vld [vmem:[#allocation20_spill] sm:$0xff] }
 0x6ab   : > { %v6665_v30 = vsel %vm6554_vm5, %v6662_v47, %v6664_v33  ;;  %v7507_v49 = vsel %vm7400_vm6, %v7504_v37, %v7506_v26  ;;  %v8104_v7 = vadd.f32 1.0, %v12280_v27  ;;  %v12282_v34 = vpop.eup %12281 }
 0x6ac   : > { %v9656_v11 = vpack.c.bf16 %v8262_v42, %v8261_v1  ;;  %12291 = vpow2.f32 %v7995_v53  ;;  %v7865_v3 = vsub.f32 0.0, %v16119_v46  ;;  %v6369_v63 = vpop.f32.mrb[208].mxu1  ;;  %v7207_v57 = vpop.f32.mrb[208].mxu0  ;;  %v6853_v8 = vadd.f32 %v6665_v30, %v16851_v10 }
 0x6ad   : > { %v7697_v62 = vadd.f32 %v7507_v49, %v6851_v52  ;;  %v6666_v22 = vrot.slane %v6369_v63, 5  ;;  %v7508_v44 = vrot.slane %v7207_v57, 6  ;;  %v11700_v55 = vpop.f32.mrb[209].mxu1  ;;  %v11884_v32 = vpop.f32.mrb[209].mxu0  ;;  %12293 = vrcp.f32 %v8104_v7 }
 0x6ae   : > { %9768 = vst [vmem:[%s15712_s5 + $0xa8] sm:$0xff] %v9656_v11   ;;  %v7997_v59 = vmul.f32 1.442695, %v7865_v3  ;;  %v6372_v41 = vpop.f32.mrb[210].mxu1  ;;  %v7210_v54 = vpop.f32.mrb[210].mxu0  ;;  %v8263_v61 = vmul.f32 %v12282_v34, %v16056_v20 }
 0x6af   : > { %v12284_v12 = vpop.eup %12283  ;;  %v16127_v60 = vadd.f32 %v16116_v35, %v7697_v62  ;;  %v6667_v24 = vsel %vm6554_vm5, %v6664_v33, %v6666_v22  ;;  %v7509_v14 = vsel %vm7400_vm6, %v7506_v26, %v7508_v44  ;;  %v6668_v39 = vrot.slane %v6372_v41, 5  ;;  %v11885_v52 = vpop.f32.mrb[211].mxu0 }
 0x6b0   : > { %v11701_v47 = vpop.f32.mrb[211].mxu1  ;;  %v8105_v37 = vadd.f32 1.0, %v12284_v12  ;;  %12295 = vpow2.f32 %v7997_v59  ;;  %v6854_v23 = vadd.f32 %v6667_v24, %v16852_v25  ;;  %v7698_v0 = vadd.f32 %v7509_v14, %v6852_v18  ;;  %v12286_v9 = vpop.eup %12285 }
 0x6b1   : > { %v7866_v36 = vsub.f32 0.0, %v16127_v60  ;;  %v6669_v6 = vsel %vm6554_vm5, %v6666_v22, %v6668_v39  ;;  %v7510_v16 = vrot.slane %v7210_v54, 6  ;;  %v8264_v43 = vmul.f32 %v12286_v9, %v16066_v17 }
 0x6b2   : > { %12297 = vrcp.f32 %v8105_v37  ;;  %v16137_v31 = vadd.f32 %v16116_v35, %v7698_v0  ;;  %v6855_v51 = vadd.f32 %v6669_v6, %v16853_v5  ;;  %v16855_v37 = vld [vmem:[#allocation22_spill] sm:$0xff] }
 0x6b3   : > { %v12288_v21 = vpop.eup %12287  ;;  %v7999_v50 = vmul.f32 1.442695, %v7866_v36  ;;  %v7511_v20 = vsel %vm7400_vm6, %v7508_v44, %v7510_v16  ;;  %v9661_v33 = vpack.c.bf16 %v8264_v43, %v8263_v61 }
 0x6b4   : > { %v12290_v29 = vpop.eup %12289  ;;  %v8106_v18 = vadd.f32 1.0, %v12288_v21  ;;  %v7867_v26 = vsub.f32 0.0, %v16137_v31  ;;  %v7699_v1 = vadd.f32 %v7511_v20, %v6853_v8  ;;  %v6377_v42 = vpop.f32.mrb[212].mxu1 }
 0x6b5   : > { %v7215_v53 = vpop.f32.mrb[212].mxu0  ;;  %v6670_v17 = vrot.slane %v6377_v42, 5  ;;  %v11704_v30 = vpop.f32.mrb[213].mxu1  ;;  %9769 = vst [vmem:[%s15712_s5 + $0xb0] sm:$0xff] %v9661_v33   ;;  %v8265_v7 = vmul.f32 %v12290_v29, %v16074_v13  ;;  %v16854_v13 = vld [vmem:[#allocation21_spill] sm:$0xff] }
 0x6b6   : > { %12299 = vrcp.f32 %v8106_v18  ;;  %v7512_v27 = vrot.slane %v7215_v53, 6  ;;  %v11888_v49 = vpop.f32.mrb[213].mxu0  ;;  %v12292_v11 = vpop.eup %12291  ;;  %v8001_v3 = vmul.f32 1.442695, %v7867_v26  ;;  %v16145_v63 = vadd.f32 %v16116_v35, %v7699_v1 }
 0x6b7   : > { %12301 = vpow2.f32 %v7999_v50  ;;  %v6380_v57 = vpop.f32.mrb[214].mxu1  ;;  %v7218_v10 = vpop.f32.mrb[214].mxu0  ;;  %v8107_v62 = vadd.f32 1.0, %v12292_v11  ;;  %v6671_v8 = vsel %vm6554_vm5, %v6668_v39, %v6670_v17 }
 0x6b8   : > { %v7513_v22 = vsel %vm7400_vm6, %v7510_v16, %v7512_v27  ;;  %v6672_v44 = vrot.slane %v6380_v57, 5  ;;  %v11889_v55 = vpop.f32.mrb[215].mxu0  ;;  %v11705_v32 = vpop.f32.mrb[215].mxu1  ;;  %12303 = vpow2.f32 %v8001_v3  ;;  %v7868_v59 = vsub.f32 0.0, %v16145_v63 }
 0x6b9   : > { %v12294_v34 = vpop.eup %12293  ;;  %v6856_v41 = vadd.f32 %v6671_v8, %v16854_v13  ;;  %v7700_v54 = vadd.f32 %v7513_v22, %v6854_v23  ;;  %12305 = vrcp.f32 %v8107_v62  ;;  %v7514_v14 = vrot.slane %v7218_v10, 6  ;;  %v16857_v32 = vld [vmem:[#allocation24_spill] sm:$0xff] }
 0x6ba   : > { %v8266_v12 = vmul.f32 %v12294_v34, %v16082_v4  ;;  %v6673_v24 = vsel %vm6554_vm5, %v6670_v17, %v6672_v44  ;;  %v12296_v39 = vpop.eup %12295  ;;  %v8003_v52 = vmul.f32 1.442695, %v7868_v59 }
 0x6bb   : > { %v16154_v47 = vadd.f32 %v16116_v35, %v7700_v54  ;;  %v6857_v25 = vadd.f32 %v6673_v24, %v16855_v37  ;;  %v8108_v9 = vadd.f32 1.0, %v12296_v39  ;;  %v7515_v61 = vsel %vm7400_vm6, %v7512_v27, %v7514_v14 }
 0x6bc   : > { %v9666_v0 = vpack.c.bf16 %v8266_v12, %v8265_v7  ;;  %v12298_v36 = vpop.eup %12297  ;;  %12307 = vpow2.f32 %v8003_v52  ;;  %v7701_v23 = vadd.f32 %v7515_v61, %v6855_v51  ;;  %v6385_v6 = vpop.f32.mrb[216].mxu1  ;;  %v16856_v7 = vld [vmem:[#allocation23_spill] sm:$0xff] }
 0x6bd   : > { %v7869_v4 = vsub.f32 0.0, %v16154_v47  ;;  %v7223_v16 = vpop.f32.mrb[216].mxu0  ;;  %12309 = vrcp.f32 %v8108_v9  ;;  %v6674_v21 = vrot.slane %v6385_v6, 5  ;;  %v11708_v5 = vpop.f32.mrb[217].mxu1  ;;  %v8267_v18 = vmul.f32 %v12298_v36, %v16091_v28 }
 0x6be   : > { %9770 = vst [vmem:[%s15712_s5 + $0xb8] sm:$0xff] %v9666_v0   ;;  %v7516_v43 = vrot.slane %v7223_v16, 6  ;;  %v11892_v29 = vpop.f32.mrb[217].mxu0  ;;  %v16162_v20 = vadd.f32 %v16116_v35, %v7701_v23  ;;  %v6388_v33 = vpop.f32.mrb[218].mxu1 }
 0x6bf   : > { %v8005_v50 = vmul.f32 1.442695, %v7869_v4  ;;  %v7226_v26 = vpop.f32.mrb[218].mxu0  ;;  %v6675_v42 = vsel %vm6554_vm5, %v6672_v44, %v6674_v21  ;;  %v6676_v53 = vrot.slane %v6388_v33, 5  ;;  %v11709_v30 = vpop.f32.mrb[219].mxu1  ;;  %v16858_v33 = vld [vmem:[#allocation25_spill] sm:$0xff] }
 0x6c0   : > { %v12300_v1 = vpop.eup %12299  ;;  %v7517_v51 = vsel %vm7400_vm6, %v7514_v14, %v7516_v43  ;;  %v7518_v17 = vrot.slane %v7226_v26, 6  ;;  %v11893_v27 = vpop.f32.mrb[219].mxu0  ;;  %v7870_v28 = vsub.f32 0.0, %v16162_v20  ;;  %v6858_v3 = vadd.f32 %v6675_v42, %v16856_v7 }
 0x6c1   : > { %v12302_v49 = vpop.eup %12301  ;;  %v8268_v11 = vmul.f32 %v12300_v1, %v16099_v56  ;;  %12311 = vpow2.f32 %v8005_v50  ;;  %v7702_v10 = vadd.f32 %v7517_v51, %v6856_v41  ;;  %v6677_v62 = vsel %vm6554_vm5, %v6674_v21, %v6676_v53 }
 0x6c2   : > { %v8109_v57 = vadd.f32 1.0, %v12302_v49  ;;  %v7519_v8 = vsel %vm7400_vm6, %v7516_v43, %v7518_v17  ;;  %v12304_v22 = vpop.eup %12303  ;;  %v8007_v55 = vmul.f32 1.442695, %v7870_v28  ;;  %v6859_v34 = vadd.f32 %v6677_v62, %v16857_v32 }
 0x6c3   : > { %v9671_v44 = vpack.c.bf16 %v8268_v11, %v8267_v18  ;;  %v7703_v59 = vadd.f32 %v7519_v8, %v6857_v25  ;;  %v12306_v13 = vpop.eup %12305  ;;  %v8110_v56 = vadd.f32 1.0, %v12304_v22  ;;  %v16173_v54 = vadd.f32 %v16116_v35, %v7702_v10  ;;  %v16859_v11 = vld [vmem:[#allocation26_spill] sm:$0xff] }
 0x6c4   : > { %12313 = vrcp.f32 %v8109_v57  ;;  %v6393_v12 = vpop.f32.mrb[220].mxu1  ;;  %v7231_v24 = vpop.f32.mrb[220].mxu0  ;;  %v8269_v9 = vmul.f32 %v12306_v13, %v16107_v15 }
 0x6c5   : > { %9771 = vst [vmem:[%s15712_s5 + $0xc0] sm:$0xff] %v9671_v44   ;;  %12315 = vpow2.f32 %v8007_v55  ;;  %v16177_v41 = vadd.f32 %v16116_v35, %v7703_v59  ;;  %v7871_v14 = vsub.f32 0.0, %v16173_v54  ;;  %v6678_v39 = vrot.slane %v6393_v12, 5  ;;  %v11712_v37 = vpop.f32.mrb[221].mxu1  ;;  %v11896_v25 = vpop.f32.mrb[221].mxu0 }
 0x6c6   : > { %12317 = vrcp.f32 %v8110_v56  ;;  %v7520_v52 = vrot.slane %v7231_v24, 6  ;;  %v12308_v0 = vpop.eup %12307  ;;  %v6396_v36 = vpop.f32.mrb[222].mxu1 }
 0x6c7   : > { %v7872_v61 = vsub.f32 0.0, %v16177_v41  ;;  %v7234_v4 = vpop.f32.mrb[222].mxu0  ;;  %v12310_v23 = vpop.eup %12309  ;;  %v8111_v6 = vadd.f32 1.0, %v12308_v0  ;;  %v8009_v16 = vmul.f32 1.442695, %v7871_v14  ;;  %v6679_v21 = vsel %vm6554_vm5, %v6676_v53, %v6678_v39 }
 0x6c8   : > { %v7521_v43 = vsel %vm7400_vm6, %v7518_v17, %v7520_v52  ;;  %v11897_v5 = vpop.f32.mrb[223].mxu0  ;;  %v11713_v29 = vpop.f32.mrb[223].mxu1  ;;  %v8270_v18 = vmul.f32 %v12310_v23, %v16119_v46  ;;  %v6860_v26 = vadd.f32 %v6679_v21, %v16858_v33  ;;  %v6680_v1 = vrot.slane %v6396_v36, 5  ;;  %v16861_v21 = vld [vmem:[#allocation28_spill] sm:$0xff] }
 0x6c9   : > { %v8011_v50 = vmul.f32 1.442695, %v7872_v61  ;;  %v7704_v15 = vadd.f32 %v7521_v43, %v6858_v3  ;;  %12319 = vrcp.f32 %v8111_v6  ;;  %v7522_v42 = vrot.slane %v7234_v4, 6 }
 0x6ca   : > { %v9676_v27 = vpack.c.bf16 %v8270_v18, %v8269_v9  ;;  %12321 = vpow2.f32 %v8009_v16  ;;  %v6681_v17 = vsel %vm6554_vm5, %v6678_v39, %v6680_v1  ;;  %v16860_v9 = vld [vmem:[#allocation27_spill] sm:$0xff] }
 0x6cb   : > { %v12312_v51 = vpop.eup %12311  ;;  %v16187_v30 = vadd.f32 %v16116_v35, %v7704_v15  ;;  %12323 = vpow2.f32 %v8011_v50  ;;  %v7523_v49 = vsel %vm7400_vm6, %v7520_v52, %v7522_v42  ;;  %v6861_v28 = vadd.f32 %v6681_v17, %v16859_v11 }
 0x6cc   : > { %v8112_v53 = vadd.f32 1.0, %v12312_v51  ;;  %9772 = vst [vmem:[%s15712_s5 + $0xc8] sm:$0xff] %v9676_v27   ;;  %v7705_v7 = vadd.f32 %v7523_v49, %v6859_v34  ;;  %v6401_v3 = vpop.f32.mrb[224].mxu1  ;;  %v7239_v57 = vpop.f32.mrb[224].mxu0 }
 0x6cd   : > { %v7873_v46 = vsub.f32 0.0, %v16187_v30  ;;  %v6682_v62 = vrot.slane %v6401_v3, 5  ;;  %v7524_v8 = vrot.slane %v7239_v57, 6  ;;  %v11716_v22 = vpop.f32.mrb[225].mxu1  ;;  %v11900_v44 = vpop.f32.mrb[225].mxu0 }
 0x6ce   : > { %v12314_v10 = vpop.eup %12313  ;;  %12325 = vrcp.f32 %v8112_v53  ;;  %v16196_v13 = vadd.f32 %v16116_v35, %v7705_v7  ;;  %v6404_v56 = vpop.f32.mrb[226].mxu1 }
 0x6cf   : > { %v12316_v55 = vpop.eup %12315  ;;  %v8271_v32 = vmul.f32 %v12314_v10, %v16127_v60  ;;  %v8013_v59 = vmul.f32 1.442695, %v7873_v46  ;;  %v7242_v12 = vpop.f32.mrb[226].mxu0  ;;  %v6683_v34 = vsel %vm6554_vm5, %v6680_v1, %v6682_v62  ;;  %v7525_v39 = vsel %vm7400_vm6, %v7522_v42, %v7524_v8 }
 0x6d0   : > { %v12318_v24 = vpop.eup %12317  ;;  %v8113_v14 = vadd.f32 1.0, %v12316_v55  ;;  %v6684_v52 = vrot.slane %v6404_v56, 5  ;;  %v11901_v37 = vpop.f32.mrb[227].mxu0  ;;  %v7874_v60 = vsub.f32 0.0, %v16196_v13  ;;  %v6862_v61 = vadd.f32 %v6683_v34, %v16860_v9 }
 0x6d1   : > { %v11717_v25 = vpop.f32.mrb[227].mxu1  ;;  %v8272_v0 = vmul.f32 %v12318_v24, %v16137_v31  ;;  %12327 = vpow2.f32 %v8013_v59  ;;  %v7706_v36 = vadd.f32 %v7525_v39, %v6860_v26  ;;  %v7526_v23 = vrot.slane %v7242_v12, 6  ;;  %v16862_v37 = vld [vmem:[#allocation29_spill] sm:$0xff] }
 0x6d2   : > { %v6685_v4 = vsel %vm6554_vm5, %v6682_v62, %v6684_v52  ;;  %v8015_v16 = vmul.f32 1.442695, %v7874_v60  ;;  %12329 = vrcp.f32 %v8113_v14 }
 0x6d3   : > { %v9681_v6 = vpack.c.bf16 %v8272_v0, %v8271_v32  ;;  %v6863_v43 = vadd.f32 %v6685_v4, %v16861_v21  ;;  %v12320_v5 = vpop.eup %12319  ;;  %v16206_v29 = vadd.f32 %v16116_v35, %v7706_v36  ;;  %v7527_v31 = vsel %vm7400_vm6, %v7524_v8, %v7526_v23 }
 0x6d4   : > { %v12322_v18 = vpop.eup %12321  ;;  %12331 = vpow2.f32 %v8015_v16  ;;  %v7707_v50 = vadd.f32 %v7527_v31, %v6861_v28  ;;  %v6409_v33 = vpop.f32.mrb[228].mxu1  ;;  %v8273_v49 = vmul.f32 %v12320_v5, %v16145_v63 }
 0x6d5   : > { %9773 = vst [vmem:[%s15712_s5 + $0xd0] sm:$0xff] %v9681_v6   ;;  %v7247_v26 = vpop.f32.mrb[228].mxu0  ;;  %v12324_v15 = vpop.eup %12323  ;;  %v8114_v1 = vadd.f32 1.0, %v12322_v18  ;;  %v7875_v42 = vsub.f32 0.0, %v16206_v29  ;;  %v6686_v51 = vrot.slane %v6409_v33, 5 }
 0x6d6   : > { %v7528_v27 = vrot.slane %v7247_v26, 6  ;;  %v11720_v53 = vpop.f32.mrb[229].mxu1  ;;  %v11904_v17 = vpop.f32.mrb[229].mxu0  ;;  %v8115_v46 = vadd.f32 1.0, %v12324_v15  ;;  %v16213_v11 = vadd.f32 %v16116_v35, %v7707_v50 }
 0x6d7   : > { %v6412_v7 = vpop.f32.mrb[230].mxu1  ;;  %v7250_v3 = vpop.f32.mrb[230].mxu0  ;;  %12333 = vrcp.f32 %v8114_v1  ;;  %v8017_v28 = vmul.f32 1.442695, %v7875_v42  ;;  %v6687_v10 = vsel %vm6554_vm5, %v6684_v52, %v6686_v51  ;;  %v16863_v42 = vld [vmem:[#allocation30_spill] sm:$0xff] }
 0x6d8   : > { %v12326_v57 = vpop.eup %12325  ;;  %v7529_v62 = vsel %vm7400_vm6, %v7526_v23, %v7528_v27  ;;  %v11905_v8 = vpop.f32.mrb[231].mxu0  ;;  %12335 = vrcp.f32 %v8115_v46  ;;  %v7876_v63 = vsub.f32 0.0, %v16213_v11  ;;  %v6864_v55 = vadd.f32 %v6687_v10, %v15440_v2 }
 0x6d9   : > { %v11721_v22 = vpop.f32.mrb[231].mxu1  ;;  %v8274_v44 = vmul.f32 %v12326_v57, %v16154_v47  ;;  %12337 = vpow2.f32 %v8017_v28  ;;  %v7708_v32 = vadd.f32 %v7529_v62, %v6862_v61  ;;  %v6688_v59 = vrot.slane %v6412_v7, 5 }
 0x6da   : > { %v7530_v56 = vrot.slane %v7250_v3, 6  ;;  %v8019_v14 = vmul.f32 1.442695, %v7876_v63 }
 0x6db   : > { %v12328_v12 = vpop.eup %12327  ;;  %v9686_v24 = vpack.c.bf16 %v8274_v44, %v8273_v49  ;;  %v16221_v39 = vadd.f32 %v16116_v35, %v7708_v32  ;;  %v6689_v52 = vsel %vm6554_vm5, %v6686_v51, %v6688_v59  ;;  %v16864_v32 = vld [vmem:[#allocation31_spill] sm:$0xff] }
 0x6dc   : > { %v8116_v34 = vadd.f32 1.0, %v12328_v12  ;;  %v7531_v47 = vsel %vm7400_vm6, %v7528_v27, %v7530_v56  ;;  %12339 = vpow2.f32 %v8019_v14  ;;  %v6865_v25 = vadd.f32 %v6689_v52, %v16862_v37  ;;  %v6417_v0 = vpop.f32.mrb[232].mxu1  ;;  %v7255_v60 = vpop.f32.mrb[232].mxu0 }
 0x6dd   : > { %9774 = vst [vmem:[%s15712_s5 + $0xd8] sm:$0xff] %v9686_v24   ;;  %v7709_v2 = vadd.f32 %v7531_v47, %v6863_v43  ;;  %v12330_v9 = vpop.eup %12329  ;;  %v7877_v61 = vsub.f32 0.0, %v16221_v39  ;;  %v6690_v36 = vrot.slane %v6417_v0, 5  ;;  %v7532_v4 = vrot.slane %v7255_v60, 6  ;;  %v11724_v23 = vpop.f32.mrb[233].mxu1 }
 0x6de   : > { %12341 = vrcp.f32 %v8116_v34  ;;  %v11908_v6 = vpop.f32.mrb[233].mxu0  ;;  %v12332_v16 = vpop.eup %12331  ;;  %v8275_v49 = vmul.f32 %v12330_v9, %v16162_v20 }
 0x6df   : > { %v16229_v21 = vadd.f32 %v16116_v35, %v7709_v2  ;;  %v6420_v5 = vpop.f32.mrb[234].mxu1  ;;  %v7258_v31 = vpop.f32.mrb[234].mxu0  ;;  %v8117_v18 = vadd.f32 1.0, %v12332_v16  ;;  %v8021_v50 = vmul.f32 1.442695, %v7877_v61  ;;  %v6691_v43 = vsel %vm6554_vm5, %v6688_v59, %v6690_v36 }
 0x6e0   : > { %v7533_v33 = vsel %vm7400_vm6, %v7530_v56, %v7532_v4  ;;  %v11909_v26 = vpop.f32.mrb[235].mxu0  ;;  %v11725_v15 = vpop.f32.mrb[235].mxu1  ;;  %v6866_v51 = vadd.f32 %v6691_v43, %v16863_v42  ;;  %v6692_v53 = vrot.slane %v6420_v5, 5  ;;  %v7534_v46 = vrot.slane %v7258_v31, 6 }
 0x6e1   : > { %v7878_v1 = vsub.f32 0.0, %v16229_v21  ;;  %v7710_v27 = vadd.f32 %v7533_v33, %v6864_v55  ;;  %v12334_v17 = vpop.eup %12333  ;;  %12343 = vrcp.f32 %v8117_v18 }
 0x6e2   : > { %v12336_v7 = vpop.eup %12335  ;;  %v8276_v3 = vmul.f32 %v12334_v17, %v16173_v54  ;;  %12345 = vpow2.f32 %v8021_v50  ;;  %v6693_v62 = vsel %vm6554_vm5, %v6690_v36, %v6692_v53  ;;  %v7535_v8 = vsel %vm7400_vm6, %v7532_v4, %v7534_v46 }
 0x6e3   : > { %v8023_v57 = vmul.f32 1.442695, %v7878_v1  ;;  %v16238_v28 = vadd.f32 %v16116_v35, %v7710_v27  ;;  %v12338_v10 = vpop.eup %12337  ;;  %v6867_v54 = vadd.f32 %v6693_v62, %v16864_v32  ;;  %v7711_v59 = vadd.f32 %v7535_v8, %v6865_v25 }
 0x6e4   : > { %v9691_v22 = vpack.c.bf16 %v8276_v3, %v8275_v49  ;;  %v8118_v44 = vadd.f32 1.0, %v12338_v10  ;;  %v6425_v63 = vpop.f32.mrb[236].mxu1  ;;  %v7263_v55 = vpop.f32.mrb[236].mxu0  ;;  %v8277_v52 = vmul.f32 %v12336_v7, %v16177_v41 }
 0x6e5   : > { %12347 = vpow2.f32 %v8023_v57  ;;  %v7879_v20 = vsub.f32 0.0, %v16238_v28  ;;  %v6694_v56 = vrot.slane %v6425_v63, 5  ;;  %v7536_v12 = vrot.slane %v7263_v55, 6  ;;  %v11728_v24 = vpop.f32.mrb[237].mxu1  ;;  %v11912_v14 = vpop.f32.mrb[237].mxu0 }
 0x6e6   : > { %v12340_v34 = vpop.eup %12339  ;;  %9775 = vst [vmem:[%s15712_s5 + $0xe0] sm:$0xff] %v9691_v22   ;;  %12349 = vrcp.f32 %v8118_v44  ;;  %v6428_v37 = vpop.f32.mrb[238].mxu1  ;;  %v16247_v9 = vadd.f32 %v16116_v35, %v7711_v59 }
 0x6e7   : > { %v8025_v47 = vmul.f32 1.442695, %v7879_v20  ;;  %v7266_v2 = vpop.f32.mrb[238].mxu0  ;;  %v8119_v60 = vadd.f32 1.0, %v12340_v34  ;;  %v6695_v61 = vsel %vm6554_vm5, %v6692_v53, %v6694_v56  ;;  %v7537_v25 = vsel %vm7400_vm6, %v7534_v46, %v7536_v12  ;;  %v11729_v4 = vpop.f32.mrb[239].mxu1 }
 0x6e8   : > { %v12342_v0 = vpop.eup %12341  ;;  %v11913_v36 = vpop.f32.mrb[239].mxu0  ;;  %v6868_v41 = vadd.f32 %v6695_v61, %v15474_v19  ;;  %v7712_v6 = vadd.f32 %v7537_v25, %v6866_v51  ;;  %v7880_v16 = vsub.f32 0.0, %v16247_v9  ;;  %v6696_v5 = vrot.slane %v6428_v37, 5 }
 0x6e9   : > { %v8278_v23 = vmul.f32 %v12342_v0, %v16187_v30  ;;  %12351 = vpow2.f32 %v8025_v47  ;;  %v7538_v31 = vrot.slane %v7266_v2, 6 }
 0x6ea   : > { %v16255_v50 = vadd.f32 %v16116_v35, %v7712_v6  ;;  %v8027_v33 = vmul.f32 1.442695, %v7880_v16  ;;  %v6697_v26 = vsel %vm6554_vm5, %v6694_v56, %v6696_v5  ;;  %12353 = vrcp.f32 %v8119_v60 }
 0x6eb   : > { %v9696_v18 = vpack.c.bf16 %v8278_v23, %v8277_v52  ;;  %v12344_v43 = vpop.eup %12343  ;;  %v7539_v15 = vsel %vm7400_vm6, %v7536_v12, %v7538_v31  ;;  %v6869_v30 = vadd.f32 %v6697_v26, %v15482_v38 }
 0x6ec   : > { %v12346_v1 = vpop.eup %12345  ;;  %v7881_v19 = vsub.f32 0.0, %v16255_v50  ;;  %v7713_v42 = vadd.f32 %v7539_v15, %v6867_v54  ;;  %v6433_v51 = vpop.f32.mrb[240].mxu1  ;;  %12355 = vpow2.f32 %v8027_v33  ;;  %v8279_v57 = vmul.f32 %v12344_v43, %v16196_v13 }
 0x6ed   : > { %9776 = vst [vmem:[%s15712_s5 + $0xe8] sm:$0xff] %v9696_v18   ;;  %v7271_v27 = vpop.f32.mrb[240].mxu0  ;;  %v8120_v53 = vadd.f32 1.0, %v12346_v1  ;;  %v6698_v17 = vrot.slane %v6433_v51, 5  ;;  %v11732_v46 = vpop.f32.mrb[241].mxu1 }
 0x6ee   : > { %v7540_v49 = vrot.slane %v7271_v27, 6  ;;  %v11916_v7 = vpop.f32.mrb[241].mxu0  ;;  %v8029_v10 = vmul.f32 1.442695, %v7881_v19  ;;  %v16264_v62 = vadd.f32 %v16116_v35, %v7713_v42  ;;  %v6436_v8 = vpop.f32.mrb[242].mxu1 }
 0x6ef   : > { %v12348_v3 = vpop.eup %12347  ;;  %v7274_v22 = vpop.f32.mrb[242].mxu0  ;;  %12357 = vrcp.f32 %v8120_v53  ;;  %v6699_v44 = vsel %vm6554_vm5, %v6696_v5, %v6698_v17  ;;  %v6700_v12 = vrot.slane %v6436_v8, 5 }
 0x6f0   : > { %v8121_v38 = vadd.f32 1.0, %v12348_v3  ;;  %v7541_v20 = vsel %vm7400_vm6, %v7538_v31, %v7540_v49  ;;  %v11917_v63 = vpop.f32.mrb[243].mxu0  ;;  %v11733_v55 = vpop.f32.mrb[243].mxu1  ;;  %12359 = vpow2.f32 %v8029_v10  ;;  %v7882_v54 = vsub.f32 0.0, %v16264_v62 }
 0x6f1   : > { %v12350_v32 = vpop.eup %12349  ;;  %v6870_v13 = vadd.f32 %v6699_v44, %v15491_v58  ;;  %v7714_v59 = vadd.f32 %v7541_v20, %v6868_v41  ;;  %v7542_v24 = vrot.slane %v7274_v22, 6  ;;  %v6701_v2 = vsel %vm6554_vm5, %v6698_v17, %v6700_v12 }
 0x6f2   : > { %v8280_v56 = vmul.f32 %v12350_v32, %v16206_v29  ;;  %12361 = vrcp.f32 %v8121_v38  ;;  %v8031_v34 = vmul.f32 1.442695, %v7882_v54  ;;  %v6871_v29 = vadd.f32 %v6701_v2, %v15499_v40 }
 0x6f3   : > { %v12352_v14 = vpop.eup %12351  ;;  %v16272_v52 = vadd.f32 %v16116_v35, %v7714_v59  ;;  %v7543_v0 = vsel %vm7400_vm6, %v7540_v49, %v7542_v24 }
 0x6f4   : > { %v9701_v47 = vpack.c.bf16 %v8280_v56, %v8279_v57  ;;  %v8122_v37 = vadd.f32 1.0, %v12352_v14  ;;  %12363 = vpow2.f32 %v8031_v34  ;;  %v6441_v60 = vpop.f32.mrb[244].mxu1  ;;  %v7279_v61 = vpop.f32.mrb[244].mxu0  ;;  %v7715_v25 = vadd.f32 %v7543_v0, %v6869_v30  ;;  %v16865_v57 = vld [vmem:[#allocation32_spill] sm:$0xff] }
 0x6f5   : > { %v7883_v58 = vsub.f32 0.0, %v16272_v52  ;;  %v6702_v36 = vrot.slane %v6441_v60, 5  ;;  %v7544_v4 = vrot.slane %v7279_v61, 6  ;;  %v11736_v23 = vpop.f32.mrb[245].mxu1  ;;  %v11920_v41 = vpop.f32.mrb[245].mxu0 }
 0x6f6   : > { %9777 = vst [vmem:[%s15712_s5 + $0xf0] sm:$0xff] %v9701_v47   ;;  %12365 = vrcp.f32 %v8122_v37  ;;  %v12354_v6 = vpop.eup %12353  ;;  %v6444_v5 = vpop.f32.mrb[246].mxu1  ;;  %v16280_v43 = vadd.f32 %v16116_v35, %v7715_v25 }
 0x6f7   : > { %v8033_v16 = vmul.f32 1.442695, %v7883_v58  ;;  %v7282_v31 = vpop.f32.mrb[246].mxu0  ;;  %v12356_v18 = vpop.eup %12355  ;;  %v6703_v33 = vsel %vm6554_vm5, %v6700_v12, %v6702_v36  ;;  %v7545_v40 = vsel %vm7400_vm6, %v7542_v24, %v7544_v4  ;;  %v6704_v26 = vrot.slane %v6444_v5, 5  ;;  %v16866_v5 = vld [vmem:[#allocation33_spill] sm:$0xff] }
 0x6f8   : > { %v11921_v15 = vpop.f32.mrb[247].mxu0  ;;  %v11737_v1 = vpop.f32.mrb[247].mxu1  ;;  %v8123_v19 = vadd.f32 1.0, %v12356_v18  ;;  %v6872_v30 = vadd.f32 %v6703_v33, %v15508_v48  ;;  %v7716_v42 = vadd.f32 %v7545_v40, %v6870_v13  ;;  %v8281_v27 = vmul.f32 %v12354_v6, %v16213_v11 }
 0x6f9   : > { %12367 = vpow2.f32 %v8033_v16  ;;  %v12358_v51 = vpop.eup %12357  ;;  %v7884_v53 = vsub.f32 0.0, %v16280_v43  ;;  %v6705_v17 = vsel %vm6554_vm5, %v6702_v36, %v6704_v26  ;;  %v7546_v49 = vrot.slane %v7282_v31, 6 }
 0x6fa   : > { %v12360_v46 = vpop.eup %12359  ;;  %v8282_v7 = vmul.f32 %v12358_v51, %v16221_v39  ;;  %12369 = vrcp.f32 %v8123_v19  ;;  %v16290_v3 = vadd.f32 %v16116_v35, %v7716_v42  ;;  %v6873_v10 = vadd.f32 %v6705_v17, %v16865_v57 }
 0x6fb   : > { %v8124_v8 = vadd.f32 1.0, %v12360_v46  ;;  %v8035_v22 = vmul.f32 1.442695, %v7884_v53  ;;  %v7547_v11 = vsel %vm7400_vm6, %v7544_v4, %v7546_v49 }
 0x6fc   : > { %v12362_v48 = vpop.eup %12361  ;;  %v9706_v38 = vpack.c.bf16 %v8282_v7, %v8281_v27  ;;  %v7885_v44 = vsub.f32 0.0, %v16290_v3  ;;  %v7717_v20 = vadd.f32 %v7547_v11, %v6871_v29  ;;  %v6449_v63 = vpop.f32.mrb[248].mxu1 }
 0x6fd   : > { %v7287_v55 = vpop.f32.mrb[248].mxu0  ;;  %12371 = vrcp.f32 %v8124_v8  ;;  %v6706_v39 = vrot.slane %v6449_v63, 5  ;;  %v11740_v54 = vpop.f32.mrb[249].mxu1  ;;  %v8283_v56 = vmul.f32 %v12362_v48, %v16229_v21 }
 0x6fe   : > { %v7548_v32 = vrot.slane %v7287_v55, 6  ;;  %v11924_v13 = vpop.f32.mrb[249].mxu0  ;;  %v12364_v59 = vpop.eup %12363  ;;  %9778 = vst [vmem:[%s15712_s5 + $0xf8] sm:$0xff] %v9706_v38   ;;  %12373 = vpow2.f32 %v8035_v22  ;;  %v8037_v12 = vmul.f32 1.442695, %v7885_v44  ;;  %v16298_v24 = vadd.f32 %v16116_v35, %v7717_v20 }
 0x6ff   : > { %v6452_v14 = vpop.f32.mrb[250].mxu1  ;;  %v7290_v34 = vpop.f32.mrb[250].mxu0  ;;  %v8125_v37 = vadd.f32 1.0, %v12364_v59  ;;  %v6707_v2 = vsel %vm6554_vm5, %v6704_v26, %v6706_v39 }
 0x700   : > { %v12366_v47 = vpop.eup %12365  ;;  %v7549_v0 = vsel %vm7400_vm6, %v7546_v49, %v7548_v32  ;;  %v6708_v58 = vrot.slane %v6452_v14, 5  ;;  %v11925_v29 = vpop.f32.mrb[251].mxu0  ;;  %12375 = vpow2.f32 %v8037_v12  ;;  %v7886_v21 = vsub.f32 0.0, %v16298_v24 }
 0x701   : > { %v11741_v60 = vpop.f32.mrb[251].mxu1  ;;  %v8284_v61 = vmul.f32 %v12366_v47, %v16238_v28  ;;  %v6874_v25 = vadd.f32 %v6707_v2, %v15525_v45  ;;  %12377 = vrcp.f32 %v8125_v37  ;;  %v7718_v36 = vadd.f32 %v7549_v0, %v6872_v30 }
 0x702   : > { %v6709_v4 = vsel %vm6554_vm5, %v6706_v39, %v6708_v58  ;;  %v7550_v23 = vrot.slane %v7290_v34, 6  ;;  %v8039_v16 = vmul.f32 1.442695, %v7886_v21 }
 0x703   : > { %v12368_v41 = vpop.eup %12367  ;;  %v9711_v6 = vpack.c.bf16 %v8284_v61, %v8283_v56  ;;  %v6875_v31 = vadd.f32 %v6709_v4, %v16866_v5  ;;  %v16308_v33 = vadd.f32 %v16116_v35, %v7718_v36  ;;  %v16868_v56 = vld [vmem:[#allocation35_spill] sm:$0xff] }
 0x704   : > { %v8126_v18 = vadd.f32 1.0, %v12368_v41  ;;  %v7551_v28 = vsel %vm7400_vm6, %v7548_v32, %v7550_v23  ;;  %v12370_v40 = vpop.eup %12369  ;;  %12379 = vpow2.f32 %v8039_v16  ;;  %v6457_v26 = vpop.f32.mrb[252].mxu1 }
 0x705   : > { %9779 = vst [vmem:[%s15712_s5 + $0x100] sm:$0xff] %v9711_v6   ;;  %v7719_v45 = vadd.f32 %v7551_v28, %v6873_v10  ;;  %v7295_v15 = vpop.f32.mrb[252].mxu0  ;;  %v7887_v1 = vsub.f32 0.0, %v16308_v33  ;;  %v6710_v19 = vrot.slane %v6457_v26, 5  ;;  %v11744_v30 = vpop.f32.mrb[253].mxu1  ;;  %v8285_v51 = vmul.f32 %v12370_v40, %v16247_v9  ;;  %v16867_v9 = vld [vmem:[#allocation34_spill] sm:$0xff] }
 0x706   : > { %12381 = vrcp.f32 %v8126_v18  ;;  %v11928_v42 = vpop.f32.mrb[253].mxu0  ;;  %v7552_v53 = vrot.slane %v7295_v15, 6  ;;  %v6460_v17 = vpop.f32.mrb[254].mxu1 }
 0x707   : > { %v16315_v27 = vadd.f32 %v16116_v35, %v7719_v45  ;;  %v7298_v49 = vpop.f32.mrb[254].mxu0  ;;  %v12372_v46 = vpop.eup %12371  ;;  %v8041_v7 = vmul.f32 1.442695, %v7887_v1  ;;  %v6711_v57 = vsel %vm6554_vm5, %v6708_v58, %v6710_v19  ;;  %v6712_v10 = vrot.slane %v6460_v17, 5  ;;  %v16869_v45 = vld [vmem:[#allocation36_spill] sm:$0xff] }
 0x708   : > { %v7554_v48 = vrot.slane %v7298_v49, 6  ;;  %v11929_v8 = vpop.f32.mrb[255].mxu0  ;;  %v11745_v22 = vpop.f32.mrb[255].mxu1  ;;  %v8286_v38 = vmul.f32 %v12372_v46, %v16255_v50  ;;  %v6876_v20 = vadd.f32 %v6711_v57, %v16867_v9  ;;  %v7553_v63 = vsel %vm7400_vm6, %v7550_v23, %v7552_v53  ;;  %v12572_v17 = vld [vmem:[%s15585_s25] ss:$0 sm:$0xff]  ;;  %v16870_v46 = vld [vmem:[#allocation44_spill] sm:$0xff] }
 0x709   : > { %v12374_v11 = vpop.eup %12373  ;;  %v7888_v44 = vsub.f32 0.0, %v16315_v27  ;;  %12383 = vpow2.f32 %v8041_v7  ;;  %v7720_v39 = vadd.f32 %v7553_v63, %v6874_v25  ;;  %v6713_v32 = vsel %vm6554_vm5, %v6710_v19, %v6712_v10  ;;  %s9464_s25 = sshll.u32 (%p12644_p4), %s12632_s15, 2 }
 0x70a   : > { %v8127_v55 = vadd.f32 1.0, %v12374_v11  ;;  %v12376_v54 = vpop.eup %12375  ;;  %v9716_v13 = vpack.c.bf16 %v8286_v38, %v8285_v51  ;;  %v6877_v12 = vadd.f32 %v6713_v32, %v16868_v56  ;;  %v7555_v14 = vsel %vm7400_vm6, %v7552_v53, %v7554_v48  ;;  %s16375_s29 = scalar_lea.vmem (%p12644_p4), %s16550_s3, %s9464_s25 }
 0x70b   : > { %v8043_v59 = vmul.f32 1.442695, %v7888_v44  ;;  %v12378_v50 = vpop.eup %12377  ;;  %v8128_v34 = vadd.f32 1.0, %v12376_v54  ;;  %v16326_v47 = vadd.f32 %v16116_v35, %v7720_v39  ;;  %v7721_v37 = vadd.f32 %v7555_v14, %v6875_v31 }
 0x70c   : > { %12385 = vrcp.f32 %v8127_v55  ;;  %9780 = vst [vmem:[%s15712_s5 + $0x108] sm:$0xff] %v9716_v13   ;;  %v6465_v2 = vpop.f32.mrb[0].mxu1  ;;  %v7303_v0 = vpop.f32.mrb[0].mxu0  ;;  %v8287_v36 = vmul.f32 %v12378_v50, %v16264_v62 }
 0x70d   : > { %12387 = vpow2.f32 %v8043_v59  ;;  %v7889_v58 = vsub.f32 0.0, %v16326_v47  ;;  %v16331_v29 = vadd.f32 %v16116_v35, %v7721_v37  ;;  %v6714_v60 = vrot.slane %v6465_v2, 5  ;;  %v11748_v61 = vpop.f32.mrb[1].mxu1  ;;  %v11932_v21 = vpop.f32.mrb[1].mxu0 }
 0x70e   : > { %12389 = vrcp.f32 %v8128_v34  ;;  %v12380_v25 = vpop.eup %12379  ;;  %v7556_v4 = vrot.slane %v7303_v0, 6  ;;  %v6468_v23 = vpop.f32.mrb[2].mxu1 }
 0x70f   : > { %v7306_v41 = vpop.f32.mrb[2].mxu0  ;;  %v8129_v16 = vadd.f32 1.0, %v12380_v25  ;;  %v8045_v5 = vmul.f32 1.442695, %v7889_v58  ;;  %v7890_v31 = vsub.f32 0.0, %v16331_v29  ;;  %v6715_v18 = vsel %vm6554_vm5, %v6712_v10, %v6714_v60  ;;  %v11749_v35 = vpop.f32.mrb[3].mxu1 }
 0x710   : > { %v12382_v6 = vpop.eup %12381  ;;  %v11933_v28 = vpop.f32.mrb[3].mxu0  ;;  %v6878_v26 = vadd.f32 %v6715_v18, %v16869_v45  ;;  %v7557_v62 = vsel %vm7400_vm6, %v7554_v48, %v7556_v4  ;;  %v6716_v15 = vrot.slane %v6468_v23, 5  ;;  %v7558_v30 = vrot.slane %v7306_v41, 6 }
 0x711   : > { %v8288_v40 = vmul.f32 %v12382_v6, %v16272_v52  ;;  %v8047_v1 = vmul.f32 1.442695, %v7890_v31  ;;  %v7722_v19 = vadd.f32 %v7557_v62, %v6876_v20  ;;  %12391 = vpow2.f32 %v8045_v5 }
 0x712   : > { %v6717_v51 = vsel %vm6554_vm5, %v6714_v60, %v6716_v15  ;;  %12393 = vrcp.f32 %v8129_v16  ;;  %v7559_v7 = vsel %vm7400_vm6, %v7556_v4, %v7558_v30 }
 0x713   : > { %v9721_v42 = vpack.c.bf16 %v8288_v40, %v8287_v36  ;;  %v12384_v53 = vpop.eup %12383  ;;  %v16341_v49 = vadd.f32 %v12572_v17, %v7722_v19  ;;  %v6879_v52 = vadd.f32 %v6717_v51, %v16870_v46  ;;  %12395 = vpow2.f32 %v8047_v1 }
 0x714   : > { %v8130_v57 = vadd.f32 1.0, %v12384_v53  ;;  %v7723_v10 = vadd.f32 %v7559_v7, %v6877_v12  ;;  %v7311_v48 = vpop.f32.mrb[4].mxu0 }
 0x715   : > { %9781 = vst [vmem:[%s15712_s5 + $0x110] sm:$0xff] %v9721_v42   ;;  %v7891_v22 = vsub.f32 0.0, %v16341_v49  ;;  %v7560_v11 = vrot.slane %v7311_v48, 6  ;;  %v11936_v38 = vpop.f32.mrb[5].mxu0 }
 0x716   : > { %v12386_v8 = vpop.eup %12385  ;;  %12397 = vrcp.f32 %v8130_v57  ;;  %v16347_v9 = vadd.f32 %v12572_v17, %v7723_v10  ;;  %v7314_v20 = vpop.f32.mrb[6].mxu0  ;;  %v8740_v38 = vld [vmem:[%s15712_s5 + $0x14] sm:$0xf] (%p12644_p4) }
 0x717   : > { %v12388_v44 = vpop.eup %12387  ;;  %v8049_v55 = vmul.f32 1.442695, %v7891_v22  ;;  %v7561_v39 = vsel %vm7400_vm6, %v7558_v30, %v7560_v11  ;;  %v7562_v32 = vrot.slane %v7314_v20, 6  ;;  %v11937_v54 = vpop.f32.mrb[7].mxu0  ;;  %v8289_v13 = vmul.f32 %v12386_v8, %v16280_v43  ;;  %v8734_v8 = vld [vmem:[%s15712_s5 + $0x8] sm:$0xf] (%p12644_p4) }
 0x718   : > { %v12390_v63 = vpop.eup %12389  ;;  %v7892_v56 = vsub.f32 0.0, %v16347_v9  ;;  %v7724_v12 = vadd.f32 %v7561_v39, %v6878_v26  ;;  %v8131_v14 = vadd.f32 1.0, %v12388_v44  ;;  %v8736_v22 = vld [vmem:[%s15712_s5 + $0xc] sm:$0xf] (%p12644_p4)  ;;  %8735 = vst [vmem:[%s16375_s29 + $0x10] sm:$0xf] (%p12644_p4), %v8734_v8 }
 0x719   : > { %v8290_v59 = vmul.f32 %v12390_v63, %v16290_v3  ;;  %v7563_v50 = vsel %vm7400_vm6, %v7560_v11, %v7562_v32  ;;  %12399 = vpow2.f32 %v8049_v55  ;;  %v8738_v11 = vld [vmem:[%s15712_s5 + $0x10] sm:$0xf] (%p12644_p4)  ;;  %8737 = vst [vmem:[%s16375_s29 + $0x18] sm:$0xf] (%p12644_p4), %v8736_v22  ;;  %v8742_v44 = vld [vmem:[%s15712_s5 + $0x18] sm:$0xf] (%p12644_p4) }
 0x71a   : > { %v8051_v37 = vmul.f32 1.442695, %v7892_v56  ;;  %v7812_v2 = vadd.f32 %v12572_v17, %v7724_v12  ;;  %v7725_v0 = vadd.f32 %v7563_v50, %v6879_v52  ;;  %8739 = vst [vmem:[%s16375_s29 + $0x20] sm:$0xf] (%p12644_p4), %v8738_v11  ;;  %8741 = vst [vmem:[%s16375_s29 + $0x28] sm:$0xf] (%p12644_p4), %v8740_v38 }
 0x71b   : > { %v9726_v34 = vpack.c.bf16 %v8290_v59, %v8289_v13  ;;  %v12392_v58 = vpop.eup %12391  ;;  %8743 = vst [vmem:[%s16375_s29 + $0x30] sm:$0xf] (%p12644_p4), %v8742_v44  ;;  %v8746_v20 = vld [vmem:[%s15712_s5 + $0x20] sm:$0xf] (%p12644_p4)  ;;  %v8748_v63 = vld [vmem:[%s15712_s5 + $0x24] sm:$0xf] (%p12644_p4) }
 0x71c   : > { %12401 = vpow2.f32 %v8051_v37  ;;  %v7893_v60 = vsub.f32 0.0, %v7812_v2  ;;  %v12394_v61 = vpop.eup %12393  ;;  %v8132_v43 = vadd.f32 1.0, %v12392_v58  ;;  %v7813_v3 = vadd.f32 %v12572_v17, %v7725_v0  ;;  %v8750_v55 = vld [vmem:[%s15712_s5 + $0x28] sm:$0xf] (%p12644_p4)  ;;  %8747 = vst [vmem:[%s16375_s29 + $0x40] sm:$0xf] (%p12644_p4), %v8746_v20 }
 0x71d   : > { %9782 = vst [vmem:[%s15712_s5 + $0x118] sm:$0xff] %v9726_v34   ;;  %12403 = vrcp.f32 %v8131_v14  ;;  %v12396_v21 = vpop.eup %12395  ;;  %v8291_v23 = vmul.f32 %v12394_v61, %v16298_v24  ;;  %8749 = vst [vmem:[%s16375_s29 + $0x48] sm:$0xf] (%p12644_p4), %v8748_v63  ;;  %v8752_v39 = vld [vmem:[%s15712_s5 + $0x2c] sm:$0xf] (%p12644_p4) }
 0x71e   : > { %v8053_v25 = vmul.f32 1.442695, %v7893_v60  ;;  %12405 = vrcp.f32 %v8132_v43  ;;  %v7894_v36 = vsub.f32 0.0, %v7813_v3  ;;  %v8133_v6 = vadd.f32 1.0, %v12396_v21  ;;  %8751 = vst [vmem:[%s16375_s29 + $0x50] sm:$0xf] (%p12644_p4), %v8750_v55 }
 0x71f   : > { %v8754_v32 = vld [vmem:[%s15712_s5 + $0x30] sm:$0xf] (%p12644_p4)  ;;  %v8756_v54 = vld [vmem:[%s15712_s5 + $0x34] sm:$0xf] (%p12644_p4)  ;;  %8753 = vst [vmem:[%s16375_s29 + $0x58] sm:$0xf] (%p12644_p4), %v8752_v39 }
 0x720   : > { %v12398_v4 = vpop.eup %12397  ;;  %12407 = vpow2.f32 %v8053_v25  ;;  %v8055_v16 = vmul.f32 1.442695, %v7894_v36  ;;  %8755 = vst [vmem:[%s16375_s29 + $0x60] sm:$0xf] (%p12644_p4), %v8754_v32  ;;  %8757 = vst [vmem:[%s16375_s29 + $0x68] sm:$0xf] (%p12644_p4), %v8756_v54 }
 0x721   : > { %v8292_v41 = vmul.f32 %v12398_v4, %v16308_v33  ;;  %v8758_v13 = vld [vmem:[%s15712_s5 + $0x38] sm:$0xf] (%p12644_p4)  ;;  %v8760_v59 = vld [vmem:[%s15712_s5 + $0x3c] sm:$0xf] (%p12644_p4)  ;;  %v8762_v56 = vld [vmem:[%s15712_s5 + $0x40] sm:$0xf] (%p12644_p4) }
 0x722   : > { %12409 = vpow2.f32 %v8055_v16  ;;  %8759 = vst [vmem:[%s16375_s29 + $0x70] sm:$0xf] (%p12644_p4), %v8758_v13  ;;  %8761 = vst [vmem:[%s16375_s29 + $0x78] sm:$0xf] (%p12644_p4), %v8760_v59  ;;  %v8764_v12 = vld [vmem:[%s15712_s5 + $0x44] sm:$0xf] (%p12644_p4) }
 0x723   : > { %v9731_v5 = vpack.c.bf16 %v8292_v41, %v8291_v23  ;;  %v12400_v31 = vpop.eup %12399  ;;  %12411 = vrcp.f32 %v8133_v6  ;;  %8763 = vst [vmem:[%s16375_s29 + $0x80] sm:$0xf] (%p12644_p4), %v8762_v56  ;;  %v8766_v14 = vld [vmem:[%s15712_s5 + $0x48] sm:$0xf] (%p12644_p4)  ;;  %v8768_v50 = vld [vmem:[%s15712_s5 + $0x4c] sm:$0xf] (%p12644_p4) }
 0x724   : > { %v8134_v18 = vadd.f32 1.0, %v12400_v31  ;;  %8765 = vst [vmem:[%s16375_s29 + $0x88] sm:$0xf] (%p12644_p4), %v8764_v12  ;;  %8767 = vst [vmem:[%s16375_s29 + $0x90] sm:$0xf] (%p12644_p4), %v8766_v14 }
 0x725   : > { %9783 = vst [vmem:[%s15712_s5 + $0x120] sm:$0xff] %v9731_v5   ;;  %8769 = vst [vmem:[%s16375_s29 + $0x98] sm:$0xf] (%p12644_p4), %v8768_v50  ;;  %v8770_v34 = vld [vmem:[%s15712_s5 + $0x50] sm:$0xf] (%p12644_p4) }
 0x726   : > { %v12402_v28 = vpop.eup %12401  ;;  %12413 = vrcp.f32 %v8134_v18  ;;  %v8772_v37 = vld [vmem:[%s15712_s5 + $0x54] sm:$0xf] (%p12644_p4)  ;;  %8771 = vst [vmem:[%s16375_s29 + $0xa0] sm:$0xf] (%p12644_p4), %v8770_v34  ;;  %v8776_v0 = vld [vmem:[%s15712_s5 + $0x5c] sm:$0xf] (%p12644_p4) }
 0x727   : > { %v12404_v35 = vpop.eup %12403  ;;  %v8135_v40 = vadd.f32 1.0, %v12402_v28  ;;  %8773 = vst [vmem:[%s16375_s29 + $0xa8] sm:$0xf] (%p12644_p4), %v8772_v37  ;;  %v8778_v58 = vld [vmem:[%s15712_s5 + $0x60] sm:$0xf] (%p12644_p4) }
 0x728   : > { %v12406_v45 = vpop.eup %12405  ;;  %v8293_v26 = vmul.f32 %v12404_v35, %v16315_v27  ;;  %v8780_v60 = vld [vmem:[%s15712_s5 + $0x64] sm:$0xf] (%p12644_p4)  ;;  %8777 = vst [vmem:[%s16375_s29 + $0xb8] sm:$0xf] (%p12644_p4), %v8776_v0  ;;  %8779 = vst [vmem:[%s16375_s29 + $0xc0] sm:$0xf] (%p12644_p4), %v8778_v58 }
 0x729   : > { %v8294_v24 = vmul.f32 %v12406_v45, %v16326_v47  ;;  %12415 = vrcp.f32 %v8135_v40  ;;  %8781 = vst [vmem:[%s16375_s29 + $0xc8] sm:$0xf] (%p12644_p4), %v8780_v60  ;;  %v8782_v61 = vld [vmem:[%s15712_s5 + $0x68] sm:$0xf] (%p12644_p4)  ;;  %v8784_v43 = vld [vmem:[%s15712_s5 + $0x6c] sm:$0xf] (%p12644_p4) }
 0x72a   : > { %v12408_v33 = vpop.eup %12407  ;;  %8783 = vst [vmem:[%s16375_s29 + $0xd0] sm:$0xf] (%p12644_p4), %v8782_v61  ;;  %8785 = vst [vmem:[%s16375_s29 + $0xd8] sm:$0xf] (%p12644_p4), %v8784_v43  ;;  %v8788_v21 = vld [vmem:[%s15712_s5 + $0x74] sm:$0xf] (%p12644_p4) }
 0x72b   : > { %v9736_v62 = vpack.c.bf16 %v8294_v24, %v8293_v26  ;;  %v8136_v15 = vadd.f32 1.0, %v12408_v33  ;;  %v8790_v25 = vld [vmem:[%s15712_s5 + $0x78] sm:$0xf] (%p12644_p4)  ;;  %v8792_v36 = vld [vmem:[%s15712_s5 + $0x7c] sm:$0xf] (%p12644_p4) }
 0x72c   : > { %v12410_v1 = vpop.eup %12409  ;;  %8789 = vst [vmem:[%s16375_s29 + $0xe8] sm:$0xf] (%p12644_p4), %v8788_v21  ;;  %8791 = vst [vmem:[%s16375_s29 + $0xf0] sm:$0xf] (%p12644_p4), %v8790_v25  ;;  %v8794_v4 = vld [vmem:[%s15712_s5 + $0x80] sm:$0xf] (%p12644_p4) }
 0x72d   : > { %9784 = vst [vmem:[%s15712_s5 + $0x128] sm:$0xff] %v9736_v62   ;;  %12417 = vrcp.f32 %v8136_v15  ;;  %v8137_v19 = vadd.f32 1.0, %v12410_v1  ;;  %v12412_v30 = vpop.eup %12411  ;;  %8793 = vst [vmem:[%s16375_s29 + $0xf8] sm:$0xf] (%p12644_p4), %v8792_v36  ;;  %v8796_v23 = vld [vmem:[%s15712_s5 + $0x84] sm:$0xf] (%p12644_p4) }
 0x72e   : > { %v8295_v51 = vmul.f32 %v12412_v30, %v16331_v29  ;;  %v8730_v29 = vld [vmem:[%s15712_s5] sm:$0xf] (%p12644_p4)  ;;  %v8798_v41 = vld [vmem:[%s15712_s5 + $0x88] sm:$0xf] (%p12644_p4)  ;;  %8795 = vst [vmem:[%s16375_s29 + $0x100] sm:$0xf] (%p12644_p4), %v8794_v4 }
 0x72f   : > { %12419 = vrcp.f32 %v8137_v19  ;;  %8731 = vst [vmem:[%s16375_s29] sm:$0xf] (%p12644_p4), %v8730_v29  ;;  %8797 = vst [vmem:[%s16375_s29 + $0x108] sm:$0xf] (%p12644_p4), %v8796_v23  ;;  %v8800_v6 = vld [vmem:[%s15712_s5 + $0x8c] sm:$0xf] (%p12644_p4) }
 0x730   : > { %v12414_v42 = vpop.eup %12413  ;;  %8799 = vst [vmem:[%s16375_s29 + $0x110] sm:$0xf] (%p12644_p4), %v8798_v41  ;;  %v8802_v16 = vld [vmem:[%s15712_s5 + $0x90] sm:$0xf] (%p12644_p4)  ;;  %v8804_v5 = vld [vmem:[%s15712_s5 + $0x94] sm:$0xf] (%p12644_p4) }
 0x731   : > { %v8296_v27 = vmul.f32 %v12414_v42, %v16341_v49  ;;  %v8732_v49 = vld [vmem:[%s15712_s5 + $0x4] sm:$0xf] (%p12644_p4)  ;;  %8801 = vst [vmem:[%s16375_s29 + $0x118] sm:$0xf] (%p12644_p4), %v8800_v6  ;;  %8803 = vst [vmem:[%s16375_s29 + $0x120] sm:$0xf] (%p12644_p4), %v8802_v16 }
 0x732   : > { %8733 = vst [vmem:[%s16375_s29 + $0x8] sm:$0xf] (%p12644_p4), %v8732_v49  ;;  %8805 = vst [vmem:[%s16375_s29 + $0x128] sm:$0xf] (%p12644_p4), %v8804_v5  ;;  %v8806_v31 = vld [vmem:[%s15712_s5 + $0x98] sm:$0xf] (%p12644_p4) }
 0x733   : > { %v9741_v53 = vpack.c.bf16 %v8296_v27, %v8295_v51  ;;  %v12416_v47 = vpop.eup %12415  ;;  %v8808_v18 = vld [vmem:[%s15712_s5 + $0x9c] sm:$0xf] (%p12644_p4)  ;;  %v8810_v28 = vld [vmem:[%s15712_s5 + $0xa0] sm:$0xf] (%p12644_p4)  ;;  %8807 = vst [vmem:[%s16375_s29 + $0x130] sm:$0xf] (%p12644_p4), %v8806_v31 }
 0x734   : > { %v8297_v46 = vmul.f32 %v12416_v47, %v16347_v9  ;;  %v8744_v9 = vld [vmem:[%s15712_s5 + $0x1c] sm:$0xf] (%p12644_p4)  ;;  %8809 = vst [vmem:[%s16375_s29 + $0x138] sm:$0xf] (%p12644_p4), %v8808_v18  ;;  %8811 = vst [vmem:[%s16375_s29 + $0x140] sm:$0xf] (%p12644_p4), %v8810_v28 }
 0x735   : > { %9785 = vst [vmem:[%s15712_s5 + $0x130] sm:$0xff] %v9741_v53   ;;  %8745 = vst [vmem:[%s16375_s29 + $0x38] sm:$0xf] (%p12644_p4), %v8744_v9  ;;  %v8812_v35 = vld [vmem:[%s15712_s5 + $0xa4] sm:$0xf] (%p12644_p4) }
 0x736   : > { %v8814_v40 = vld [vmem:[%s15712_s5 + $0xa8] sm:$0xf] (%p12644_p4)  ;;  %v8816_v45 = vld [vmem:[%s15712_s5 + $0xac] sm:$0xf] (%p12644_p4)  ;;  %8813 = vst [vmem:[%s16375_s29 + $0x148] sm:$0xf] (%p12644_p4), %v8812_v35 }
 0x737   : > { %v12418_v17 = vpop.eup %12417  ;;  %8815 = vst [vmem:[%s16375_s29 + $0x150] sm:$0xf] (%p12644_p4), %v8814_v40  ;;  %8817 = vst [vmem:[%s16375_s29 + $0x158] sm:$0xf] (%p12644_p4), %v8816_v45  ;;  %v8818_v26 = vld [vmem:[%s15712_s5 + $0xb0] sm:$0xf] (%p12644_p4) }
 0x738   : > { %v8298_v52 = vmul.f32 %v12418_v17, %v7812_v2  ;;  %8712 = sbr.rel (!%p12644_p4) target bundleno = 1875 (0x753), region = 36  ;;  %v8774_v2 = vld [vmem:[%s15712_s5 + $0x58] sm:$0xf] (%p12644_p4)  ;;  %v8820_v24 = vld [vmem:[%s15712_s5 + $0xb4] sm:$0xf] (%p12644_p4) }
 0x739   : > { %v12420_v7 = vpop.eup %12419  ;;  %8775 = vst [vmem:[%s16375_s29 + $0xb0] sm:$0xf] (%p12644_p4), %v8774_v2  ;;  %v8822_v33 = vld [vmem:[%s15712_s5 + $0xb8] sm:$0xf] (%p12644_p4)  ;;  %8819 = vst [vmem:[%s16375_s29 + $0x160] sm:$0xf] (%p12644_p4), %v8818_v26 }
 0x73a   : > { %v9746_v57 = vpack.c.bf16 %v8298_v52, %v8297_v46  ;;  %v8299_v10 = vmul.f32 %v12420_v7, %v7813_v3  ;;  %v8786_v3 = vld [vmem:[%s15712_s5 + $0x70] sm:$0xf] (%p12644_p4)  ;;  %8821 = vst [vmem:[%s16375_s29 + $0x168] sm:$0xf] (%p12644_p4), %v8820_v24  ;;  %8823 = vst [vmem:[%s16375_s29 + $0x170] sm:$0xf] (%p12644_p4), %v8822_v33 }
 0x73b   : > { %8787 = vst [vmem:[%s16375_s29 + $0xe0] sm:$0xf] (%p12644_p4), %v8786_v3  ;;  %v8824_v62 = vld [vmem:[%s15712_s5 + $0xbc] sm:$0xf] (%p12644_p4)  ;;  %v8826_v15 = vld [vmem:[%s15712_s5 + $0xc0] sm:$0xf] (%p12644_p4) }
 0x73c   : > { %9786 = vst [vmem:[%s15712_s5 + $0x138] sm:$0xff] %v9746_v57   ;;  %v9547_v48 = vpack.c.bf16 %v8299_v10, %v8299_v10  ;;  %v8828_v1 = vld [vmem:[%s15712_s5 + $0xc4] sm:$0xf] (%p12644_p4)  ;;  %8825 = vst [vmem:[%s16375_s29 + $0x178] sm:$0xf] (%p12644_p4), %v8824_v62 }
 0x73d   : > { %8827 = vst [vmem:[%s16375_s29 + $0x180] sm:$0xf] (%p12644_p4), %v8826_v15  ;;  %8829 = vst [vmem:[%s16375_s29 + $0x188] sm:$0xf] (%p12644_p4), %v8828_v1  ;;  %v8830_v19 = vld [vmem:[%s15712_s5 + $0xc8] sm:$0xf] (%p12644_p4) }
 0x73e   : > { %8705 = vst [vmem:[%s15712_s5 + $0x140] sm:$0xf] %v9547_v48  ;;  %v8832_v30 = vld [vmem:[%s15712_s5 + $0xcc] sm:$0xf] (%p12644_p4)  ;;  %v8834_v42 = vld [vmem:[%s15712_s5 + $0xd0] sm:$0xf] (%p12644_p4) }
 0x73f   : > { %8831 = vst [vmem:[%s16375_s29 + $0x190] sm:$0xf] %v8830_v19  ;;  %8833 = vst [vmem:[%s16375_s29 + $0x198] sm:$0xf] %v8832_v30  ;;  %v8836_v51 = vld [vmem:[%s15712_s5 + $0xd4] sm:$0xf] }
 0x740   : > { %8835 = vst [vmem:[%s16375_s29 + $0x1a0] sm:$0xf] %v8834_v42  ;;  %v8838_v27 = vld [vmem:[%s15712_s5 + $0xd8] sm:$0xf]  ;;  %v8840_v53 = vld [vmem:[%s15712_s5 + $0xdc] sm:$0xf] }
 0x741   : > { %8837 = vst [vmem:[%s16375_s29 + $0x1a8] sm:$0xf] %v8836_v51  ;;  %8839 = vst [vmem:[%s16375_s29 + $0x1b0] sm:$0xf] %v8838_v27  ;;  %v8842_v47 = vld [vmem:[%s15712_s5 + $0xe0] sm:$0xf] }
 0x742   : > { %8841 = vst [vmem:[%s16375_s29 + $0x1b8] sm:$0xf] %v8840_v53  ;;  %v8844_v17 = vld [vmem:[%s15712_s5 + $0xe4] sm:$0xf]  ;;  %v8846_v46 = vld [vmem:[%s15712_s5 + $0xe8] sm:$0xf] }
 0x743   : > { %8843 = vst [vmem:[%s16375_s29 + $0x1c0] sm:$0xf] %v8842_v47  ;;  %8845 = vst [vmem:[%s16375_s29 + $0x1c8] sm:$0xf] %v8844_v17  ;;  %v8848_v52 = vld [vmem:[%s15712_s5 + $0xec] sm:$0xf] }
 0x744   : > { %8847 = vst [vmem:[%s16375_s29 + $0x1d0] sm:$0xf] %v8846_v46  ;;  %v8850_v7 = vld [vmem:[%s15712_s5 + $0xf0] sm:$0xf]  ;;  %v8852_v57 = vld [vmem:[%s15712_s5 + $0xf4] sm:$0xf] }
 0x745   : > { %8849 = vst [vmem:[%s16375_s29 + $0x1d8] sm:$0xf] %v8848_v52  ;;  %8851 = vst [vmem:[%s16375_s29 + $0x1e0] sm:$0xf] %v8850_v7  ;;  %v8854_v10 = vld [vmem:[%s15712_s5 + $0xf8] sm:$0xf] }
 0x746   : > { %8853 = vst [vmem:[%s16375_s29 + $0x1e8] sm:$0xf] %v8852_v57  ;;  %v8856_v48 = vld [vmem:[%s15712_s5 + $0xfc] sm:$0xf]  ;;  %v8858_v29 = vld [vmem:[%s15712_s5 + $0x100] sm:$0xf] }
 0x747   : > { %8855 = vst [vmem:[%s16375_s29 + $0x1f0] sm:$0xf] %v8854_v10  ;;  %8857 = vst [vmem:[%s16375_s29 + $0x1f8] sm:$0xf] %v8856_v48  ;;  %v8860_v49 = vld [vmem:[%s15712_s5 + $0x104] sm:$0xf] }
 0x748   : > { %8859 = vst [vmem:[%s16375_s29 + $0x200] sm:$0xf] %v8858_v29  ;;  %v8862_v8 = vld [vmem:[%s15712_s5 + $0x108] sm:$0xf]  ;;  %v8864_v22 = vld [vmem:[%s15712_s5 + $0x10c] sm:$0xf] }
 0x749   : > { %8861 = vst [vmem:[%s16375_s29 + $0x208] sm:$0xf] %v8860_v49  ;;  %8863 = vst [vmem:[%s16375_s29 + $0x210] sm:$0xf] %v8862_v8  ;;  %v8866_v11 = vld [vmem:[%s15712_s5 + $0x110] sm:$0xf] }
 0x74a   : > { %8865 = vst [vmem:[%s16375_s29 + $0x218] sm:$0xf] %v8864_v22  ;;  %v8868_v38 = vld [vmem:[%s15712_s5 + $0x114] sm:$0xf]  ;;  %v8870_v44 = vld [vmem:[%s15712_s5 + $0x118] sm:$0xf] }
 0x74b   : > { %8867 = vst [vmem:[%s16375_s29 + $0x220] sm:$0xf] %v8866_v11  ;;  %8869 = vst [vmem:[%s16375_s29 + $0x228] sm:$0xf] %v8868_v38  ;;  %v8872_v9 = vld [vmem:[%s15712_s5 + $0x11c] sm:$0xf] }
 0x74c   : > { %8871 = vst [vmem:[%s16375_s29 + $0x230] sm:$0xf] %v8870_v44  ;;  %v8874_v20 = vld [vmem:[%s15712_s5 + $0x120] sm:$0xf]  ;;  %v8876_v63 = vld [vmem:[%s15712_s5 + $0x124] sm:$0xf] }
 0x74d   : > { %8873 = vst [vmem:[%s16375_s29 + $0x238] sm:$0xf] %v8872_v9  ;;  %8875 = vst [vmem:[%s16375_s29 + $0x240] sm:$0xf] %v8874_v20  ;;  %v8878_v55 = vld [vmem:[%s15712_s5 + $0x128] sm:$0xf] }
 0x74e   : > { %8877 = vst [vmem:[%s16375_s29 + $0x248] sm:$0xf] %v8876_v63  ;;  %v8880_v39 = vld [vmem:[%s15712_s5 + $0x12c] sm:$0xf]  ;;  %v8882_v32 = vld [vmem:[%s15712_s5 + $0x130] sm:$0xf] }
 0x74f   : > { %8879 = vst [vmem:[%s16375_s29 + $0x250] sm:$0xf] %v8878_v55  ;;  %8881 = vst [vmem:[%s16375_s29 + $0x258] sm:$0xf] %v8880_v39  ;;  %v8884_v54 = vld [vmem:[%s15712_s5 + $0x134] sm:$0xf] }
 0x750   : > { %8883 = vst [vmem:[%s16375_s29 + $0x260] sm:$0xf] %v8882_v32  ;;  %v8886_v13 = vld [vmem:[%s15712_s5 + $0x138] sm:$0xf]  ;;  %v8888_v59 = vld [vmem:[%s15712_s5 + $0x13c] sm:$0xf] }
 0x751   : > { %8885 = vst [vmem:[%s16375_s29 + $0x268] sm:$0xf] %v8884_v54  ;;  %8887 = vst [vmem:[%s16375_s29 + $0x270] sm:$0xf] %v8886_v13  ;;  %v8890_v56 = vld [vmem:[%s15712_s5 + $0x140] sm:$0xf] }
 0x752   : > { %8889 = vst [vmem:[%s16375_s29 + $0x278] sm:$0xf] %v8888_v59  ;;  %8891 = vst [vmem:[%s16375_s29 + $0x280] sm:$0xf] %v8890_v56 }
 0x753 PF: > { %p10_p8 = scmp.ge.s32.totalorder %s12634_s16, 4   ;;  %s16871_s12 = smov %s12591_s13 }
 0x754   : > { %s16872_s13 = smov %s12642_s19  ;;  %s16873_s14 = smov %s12634_s16 }
 0x755   :  { %12 = sbr.rel (!%p10_p8) target bundleno = 2 (0x2), region = 114 }

</bundles_post_ra>
